<compile_context>
chip_gen: v6e
topology: v6e:2x2x1
jax: 0.10.0
libtpu: 0.0.40
codegen_flags: <defaults>
</compile_context>

<pallas_src>
import functools

import jax
import jax.numpy as jnp
import numpy as np
from jax import lax
from jax.experimental import pallas as pl
from jax.experimental.pallas import tpu as pltpu


# ----------------------------------------------------------------------------
# Fused Conv3d(3x3x3, pad=1) + bias + ReLU kernel.
#
# Grid = (Cout_tiles, N, D).  For grid point (j, n, d) the kernel gets the
# three padded depth slabs (depth d, d+1, d+2), each flattened over
# (H+2, W+2) into a row axis of length (H+2)*(W+2)+2 (2 extra zero rows so
# every tap window fits), plus the full 3x3x3xCin x tco weight block.
#
#   out_row r = h*(W+2) + w     consumes    slab_kd row  r + kh*(W+2) + kw
#
# so each of the 27 taps is a contiguous (R, Cin) slice -> MXU matmul,
# accumulated in f32.  Output rows with w in {W, W+1} are junk pad columns
# and are dropped by the caller.
# ----------------------------------------------------------------------------
def _conv3d_kernel(x0_ref, x1_ref, x2_ref, w_ref, b_ref, o_ref, *, R, W):
    Wp = W + 2
    acc = None
    for kd, x_ref in enumerate((x0_ref, x1_ref, x2_ref)):
        for kh in range(3):
            for kw in range(3):
                off = kh * Wp + kw
                a = x_ref[0, 0, pl.ds(off, R), :]        # (R, Cin)   bf16
                wk = w_ref[kd, kh, kw]                   # (Cin, tco) bf16
                p = jnp.dot(a, wk, preferred_element_type=jnp.float32)
                acc = p if acc is None else acc + p
    acc = acc + b_ref[...]                               # (1, tco) f32 bias
    o_ref[0, 0] = jnp.maximum(acc, 0.0).astype(o_ref.dtype)


def _slab_spec(kd, Rb, Cin):
    return pl.BlockSpec((1, 1, Rb, Cin), lambda j, n, d: (n, d + kd, 0, 0))


def conv3d_relu(x, w, b):
    """x: (N, D, H, W, Cin) bf16; w: (3,3,3,Cin,Cout) bf16; b: (1, Cout) f32."""
    N, D, H, W, Cin = x.shape
    Cout = w.shape[-1]
    Hp, Wp = H + 2, W + 2
    R = H * Wp              # output rows per (n, d) (incl. 2 junk pad cols/row)
    Rb = Hp * Wp + 2        # slab rows (+2 zero rows so every tap window fits)

    xp = jnp.pad(x, ((0, 0), (1, 1), (1, 1), (1, 1), (0, 0)))
    xf = jnp.pad(xp.reshape(N, D + 2, Hp * Wp, Cin),
                 ((0, 0), (0, 0), (0, 2), (0, 0)))

    tco = Cout if Cout <= 256 else 256
    n_co = Cout // tco

    out = pl.pallas_call(
        functools.partial(_conv3d_kernel, R=R, W=W),
        out_shape=jax.ShapeDtypeStruct((N, D, R, Cout), jnp.bfloat16),
        grid=(n_co, N, D),
        in_specs=[
            _slab_spec(0, Rb, Cin),
            _slab_spec(1, Rb, Cin),
            _slab_spec(2, Rb, Cin),
            # full 3x3x3 weight block: index depends only on j (outermost axis)
            # -> stays resident in VMEM across the whole (N, D) sweep.
            pl.BlockSpec((3, 3, 3, Cin, tco), lambda j, n, d: (0, 0, 0, 0, j)),
            pl.BlockSpec((1, tco), lambda j, n, d: (0, j)),
        ],
        out_specs=pl.BlockSpec((1, 1, R, tco), lambda j, n, d: (n, d, 0, j)),
        compiler_params=pltpu.CompilerParams(
            dimension_semantics=("parallel", "parallel", "parallel"),
            vmem_limit_bytes=32 * 1024 * 1024,
        ),
    )(xf, xf, xf, w, b)

    # (N, D, H*(W+2), Cout) -> drop the 2 pad columns per row -> NDHWC
    return out.reshape(N, D, H, Wp, Cout)[:, :, :, :W, :]


# ----------------------------------------------------------------------------
# Linear heads: one pallas_call, grid over the head index (both SSL heads in
# a single launch; "parallel" so v7x can put one head on each TensorCore).
# ----------------------------------------------------------------------------
def _linear_kernel(x_ref, w_ref, b_ref, o_ref):
    y = jnp.dot(x_ref[0], w_ref[0], preferred_element_type=jnp.float32)
    o_ref[0] = y + b_ref[0]


def linear_heads(feats, ws, bs):
    """feats: (G, Nb, K) bf16; ws: (G, K, C) bf16; bs: (G, 1, C) f32 -> f32."""
    G, Nb, K = feats.shape
    C = ws.shape[-1]
    return pl.pallas_call(
        _linear_kernel,
        out_shape=jax.ShapeDtypeStruct((G, Nb, C), jnp.float32),
        grid=(G,),
        in_specs=[
            pl.BlockSpec((1, Nb, K), lambda i: (i, 0, 0)),
            pl.BlockSpec((1, K, C), lambda i: (i, 0, 0)),
            pl.BlockSpec((1, 1, C), lambda i: (i, 0, 0)),
        ],
        out_specs=pl.BlockSpec((1, Nb, C), lambda i: (i, 0, 0)),
        compiler_params=pltpu.CompilerParams(
            dimension_semantics=("parallel",)),
    )(feats, ws, bs)


# ----------------------------------------------------------------------------
# Cheap glue kept in plain JAX (memory-bound reshapes/reductions).
# ----------------------------------------------------------------------------
def maxpool3d(x, kd, kh, kw):
    N, D, H, W, C = x.shape
    x = x.reshape(N, D // kd, kd, H // kh, kh, W // kw, kw, C)
    return x.max(axis=(2, 4, 6))


def global_avgpool3d(x):
    return x.astype(jnp.float32).mean(axis=(1, 2, 3))   # (N, C) f32


# ----------------------------------------------------------------------------
# Parameters (deterministic He-style init; conv weights pre-laid-out in bf16,
# biases f32 and already shaped (1, Cout) so no per-call reshaping/padding).
# ----------------------------------------------------------------------------
def init_params(key, num_classes=101):
    conv_cfg = [
        ("conv1", 3, 64), ("conv2", 64, 128),
        ("conv3_1", 128, 256), ("conv3_2", 256, 256),
        ("conv4_1", 256, 512), ("conv4_2", 512, 512),
        ("conv5_1", 512, 512), ("conv5_2", 512, 512),
    ]
    params = {}
    for name, cin, cout in conv_cfg:
        key, k1 = jax.random.split(key)
        w = jax.random.normal(k1, (3, 3, 3, cin, cout), jnp.float32)
        w = w * jnp.sqrt(2.0 / (27 * cin))
        params[name] = {"w": w.astype(jnp.bfloat16),
                        "b": jnp.zeros((1, cout), jnp.float32)}
    for name in ("linear_ssl_1", "linear_ssl_2", "linear_finetune"):
        key, k1 = jax.random.split(key)
        w = jax.random.normal(k1, (512, num_classes), jnp.float32)
        w = w * jnp.sqrt(1.0 / 512.0)
        params[name] = {"w": w.astype(jnp.bfloat16),
                        "b": jnp.zeros((1, num_classes), jnp.float32)}
    return params


# ----------------------------------------------------------------------------
# Forward pass (mirrors C3D.subforward / C3D.forward).
# ----------------------------------------------------------------------------
def subforward(x, p):
    x = conv3d_relu(x, p["conv1"]["w"], p["conv1"]["b"])
    x = maxpool3d(x, 1, 2, 2)
    x = conv3d_relu(x, p["conv2"]["w"], p["conv2"]["b"])
    x = maxpool3d(x, 2, 2, 2)
    x = conv3d_relu(x, p["conv3_1"]["w"], p["conv3_1"]["b"])
    x = conv3d_relu(x, p["conv3_2"]["w"], p["conv3_2"]["b"])
    x = maxpool3d(x, 2, 2, 2)
    x = conv3d_relu(x, p["conv4_1"]["w"], p["conv4_1"]["b"])
    x = conv3d_relu(x, p["conv4_2"]["w"], p["conv4_2"]["b"])
    x = maxpool3d(x, 2, 2, 2)
    x = conv3d_relu(x, p["conv5_1"]["w"], p["conv5_1"]["b"])
    x = conv3d_relu(x, p["conv5_2"]["w"], p["conv5_2"]["b"])
    return global_avgpool3d(x)   # (N, 512) f32


def c3d_forward(x_ncdhw, params, train_type="SSL"):
    # x_ncdhw: (N, C=3, T, H, W) -- PyTorch convention
    x = jnp.transpose(x_ncdhw, (0, 2, 3, 4, 1)).astype(jnp.bfloat16)  # NDHWC
    if train_type == "Finetune":
        feat = subforward(x, params)
        out = linear_heads(feat[None].astype(jnp.bfloat16),
                           params["linear_finetune"]["w"][None],
                           params["linear_finetune"]["b"][None])
        return out[0]
    # SSL: chunk(2, dim=2) in NCDHW == split the temporal axis (D) in half
    D = x.shape[1]
    xa, xb = x[:, : D // 2], x[:, D // 2:]
    feat_rgb = subforward(xa, params)
    feat_diff = subforward(xb, params)
    feats = jnp.stack([feat_rgb, feat_diff]).astype(jnp.bfloat16)     # (2,N,512)
    ws = jnp.stack([params["linear_ssl_1"]["w"], params["linear_ssl_2"]["w"]])
    bs = jnp.stack([params["linear_ssl_1"]["b"], params["linear_ssl_2"]["b"]])
    y = linear_heads(feats, ws, bs)                                   # (2,N,C)
    return y[0], y[1]


if __name__ == "__main__":
    key = jax.random.PRNGKey(0)
    kx, kp, kc = jax.random.split(key, 3)
    params = init_params(kp, num_classes=101)

    # (N, C, T, H, W): T=16 so each SSL half is T=8 and survives the pools.
    x = jax.random.normal(kx, (2, 3, 16, 16, 16), jnp.float32)

    # ---- spot-check the fused conv kernel against lax.conv (f32 reference) ----
    def _conv_ref(xh, w, b):
        y = lax.conv_general_dilated(
            xh.astype(jnp.float32), w.astype(jnp.float32),
            window_strides=(1, 1, 1), padding="SAME",
            dimension_numbers=("NDHWC", "DHWIO", "NDHWC"),
            precision=lax.Precision.HIGHEST)
        return jnp.maximum(y + b.reshape(1, 1, 1, 1, -1), 0.0)

    xh = jnp.transpose(x, (0, 2, 3, 4, 1)).astype(jnp.bfloat16)[:, :8]
    y_k = conv3d_relu(xh, params["conv1"]["w"], params["conv1"]["b"])
    y_r = _conv_ref(xh, params["conv1"]["w"], params["conv1"]["b"])
    np.testing.assert_allclose(np.asarray(y_k, np.float32), np.asarray(y_r),
                               rtol=5e-2, atol=5e-2)

    x5 = jax.random.normal(kc, (1, 2, 2, 2, 512), jnp.float32).astype(jnp.bfloat16)
    y_k = conv3d_relu(x5, params["conv5_1"]["w"], params["conv5_1"]["b"])
    y_r = _conv_ref(x5, params["conv5_1"]["w"], params["conv5_1"]["b"])
    np.testing.assert_allclose(np.asarray(y_k, np.float32), np.asarray(y_r),
                               rtol=5e-2, atol=5e-2)

    # ---- full forward passes ----
    fwd_ssl = jax.jit(functools.partial(c3d_forward, train_type="SSL"))
    y_rgb, y_diff = fwd_ssl(x, params)
    jax.block_until_ready((y_rgb, y_diff))
    assert y_rgb.shape == (2, 101) and y_diff.shape == (2, 101)
    assert jnp.all(jnp.isfinite(y_rgb)) and jnp.all(jnp.isfinite(y_diff))

    fwd_ft = jax.jit(functools.partial(c3d_forward, train_type="Finetune"))
    y_ft = fwd_ft(x, params)
    jax.block_until_ready(y_ft)
    assert y_ft.shape == (2, 101) and jnp.all(jnp.isfinite(y_ft))

    print("KERNEL_OK")
</pallas_src>

<mosaic_0001>
module attributes {stable_mosaic.version = 11 : i64} {
  func.func @_conv3d_kernel(%arg0: i32, %arg1: i32, %arg2: i32, %arg3: memref<1x1x326x3xbf16, #tpu.memory_space<vmem>>, %arg4: memref<1x1x326x3xbf16, #tpu.memory_space<vmem>>, %arg5: memref<1x1x326x3xbf16, #tpu.memory_space<vmem>>, %arg6: memref<3x3x3x3x64xbf16, #tpu.memory_space<vmem>>, %arg7: memref<1x64xf32, #tpu.memory_space<vmem>>, %arg8: memref<1x1x288x64xbf16, #tpu.memory_space<vmem>>) attributes {dimension_semantics = [#tpu.dimension_semantics<parallel>, #tpu.dimension_semantics<parallel>, #tpu.dimension_semantics<parallel>], iteration_bounds = array<i64: 1, 2, 8>, scalar_prefetch = 0 : i64, scratch_operands = 0 : i64, tpu.core_type = #tpu.core_type<tc>, window_params = [{transform_indices = @transform_0, window_bounds = array<i64: 1, 1, 326, 3>}, {transform_indices = @transform_1, window_bounds = array<i64: 1, 1, 326, 3>}, {transform_indices = @transform_2, window_bounds = array<i64: 1, 1, 326, 3>}, {transform_indices = @transform_3, window_bounds = array<i64: 3, 3, 3, 3, 64>}, {transform_indices = @transform_4, window_bounds = array<i64: 1, 64>}, {transform_indices = @transform_5, window_bounds = array<i64: 1, 1, 288, 64>}]} {
    %c0 = arith.constant 0 : index
    %c0_0 = arith.constant 0 : index
    %c0_1 = arith.constant 0 : index
    %c0_2 = arith.constant 0 : index
    %0 = vector.load %arg3[%c0, %c0_0, %c0_1, %c0_2] : memref<1x1x326x3xbf16, #tpu.memory_space<vmem>>, vector<1x1x288x3xbf16>
    %1 = vector.shape_cast %0 : vector<1x1x288x3xbf16> to vector<288x3xbf16>
    %c0_3 = arith.constant 0 : index
    %c0_4 = arith.constant 0 : index
    %c0_5 = arith.constant 0 : index
    %c0_6 = arith.constant 0 : index
    %c0_7 = arith.constant 0 : index
    %2 = vector.load %arg6[%c0_3, %c0_4, %c0_5, %c0_6, %c0_7] : memref<3x3x3x3x64xbf16, #tpu.memory_space<vmem>>, vector<1x1x1x3x64xbf16>
    %3 = vector.shape_cast %2 : vector<1x1x1x3x64xbf16> to vector<3x64xbf16>
    %cst = arith.constant dense<0.000000e+00> : vector<288x64xf32>
    %4 = tpu.matmul %1, %3, %cst {dimension_numbers = #tpu.dot_dimension_numbers<[1], [0], [0], [1], [0, 0, 1, 1], [], []>} : vector<288x3xbf16>, vector<3x64xbf16>, vector<288x64xf32> -> vector<288x64xf32>
    %c0_8 = arith.constant 0 : index
    %c0_9 = arith.constant 0 : index
    %c1 = arith.constant 1 : index
    %c0_10 = arith.constant 0 : index
    %5 = vector.load %arg3[%c0_8, %c0_9, %c1, %c0_10] : memref<1x1x326x3xbf16, #tpu.memory_space<vmem>>, vector<1x1x288x3xbf16>
    %6 = vector.shape_cast %5 : vector<1x1x288x3xbf16> to vector<288x3xbf16>
    %c0_11 = arith.constant 0 : index
    %c0_12 = arith.constant 0 : index
    %c1_13 = arith.constant 1 : index
    %c0_14 = arith.constant 0 : index
    %c0_15 = arith.constant 0 : index
    %7 = vector.load %arg6[%c0_11, %c0_12, %c1_13, %c0_14, %c0_15] : memref<3x3x3x3x64xbf16, #tpu.memory_space<vmem>>, vector<1x1x1x3x64xbf16>
    %8 = vector.shape_cast %7 : vector<1x1x1x3x64xbf16> to vector<3x64xbf16>
    %cst_16 = arith.constant dense<0.000000e+00> : vector<288x64xf32>
    %9 = tpu.matmul %6, %8, %cst_16 {dimension_numbers = #tpu.dot_dimension_numbers<[1], [0], [0], [1], [0, 0, 1, 1], [], []>} : vector<288x3xbf16>, vector<3x64xbf16>, vector<288x64xf32> -> vector<288x64xf32>
    %10 = arith.addf %4, %9 : vector<288x64xf32>
    %c0_17 = arith.constant 0 : index
    %c0_18 = arith.constant 0 : index
    %c2 = arith.constant 2 : index
    %c0_19 = arith.constant 0 : index
    %11 = vector.load %arg3[%c0_17, %c0_18, %c2, %c0_19] : memref<1x1x326x3xbf16, #tpu.memory_space<vmem>>, vector<1x1x288x3xbf16>
    %12 = vector.shape_cast %11 : vector<1x1x288x3xbf16> to vector<288x3xbf16>
    %c0_20 = arith.constant 0 : index
    %c0_21 = arith.constant 0 : index
    %c2_22 = arith.constant 2 : index
    %c0_23 = arith.constant 0 : index
    %c0_24 = arith.constant 0 : index
    %13 = vector.load %arg6[%c0_20, %c0_21, %c2_22, %c0_23, %c0_24] : memref<3x3x3x3x64xbf16, #tpu.memory_space<vmem>>, vector<1x1x1x3x64xbf16>
    %14 = vector.shape_cast %13 : vector<1x1x1x3x64xbf16> to vector<3x64xbf16>
    %cst_25 = arith.constant dense<0.000000e+00> : vector<288x64xf32>
    %15 = tpu.matmul %12, %14, %cst_25 {dimension_numbers = #tpu.dot_dimension_numbers<[1], [0], [0], [1], [0, 0, 1, 1], [], []>} : vector<288x3xbf16>, vector<3x64xbf16>, vector<288x64xf32> -> vector<288x64xf32>
    %16 = arith.addf %10, %15 : vector<288x64xf32>
    %c0_26 = arith.constant 0 : index
    %c0_27 = arith.constant 0 : index
    %c18 = arith.constant 18 : index
    %c0_28 = arith.constant 0 : index
    %17 = vector.load %arg3[%c0_26, %c0_27, %c18, %c0_28] : memref<1x1x326x3xbf16, #tpu.memory_space<vmem>>, vector<1x1x288x3xbf16>
    %18 = vector.shape_cast %17 : vector<1x1x288x3xbf16> to vector<288x3xbf16>
    %c0_29 = arith.constant 0 : index
    %c1_30 = arith.constant 1 : index
    %c0_31 = arith.constant 0 : index
    %c0_32 = arith.constant 0 : index
    %c0_33 = arith.constant 0 : index
    %19 = vector.load %arg6[%c0_29, %c1_30, %c0_31, %c0_32, %c0_33] : memref<3x3x3x3x64xbf16, #tpu.memory_space<vmem>>, vector<1x1x1x3x64xbf16>
    %20 = vector.shape_cast %19 : vector<1x1x1x3x64xbf16> to vector<3x64xbf16>
    %cst_34 = arith.constant dense<0.000000e+00> : vector<288x64xf32>
    %21 = tpu.matmul %18, %20, %cst_34 {dimension_numbers = #tpu.dot_dimension_numbers<[1], [0], [0], [1], [0, 0, 1, 1], [], []>} : vector<288x3xbf16>, vector<3x64xbf16>, vector<288x64xf32> -> vector<288x64xf32>
    %22 = arith.addf %16, %21 : vector<288x64xf32>
    %c0_35 = arith.constant 0 : index
    %c0_36 = arith.constant 0 : index
    %c19 = arith.constant 19 : index
    %c0_37 = arith.constant 0 : index
    %23 = vector.load %arg3[%c0_35, %c0_36, %c19, %c0_37] : memref<1x1x326x3xbf16, #tpu.memory_space<vmem>>, vector<1x1x288x3xbf16>
    %24 = vector.shape_cast %23 : vector<1x1x288x3xbf16> to vector<288x3xbf16>
    %c0_38 = arith.constant 0 : index
    %c1_39 = arith.constant 1 : index
    %c1_40 = arith.constant 1 : index
    %c0_41 = arith.constant 0 : index
    %c0_42 = arith.constant 0 : index
    %25 = vector.load %arg6[%c0_38, %c1_39, %c1_40, %c0_41, %c0_42] : memref<3x3x3x3x64xbf16, #tpu.memory_space<vmem>>, vector<1x1x1x3x64xbf16>
    %26 = vector.shape_cast %25 : vector<1x1x1x3x64xbf16> to vector<3x64xbf16>
    %cst_43 = arith.constant dense<0.000000e+00> : vector<288x64xf32>
    %27 = tpu.matmul %24, %26, %cst_43 {dimension_numbers = #tpu.dot_dimension_numbers<[1], [0], [0], [1], [0, 0, 1, 1], [], []>} : vector<288x3xbf16>, vector<3x64xbf16>, vector<288x64xf32> -> vector<288x64xf32>
    %28 = arith.addf %22, %27 : vector<288x64xf32>
    %c0_44 = arith.constant 0 : index
    %c0_45 = arith.constant 0 : index
    %c20 = arith.constant 20 : index
    %c0_46 = arith.constant 0 : index
    %29 = vector.load %arg3[%c0_44, %c0_45, %c20, %c0_46] : memref<1x1x326x3xbf16, #tpu.memory_space<vmem>>, vector<1x1x288x3xbf16>
    %30 = vector.shape_cast %29 : vector<1x1x288x3xbf16> to vector<288x3xbf16>
    %c0_47 = arith.constant 0 : index
    %c1_48 = arith.constant 1 : index
    %c2_49 = arith.constant 2 : index
    %c0_50 = arith.constant 0 : index
    %c0_51 = arith.constant 0 : index
    %31 = vector.load %arg6[%c0_47, %c1_48, %c2_49, %c0_50, %c0_51] : memref<3x3x3x3x64xbf16, #tpu.memory_space<vmem>>, vector<1x1x1x3x64xbf16>
    %32 = vector.shape_cast %31 : vector<1x1x1x3x64xbf16> to vector<3x64xbf16>
    %cst_52 = arith.constant dense<0.000000e+00> : vector<288x64xf32>
    %33 = tpu.matmul %30, %32, %cst_52 {dimension_numbers = #tpu.dot_dimension_numbers<[1], [0], [0], [1], [0, 0, 1, 1], [], []>} : vector<288x3xbf16>, vector<3x64xbf16>, vector<288x64xf32> -> vector<288x64xf32>
    %34 = arith.addf %28, %33 : vector<288x64xf32>
    %c0_53 = arith.constant 0 : index
    %c0_54 = arith.constant 0 : index
    %c36 = arith.constant 36 : index
    %c0_55 = arith.constant 0 : index
    %35 = vector.load %arg3[%c0_53, %c0_54, %c36, %c0_55] : memref<1x1x326x3xbf16, #tpu.memory_space<vmem>>, vector<1x1x288x3xbf16>
    %36 = vector.shape_cast %35 : vector<1x1x288x3xbf16> to vector<288x3xbf16>
    %c0_56 = arith.constant 0 : index
    %c2_57 = arith.constant 2 : index
    %c0_58 = arith.constant 0 : index
    %c0_59 = arith.constant 0 : index
    %c0_60 = arith.constant 0 : index
    %37 = vector.load %arg6[%c0_56, %c2_57, %c0_58, %c0_59, %c0_60] : memref<3x3x3x3x64xbf16, #tpu.memory_space<vmem>>, vector<1x1x1x3x64xbf16>
    %38 = vector.shape_cast %37 : vector<1x1x1x3x64xbf16> to vector<3x64xbf16>
    %cst_61 = arith.constant dense<0.000000e+00> : vector<288x64xf32>
    %39 = tpu.matmul %36, %38, %cst_61 {dimension_numbers = #tpu.dot_dimension_numbers<[1], [0], [0], [1], [0, 0, 1, 1], [], []>} : vector<288x3xbf16>, vector<3x64xbf16>, vector<288x64xf32> -> vector<288x64xf32>
    %40 = arith.addf %34, %39 : vector<288x64xf32>
    %c0_62 = arith.constant 0 : index
    %c0_63 = arith.constant 0 : index
    %c37 = arith.constant 37 : index
    %c0_64 = arith.constant 0 : index
    %41 = vector.load %arg3[%c0_62, %c0_63, %c37, %c0_64] : memref<1x1x326x3xbf16, #tpu.memory_space<vmem>>, vector<1x1x288x3xbf16>
    %42 = vector.shape_cast %41 : vector<1x1x288x3xbf16> to vector<288x3xbf16>
    %c0_65 = arith.constant 0 : index
    %c2_66 = arith.constant 2 : index
    %c1_67 = arith.constant 1 : index
    %c0_68 = arith.constant 0 : index
    %c0_69 = arith.constant 0 : index
    %43 = vector.load %arg6[%c0_65, %c2_66, %c1_67, %c0_68, %c0_69] : memref<3x3x3x3x64xbf16, #tpu.memory_space<vmem>>, vector<1x1x1x3x64xbf16>
    %44 = vector.shape_cast %43 : vector<1x1x1x3x64xbf16> to vector<3x64xbf16>
    %cst_70 = arith.constant dense<0.000000e+00> : vector<288x64xf32>
    %45 = tpu.matmul %42, %44, %cst_70 {dimension_numbers = #tpu.dot_dimension_numbers<[1], [0], [0], [1], [0, 0, 1, 1], [], []>} : vector<288x3xbf16>, vector<3x64xbf16>, vector<288x64xf32> -> vector<288x64xf32>
    %46 = arith.addf %40, %45 : vector<288x64xf32>
    %c0_71 = arith.constant 0 : index
    %c0_72 = arith.constant 0 : index
    %c38 = arith.constant 38 : index
    %c0_73 = arith.constant 0 : index
    %47 = vector.load %arg3[%c0_71, %c0_72, %c38, %c0_73] : memref<1x1x326x3xbf16, #tpu.memory_space<vmem>>, vector<1x1x288x3xbf16>
    %48 = vector.shape_cast %47 : vector<1x1x288x3xbf16> to vector<288x3xbf16>
    %c0_74 = arith.constant 0 : index
    %c2_75 = arith.constant 2 : index
    %c2_76 = arith.constant 2 : index
    %c0_77 = arith.constant 0 : index
    %c0_78 = arith.constant 0 : index
    %49 = vector.load %arg6[%c0_74, %c2_75, %c2_76, %c0_77, %c0_78] : memref<3x3x3x3x64xbf16, #tpu.memory_space<vmem>>, vector<1x1x1x3x64xbf16>
    %50 = vector.shape_cast %49 : vector<1x1x1x3x64xbf16> to vector<3x64xbf16>
    %cst_79 = arith.constant dense<0.000000e+00> : vector<288x64xf32>
    %51 = tpu.matmul %48, %50, %cst_79 {dimension_numbers = #tpu.dot_dimension_numbers<[1], [0], [0], [1], [0, 0, 1, 1], [], []>} : vector<288x3xbf16>, vector<3x64xbf16>, vector<288x64xf32> -> vector<288x64xf32>
    %52 = arith.addf %46, %51 : vector<288x64xf32>
    %c0_80 = arith.constant 0 : index
    %c0_81 = arith.constant 0 : index
    %c0_82 = arith.constant 0 : index
    %c0_83 = arith.constant 0 : index
    %53 = vector.load %arg4[%c0_80, %c0_81, %c0_82, %c0_83] : memref<1x1x326x3xbf16, #tpu.memory_space<vmem>>, vector<1x1x288x3xbf16>
    %54 = vector.shape_cast %53 : vector<1x1x288x3xbf16> to vector<288x3xbf16>
    %c1_84 = arith.constant 1 : index
    %c0_85 = arith.constant 0 : index
    %c0_86 = arith.constant 0 : index
    %c0_87 = arith.constant 0 : index
    %c0_88 = arith.constant 0 : index
    %55 = vector.load %arg6[%c1_84, %c0_85, %c0_86, %c0_87, %c0_88] : memref<3x3x3x3x64xbf16, #tpu.memory_space<vmem>>, vector<1x1x1x3x64xbf16>
    %56 = vector.shape_cast %55 : vector<1x1x1x3x64xbf16> to vector<3x64xbf16>
    %cst_89 = arith.constant dense<0.000000e+00> : vector<288x64xf32>
    %57 = tpu.matmul %54, %56, %cst_89 {dimension_numbers = #tpu.dot_dimension_numbers<[1], [0], [0], [1], [0, 0, 1, 1], [], []>} : vector<288x3xbf16>, vector<3x64xbf16>, vector<288x64xf32> -> vector<288x64xf32>
    %58 = arith.addf %52, %57 : vector<288x64xf32>
    %c0_90 = arith.constant 0 : index
    %c0_91 = arith.constant 0 : index
    %c1_92 = arith.constant 1 : index
    %c0_93 = arith.constant 0 : index
    %59 = vector.load %arg4[%c0_90, %c0_91, %c1_92, %c0_93] : memref<1x1x326x3xbf16, #tpu.memory_space<vmem>>, vector<1x1x288x3xbf16>
    %60 = vector.shape_cast %59 : vector<1x1x288x3xbf16> to vector<288x3xbf16>
    %c1_94 = arith.constant 1 : index
    %c0_95 = arith.constant 0 : index
    %c1_96 = arith.constant 1 : index
    %c0_97 = arith.constant 0 : index
    %c0_98 = arith.constant 0 : index
    %61 = vector.load %arg6[%c1_94, %c0_95, %c1_96, %c0_97, %c0_98] : memref<3x3x3x3x64xbf16, #tpu.memory_space<vmem>>, vector<1x1x1x3x64xbf16>
    %62 = vector.shape_cast %61 : vector<1x1x1x3x64xbf16> to vector<3x64xbf16>
    %cst_99 = arith.constant dense<0.000000e+00> : vector<288x64xf32>
    %63 = tpu.matmul %60, %62, %cst_99 {dimension_numbers = #tpu.dot_dimension_numbers<[1], [0], [0], [1], [0, 0, 1, 1], [], []>} : vector<288x3xbf16>, vector<3x64xbf16>, vector<288x64xf32> -> vector<288x64xf32>
    %64 = arith.addf %58, %63 : vector<288x64xf32>
    %c0_100 = arith.constant 0 : index
    %c0_101 = arith.constant 0 : index
    %c2_102 = arith.constant 2 : index
    %c0_103 = arith.constant 0 : index
    %65 = vector.load %arg4[%c0_100, %c0_101, %c2_102, %c0_103] : memref<1x1x326x3xbf16, #tpu.memory_space<vmem>>, vector<1x1x288x3xbf16>
    %66 = vector.shape_cast %65 : vector<1x1x288x3xbf16> to vector<288x3xbf16>
    %c1_104 = arith.constant 1 : index
    %c0_105 = arith.constant 0 : index
    %c2_106 = arith.constant 2 : index
    %c0_107 = arith.constant 0 : index
    %c0_108 = arith.constant 0 : index
    %67 = vector.load %arg6[%c1_104, %c0_105, %c2_106, %c0_107, %c0_108] : memref<3x3x3x3x64xbf16, #tpu.memory_space<vmem>>, vector<1x1x1x3x64xbf16>
    %68 = vector.shape_cast %67 : vector<1x1x1x3x64xbf16> to vector<3x64xbf16>
    %cst_109 = arith.constant dense<0.000000e+00> : vector<288x64xf32>
    %69 = tpu.matmul %66, %68, %cst_109 {dimension_numbers = #tpu.dot_dimension_numbers<[1], [0], [0], [1], [0, 0, 1, 1], [], []>} : vector<288x3xbf16>, vector<3x64xbf16>, vector<288x64xf32> -> vector<288x64xf32>
    %70 = arith.addf %64, %69 : vector<288x64xf32>
    %c0_110 = arith.constant 0 : index
    %c0_111 = arith.constant 0 : index
    %c18_112 = arith.constant 18 : index
    %c0_113 = arith.constant 0 : index
    %71 = vector.load %arg4[%c0_110, %c0_111, %c18_112, %c0_113] : memref<1x1x326x3xbf16, #tpu.memory_space<vmem>>, vector<1x1x288x3xbf16>
    %72 = vector.shape_cast %71 : vector<1x1x288x3xbf16> to vector<288x3xbf16>
    %c1_114 = arith.constant 1 : index
    %c1_115 = arith.constant 1 : index
    %c0_116 = arith.constant 0 : index
    %c0_117 = arith.constant 0 : index
    %c0_118 = arith.constant 0 : index
    %73 = vector.load %arg6[%c1_114, %c1_115, %c0_116, %c0_117, %c0_118] : memref<3x3x3x3x64xbf16, #tpu.memory_space<vmem>>, vector<1x1x1x3x64xbf16>
    %74 = vector.shape_cast %73 : vector<1x1x1x3x64xbf16> to vector<3x64xbf16>
    %cst_119 = arith.constant dense<0.000000e+00> : vector<288x64xf32>
    %75 = tpu.matmul %72, %74, %cst_119 {dimension_numbers = #tpu.dot_dimension_numbers<[1], [0], [0], [1], [0, 0, 1, 1], [], []>} : vector<288x3xbf16>, vector<3x64xbf16>, vector<288x64xf32> -> vector<288x64xf32>
    %76 = arith.addf %70, %75 : vector<288x64xf32>
    %c0_120 = arith.constant 0 : index
    %c0_121 = arith.constant 0 : index
    %c19_122 = arith.constant 19 : index
    %c0_123 = arith.constant 0 : index
    %77 = vector.load %arg4[%c0_120, %c0_121, %c19_122, %c0_123] : memref<1x1x326x3xbf16, #tpu.memory_space<vmem>>, vector<1x1x288x3xbf16>
    %78 = vector.shape_cast %77 : vector<1x1x288x3xbf16> to vector<288x3xbf16>
    %c1_124 = arith.constant 1 : index
    %c1_125 = arith.constant 1 : index
    %c1_126 = arith.constant 1 : index
    %c0_127 = arith.constant 0 : index
    %c0_128 = arith.constant 0 : index
    %79 = vector.load %arg6[%c1_124, %c1_125, %c1_126, %c0_127, %c0_128] : memref<3x3x3x3x64xbf16, #tpu.memory_space<vmem>>, vector<1x1x1x3x64xbf16>
    %80 = vector.shape_cast %79 : vector<1x1x1x3x64xbf16> to vector<3x64xbf16>
    %cst_129 = arith.constant dense<0.000000e+00> : vector<288x64xf32>
    %81 = tpu.matmul %78, %80, %cst_129 {dimension_numbers = #tpu.dot_dimension_numbers<[1], [0], [0], [1], [0, 0, 1, 1], [], []>} : vector<288x3xbf16>, vector<3x64xbf16>, vector<288x64xf32> -> vector<288x64xf32>
    %82 = arith.addf %76, %81 : vector<288x64xf32>
    %c0_130 = arith.constant 0 : index
    %c0_131 = arith.constant 0 : index
    %c20_132 = arith.constant 20 : index
    %c0_133 = arith.constant 0 : index
    %83 = vector.load %arg4[%c0_130, %c0_131, %c20_132, %c0_133] : memref<1x1x326x3xbf16, #tpu.memory_space<vmem>>, vector<1x1x288x3xbf16>
    %84 = vector.shape_cast %83 : vector<1x1x288x3xbf16> to vector<288x3xbf16>
    %c1_134 = arith.constant 1 : index
    %c1_135 = arith.constant 1 : index
    %c2_136 = arith.constant 2 : index
    %c0_137 = arith.constant 0 : index
    %c0_138 = arith.constant 0 : index
    %85 = vector.load %arg6[%c1_134, %c1_135, %c2_136, %c0_137, %c0_138] : memref<3x3x3x3x64xbf16, #tpu.memory_space<vmem>>, vector<1x1x1x3x64xbf16>
    %86 = vector.shape_cast %85 : vector<1x1x1x3x64xbf16> to vector<3x64xbf16>
    %cst_139 = arith.constant dense<0.000000e+00> : vector<288x64xf32>
    %87 = tpu.matmul %84, %86, %cst_139 {dimension_numbers = #tpu.dot_dimension_numbers<[1], [0], [0], [1], [0, 0, 1, 1], [], []>} : vector<288x3xbf16>, vector<3x64xbf16>, vector<288x64xf32> -> vector<288x64xf32>
    %88 = arith.addf %82, %87 : vector<288x64xf32>
    %c0_140 = arith.constant 0 : index
    %c0_141 = arith.constant 0 : index
    %c36_142 = arith.constant 36 : index
    %c0_143 = arith.constant 0 : index
    %89 = vector.load %arg4[%c0_140, %c0_141, %c36_142, %c0_143] : memref<1x1x326x3xbf16, #tpu.memory_space<vmem>>, vector<1x1x288x3xbf16>
    %90 = vector.shape_cast %89 : vector<1x1x288x3xbf16> to vector<288x3xbf16>
    %c1_144 = arith.constant 1 : index
    %c2_145 = arith.constant 2 : index
    %c0_146 = arith.constant 0 : index
    %c0_147 = arith.constant 0 : index
    %c0_148 = arith.constant 0 : index
    %91 = vector.load %arg6[%c1_144, %c2_145, %c0_146, %c0_147, %c0_148] : memref<3x3x3x3x64xbf16, #tpu.memory_space<vmem>>, vector<1x1x1x3x64xbf16>
    %92 = vector.shape_cast %91 : vector<1x1x1x3x64xbf16> to vector<3x64xbf16>
    %cst_149 = arith.constant dense<0.000000e+00> : vector<288x64xf32>
    %93 = tpu.matmul %90, %92, %cst_149 {dimension_numbers = #tpu.dot_dimension_numbers<[1], [0], [0], [1], [0, 0, 1, 1], [], []>} : vector<288x3xbf16>, vector<3x64xbf16>, vector<288x64xf32> -> vector<288x64xf32>
    %94 = arith.addf %88, %93 : vector<288x64xf32>
    %c0_150 = arith.constant 0 : index
    %c0_151 = arith.constant 0 : index
    %c37_152 = arith.constant 37 : index
    %c0_153 = arith.constant 0 : index
    %95 = vector.load %arg4[%c0_150, %c0_151, %c37_152, %c0_153] : memref<1x1x326x3xbf16, #tpu.memory_space<vmem>>, vector<1x1x288x3xbf16>
    %96 = vector.shape_cast %95 : vector<1x1x288x3xbf16> to vector<288x3xbf16>
    %c1_154 = arith.constant 1 : index
    %c2_155 = arith.constant 2 : index
    %c1_156 = arith.constant 1 : index
    %c0_157 = arith.constant 0 : index
    %c0_158 = arith.constant 0 : index
    %97 = vector.load %arg6[%c1_154, %c2_155, %c1_156, %c0_157, %c0_158] : memref<3x3x3x3x64xbf16, #tpu.memory_space<vmem>>, vector<1x1x1x3x64xbf16>
    %98 = vector.shape_cast %97 : vector<1x1x1x3x64xbf16> to vector<3x64xbf16>
    %cst_159 = arith.constant dense<0.000000e+00> : vector<288x64xf32>
    %99 = tpu.matmul %96, %98, %cst_159 {dimension_numbers = #tpu.dot_dimension_numbers<[1], [0], [0], [1], [0, 0, 1, 1], [], []>} : vector<288x3xbf16>, vector<3x64xbf16>, vector<288x64xf32> -> vector<288x64xf32>
    %100 = arith.addf %94, %99 : vector<288x64xf32>
    %c0_160 = arith.constant 0 : index
    %c0_161 = arith.constant 0 : index
    %c38_162 = arith.constant 38 : index
    %c0_163 = arith.constant 0 : index
    %101 = vector.load %arg4[%c0_160, %c0_161, %c38_162, %c0_163] : memref<1x1x326x3xbf16, #tpu.memory_space<vmem>>, vector<1x1x288x3xbf16>
    %102 = vector.shape_cast %101 : vector<1x1x288x3xbf16> to vector<288x3xbf16>
    %c1_164 = arith.constant 1 : index
    %c2_165 = arith.constant 2 : index
    %c2_166 = arith.constant 2 : index
    %c0_167 = arith.constant 0 : index
    %c0_168 = arith.constant 0 : index
    %103 = vector.load %arg6[%c1_164, %c2_165, %c2_166, %c0_167, %c0_168] : memref<3x3x3x3x64xbf16, #tpu.memory_space<vmem>>, vector<1x1x1x3x64xbf16>
    %104 = vector.shape_cast %103 : vector<1x1x1x3x64xbf16> to vector<3x64xbf16>
    %cst_169 = arith.constant dense<0.000000e+00> : vector<288x64xf32>
    %105 = tpu.matmul %102, %104, %cst_169 {dimension_numbers = #tpu.dot_dimension_numbers<[1], [0], [0], [1], [0, 0, 1, 1], [], []>} : vector<288x3xbf16>, vector<3x64xbf16>, vector<288x64xf32> -> vector<288x64xf32>
    %106 = arith.addf %100, %105 : vector<288x64xf32>
    %c0_170 = arith.constant 0 : index
    %c0_171 = arith.constant 0 : index
    %c0_172 = arith.constant 0 : index
    %c0_173 = arith.constant 0 : index
    %107 = vector.load %arg5[%c0_170, %c0_171, %c0_172, %c0_173] : memref<1x1x326x3xbf16, #tpu.memory_space<vmem>>, vector<1x1x288x3xbf16>
    %108 = vector.shape_cast %107 : vector<1x1x288x3xbf16> to vector<288x3xbf16>
    %c2_174 = arith.constant 2 : index
    %c0_175 = arith.constant 0 : index
    %c0_176 = arith.constant 0 : index
    %c0_177 = arith.constant 0 : index
    %c0_178 = arith.constant 0 : index
    %109 = vector.load %arg6[%c2_174, %c0_175, %c0_176, %c0_177, %c0_178] : memref<3x3x3x3x64xbf16, #tpu.memory_space<vmem>>, vector<1x1x1x3x64xbf16>
    %110 = vector.shape_cast %109 : vector<1x1x1x3x64xbf16> to vector<3x64xbf16>
    %cst_179 = arith.constant dense<0.000000e+00> : vector<288x64xf32>
    %111 = tpu.matmul %108, %110, %cst_179 {dimension_numbers = #tpu.dot_dimension_numbers<[1], [0], [0], [1], [0, 0, 1, 1], [], []>} : vector<288x3xbf16>, vector<3x64xbf16>, vector<288x64xf32> -> vector<288x64xf32>
    %112 = arith.addf %106, %111 : vector<288x64xf32>
    %c0_180 = arith.constant 0 : index
    %c0_181 = arith.constant 0 : index
    %c1_182 = arith.constant 1 : index
    %c0_183 = arith.constant 0 : index
    %113 = vector.load %arg5[%c0_180, %c0_181, %c1_182, %c0_183] : memref<1x1x326x3xbf16, #tpu.memory_space<vmem>>, vector<1x1x288x3xbf16>
    %114 = vector.shape_cast %113 : vector<1x1x288x3xbf16> to vector<288x3xbf16>
    %c2_184 = arith.constant 2 : index
    %c0_185 = arith.constant 0 : index
    %c1_186 = arith.constant 1 : index
    %c0_187 = arith.constant 0 : index
    %c0_188 = arith.constant 0 : index
    %115 = vector.load %arg6[%c2_184, %c0_185, %c1_186, %c0_187, %c0_188] : memref<3x3x3x3x64xbf16, #tpu.memory_space<vmem>>, vector<1x1x1x3x64xbf16>
    %116 = vector.shape_cast %115 : vector<1x1x1x3x64xbf16> to vector<3x64xbf16>
    %cst_189 = arith.constant dense<0.000000e+00> : vector<288x64xf32>
    %117 = tpu.matmul %114, %116, %cst_189 {dimension_numbers = #tpu.dot_dimension_numbers<[1], [0], [0], [1], [0, 0, 1, 1], [], []>} : vector<288x3xbf16>, vector<3x64xbf16>, vector<288x64xf32> -> vector<288x64xf32>
    %118 = arith.addf %112, %117 : vector<288x64xf32>
    %c0_190 = arith.constant 0 : index
    %c0_191 = arith.constant 0 : index
    %c2_192 = arith.constant 2 : index
    %c0_193 = arith.constant 0 : index
    %119 = vector.load %arg5[%c0_190, %c0_191, %c2_192, %c0_193] : memref<1x1x326x3xbf16, #tpu.memory_space<vmem>>, vector<1x1x288x3xbf16>
    %120 = vector.shape_cast %119 : vector<1x1x288x3xbf16> to vector<288x3xbf16>
    %c2_194 = arith.constant 2 : index
    %c0_195 = arith.constant 0 : index
    %c2_196 = arith.constant 2 : index
    %c0_197 = arith.constant 0 : index
    %c0_198 = arith.constant 0 : index
    %121 = vector.load %arg6[%c2_194, %c0_195, %c2_196, %c0_197, %c0_198] : memref<3x3x3x3x64xbf16, #tpu.memory_space<vmem>>, vector<1x1x1x3x64xbf16>
    %122 = vector.shape_cast %121 : vector<1x1x1x3x64xbf16> to vector<3x64xbf16>
    %cst_199 = arith.constant dense<0.000000e+00> : vector<288x64xf32>
    %123 = tpu.matmul %120, %122, %cst_199 {dimension_numbers = #tpu.dot_dimension_numbers<[1], [0], [0], [1], [0, 0, 1, 1], [], []>} : vector<288x3xbf16>, vector<3x64xbf16>, vector<288x64xf32> -> vector<288x64xf32>
    %124 = arith.addf %118, %123 : vector<288x64xf32>
    %c0_200 = arith.constant 0 : index
    %c0_201 = arith.constant 0 : index
    %c18_202 = arith.constant 18 : index
    %c0_203 = arith.constant 0 : index
    %125 = vector.load %arg5[%c0_200, %c0_201, %c18_202, %c0_203] : memref<1x1x326x3xbf16, #tpu.memory_space<vmem>>, vector<1x1x288x3xbf16>
    %126 = vector.shape_cast %125 : vector<1x1x288x3xbf16> to vector<288x3xbf16>
    %c2_204 = arith.constant 2 : index
    %c1_205 = arith.constant 1 : index
    %c0_206 = arith.constant 0 : index
    %c0_207 = arith.constant 0 : index
    %c0_208 = arith.constant 0 : index
    %127 = vector.load %arg6[%c2_204, %c1_205, %c0_206, %c0_207, %c0_208] : memref<3x3x3x3x64xbf16, #tpu.memory_space<vmem>>, vector<1x1x1x3x64xbf16>
    %128 = vector.shape_cast %127 : vector<1x1x1x3x64xbf16> to vector<3x64xbf16>
    %cst_209 = arith.constant dense<0.000000e+00> : vector<288x64xf32>
    %129 = tpu.matmul %126, %128, %cst_209 {dimension_numbers = #tpu.dot_dimension_numbers<[1], [0], [0], [1], [0, 0, 1, 1], [], []>} : vector<288x3xbf16>, vector<3x64xbf16>, vector<288x64xf32> -> vector<288x64xf32>
    %130 = arith.addf %124, %129 : vector<288x64xf32>
    %c0_210 = arith.constant 0 : index
    %c0_211 = arith.constant 0 : index
    %c19_212 = arith.constant 19 : index
    %c0_213 = arith.constant 0 : index
    %131 = vector.load %arg5[%c0_210, %c0_211, %c19_212, %c0_213] : memref<1x1x326x3xbf16, #tpu.memory_space<vmem>>, vector<1x1x288x3xbf16>
    %132 = vector.shape_cast %131 : vector<1x1x288x3xbf16> to vector<288x3xbf16>
    %c2_214 = arith.constant 2 : index
    %c1_215 = arith.constant 1 : index
    %c1_216 = arith.constant 1 : index
    %c0_217 = arith.constant 0 : index
    %c0_218 = arith.constant 0 : index
    %133 = vector.load %arg6[%c2_214, %c1_215, %c1_216, %c0_217, %c0_218] : memref<3x3x3x3x64xbf16, #tpu.memory_space<vmem>>, vector<1x1x1x3x64xbf16>
    %134 = vector.shape_cast %133 : vector<1x1x1x3x64xbf16> to vector<3x64xbf16>
    %cst_219 = arith.constant dense<0.000000e+00> : vector<288x64xf32>
    %135 = tpu.matmul %132, %134, %cst_219 {dimension_numbers = #tpu.dot_dimension_numbers<[1], [0], [0], [1], [0, 0, 1, 1], [], []>} : vector<288x3xbf16>, vector<3x64xbf16>, vector<288x64xf32> -> vector<288x64xf32>
    %136 = arith.addf %130, %135 : vector<288x64xf32>
    %c0_220 = arith.constant 0 : index
    %c0_221 = arith.constant 0 : index
    %c20_222 = arith.constant 20 : index
    %c0_223 = arith.constant 0 : index
    %137 = vector.load %arg5[%c0_220, %c0_221, %c20_222, %c0_223] : memref<1x1x326x3xbf16, #tpu.memory_space<vmem>>, vector<1x1x288x3xbf16>
    %138 = vector.shape_cast %137 : vector<1x1x288x3xbf16> to vector<288x3xbf16>
    %c2_224 = arith.constant 2 : index
    %c1_225 = arith.constant 1 : index
    %c2_226 = arith.constant 2 : index
    %c0_227 = arith.constant 0 : index
    %c0_228 = arith.constant 0 : index
    %139 = vector.load %arg6[%c2_224, %c1_225, %c2_226, %c0_227, %c0_228] : memref<3x3x3x3x64xbf16, #tpu.memory_space<vmem>>, vector<1x1x1x3x64xbf16>
    %140 = vector.shape_cast %139 : vector<1x1x1x3x64xbf16> to vector<3x64xbf16>
    %cst_229 = arith.constant dense<0.000000e+00> : vector<288x64xf32>
    %141 = tpu.matmul %138, %140, %cst_229 {dimension_numbers = #tpu.dot_dimension_numbers<[1], [0], [0], [1], [0, 0, 1, 1], [], []>} : vector<288x3xbf16>, vector<3x64xbf16>, vector<288x64xf32> -> vector<288x64xf32>
    %142 = arith.addf %136, %141 : vector<288x64xf32>
    %c0_230 = arith.constant 0 : index
    %c0_231 = arith.constant 0 : index
    %c36_232 = arith.constant 36 : index
    %c0_233 = arith.constant 0 : index
    %143 = vector.load %arg5[%c0_230, %c0_231, %c36_232, %c0_233] : memref<1x1x326x3xbf16, #tpu.memory_space<vmem>>, vector<1x1x288x3xbf16>
    %144 = vector.shape_cast %143 : vector<1x1x288x3xbf16> to vector<288x3xbf16>
    %c2_234 = arith.constant 2 : index
    %c2_235 = arith.constant 2 : index
    %c0_236 = arith.constant 0 : index
    %c0_237 = arith.constant 0 : index
    %c0_238 = arith.constant 0 : index
    %145 = vector.load %arg6[%c2_234, %c2_235, %c0_236, %c0_237, %c0_238] : memref<3x3x3x3x64xbf16, #tpu.memory_space<vmem>>, vector<1x1x1x3x64xbf16>
    %146 = vector.shape_cast %145 : vector<1x1x1x3x64xbf16> to vector<3x64xbf16>
    %cst_239 = arith.constant dense<0.000000e+00> : vector<288x64xf32>
    %147 = tpu.matmul %144, %146, %cst_239 {dimension_numbers = #tpu.dot_dimension_numbers<[1], [0], [0], [1], [0, 0, 1, 1], [], []>} : vector<288x3xbf16>, vector<3x64xbf16>, vector<288x64xf32> -> vector<288x64xf32>
    %148 = arith.addf %142, %147 : vector<288x64xf32>
    %c0_240 = arith.constant 0 : index
    %c0_241 = arith.constant 0 : index
    %c37_242 = arith.constant 37 : index
    %c0_243 = arith.constant 0 : index
    %149 = vector.load %arg5[%c0_240, %c0_241, %c37_242, %c0_243] : memref<1x1x326x3xbf16, #tpu.memory_space<vmem>>, vector<1x1x288x3xbf16>
    %150 = vector.shape_cast %149 : vector<1x1x288x3xbf16> to vector<288x3xbf16>
    %c2_244 = arith.constant 2 : index
    %c2_245 = arith.constant 2 : index
    %c1_246 = arith.constant 1 : index
    %c0_247 = arith.constant 0 : index
    %c0_248 = arith.constant 0 : index
    %151 = vector.load %arg6[%c2_244, %c2_245, %c1_246, %c0_247, %c0_248] : memref<3x3x3x3x64xbf16, #tpu.memory_space<vmem>>, vector<1x1x1x3x64xbf16>
    %152 = vector.shape_cast %151 : vector<1x1x1x3x64xbf16> to vector<3x64xbf16>
    %cst_249 = arith.constant dense<0.000000e+00> : vector<288x64xf32>
    %153 = tpu.matmul %150, %152, %cst_249 {dimension_numbers = #tpu.dot_dimension_numbers<[1], [0], [0], [1], [0, 0, 1, 1], [], []>} : vector<288x3xbf16>, vector<3x64xbf16>, vector<288x64xf32> -> vector<288x64xf32>
    %154 = arith.addf %148, %153 : vector<288x64xf32>
    %c0_250 = arith.constant 0 : index
    %c0_251 = arith.constant 0 : index
    %c38_252 = arith.constant 38 : index
    %c0_253 = arith.constant 0 : index
    %155 = vector.load %arg5[%c0_250, %c0_251, %c38_252, %c0_253] : memref<1x1x326x3xbf16, #tpu.memory_space<vmem>>, vector<1x1x288x3xbf16>
    %156 = vector.shape_cast %155 : vector<1x1x288x3xbf16> to vector<288x3xbf16>
    %c2_254 = arith.constant 2 : index
    %c2_255 = arith.constant 2 : index
    %c2_256 = arith.constant 2 : index
    %c0_257 = arith.constant 0 : index
    %c0_258 = arith.constant 0 : index
    %157 = vector.load %arg6[%c2_254, %c2_255, %c2_256, %c0_257, %c0_258] : memref<3x3x3x3x64xbf16, #tpu.memory_space<vmem>>, vector<1x1x1x3x64xbf16>
    %158 = vector.shape_cast %157 : vector<1x1x1x3x64xbf16> to vector<3x64xbf16>
    %cst_259 = arith.constant dense<0.000000e+00> : vector<288x64xf32>
    %159 = tpu.matmul %156, %158, %cst_259 {dimension_numbers = #tpu.dot_dimension_numbers<[1], [0], [0], [1], [0, 0, 1, 1], [], []>} : vector<288x3xbf16>, vector<3x64xbf16>, vector<288x64xf32> -> vector<288x64xf32>
    %160 = arith.addf %154, %159 : vector<288x64xf32>
    %c0_260 = arith.constant 0 : index
    %c0_261 = arith.constant 0 : index
    %161 = vector.load %arg7[%c0_260, %c0_261] : memref<1x64xf32, #tpu.memory_space<vmem>>, vector<1x64xf32>
    %162 = vector.broadcast %161 : vector<1x64xf32> to vector<288x64xf32>
    %163 = arith.addf %160, %162 : vector<288x64xf32>
    %cst_262 = arith.constant 0.000000e+00 : f32
    %164 = vector.broadcast %cst_262 : f32 to vector<288x64xf32>
    %165 = arith.maximumf %163, %164 : vector<288x64xf32>
    %166 = arith.truncf %165 : vector<288x64xf32> to vector<288x64xbf16>
    %c0_263 = arith.constant 0 : index
    %c0_264 = arith.constant 0 : index
    %c0_265 = arith.constant 0 : index
    %c0_266 = arith.constant 0 : index
    %167 = vector.load %arg8[%c0_263, %c0_264, %c0_265, %c0_266] : memref<1x1x288x64xbf16, #tpu.memory_space<vmem>>, vector<1x1x288x64xbf16>
    %168 = vector.shape_cast %167 : vector<1x1x288x64xbf16> to vector<288x64xbf16>
    %169 = vector.shape_cast %166 : vector<288x64xbf16> to vector<1x1x288x64xbf16>
    tpu.vector_store %arg8[%c0_263, %c0_264, %c0_265, %c0_266], %169 {strides = array<i32>} : memref<1x1x288x64xbf16, #tpu.memory_space<vmem>>, vector<1x1x288x64xbf16>,
    return
  }
  func.func @transform_0(%arg0: i32, %arg1: i32, %arg2: i32) -> (i32, i32, i32, i32) {
    %c0_i32 = arith.constant 0 : i32
    %0 = arith.addi %arg2, %c0_i32 : i32
    %c0_i32_0 = arith.constant 0 : i32
    %c0_i32_1 = arith.constant 0 : i32
    %c0_i32_2 = arith.constant 0 : i32
    return %arg1, %0, %c0_i32_0, %c0_i32_1 : i32, i32, i32, i32
  }
  func.func @transform_1(%arg0: i32, %arg1: i32, %arg2: i32) -> (i32, i32, i32, i32) {
    %c1_i32 = arith.constant 1 : i32
    %0 = arith.addi %arg2, %c1_i32 : i32
    %c0_i32 = arith.constant 0 : i32
    %c0_i32_0 = arith.constant 0 : i32
    %c0_i32_1 = arith.constant 0 : i32
    return %arg1, %0, %c0_i32, %c0_i32_0 : i32, i32, i32, i32
  }
  func.func @transform_2(%arg0: i32, %arg1: i32, %arg2: i32) -> (i32, i32, i32, i32) {
    %c2_i32 = arith.constant 2 : i32
    %0 = arith.addi %arg2, %c2_i32 : i32
    %c0_i32 = arith.constant 0 : i32
    %c0_i32_0 = arith.constant 0 : i32
    %c0_i32_1 = arith.constant 0 : i32
    return %arg1, %0, %c0_i32, %c0_i32_0 : i32, i32, i32, i32
  }
  func.func @transform_3(%arg0: i32, %arg1: i32, %arg2: i32) -> (i32, i32, i32, i32, i32) {
    %c0_i32 = arith.constant 0 : i32
    %c0_i32_0 = arith.constant 0 : i32
    %c0_i32_1 = arith.constant 0 : i32
    %c0_i32_2 = arith.constant 0 : i32
    %c0_i32_3 = arith.constant 0 : i32
    return %c0_i32, %c0_i32_0, %c0_i32_1, %c0_i32_2, %arg0 : i32, i32, i32, i32, i32
  }
  func.func @transform_4(%arg0: i32, %arg1: i32, %arg2: i32) -> (i32, i32) {
    %c0_i32 = arith.constant 0 : i32
    %c0_i32_0 = arith.constant 0 : i32
    return %c0_i32, %arg0 : i32, i32
  }
  func.func @transform_5(%arg0: i32, %arg1: i32, %arg2: i32) -> (i32, i32, i32, i32) {
    %c0_i32 = arith.constant 0 : i32
    %c0_i32_0 = arith.constant 0 : i32
    return %arg1, %arg2, %c0_i32, %arg0 : i32, i32, i32, i32
  }
}

</mosaic_0001>

<bundles_post_ra>
// kernel: tpu_custom_call.1
= control target key start
LH: loop header
LB: loop body
LE: loop exit
PB: predicated region body
PF: predicated region fallthrough
CT: control target
= control target key end

     0   :  { %s14294_s18 = smov 0   ;;  %s14296_s19 = smov 0   ;;  %s18354_s0 = inlined_call_operand.vmem [shape: bf16[2,10,326,3], index: 0, kind: input, shape index: {}]   ;;  %s18355_s1 = inlined_call_operand.vmem [shape: bf16[2,10,326,3], index: 1, kind: input, shape index: {}]   ;;  %s18356_s2 = inlined_call_operand.vmem [shape: bf16[2,10,326,3], index: 2, kind: input, shape index: {}]   ;;  %s18357_s3 = inlined_call_operand.vmem [shape: bf16[3,3,3,3,64], index: 3, kind: input, shape index: {}]   ;;  %s18358_s4 = inlined_call_operand.vmem [shape: f32[1,64], index: 4, kind: input, shape index: {}]   ;;  %s18359_s5 = inlined_call_operand.vmem [shape: bf16[2,8,288,64], index: 5, kind: output, shape index: {}]  }
   0x1   :  { %s14298_s20 = smov 0   ;;  %s14300_s21 = smov 0  }
   0x2   :  { %s14302_s22 = smov 0  }
   0x3 LB: > { %s27_s23 = sadd.s32 1, %s14253_s20  ;;  %s30_s24 = sadd.s32 1, %s14257_s21  ;;  %s14261_s22 = sphi %s14302_s22, %s15_s22   ;;  %s14257_s21 = sphi %s14300_s21, %s18642_s21   ;;  %s14253_s20 = sphi %s14298_s20, %s18641_s20   ;;  %s14249_s19 = sphi %s14296_s19, %s18640_s19   ;;  %s14245_s18 = sphi %s14294_s18, %s18639_s18  }
   0x4   : > { %p28_p0 = scmp.ge.s32.totalorder %s27_s23, 8  ;;  %p11599_p1 = scmp.ge.s32.totalorder %s14261_s22, 1 }
   0x5   : > { %p273_p2 = scmp.lt.s32.totalorder %s14261_s22, 17 }
   0x6   : > { %s18644_s23 = smov (%p28_p0, %s27_s23), 0  ;;  %s18646_s24 = smov (!%p28_p0, %s30_s24), %s14257_s21 }
   0x7   : > { %p274_p3 = pnand %p11599_p1, %p273_p2  ;;  %p32_p4 = scmp.ge.s32.totalorder %s18646_s24, 2 }
   0x9   : > { %s18648_s24 = smov (%p32_p4, %s18646_s24), 0  ;;  %277 = sbr.rel (%p274_p3) target bundleno = 1211 (0x4bb), region = 40 }
   0xe   : > { %v11604_v0 = vld [vmem:[%s18357_s3 + $0x2] sm:$0x3]  ;;  %vm727_vm0 = vcmask 1040384   ;;  %vm728_vm1 = vcmask 1041408   ;;  %p339_p5 = scmp.lt.s32.totalorder %s14249_s19, 1  ;;  %v14263_v1 = vmov 65535  }
   0xf   : > { %v729_v2 = vsel %vm727_vm0, 4294967295, %v14263_v1  ;;  %p341_p6 = scmp.lt.s32.totalorder %s14245_s18, 9  ;;  %v11660_v4 = vld [vmem:[%s18357_s3 + $0x4] sm:$0x3]  ;;  %v426_v5 = vld [vmem:[%s18357_s3] sm:$0x3] }
  0x10   : > { %v14330_v3 = vsel %vm728_vm1, %v729_v2, 0  ;;  %s18650_s19 = smov (!%p339_p5, %s14249_s19), 1  ;;  %vm523_vm2 = vsmask.f32 7424  ;;  %v11680_v18 = vld [vmem:[%s18357_s3 + $0x6] sm:$0x3] }
  0x11   : > { %v732_v6 = vand.u32 %v11604_v0, %v14330_v3  ;;  %s342_s6 = scalar_select %p341_p6, %s14245_s18, 9  ;;  %v14343_v7 = vand.u32 %v11660_v4, %v14330_v3  ;;  %v14346_v8 = vand.u32 %v14330_v3, %v426_v5  ;;  %v11718_v19 = vld [vmem:[%s18357_s3 + $0x8] sm:$0x3]  ;;  %vm672_vm3 = vcmask 23552  }
  0x12   : > { %s14349_s7 = smul.u32 410, %s18650_s19  ;;  %v14406_v37 = vand.u32 %v11680_v18, %v14330_v3  ;;  %v14409_v38 = vand.u32 %v11718_v19, %v14330_v3  ;;  %vm1133_vm4 = vcmask 1046528   ;;  %s348_s29 = sadd.s32 1, %s14245_s18  ;;  %vm2333_vm5 = vcmask 1045504  }
  0x13   : > { %12926 = vmatprep.subr.bf16.mxu0 %v732_v6  ;;  %13952 = vmatprep.subr.bf16.mxu1 %v732_v6  ;;  %s13954_s8 = smul.u32 41, %s342_s6  ;;  %p351_p7 = scmp.lt.s32.totalorder %s348_s29, 9  ;;  %vm1886_vm6 = vsmask.f32 6400  ;;  %vm3533_vm7 = vcmask 1044480   ;;  %vm11378_vm9 = vcmask 519168  }
  0x14   : > { %12927 = vmatpush3.bf16.msra.mxu0 %v732_v6  ;;  %13953 = vmatpush3.bf16.msra.mxu1 %v732_v6  ;;  %s359_s30 = sadd.s32 2, %s14245_s18  ;;  %vm3086_vm8 = vsmask.f32 5376  ;;  %p379_p9 = scmp.lt.s32.totalorder %s14245_s18, 7 }
  0x15   : > { %s345_s9 = sadd.s32 %s14349_s7, %s13954_s8  ;;  %13002 = vmatprep.subr.bf16.mxu0 %v14343_v7  ;;  %12964 = vmatprep.subr.bf16.mxu1 %v14346_v8  ;;  %s18652_s29 = smov (!%p351_p7, %s348_s29), 9 }
  0x16   : > { %s11600_s10 = sshll.u32 %s345_s9, 2  ;;  %s13956_s6 = smul.u32 41, %s18652_s29 }
  0x17   : > { %s14357_s13 = scalar_lea.vmem %s18354_s0, %s11600_s10  ;;  %p362_p8 = scmp.lt.s32.totalorder %s359_s30, 9 }
  0x18   : > { %v390_v9 = vld [vmem:[%s14357_s13] sm:$0xf]  ;;  %v14361_v10 = vld [vmem:[%s14357_s13 + $0x4] sm:$0xf]  ;;  %v14367_v12 = vld [vmem:[%s14357_s13 + $0x8] sm:$0xff]   ;;  %s14567_s8 = sadd.s32 %s13956_s6, %s14349_s7  ;;  %s18656_s18 = smov (!%p379_p9, %s14245_s18), 7 }
  0x19   : > { %v14364_v11 = vcombine.low %v390_v9, %v14361_v10  ;;  %v532_v15 = vshll.u32 %v14367_v12, 16  ;;  %v536_v16 = vshrl.u32 %v14367_v12, 16  ;;  %v14374_v17 = vld [vmem:[%s14357_s13 + $0x50] sm:$0xff]   ;;  %v14383_v20 = vld [vmem:[%s14357_s13 + $0x58] sm:$0xff]   ;;  %v14396_v32 = vld [vmem:[%s14357_s13 + $0x60] sm:$0xff]   ;;  %s18654_s30 = smov (!%p362_p8, %s359_s30), 9 }
  0x1a   : > { %v604_v23 = vshll.u32 %v14374_v17, 16  ;;  %v608_v24 = vshrl.u32 %v14374_v17, 16  ;;  %v14388_v25 = vld [vmem:[%s14357_s13 + $0x10] sm:$0xff]   ;;  %v612_v26 = vshll.u32 %v14383_v20, 16  ;;  %v616_v27 = vshrl.u32 %v14383_v20, 16  ;;  %v14399_v33 = vld [vmem:[%s14357_s13 + $0x18] sm:$0xff]  }
  0x1b   : > { %v525_v13 = vshrl.u32 %v14364_v11, 16  ;;  %v527_v14 = vshll.u32 %v14364_v11, 16  ;;  %v534_v22 = vrot.slane %v532_v15, 1  ;;  %v540_v31 = vshll.u32 %v14388_v25, 16  ;;  %v14403_v36 = vld [vmem:[%s14357_s13 + $0x68] sm:$0xff]   ;;  %v14419_v47 = vld [vmem:[%s14357_s13 + $0x20] sm:$0xff]  }
  0x1c   : > { %v14392_v30 = vrot.slane %v604_v23, 1  ;;  %v614_v34 = vrot.slane %v612_v26, 1  ;;  %v544_v35 = vshrl.u32 %v14388_v25, 16  ;;  %v620_v42 = vshll.u32 %v14396_v32, 16  ;;  %v14424_v52 = vld [vmem:[%s14357_s13 + $0x70] sm:$0xff]   ;;  %v14437_v0 = vld [vmem:[%s14357_s13 + $0x28] sm:$0xff]  }
  0x1d   : > { %v529_v21 = vrot.slane %v527_v14, 1  ;;  %v538_v29 = vor.u32 %v536_v16, %v534_v22  ;;  %v542_v41 = vrot.slane %v540_v31, 1  ;;  %v548_v44 = vshll.u32 %v14399_v33, 16  ;;  %v14441_v2 = vld [vmem:[%s14357_s13 + $0x78] sm:$0xff]   ;;  %v14452_v15 = vld [vmem:[%s14357_s13 + $0x30] sm:$0xff]   ;;  %v14455_v16 = vld [vmem:[%s14357_s13 + $0x80] sm:$0xff]  }
  0x1e   : > { %v610_v40 = vor.u32 %v608_v24, %v14392_v30  ;;  %v618_v43 = vor.u32 %v616_v27, %v614_v34  ;;  %v624_v45 = vshrl.u32 %v14396_v32, 16  ;;  %v628_v46 = vshll.u32 %v14403_v36, 16  ;;  %s11601_s9 = sshll.u32 %s14567_s8, 2  ;;  %s13957_s10 = smul.u32 41, %s18654_s30 }
  0x1f   : > { %v530_v28 = vor.u32 %v529_v21, %v525_v13  ;;  %v543_v49 = vsel %vm523_vm2, %v538_v29, %v542_v41  ;;  %v622_v50 = vrot.slane %v620_v42, 1  ;;  %v546_v51 = vor.u32 %v544_v35, %v542_v41  ;;  %s14623_s14 = scalar_lea.vmem %s18355_s1, %s11601_s9  ;;  %s13958_s9 = smul.u32 36, %s18656_s18 }
  0x20   : > { %v615_v48 = vsel %vm523_vm2, %v610_v40, %v614_v34  ;;  %v550_v53 = vrot.slane %v548_v44, 1  ;;  %v630_v54 = vrot.slane %v628_v46, 1  ;;  %v552_v55 = vshrl.u32 %v14399_v33, 16  ;;  %s14856_s26 = sadd.s32 %s13957_s10, %s14349_s7 }
  0x21   : > { %v535_v39 = vsel %vm523_vm2, %v530_v28, %v534_v22  ;;  %12948 = vmatprep.mubr.msk.bf16.mxu1 %vm672_vm3, %v615_v48  ;;  %v556_v56 = vshll.u32 %v14419_v47, 16  ;;  %v623_v57 = vsel %vm523_vm2, %v618_v43, %v622_v50  ;;  %v626_v58 = vor.u32 %v624_v45, %v622_v50  ;;  %v14465_v28 = vld [vmem:[%s14357_s13 + $0x38] sm:$0xff]   ;;  %v14478_v43 = vld [vmem:[%s14357_s13 + $0x40] sm:$0xff]   ;;  %v14484_v50 = vld [vmem:[%s14357_s13 + $0x90] ss:$0 sps:$4 sm:$0x11]  }
  0x22   : > { %12928 = vmatprep.mubr.msk.bf16.mxu0 %vm672_vm3, %v535_v39  ;;  %v632_v59 = vshrl.u32 %v14403_v36, 16  ;;  %v636_v60 = vshll.u32 %v14424_v52, 16  ;;  %12949 = vmatmul.mubr.msk.bf16.vlgmr.msra.gmra.mxu1 %vm672_vm3, %v623_v57  ;;  %v551_v61 = vsel %vm523_vm2, %v546_v51, %v550_v53  ;;  %v554_v62 = vor.u32 %v552_v55, %v550_v53  ;;  %v14472_v39 = vld [vmem:[%s14357_s13 + $0x88] sm:$0xff]   ;;  %s11602_s27 = sshll.u32 %s14856_s26, 2 }
  0x23   : > { %12929 = vmatmul.mubr.msk.bf16.vlgmr.msra.gmra.mxu0 %vm672_vm3, %v543_v49  ;;  %v558_v63 = vrot.slane %v556_v56, 1  ;;  %v560_v1 = vshrl.u32 %v14419_v47, 16  ;;  %12965 = vmatpush3.bf16.msra.mxu1 %v14346_v8  ;;  %v631_v4 = vsel %vm523_vm2, %v626_v58, %v630_v54  ;;  %v564_v13 = vshll.u32 %v14437_v0, 16  ;;  %v14487_v51 = vld [vmem:[%s14357_s13 + $0x48] sm:$0xff]   ;;  %s14907_s29 = scalar_lea.vmem %s18356_s2, %s11602_s27 }
  0x24   : > { %13003 = vmatpush3.bf16.msra.mxu0 %v14343_v7  ;;  %12932 = vmatprep.mubr.msk.bf16.mxu0 %vm672_vm3, %v551_v61  ;;  %v634_v5 = vor.u32 %v632_v59, %v630_v54  ;;  %v638_v6 = vrot.slane %v636_v60, 1  ;;  %v640_v7 = vshrl.u32 %v14424_v52, 16  ;;  %v644_v14 = vshll.u32 %v14441_v2, 16 }
  0x25   : > { %13078 = vmatprep.subr.bf16.mxu0 %v14409_v38  ;;  %12952 = vmatprep.mubr.msk.bf16.mxu1 %vm672_vm3, %v631_v4  ;;  %v562_v9 = vor.u32 %v560_v1, %v558_v63  ;;  %v559_v8 = vsel %vm523_vm2, %v554_v62, %v558_v63  ;;  %v568_v19 = vshrl.u32 %v14437_v0, 16  ;;  %v648_v21 = vshrl.u32 %v14441_v2, 16 }
  0x26   : > { %13040 = vmatprep.subr.bf16.mxu1 %v14406_v37  ;;  %v642_v18 = vor.u32 %v640_v7, %v638_v6  ;;  %v566_v22 = vrot.slane %v564_v13, 1  ;;  %v646_v23 = vrot.slane %v644_v14, 1  ;;  %v572_v24 = vshll.u32 %v14452_v15, 16  ;;  %v1127_v7 = vld [vmem:[%s14357_s13] sm:$0xe] }
  0x27   : > { %v652_v26 = vshll.u32 %v14455_v16, 16  ;;  %v639_v27 = vsel %vm523_vm2, %v634_v5, %v638_v6  ;;  %v576_v29 = vshrl.u32 %v14452_v15, 16  ;;  %v580_v41 = vshll.u32 %v14465_v28, 16 }
  0x28   : > { %v567_v31 = vsel %vm523_vm2, %v562_v9, %v566_v22  ;;  %v647_v34 = vsel %vm523_vm2, %v642_v18, %v646_v23  ;;  %v574_v35 = vrot.slane %v572_v24, 1  ;;  %v570_v40 = vor.u32 %v568_v19, %v566_v22 }
  0x29   : > { %v656_v42 = vshrl.u32 %v14455_v16, 16  ;;  %v654_v44 = vrot.slane %v652_v26, 1  ;;  %v660_v46 = vshll.u32 %v14472_v39, 16  ;;  %v650_v48 = vor.u32 %v648_v21, %v646_v23 }
  0x2a   : > { %12953 = vmatmul.mubr.msk.bf16.gmra.mxu1 %vm672_vm3, %v639_v27  ;;  %v578_v45 = vor.u32 %v576_v29, %v574_v35  ;;  %v582_v49 = vrot.slane %v580_v41, 1  ;;  %v588_v55 = vshll.u32 %v14478_v43, 16  ;;  %v575_v56 = vsel %vm523_vm2, %v570_v40, %v574_v35 }
  0x2b   : > { %12933 = vmatmul.mubr.msk.bf16.gmra.mxu0 %vm672_vm3, %v559_v8  ;;  %12956 = vmatprep.mubr.msk.bf16.mxu1 %vm672_vm3, %v647_v34  ;;  %v658_v53 = vor.u32 %v656_v42, %v654_v44  ;;  %v662_v54 = vrot.slane %v660_v46, 1  ;;  %v584_v57 = vshrl.u32 %v14465_v28, 16  ;;  %v592_v59 = vshrl.u32 %v14478_v43, 16  ;;  %v11758_v34 = vld [vmem:[%s18357_s3 + $0xc] sm:$0x3] }
  0x2c   : > { %12936 = vmatprep.mubr.msk.bf16.mxu0 %vm672_vm3, %v567_v31  ;;  %v583_v58 = vsel %vm523_vm2, %v578_v45, %v582_v49  ;;  %v596_v60 = vshll.u32 %v14487_v51, 16  ;;  %v655_v61 = vsel %vm523_vm2, %v650_v48, %v654_v44  ;;  %v664_v62 = vshrl.u32 %v14472_v39, 16  ;;  %v1442_v46 = vld [vmem:[%s14357_s13 + $0xc] sm:$0xf]  ;;  %v14582_v48 = vld [vmem:[%s14357_s13 + $0x10] sm:$0xff]  }
  0x2d   : > { %v668_v63 = vshll.u32 %v14484_v50, 16  ;;  %v663_v1 = vsel %vm523_vm2, %v658_v53, %v662_v54  ;;  %v590_v4 = vrot.slane %v588_v55, 1  ;;  %v586_v5 = vor.u32 %v584_v57, %v582_v49  ;;  %v14589_v55 = vld [vmem:[%s14357_s13 + $0x18] sm:$0xff]   ;;  %v14595_v57 = vld [vmem:[%s14357_s13 + $0x20] sm:$0xff]  }
  0x2e   : > { %v598_v6 = vrot.slane %v596_v60, 1  ;;  %v666_v13 = vor.u32 %v664_v62, %v662_v54  ;;  %v600_v18 = vshrl.u32 %v14487_v51, 16  ;;  %v11661_v21 = vcombine.low %v1127_v7, %v14361_v10  ;;  %v11738_v10 = vld [vmem:[%s18357_s3 + $0xa] sm:$0x3]  ;;  %v14615_v7 = vld [vmem:[%s14357_s13 + $0x38] sm:$0xff]  }
  0x2f   : > { %v594_v9 = vor.u32 %v592_v59, %v590_v4  ;;  %v670_v14 = vrot.slane %v668_v63, 1  ;;  %v591_v8 = vsel %vm523_vm2, %v586_v5, %v590_v4  ;;  %v1135_v26 = vrot.slane %v14367_v12, 1  ;;  %v1441_v54 = vld [vmem:[%s14357_s13 + $0x8] sm:$0xe] }
  0x30   : > { %v602_v23 = vor.u32 %v600_v18, %v598_v6  ;;  %v1134_v24 = vrot.slane %v11661_v21, 1  ;;  %v14523_v31 = vand.u32 %v11738_v10, %v14330_v3  ;;  %v14540_v41 = vand.u32 %v11758_v34, %v14330_v3 }
  0x31   : > { %v599_v19 = vsel %vm523_vm2, %v594_v9, %v598_v6  ;;  %v671_v22 = vsel %vm523_vm2, %v666_v13, %v670_v14  ;;  %v1151_v45 = vrot.slane %v14487_v51, 1  ;;  %v1155_v60 = vrot.slane %v14383_v20, 1 }
  0x32   : > { %12957 = vmatmul.mubr.msk.bf16.gmra.mxu1 %vm672_vm3, %v655_v61  ;;  %v607_v27 = vsel %vm523_vm2, %v602_v23, %v14392_v30  ;;  %v1136_v29 = vsel %vm1133_vm4, %v1134_v24, %v1135_v26  ;;  %v1139_v30 = vrot.slane %v14399_v33, 1  ;;  %v2337_v61 = vrot.slane %v14589_v55, 2  ;;  %v14642_v23 = vld [vmem:[%s14357_s13 + $0x48] sm:$0xff]  }
  0x33   : > { %12937 = vmatmul.mubr.msk.bf16.gmra.mxu0 %vm672_vm3, %v575_v56  ;;  %12960 = vmatprep.mubr.msk.bf16.mxu1 %vm672_vm3, %v663_v1  ;;  %v1157_v62 = vrot.slane %v14396_v32, 1  ;;  %v1159_v63 = vrot.slane %v14403_v36, 1  ;;  %v14606_v1 = vld [vmem:[%s14357_s13 + $0x30] sm:$0xff]   ;;  %v2339_v5 = vrot.slane %v14595_v57, 2  ;;  %v1161_v6 = vrot.slane %v14424_v52, 1 }
  0x34   : > { %12940 = vmatprep.mubr.msk.bf16.mxu0 %vm672_vm3, %v583_v58  ;;  %v14598_v58 = vld [vmem:[%s14357_s13 + $0x28] sm:$0xff]   ;;  %v1163_v13 = vrot.slane %v14441_v2, 1  ;;  %v14628_v14 = vcombine.low %v1441_v54, %v1442_v46  ;;  %v1165_v21 = vrot.slane %v14455_v16, 1  ;;  %v1574_v24 = vrot.slane %v14582_v48, 1 }
  0x35   : > { %v14634_v18 = vsel %vm2333_vm5, %v2337_v61, %v2339_v5 }
  0x36   : > { %v1573_v34 = vrot.slane %v14628_v14, 1 }
  0x3a   : > { %12961 = vmatmul.mubr.msk.bf16.gmra.mxu1 %vm672_vm3, %v671_v22  ;;  %v1167_v22 = vrot.slane %v14472_v39, 1 }
  0x3b   : > { %12941 = vmatmul.mubr.msk.bf16.gmra.mxu0 %vm672_vm3, %v591_v8  ;;  %12966 = vmatprep.mubr.msk.bf16.mxu1 %vm672_vm3, %v14364_v11  ;;  %v1137_v11 = vrot.slane %v14388_v25, 1  ;;  %v14631_v8 = vld [vmem:[%s14357_s13 + $0x40] sm:$0xff]  }
  0x3c   : > { %12944 = vmatprep.mubr.msk.bf16.mxu0 %vm672_vm3, %v599_v19  ;;  %v2341_v19 = vrot.slane %v14598_v58, 2 }
  0x3d   : > { %v1138_v35 = vsel %vm1133_vm4, %v1135_v26, %v1137_v11  ;;  %v1140_v40 = vsel %vm1133_vm4, %v1137_v11, %v1139_v30 }
  0x3e   : > { %v14647_v26 = vsel %vm2333_vm5, %v2339_v5, %v2341_v19 }
  0x42   : > { %12967 = vmatmul.mubr.msk.bf16.vlgmr.msra.gmra.mxu1 %vm672_vm3, %v14367_v12  ;;  %v1141_v12 = vrot.slane %v14419_v47, 1 }
  0x43   : > { %12945 = vmatmul.mubr.msk.bf16.gmra.mxu0 %vm672_vm3, %v607_v27  ;;  %13041 = vmatpush3.bf16.msra.mxu1 %v14406_v37  ;;  %v2345_v27 = vrot.slane %v14615_v7, 2 }
  0x44   : > { %13004 = vmatprep.mubr.msk.bf16.mxu0 %vm672_vm3, %v1136_v29  ;;  %12970 = vmatprep.mubr.msk.bf16.mxu1 %vm672_vm3, %v14388_v25  ;;  %v1143_v25 = vrot.slane %v14437_v0, 1  ;;  %v1142_v37 = vsel %vm1133_vm4, %v1139_v30, %v1141_v12  ;;  %v1169_v29 = vrot.slane %v14484_v50, 1 }
  0x45   : > { %13116 = vmatprep.subr.bf16.mxu1 %v14523_v31 }
  0x4a   : > { %12971 = vmatmul.mubr.msk.bf16.gmra.mxu1 %vm672_vm3, %v14399_v33  ;;  %v1145_v33 = vrot.slane %v14452_v15, 1 }
  0x4b   : > { %13005 = vmatmul.mubr.msk.bf16.vlgmr.msra.gmra.mxu0 %vm672_vm3, %v1138_v35  ;;  %12974 = vmatprep.mubr.msk.bf16.mxu1 %vm672_vm3, %v14419_v47  ;;  %v1147_v47 = vrot.slane %v14465_v28, 1 }
  0x4c   : > { %13079 = vmatpush3.bf16.msra.mxu0 %v14409_v38  ;;  %13008 = vmatprep.mubr.msk.bf16.mxu0 %vm672_vm3, %v1140_v40  ;;  %v1144_v38 = vsel %vm1133_vm4, %v1141_v12, %v1143_v25  ;;  %v1146_v42 = vsel %vm1133_vm4, %v1143_v25, %v1145_v33  ;;  %v2347_v40 = vrot.slane %v14631_v8, 2  ;;  %v1578_v12 = vrot.slane %v14595_v57, 1 }
  0x4d   : > { %13154 = vmatprep.subr.bf16.mxu0 %v14540_v41  ;;  %v1148_v44 = vsel %vm1133_vm4, %v1145_v33, %v1147_v47  ;;  %v2349_v25 = vrot.slane %v14642_v23, 2 }
  0x4e   : > { %v14668_v33 = vsel %vm2333_vm5, %v2345_v27, %v2347_v40 }
  0x52   : > { %12975 = vmatmul.mubr.msk.bf16.gmra.mxu1 %vm672_vm3, %v14437_v0  ;;  %v1149_v0 = vrot.slane %v14478_v43, 1 }
  0x53   : > { %13009 = vmatmul.mubr.msk.bf16.gmra.mxu0 %vm672_vm3, %v1142_v37  ;;  %12978 = vmatprep.mubr.msk.bf16.mxu1 %vm672_vm3, %v14452_v15  ;;  %v2327_v15 = vld [vmem:[%s14357_s13 + $0x8] sm:$0xc]  ;;  %v1888_v37 = vshrl.u32 %v14628_v14, 16 }
  0x54   : > { %13012 = vmatprep.mubr.msk.bf16.mxu0 %vm672_vm3, %v1144_v38  ;;  %v11739_v49 = vcombine.low %v2327_v15, %v1442_v46  ;;  %v1150_v53 = vsel %vm1133_vm4, %v1147_v47, %v1149_v0  ;;  %v1152_v56 = vsel %vm1133_vm4, %v1149_v0, %v1151_v45  ;;  %v1891_v38 = vshll.u32 %v14628_v14, 16 }
  0x55   : > { %v14672_v47 = vsel %vm2333_vm5, %v2347_v40, %v2349_v25  ;;  %v1158_v0 = vsel %vm1133_vm4, %v1155_v60, %v1157_v62  ;;  %v1896_v15 = vshrl.u32 %v14582_v48, 16  ;;  %v1160_v46 = vsel %vm1133_vm4, %v1157_v62, %v1159_v63 }
  0x56   : > { %v2334_v59 = vrot.slane %v11739_v49, 2  ;;  %v1890_v49 = vrot.slane %v1888_v37, 1  ;;  %v1164_v14 = vsel %vm1133_vm4, %v1161_v6, %v1163_v13  ;;  %v1166_v40 = vsel %vm1133_vm4, %v1163_v13, %v1165_v21  ;;  %v14740_v37 = vld [vmem:[%s14357_s13 + $0x78] sm:$0xff]  }
  0x57   : > { %v1898_v62 = vrot.slane %v1896_v15, 1  ;;  %v1575_v13 = vsel %vm1133_vm4, %v1573_v34, %v1574_v24  ;;  %v14770_v34 = vld [vmem:[%s14357_s13 + $0x88] sm:$0xff]  }
  0x5a   : > { %12979 = vmatmul.mubr.msk.bf16.gmra.mxu1 %vm672_vm3, %v14465_v28  ;;  %v2335_v28 = vrot.slane %v14582_v48, 2 }
  0x5b   : > { %13013 = vmatmul.mubr.msk.bf16.gmra.mxu0 %vm672_vm3, %v1146_v42  ;;  %12982 = vmatprep.mubr.msk.bf16.mxu1 %vm672_vm3, %v14478_v43  ;;  %v1153_v43 = vrot.slane %v14374_v17, 1  ;;  %v14677_v42 = vld [vmem:[%s14357_s13 + $0x50] sm:$0xff]  }
  0x5c   : > { %13016 = vmatprep.mubr.msk.bf16.mxu0 %vm672_vm3, %v1148_v44  ;;  %v14609_v4 = vsel %vm2333_vm5, %v2334_v59, %v2335_v28  ;;  %v14618_v9 = vsel %vm2333_vm5, %v2335_v28, %v2337_v61  ;;  %v14682_v44 = vld [vmem:[%s14357_s13 + $0x58] sm:$0xff]   ;;  %v1905_v28 = vshrl.u32 %v14589_v55, 16  ;;  %v14703_v59 = vld [vmem:[%s14357_s13 + $0x60] sm:$0xff]   ;;  %v1162_v61 = vsel %vm1133_vm4, %v1159_v63, %v1161_v6 }
  0x5d   : > { %v1154_v10 = vsel %vm1133_vm4, %v1151_v45, %v1153_v43  ;;  %v1156_v30 = vsel %vm1133_vm4, %v1153_v43, %v1155_v60  ;;  %v1899_v45 = vshll.u32 %v14582_v48, 16  ;;  %v2353_v54 = vrot.slane %v14682_v44, 2  ;;  %v14708_v60 = vld [vmem:[%s14357_s13 + $0x68] sm:$0xff]  }
  0x5e   : > { %v1914_v63 = vshrl.u32 %v14595_v57, 16 }
  0x5f   : > { %v1901_v5 = vrot.slane %v1899_v45, 2 }
  0x60   : > { %v1916_v45 = vrot.slane %v1914_v63, 1 }
  0x62   : > { %12983 = vmatmul.mubr.msk.bf16.gmra.mxu1 %vm672_vm3, %v14487_v51  ;;  %v2343_v51 = vrot.slane %v14606_v1, 2 }
  0x63   : > { %13017 = vmatmul.mubr.msk.bf16.gmra.mxu0 %vm672_vm3, %v1150_v53  ;;  %12986 = vmatprep.mubr.msk.bf16.mxu1 %vm672_vm3, %v14374_v17  ;;  %v1576_v17 = vrot.slane %v14589_v55, 1  ;;  %v1893_v53 = vrot.slane %v1891_v38, 2  ;;  %v1168_v38 = vsel %vm1133_vm4, %v1165_v21, %v1167_v22 }
  0x64   : > { %13020 = vmatprep.mubr.msk.bf16.mxu0 %vm672_vm3, %v1152_v56  ;;  %v14654_v11 = vsel %vm2333_vm5, %v2341_v19, %v2343_v51  ;;  %v14659_v35 = vsel %vm2333_vm5, %v2343_v51, %v2345_v27  ;;  %v1908_v19 = vshll.u32 %v14589_v55, 16  ;;  %v1582_v51 = vrot.slane %v14606_v1, 1 }
  0x65   : > { %v1907_v27 = vrot.slane %v1905_v28, 1  ;;  %v1902_v28 = vor.u32 %v1901_v5, %v1898_v62  ;;  %v1577_v50 = vsel %vm1133_vm4, %v1574_v24, %v1576_v17  ;;  %v1932_v62 = vshrl.u32 %v14606_v1, 16 }
  0x66   : > { %v1935_v5 = vshll.u32 %v14606_v1, 16 }
  0x6a   : > { %12987 = vmatmul.mubr.msk.bf16.gmra.mxu1 %vm672_vm3, %v14383_v20  ;;  %v2351_v20 = vrot.slane %v14677_v42, 2 }
  0x6b   : > { %13021 = vmatmul.mubr.msk.bf16.gmra.mxu0 %vm672_vm3, %v1154_v10  ;;  %12990 = vmatprep.mubr.msk.bf16.mxu1 %vm672_vm3, %v14396_v32  ;;  %v1580_v32 = vrot.slane %v14598_v58, 1 }
  0x6c   : > { %13024 = vmatprep.mubr.msk.bf16.mxu0 %vm672_vm3, %v1156_v30  ;;  %v14694_v56 = vsel %vm2333_vm5, %v2349_v25, %v2351_v20  ;;  %v14698_v43 = vsel %vm2333_vm5, %v2351_v20, %v2353_v54  ;;  %v14730_v30 = vld [vmem:[%s14357_s13 + $0x70] sm:$0xff]   ;;  %v1910_v25 = vrot.slane %v1908_v19, 2  ;;  %v11796_v19 = vld [vmem:[%s18357_s3 + $0xe] sm:$0x3] }
  0x6d   : > { %v2359_v15 = vrot.slane %v14730_v30, 2  ;;  %v14797_v48 = vand.u32 %v11796_v19, %v14330_v3 }
  0x6e   : > { %v1911_v55 = vor.u32 %v1910_v25, %v1907_v27 }
  0x70   : > { %v1912_v27 = vsel %vm1886_vm6, %v1902_v28, %v1911_v55 }
  0x72   : > { %12991 = vmatmul.mubr.msk.bf16.gmra.mxu1 %vm672_vm3, %v14403_v36  ;;  %v2355_v36 = vrot.slane %v14703_v59, 2 }
  0x73   : > { %13025 = vmatmul.mubr.msk.bf16.gmra.mxu0 %vm672_vm3, %v1158_v0  ;;  %12994 = vmatprep.mubr.msk.bf16.mxu1 %vm672_vm3, %v14424_v52  ;;  %v2357_v52 = vrot.slane %v14708_v60, 2  ;;  %v1917_v0 = vshll.u32 %v14595_v57, 16  ;;  %v1950_v57 = vshrl.u32 %v14631_v8, 16 }
  0x74   : > { %13028 = vmatprep.mubr.msk.bf16.mxu0 %vm672_vm3, %v1160_v46  ;;  %v14721_v10 = vsel %vm2333_vm5, %v2353_v54, %v2355_v36  ;;  %v1923_v46 = vshrl.u32 %v14598_v58, 16  ;;  %v1894_v54 = vor.u32 %v1893_v53, %v1890_v49 }
  0x75   : > { %v14725_v6 = vsel %vm2333_vm5, %v2355_v36, %v2357_v52  ;;  %v14757_v21 = vsel %vm2333_vm5, %v2357_v52, %v2359_v15  ;;  %v1919_v49 = vrot.slane %v1917_v0, 2  ;;  %v1934_v0 = vrot.slane %v1932_v62, 1 }
  0x76   : > { %v1903_v36 = vsel %vm1886_vm6, %v1894_v54, %v1902_v28  ;;  %v1944_v28 = vshll.u32 %v14615_v7, 16  ;;  %v1959_v62 = vshrl.u32 %v14642_v23, 16 }
  0x77   : > { %v1920_v63 = vor.u32 %v1919_v49, %v1916_v45 }
  0x7a   : > { %12995 = vmatmul.mubr.msk.bf16.gmra.mxu1 %vm672_vm3, %v14441_v2  ;;  %v2361_v2 = vrot.slane %v14740_v37, 2 }
  0x7b   : > { %13029 = vmatmul.mubr.msk.bf16.gmra.mxu0 %vm672_vm3, %v1162_v61  ;;  %12998 = vmatprep.mubr.msk.bf16.mxu1 %vm672_vm3, %v14455_v16  ;;  %v1926_v16 = vshll.u32 %v14598_v58, 16  ;;  %v14766_v61 = vld [vmem:[%s14357_s13 + $0x80] sm:$0xff]  }
  0x7c   : > { %13032 = vmatprep.mubr.msk.bf16.mxu0 %vm672_vm3, %v1164_v14  ;;  %v14761_v20 = vsel %vm2333_vm5, %v2359_v15, %v2361_v2  ;;  %v1170_v14 = vsel %vm1133_vm4, %v1167_v22, %v1169_v29  ;;  %v2363_v53 = vrot.slane %v14766_v61, 2  ;;  %v1925_v22 = vrot.slane %v1923_v46, 1 }
  0x7d   : > { %v2365_v29 = vrot.slane %v14770_v34, 2  ;;  %v1928_v25 = vrot.slane %v1926_v16, 2  ;;  %v1921_v15 = vsel %vm1886_vm6, %v1911_v55, %v1920_v63  ;;  %v1941_v46 = vshrl.u32 %v14615_v7, 16 }
  0x7e   : > { %v14800_v24 = vsel %vm2333_vm5, %v2361_v2, %v2363_v53  ;;  %v1937_v2 = vrot.slane %v1935_v5, 2  ;;  %v1583_v16 = vsel %vm1133_vm4, %v1580_v32, %v1582_v51  ;;  %v1962_v5 = vshll.u32 %v14642_v23, 16 }
  0x7f   : > { %v14807_v52 = vsel %vm2333_vm5, %v2363_v53, %v2365_v29  ;;  %v1943_v53 = vrot.slane %v1941_v46, 1  ;;  %v1968_v55 = vshrl.u32 %v14677_v42, 16 }
  0x80   : > { %v1938_v58 = vor.u32 %v1937_v2, %v1934_v0  ;;  %v14880_v2 = vld [vmem:[%s14357_s13 + $0x14] sm:$0xf] }
  0x81   : > { %v1970_v0 = vrot.slane %v1968_v55, 1 }
  0x82   : > { %12999 = vmatmul.mubr.msk.bf16.gmra.mxu1 %vm672_vm3, %v14472_v39  ;;  %v1579_v39 = vsel %vm1133_vm4, %v1576_v17, %v1578_v12  ;;  %v11816_v17 = vld [vmem:[%s18357_s3 + $0x10] sm:$0x3] }
  0x83   : > { %13033 = vmatmul.mubr.msk.bf16.gmra.mxu0 %vm672_vm3, %v1166_v40  ;;  %13042 = vmatprep.mubr.msk.bf16.mxu1 %vm672_vm3, %v1575_v13  ;;  %v14811_v40 = vld [vmem:[%s14357_s13 + $0x90] sm:$0xff]   ;;  %v14822_v13 = vand.u32 %v11816_v17, %v14330_v3 }
  0x84   : > { %13036 = vmatprep.mubr.msk.bf16.mxu0 %vm672_vm3, %v1168_v38  ;;  %v14816_v38 = vld [vmem:[%s14357_s13 + $0x98] ss:$0 sps:$4 sm:$0x33]   ;;  %v2367_v45 = vrot.slane %v14811_v40, 2 }
  0x85   : > { %v2369_v54 = vrot.slane %v14816_v38, 2 }
  0x87   : > { %v14846_v19 = vsel %vm2333_vm5, %v2367_v45, %v2369_v54 }
  0x8a   : > { %13043 = vmatmul.mubr.msk.bf16.vlgmr.msra.gmra.mxu1 %vm672_vm3, %v1577_v50  ;;  %v1946_v50 = vrot.slane %v1944_v28, 2 }
  0x8b   : > { %13037 = vmatmul.mubr.msk.bf16.gmra.mxu0 %vm672_vm3, %v1170_v14  ;;  %13117 = vmatpush3.bf16.msra.mxu1 %v14523_v31  ;;  %v1581_v31 = vsel %vm1133_vm4, %v1578_v12, %v1580_v32  ;;  %v14841_v12 = vsel %vm2333_vm5, %v2365_v29, %v2367_v45  ;;  %v1929_v14 = vor.u32 %v1928_v25, %v1925_v22  ;;  %v1953_v32 = vshll.u32 %v14631_v8, 16  ;;  %v3527_v45 = vld [vmem:[%s14357_s13 + $0x10] sm:$0x8] }
  0x8c   : > { %13080 = vmatprep.mubr.msk.bf16.mxu0 %vm672_vm3, %v1903_v36  ;;  %13046 = vmatprep.mubr.msk.bf16.mxu1 %vm672_vm3, %v1579_v39  ;;  %v1584_v36 = vrot.slane %v14615_v7, 1  ;;  %v1952_v39 = vrot.slane %v1950_v57, 1  ;;  %v1947_v1 = vor.u32 %v1946_v50, %v1943_v53  ;;  %v1961_v25 = vrot.slane %v1959_v62, 1 }
  0x8d   : > { %13192 = vmatprep.subr.bf16.mxu1 %v14797_v48  ;;  %v1930_v49 = vsel %vm1886_vm6, %v1920_v63, %v1929_v14  ;;  %v1939_v22 = vsel %vm1886_vm6, %v1929_v14, %v1938_v58  ;;  %v1955_v29 = vrot.slane %v1953_v32, 2  ;;  %v1590_v63 = vrot.slane %v14677_v42, 1 }
  0x8e   : > { %v1585_v7 = vsel %vm1133_vm4, %v1582_v51, %v1584_v36  ;;  %v11817_v54 = vcombine.low %v3527_v45, %v14880_v2  ;;  %v1977_v57 = vshrl.u32 %v14682_v44, 16  ;;  %v1980_v14 = vshll.u32 %v14682_v44, 16 }
  0x8f   : > { %v1956_v51 = vor.u32 %v1955_v29, %v1952_v39  ;;  %v1989_v50 = vshll.u32 %v14703_v59, 16  ;;  %v1592_v62 = vrot.slane %v14682_v44, 1  ;;  %v2007_v45 = vshll.u32 %v14730_v30, 16 }
  0x90   : > { %v3534_v32 = vrot.slane %v11817_v54, 3 }
  0x91   : > { %v1957_v28 = vsel %vm1886_vm6, %v1947_v1, %v1956_v51 }
  0x92   : > { %13047 = vmatmul.mubr.msk.bf16.gmra.mxu1 %vm672_vm3, %v1581_v31  ;;  %v1948_v31 = vsel %vm1886_vm6, %v1938_v58, %v1947_v1 }
  0x93   : > { %13081 = vmatmul.mubr.msk.bf16.vlgmr.msra.gmra.mxu0 %vm672_vm3, %v1912_v27  ;;  %13050 = vmatprep.mubr.msk.bf16.mxu1 %vm672_vm3, %v1583_v16  ;;  %v1971_v27 = vshll.u32 %v14677_v42, 16  ;;  %v14885_v42 = vld [vmem:[%s14357_s13 + $0x20] sm:$0xff]  }
  0x94   : > { %13155 = vmatpush3.bf16.msra.mxu0 %v14540_v41  ;;  %13084 = vmatprep.mubr.msk.bf16.mxu0 %vm672_vm3, %v1921_v15  ;;  %v1586_v41 = vrot.slane %v14631_v8, 1  ;;  %v1588_v8 = vrot.slane %v14642_v23, 1  ;;  %v1964_v23 = vrot.slane %v1962_v5, 2  ;;  %v14877_v15 = vld [vmem:[%s14357_s13 + $0x18] sm:$0xff]   ;;  %v1594_v5 = vrot.slane %v14703_v59, 1 }
  0x95   : > { %13230 = vmatprep.subr.bf16.mxu0 %v14822_v13  ;;  %v1973_v46 = vrot.slane %v1971_v27, 2  ;;  %v1991_v27 = vrot.slane %v1989_v50, 2 }
  0x96   : > { %v1587_v17 = vsel %vm1133_vm4, %v1584_v36, %v1586_v41  ;;  %v1589_v16 = vsel %vm1133_vm4, %v1586_v41, %v1588_v8  ;;  %v3535_v36 = vrot.slane %v14877_v15, 3  ;;  %v1591_v58 = vsel %vm1133_vm4, %v1588_v8, %v1590_v63 }
  0x97   : > { %v1965_v53 = vor.u32 %v1964_v23, %v1961_v25  ;;  %v1986_v41 = vshrl.u32 %v14703_v59, 16  ;;  %v1982_v8 = vrot.slane %v1980_v14, 2  ;;  %v1593_v25 = vsel %vm1133_vm4, %v1590_v63, %v1592_v62 }
  0x98   : > { %v14900_v39 = vsel %vm3533_vm7, %v3534_v32, %v3535_v36  ;;  %v1995_v23 = vshrl.u32 %v14708_v60, 16  ;;  %v1595_v44 = vsel %vm1133_vm4, %v1592_v62, %v1594_v5  ;;  %v2004_v59 = vshrl.u32 %v14730_v30, 16 }
  0x99   : > { %v1966_v55 = vsel %vm1886_vm6, %v1956_v51, %v1965_v53  ;;  %v1596_v63 = vrot.slane %v14708_v60, 1  ;;  %v2009_v14 = vrot.slane %v2007_v45, 2  ;;  %v1600_v62 = vrot.slane %v14740_v37, 1 }
  0x9a   : > { %13051 = vmatmul.mubr.msk.bf16.gmra.mxu1 %vm672_vm3, %v1585_v7  ;;  %v1979_v7 = vrot.slane %v1977_v57, 1  ;;  %v1997_v54 = vrot.slane %v1995_v23, 1  ;;  %v2006_v57 = vrot.slane %v2004_v59, 1  ;;  %v2031_v23 = vshrl.u32 %v14770_v34, 16 }
  0x9b   : > { %13085 = vmatmul.mubr.msk.bf16.gmra.mxu0 %vm672_vm3, %v1930_v49  ;;  %13054 = vmatprep.mubr.msk.bf16.mxu1 %vm672_vm3, %v1587_v17  ;;  %v18360_v49 = vrot.slane %v14885_v42, 3  ;;  %v1988_v17 = vrot.slane %v1986_v41, 1  ;;  %v2025_v41 = vshll.u32 %v14766_v61, 16 }
  0x9c   : > { %13088 = vmatprep.mubr.msk.bf16.mxu0 %vm672_vm3, %v1939_v22  ;;  %v1974_v22 = vor.u32 %v1973_v46, %v1970_v0  ;;  %v1998_v0 = vshll.u32 %v14708_v60, 16  ;;  %v1983_v51 = vor.u32 %v1982_v8, %v1979_v7  ;;  %v1598_v46 = vrot.slane %v14730_v30, 1 }
  0x9d   : > { %v14913_v29 = vsel %vm3533_vm7, %v3535_v36, %v18360_v49  ;;  %v1597_v36 = vsel %vm1133_vm4, %v1594_v5, %v1596_v63  ;;  %v2022_v30 = vshrl.u32 %v14766_v61, 16  ;;  %v1602_v5 = vrot.slane %v14766_v61, 1 }
  0x9e   : > { %v1975_v1 = vsel %vm1886_vm6, %v1965_v53, %v1974_v22  ;;  %v2016_v53 = vshll.u32 %v14740_v37, 16  ;;  %v1599_v60 = vsel %vm1133_vm4, %v1596_v63, %v1598_v46  ;;  %v2040_v61 = vshrl.u32 %v14811_v40, 16 }
  0x9f   : > { %v2033_v63 = vrot.slane %v2031_v23, 1  ;;  %v2776_v23 = vrot.slane %v14885_v42, 2 }
  0xa0   : > { %v2018_v8 = vrot.slane %v2016_v53, 2 }
  0xa2   : > { %13055 = vmatmul.mubr.msk.bf16.gmra.mxu1 %vm672_vm3, %v1589_v16  ;;  %v2000_v16 = vrot.slane %v1998_v0, 2  ;;  %v2034_v0 = vshll.u32 %v14770_v34, 16 }
  0xa3   : > { %13089 = vmatmul.mubr.msk.bf16.gmra.mxu0 %vm672_vm3, %v1948_v31  ;;  %13058 = vmatprep.mubr.msk.bf16.mxu1 %vm672_vm3, %v1591_v58  ;;  %v1992_v31 = vor.u32 %v1991_v27, %v1988_v17  ;;  %v2013_v58 = vshrl.u32 %v14740_v37, 16  ;;  %v2024_v17 = vrot.slane %v2022_v30, 1  ;;  %v2027_v27 = vrot.slane %v2025_v41, 2 }
  0xa4   : > { %13092 = vmatprep.mubr.msk.bf16.mxu0 %vm672_vm3, %v1957_v28  ;;  %v1984_v28 = vsel %vm1886_vm6, %v1974_v22, %v1983_v51  ;;  %v2001_v50 = vor.u32 %v2000_v16, %v1997_v54  ;;  %v2010_v22 = vor.u32 %v2009_v14, %v2006_v57  ;;  %v1603_v37 = vsel %vm1133_vm4, %v1600_v62, %v1602_v5  ;;  %v14039_v16 = vld [vmem:[%s14357_s13 + $0x98] ss:$0 sps:$4 sm:$0x11]  }
  0xa5   : > { %v1993_v32 = vsel %vm1886_vm6, %v1983_v51, %v1992_v31  ;;  %v2015_v7 = vrot.slane %v2013_v58, 1  ;;  %v2028_v45 = vor.u32 %v2027_v27, %v2024_v17  ;;  %v1604_v51 = vrot.slane %v14770_v34, 1  ;;  %v11836_v27 = vld [vmem:[%s18357_s3 + $0x12] sm:$0x3] }
  0xa6   : > { %v2049_v34 = vshrl.u32 %v14816_v38, 16  ;;  %v1608_v30 = vrot.slane %v14039_v16, 1 }
  0xa7   : > { %v2019_v59 = vor.u32 %v2018_v8, %v2015_v7 }
  0xa9   : > { %v2020_v54 = vsel %vm1886_vm6, %v2010_v22, %v2019_v59  ;;  %v2029_v14 = vsel %vm1886_vm6, %v2019_v59, %v2028_v45 }
  0xaa   : > { %13059 = vmatmul.mubr.msk.bf16.gmra.mxu1 %vm672_vm3, %v1593_v25  ;;  %v1601_v25 = vsel %vm1133_vm4, %v1598_v46, %v1600_v62  ;;  %v2036_v46 = vrot.slane %v2034_v0, 2  ;;  %v15003_v0 = vld [vmem:[%s14357_s13 + $0x30] sm:$0xff]  }
  0xab   : > { %13093 = vmatmul.mubr.msk.bf16.gmra.mxu0 %vm672_vm3, %v1966_v55  ;;  %13062 = vmatprep.mubr.msk.bf16.mxu1 %vm672_vm3, %v1595_v44  ;;  %v2002_v55 = vsel %vm1886_vm6, %v1992_v31, %v2001_v50  ;;  %v2043_v44 = vshll.u32 %v14811_v40, 16  ;;  %v1606_v31 = vrot.slane %v14811_v40, 1  ;;  %v2052_v40 = vshll.u32 %v14816_v38, 16 }
  0xac   : > { %13096 = vmatprep.mubr.msk.bf16.mxu0 %vm672_vm3, %v1975_v1  ;;  %v2011_v1 = vsel %vm1886_vm6, %v2001_v50, %v2010_v22  ;;  %v2037_v58 = vor.u32 %v2036_v46, %v2033_v63  ;;  %v2051_v50 = vrot.slane %v2049_v34, 1  ;;  %v15066_v34 = vld [vmem:[%s14357_s13 + $0x58] sm:$0xff]  }
  0xad   : > { %v2045_v57 = vrot.slane %v2043_v44, 2  ;;  %v2054_v22 = vrot.slane %v2052_v40, 2  ;;  %v1609_v38 = vsel %vm1133_vm4, %v1606_v31, %v1608_v30  ;;  %v2790_v30 = vrot.slane %v15066_v34, 2 }
  0xae   : > { %v2038_v41 = vsel %vm1886_vm6, %v2028_v45, %v2037_v58  ;;  %v15028_v45 = vld [vmem:[%s14357_s13 + $0x40] sm:$0xff]  }
  0xaf   : > { %v2055_v7 = vor.u32 %v2054_v22, %v2051_v50 }
  0xb2   : > { %13063 = vmatmul.mubr.msk.bf16.gmra.mxu1 %vm672_vm3, %v1597_v36  ;;  %v1607_v36 = vsel %vm1133_vm4, %v1604_v51, %v1606_v31 }
  0xb3   : > { %13097 = vmatmul.mubr.msk.bf16.gmra.mxu0 %vm672_vm3, %v1984_v28  ;;  %13066 = vmatprep.mubr.msk.bf16.mxu1 %vm672_vm3, %v1599_v60  ;;  %v2042_v28 = vrot.slane %v2040_v61, 1  ;;  %v2641_v60 = vld [vmem:[%s14357_s13 + $0x10] sm:$0xc]  ;;  %v15012_v61 = vld [vmem:[%s14357_s13 + $0x38] sm:$0xff]  }
  0xb4   : > { %13100 = vmatprep.mubr.msk.bf16.mxu0 %vm672_vm3, %v1993_v32  ;;  %v1605_v32 = vsel %vm1133_vm4, %v1602_v5, %v1604_v51  ;;  %v14975_v5 = vcombine.low %v2641_v60, %v14880_v2  ;;  %v14986_v2 = vld [vmem:[%s14357_s13 + $0x28] sm:$0xff]  }
  0xb5   : > { %v2046_v53 = vor.u32 %v2045_v57, %v2042_v28  ;;  %v15034_v51 = vld [vmem:[%s14357_s13 + $0x48] sm:$0xff]  }
  0xb6   : > { %v2773_v8 = vrot.slane %v14975_v5, 2 }
  0xb7   : > { %v2047_v62 = vsel %vm1886_vm6, %v2037_v58, %v2046_v53  ;;  %v2056_v17 = vsel %vm1886_vm6, %v2046_v53, %v2055_v7 }
  0xba   : > { %13067 = vmatmul.mubr.msk.bf16.gmra.mxu1 %vm672_vm3, %v1601_v25  ;;  %v14995_v25 = vand.u32 %v11836_v27, %v14330_v3 }
  0xbb   : > { %13101 = vmatmul.mubr.msk.bf16.gmra.mxu0 %vm672_vm3, %v2002_v55  ;;  %13070 = vmatprep.mubr.msk.bf16.mxu1 %vm672_vm3, %v1603_v37  ;;  %v2774_v55 = vrot.slane %v14877_v15, 2  ;;  %v11873_v37 = vld [vmem:[%s18357_s3 + $0x14] sm:$0x3] }
  0xbc   : > { %13104 = vmatprep.mubr.msk.bf16.mxu0 %vm672_vm3, %v2011_v1  ;;  %v15018_v59 = vand.u32 %v11873_v37, %v14330_v3 }
  0xbd   : > { %v2775_v1 = vsel %vm2333_vm5, %v2773_v8, %v2774_v55  ;;  %v15098_v8 = vld [vmem:[%s14357_s13 + $0x68] sm:$0xff]  }
  0xc2   : > { %13071 = vmatmul.mubr.msk.bf16.gmra.mxu1 %vm672_vm3, %v1605_v32 }
  0xc3   : > { %13105 = vmatmul.mubr.msk.bf16.gmra.mxu0 %vm672_vm3, %v2020_v54  ;;  %13074 = vmatprep.mubr.msk.bf16.mxu1 %vm672_vm3, %v1607_v36  ;;  %v2786_v54 = vrot.slane %v15034_v51, 2 }
  0xc4   : > { %13108 = vmatprep.mubr.msk.bf16.mxu0 %vm672_vm3, %v2029_v14  ;;  %v15058_v14 = vld [vmem:[%s14357_s13 + $0x50] sm:$0xff]  }
  0xc5   : > { %v2788_v58 = vrot.slane %v15058_v14, 2 }
  0xc7   : > { %v2789_v22 = vsel %vm2333_vm5, %v2786_v54, %v2788_v58 }
  0xca   : > { %13075 = vmatmul.mubr.msk.bf16.gmra.mxu1 %vm672_vm3, %v1609_v38 }
  0xcb   : > { %13109 = vmatmul.mubr.msk.bf16.gmra.mxu0 %vm672_vm3, %v2038_v41  ;;  %13118 = vmatprep.mubr.msk.bf16.mxu1 %vm672_vm3, %v14609_v4  ;;  %v2778_v4 = vrot.slane %v14986_v2, 2 }
  0xcc   : > { %13112 = vmatprep.mubr.msk.bf16.mxu0 %vm672_vm3, %v2047_v62  ;;  %v15090_v62 = vld [vmem:[%s14357_s13 + $0x60] sm:$0xff]  }
  0xcd   : > { %v2779_v44 = vsel %vm2333_vm5, %v2776_v23, %v2778_v4 }
  0xd2   : > { %13119 = vmatmul.mubr.msk.bf16.vlgmr.msra.gmra.mxu1 %vm672_vm3, %v14618_v9  ;;  %v2777_v9 = vsel %vm2333_vm5, %v2774_v55, %v2776_v23  ;;  %v2794_v23 = vrot.slane %v15098_v8, 2 }
  0xd3   : > { %13113 = vmatmul.mubr.msk.bf16.gmra.mxu0 %vm672_vm3, %v2056_v17  ;;  %13193 = vmatpush3.bf16.msra.mxu1 %v14797_v48  ;;  %v2782_v48 = vrot.slane %v15012_v61, 2  ;;  %v2792_v17 = vrot.slane %v15090_v62, 2 }
  0xd4   : > { %13156 = vmatprep.mubr.msk.bf16.mxu0 %vm672_vm3, %v2775_v1  ;;  %13122 = vmatprep.mubr.msk.bf16.mxu1 %vm672_vm3, %v14634_v18  ;;  %v2780_v18 = vrot.slane %v15003_v0, 2 }
  0xd5   : > { %13268 = vmatprep.subr.bf16.mxu1 %v14995_v25 }
  0xd6   : > { %v2781_v31 = vsel %vm2333_vm5, %v2778_v4, %v2780_v18  ;;  %v2783_v63 = vsel %vm2333_vm5, %v2780_v18, %v2782_v48 }
  0xda   : > { %13123 = vmatmul.mubr.msk.bf16.gmra.mxu1 %vm672_vm3, %v14647_v26  ;;  %v2784_v26 = vrot.slane %v15028_v45, 2 }
  0xdb   : > { %13157 = vmatmul.mubr.msk.bf16.vlgmr.msra.gmra.mxu0 %vm672_vm3, %v2777_v9  ;;  %13126 = vmatprep.mubr.msk.bf16.mxu1 %vm672_vm3, %v14654_v11  ;;  %v2793_v9 = vsel %vm2333_vm5, %v2790_v30, %v2792_v17 }
  0xdc   : > { %13231 = vmatpush3.bf16.msra.mxu0 %v14822_v13  ;;  %13160 = vmatprep.mubr.msk.bf16.mxu0 %vm672_vm3, %v2779_v44  ;;  %v2785_v57 = vsel %vm2333_vm5, %v2782_v48, %v2784_v26  ;;  %v15122_v44 = vld [vmem:[%s14357_s13 + $0x70] sm:$0xff]  }
  0xdd   : > { %13306 = vmatprep.subr.bf16.mxu0 %v15018_v59 }
  0xe2   : > { %v15043_v46 = vpop.f32.mrf.mxu1  ;;  %13127 = vmatmul.mubr.msk.bf16.gmra.mxu1 %vm672_vm3, %v14659_v35  ;;  %v2787_v35 = vsel %vm2333_vm5, %v2784_v26, %v2786_v54  ;;  %v2796_v26 = vrot.slane %v15122_v44, 2 }
  0xe3   : > { %v15038_v13 = vpop.f32.mrf.mxu0  ;;  %13161 = vmatmul.mubr.msk.bf16.gmra.mxu0 %vm672_vm3, %v2781_v31  ;;  %13130 = vmatprep.mubr.msk.bf16.mxu1 %vm672_vm3, %v14668_v33  ;;  %v15130_v31 = vld [vmem:[%s14357_s13 + $0x78] sm:$0xff]  }
  0xe4   : > { %13164 = vmatprep.mubr.msk.bf16.mxu0 %vm672_vm3, %v2783_v63  ;;  %v15052_v16 = vpop.f32.mrf.mxu1 }
  0xe5   : > { %v15047_v11 = vpop.f32.mrf.mxu0 }
  0xe6   : > { %v15060_v32 = vpop.f32.mrf.mxu1 }
  0xe7   : > { %v15054_v28 = vpop.f32.mrf.mxu0 }
  0xe8   : > { %v15068_v40 = vpop.f32.mrf.mxu1 }
  0xe9   : > { %v15062_v36 = vpop.f32.mrf.mxu0  ;;  %18408 = vst [vmem:[#allocation2_spill] sm:$0xff] %v15068_v40 }
  0xea   : > { %v15075_v53 = vpop.f32.mrf.mxu1  ;;  %13131 = vmatmul.mubr.msk.bf16.gmra.mxu1 %vm672_vm3, %v14672_v47  ;;  %v2791_v47 = vsel %vm2333_vm5, %v2788_v58, %v2790_v30 }
  0xeb   : > { %v15070_v33 = vpop.f32.mrf.mxu0  ;;  %13165 = vmatmul.mubr.msk.bf16.gmra.mxu0 %vm672_vm3, %v2785_v57  ;;  %18409 = vst [vmem:[#allocation3_spill] sm:$0xff] %v15075_v53  ;;  %13134 = vmatprep.mubr.msk.bf16.mxu1 %vm672_vm3, %v14694_v56 }
  0xec   : > { %13168 = vmatprep.mubr.msk.bf16.mxu0 %vm672_vm3, %v2787_v35  ;;  %v15084_v41 = vpop.f32.mrf.mxu1  ;;  %v2798_v35 = vrot.slane %v15130_v31, 2 }
  0xed   : > { %v15079_v60 = vpop.f32.mrf.mxu0  ;;  %18410 = vst [vmem:[#allocation4_spill] sm:$0xff] %v15084_v41 }
  0xee   : > { %v15092_v38 = vpop.f32.mrf.mxu1 }
  0xef   : > { %v15086_v50 = vpop.f32.mrf.mxu0  ;;  %18411 = vst [vmem:[#allocation5_spill] sm:$0xff] %v15092_v38 }
  0xf0   : > { %v15100_v55 = vpop.f32.mrf.mxu1 }
  0xf1   : > { %v15094_v7 = vpop.f32.mrf.mxu0  ;;  %18412 = vst [vmem:[#allocation6_spill] sm:$0xff] %v15100_v55  ;;  %v15188_v55 = vld [vmem:[%s14357_s13 + $0x90] sm:$0xff]  }
  0xf2   : > { %v15107_v27 = vpop.f32.mrf.mxu1  ;;  %13135 = vmatmul.mubr.msk.bf16.gmra.mxu1 %vm672_vm3, %v14698_v43  ;;  %v2795_v43 = vsel %vm2333_vm5, %v2792_v17, %v2794_v23 }
  0xf3   : > { %v15102_v56 = vpop.f32.mrf.mxu0  ;;  %13169 = vmatmul.mubr.msk.bf16.gmra.mxu0 %vm672_vm3, %v2789_v22  ;;  %18413 = vst [vmem:[#allocation7_spill] sm:$0xff] %v15107_v27  ;;  %13138 = vmatprep.mubr.msk.bf16.mxu1 %vm672_vm3, %v14721_v10  ;;  %v2797_v22 = vsel %vm2333_vm5, %v2794_v23, %v2796_v26 }
  0xf4   : > { %13172 = vmatprep.mubr.msk.bf16.mxu0 %vm672_vm3, %v2791_v47  ;;  %v15116_v4 = vpop.f32.mrf.mxu1  ;;  %v15154_v47 = vld [vmem:[%s14357_s13 + $0x80] sm:$0xff]  }
  0xf5   : > { %v15111_v1 = vpop.f32.mrf.mxu0  ;;  %18414 = vst [vmem:[#allocation8_spill] sm:$0xff] %v15116_v4  ;;  %18419 = vst [vmem:[#allocation13_spill] sm:$0xff] %v15154_v47 }
  0xf6   : > { %v15124_v18 = vpop.f32.mrf.mxu1 }
  0xf7   : > { %v15118_v37 = vpop.f32.mrf.mxu0  ;;  %18415 = vst [vmem:[#allocation9_spill] sm:$0xff] %v15124_v18  ;;  %v3096_v18 = vshrl.u32 %v14877_v15, 16 }
  0xf8   : > { %v15132_v63 = vpop.f32.mrf.mxu1 }
  0xf9   : > { %v15126_v48 = vpop.f32.mrf.mxu0  ;;  %18416 = vst [vmem:[#allocation10_spill] sm:$0xff] %v15132_v63  ;;  %v3091_v63 = vshll.u32 %v14975_v5, 16 }
  0xfa   : > { %v15139_v54 = vpop.f32.mrf.mxu1  ;;  %13139 = vmatmul.mubr.msk.bf16.gmra.mxu1 %vm672_vm3, %v14725_v6  ;;  %v2799_v6 = vsel %vm2333_vm5, %v2796_v26, %v2798_v35 }
  0xfb   : > { %v15134_v10 = vpop.f32.mrf.mxu0  ;;  %13173 = vmatmul.mubr.msk.bf16.gmra.mxu0 %vm672_vm3, %v2793_v9  ;;  %18417 = vst [vmem:[#allocation11_spill] sm:$0xff] %v15139_v54  ;;  %13142 = vmatprep.mubr.msk.bf16.mxu1 %vm672_vm3, %v14757_v21  ;;  %v2800_v21 = vrot.slane %v15154_v47, 2  ;;  %v3093_v41 = vrot.slane %v3091_v63, 3 }
  0xfc   : > { %13176 = vmatprep.mubr.msk.bf16.mxu0 %vm672_vm3, %v2795_v43  ;;  %v15148_v58 = vpop.f32.mrf.mxu1  ;;  %v15162_v43 = vld [vmem:[%s14357_s13 + $0x88] sm:$0xff]  }
  0xfd   : > { %v15143_v57 = vpop.f32.mrf.mxu0  ;;  %18418 = vst [vmem:[#allocation12_spill] sm:$0xff] %v15148_v58  ;;  %18421 = vst [vmem:[#allocation15_spill] sm:$0xff] %v15162_v43  ;;  %v2802_v26 = vrot.slane %v15162_v43, 2  ;;  %v2801_v27 = vsel %vm2333_vm5, %v2798_v35, %v2800_v21  ;;  %v15194_v43 = vld [vmem:[%s14357_s13 + $0x98] sm:$0xff]  }
  0xfe   : > { %v15156_v17 = vpop.f32.mrf.mxu1  ;;  %18423 = vst [vmem:[#allocation17_spill] sm:$0xff] %v15194_v43 }
  0xff   : > { %v15150_v30 = vpop.f32.mrf.mxu0  ;;  %18420 = vst [vmem:[#allocation14_spill] sm:$0xff] %v15156_v17 }
 0x100   : > { %v15164_v49 = vpop.f32.mrf.mxu1 }
 0x101   : > { %v15158_v9 = vpop.f32.mrf.mxu0  ;;  %18422 = vst [vmem:[#allocation16_spill] sm:$0xff] %v15164_v49 }
 0x102   : > { %v12968_v23 = vpop.f32.mrf.mxu1  ;;  %13143 = vmatmul.mubr.msk.bf16.gmra.mxu1 %vm672_vm3, %v14761_v20  ;;  %v3099_v20 = vshll.u32 %v14877_v15, 16 }
 0x103   : > { %v15166_v54 = vpop.f32.mrf.mxu0  ;;  %13177 = vmatmul.mubr.msk.bf16.gmra.mxu0 %vm672_vm3, %v2797_v22  ;;  %v993_v49 = vadd.f32 %v12968_v23, %v15038_v13  ;;  %13146 = vmatprep.mubr.msk.bf16.mxu1 %vm672_vm3, %v14800_v24  ;;  %v2803_v24 = vsel %vm2333_vm5, %v2800_v21, %v2802_v26  ;;  %v2804_v21 = vrot.slane %v15188_v55, 2 }
 0x104   : > { %13180 = vmatprep.mubr.msk.bf16.mxu0 %vm672_vm3, %v2799_v6  ;;  %v984_v22 = vpop.f32.mrf.mxu1  ;;  %v3088_v6 = vshrl.u32 %v14975_v5, 16 }
 0x105   : > { %v15173_v17 = vpop.f32.mrf.mxu0  ;;  %v985_v4 = vadd.f32 %v984_v22, %v15047_v11  ;;  %v3098_v11 = vrot.slane %v3096_v18, 2  ;;  %v3101_v22 = vrot.slane %v3099_v20, 3 }
 0x106   : > { %v12969_v13 = vpop.f32.mrf.mxu1  ;;  %v3090_v15 = vrot.slane %v3088_v6, 2 }
 0x107   : > { %v15179_v58 = vpop.f32.mrf.mxu0  ;;  %v996_v47 = vadd.f32 %v12969_v13, %v15054_v28  ;;  %v2806_v13 = vrot.slane %v15194_v43, 2  ;;  %v3102_v20 = vor.u32 %v3101_v22, %v3098_v11 }
 0x108   : > { %v987_v5 = vpop.f32.mrf.mxu1  ;;  %v3094_v6 = vor.u32 %v3093_v41, %v3090_v15 }
 0x109   : > { %v15190_v23 = vpop.f32.mrf.mxu0  ;;  %v988_v35 = vadd.f32 %v987_v5, %v15062_v36  ;;  %v3108_v36 = vshll.u32 %v14885_v42, 16 }
 0x10a   : > { %v12972_v40 = vpop.f32.mrf.mxu1  ;;  %13147 = vmatmul.mubr.msk.bf16.gmra.mxu1 %vm672_vm3, %v14807_v52  ;;  %v3114_v52 = vshrl.u32 %v14986_v2, 16 }
 0x10b   : > { %v13006_v38 = vpop.f32.mrf.mxu0  ;;  %13181 = vmatmul.mubr.msk.bf16.gmra.mxu0 %vm672_vm3, %v2801_v27  ;;  %v1009_v27 = vadd.f32 %v12972_v40, %v15070_v33  ;;  %13150 = vmatprep.mubr.msk.bf16.mxu1 %vm672_vm3, %v14841_v12  ;;  %v2805_v33 = vsel %vm2333_vm5, %v2802_v26, %v2804_v21  ;;  %v14060_v12 = vld [vmem:[%s14357_s13 + $0xa0] ss:$0 sps:$4 sm:$0x33]   ;;  %v3110_v11 = vrot.slane %v3108_v36, 3  ;;  %v3126_v36 = vshll.u32 %v15003_v0, 16 }
 0x10c   : > { %v15199_v53 = vadd.f32 %v13006_v38, %v993_v49  ;;  %13184 = vmatprep.mubr.msk.bf16.mxu0 %vm672_vm3, %v2803_v24  ;;  %v3105_v49 = vshrl.u32 %v14885_v42, 16  ;;  %v1000_v38 = vpop.f32.mrf.mxu1  ;;  %v3117_v24 = vshll.u32 %v14986_v2, 16 }
 0x10d   : > { %v1262_v28 = vpop.f32.mrf.mxu0  ;;  %v1001_v5 = vadd.f32 %v1000_v38, %v15079_v60  ;;  %v3103_v60 = vsel %vm3086_vm8, %v3094_v6, %v3102_v20 }
 0x10e   : > { %18424 = vst [vmem:[#allocation18_spill] sm:$0xff] %v15199_v53  ;;  %v15207_v18 = vadd.f32 %v1262_v28, %v985_v4  ;;  %v12973_v4 = vpop.f32.mrf.mxu1  ;;  %v3107_v15 = vrot.slane %v3105_v49, 2  ;;  %v3119_v26 = vrot.slane %v3117_v24, 3  ;;  %v3123_v49 = vshrl.u32 %v15003_v0, 16 }
 0x10f   : > { %v13007_v63 = vpop.f32.mrf.mxu0  ;;  %v1012_v53 = vadd.f32 %v12973_v4, %v15086_v50  ;;  %v3132_v24 = vshrl.u32 %v15012_v61, 16 }
 0x110   : > { %18425 = vst [vmem:[#allocation19_spill] sm:$0xff] %v15207_v18  ;;  %v15216_v40 = vadd.f32 %v13007_v63, %v996_v47  ;;  %v2807_v18 = vsel %vm2333_vm5, %v2804_v21, %v2806_v13  ;;  %v1003_v22 = vpop.f32.mrf.mxu1  ;;  %v3116_v47 = vrot.slane %v3114_v52, 2  ;;  %v2808_v21 = vrot.slane %v14060_v12, 2 }
 0x111   : > { %v1265_v28 = vpop.f32.mrf.mxu0  ;;  %v1004_v38 = vadd.f32 %v1003_v22, %v15094_v7  ;;  %v3111_v7 = vor.u32 %v3110_v11, %v3107_v15  ;;  %v3125_v15 = vrot.slane %v3123_v49, 2  ;;  %v3128_v11 = vrot.slane %v3126_v36, 3 }
 0x112   : > { %v15222_v41 = vadd.f32 %v1265_v28, %v988_v35  ;;  %v12976_v50 = vpop.f32.mrf.mxu1  ;;  %13151 = vmatmul.mubr.msk.bf16.gmra.mxu1 %vm672_vm3, %v14846_v19  ;;  %v2809_v4 = vsel %vm2333_vm5, %v2806_v13, %v2808_v21  ;;  %v3134_v13 = vrot.slane %v3132_v24, 2  ;;  %v3539_v36 = vrot.slane %v14986_v2, 3 }
 0x113   : > { %v13010_v43 = vpop.f32.mrf.mxu0  ;;  %13185 = vmatmul.mubr.msk.bf16.gmra.mxu0 %vm672_vm3, %v2805_v33  ;;  %v1025_v6 = vadd.f32 %v12976_v50, %v15102_v56  ;;  %13194 = vmatprep.mubr.msk.bf16.mxu1 %vm672_vm3, %v3103_v60  ;;  %v3135_v33 = vshll.u32 %v15012_v61, 16  ;;  %v11911_v56 = vld [vmem:[%s18357_s3 + $0x16] sm:$0x3]  ;;  %v3150_v2 = vshrl.u32 %v15034_v51, 16 }
 0x114   : > { %v15227_v63 = vadd.f32 %v13010_v43, %v1009_v27  ;;  %13188 = vmatprep.mubr.msk.bf16.mxu0 %vm672_vm3, %v2807_v18  ;;  %v1016_v43 = vpop.f32.mrf.mxu1  ;;  %v3120_v18 = vor.u32 %v3119_v26, %v3116_v47  ;;  %v3112_v47 = vsel %vm3086_vm8, %v3102_v20, %v3111_v7  ;;  %v15254_v50 = vand.u32 %v11911_v56, %v14330_v3 }
 0x115   : > { %v1278_v35 = vpop.f32.mrf.mxu0  ;;  %v1017_v19 = vadd.f32 %v1016_v43, %v15111_v1  ;;  %v3137_v21 = vrot.slane %v3135_v33, 3 }
 0x116   : > { %v15235_v52 = vadd.f32 %v1278_v35, %v1001_v5  ;;  %v12977_v5 = vpop.f32.mrf.mxu1 }
 0x117   : > { %v13011_v27 = vpop.f32.mrf.mxu0  ;;  %v1028_v22 = vadd.f32 %v12977_v5, %v15118_v37  ;;  %v3138_v33 = vor.u32 %v3137_v21, %v3134_v13  ;;  %v3152_v13 = vrot.slane %v3150_v2, 2 }
 0x118   : > { %v15241_v12 = vadd.f32 %v13011_v27, %v1012_v53  ;;  %v1019_v26 = vpop.f32.mrf.mxu1  ;;  %v3121_v53 = vsel %vm3086_vm8, %v3111_v7, %v3120_v18 }
 0x119   : > { %v1281_v28 = vpop.f32.mrf.mxu0  ;;  %v1020_v35 = vadd.f32 %v1019_v26, %v15126_v48  ;;  %v3141_v48 = vshrl.u32 %v15028_v45, 16 }
 0x11a   : > { %v15248_v60 = vadd.f32 %v1281_v28, %v1004_v38  ;;  %v12980_v37 = vpop.f32.mrf.mxu1  ;;  %13195 = vmatmul.mubr.msk.bf16.vlgmr.msra.gmra.mxu1 %vm672_vm3, %v3112_v47  ;;  %v3129_v38 = vor.u32 %v3128_v11, %v3125_v15  ;;  %v18426_v28 = vrot.slane %v14885_v42, 3 }
 0x11b   : > { %v13014_v1 = vpop.f32.mrf.mxu0  ;;  %13189 = vmatmul.mubr.msk.bf16.gmra.mxu0 %vm672_vm3, %v2809_v4  ;;  %v1041_v7 = vadd.f32 %v12980_v37, %v15134_v10  ;;  %13269 = vmatpush3.bf16.msra.mxu1 %v14995_v25  ;;  %v3153_v10 = vshll.u32 %v15034_v51, 16 }
 0x11c   : > { %v15257_v49 = vadd.f32 %v13014_v1, %v1025_v6  ;;  %13232 = vmatprep.mubr.msk.bf16.mxu0 %vm672_vm3, %v14900_v39  ;;  %13198 = vmatprep.mubr.msk.bf16.mxu1 %vm672_vm3, %v3121_v53  ;;  %v3144_v6 = vshll.u32 %v15028_v45, 16  ;;  %v11931_v39 = vld [vmem:[%s18357_s3 + $0x18] sm:$0x3]  ;;  %v1032_v27 = vpop.f32.mrf.mxu1  ;;  %v3130_v5 = vsel %vm3086_vm8, %v3120_v18, %v3129_v38  ;;  %v3540_v15 = vsel %vm3533_vm7, %v18426_v28, %v3539_v36 }
 0x11d   : > { %v1294_v20 = vpop.f32.mrf.mxu0  ;;  %13344 = vmatprep.subr.bf16.mxu1 %v15254_v50  ;;  %v1033_v25 = vadd.f32 %v1032_v27, %v15143_v57  ;;  %v15284_v11 = vand.u32 %v11931_v39, %v14330_v3  ;;  %v3143_v1 = vrot.slane %v3141_v48, 2  ;;  %v3139_v18 = vsel %vm3086_vm8, %v3129_v38, %v3138_v33 }
 0x11e   : > { %v15264_v43 = vadd.f32 %v1294_v20, %v1017_v19  ;;  %v12981_v4 = vpop.f32.mrf.mxu1  ;;  %v3146_v53 = vrot.slane %v3144_v6, 3  ;;  %v3155_v42 = vrot.slane %v3153_v10, 3  ;;  %v3159_v38 = vshrl.u32 %v15058_v14, 16 }
 0x11f   : > { %v13015_v24 = vpop.f32.mrf.mxu0  ;;  %v1044_v47 = vadd.f32 %v12981_v4, %v15150_v30  ;;  %v3541_v30 = vrot.slane %v15003_v0, 3  ;;  %v3162_v48 = vshll.u32 %v15058_v14, 16  ;;  %v3168_v27 = vshrl.u32 %v15066_v34, 16 }
 0x120   : > { %v15277_v19 = vadd.f32 %v13015_v24, %v1028_v22  ;;  %v1035_v57 = vpop.f32.mrf.mxu1  ;;  %v3156_v39 = vor.u32 %v3155_v42, %v3152_v13 }
 0x121   : > { %v1297_v56 = vpop.f32.mrf.mxu0  ;;  %v1036_v21 = vadd.f32 %v1035_v57, %v15158_v9  ;;  %v3542_v10 = vsel %vm3533_vm7, %v3539_v36, %v3541_v30 }
 0x122   : > { %v15287_v26 = vadd.f32 %v1297_v56, %v1020_v35  ;;  %v12984_v35 = vpop.f32.mrf.mxu1  ;;  %13199 = vmatmul.mubr.msk.bf16.gmra.mxu1 %vm672_vm3, %v3130_v5  ;;  %v3161_v56 = vrot.slane %v3159_v38, 2  ;;  %v3164_v5 = vrot.slane %v3162_v48, 3 }
 0x123   : > { %v13018_v22 = vpop.f32.mrf.mxu0  ;;  %13233 = vmatmul.mubr.msk.bf16.vlgmr.msra.gmra.mxu0 %vm672_vm3, %v14913_v29  ;;  %v3543_v29 = vrot.slane %v15012_v61, 3  ;;  %v1057_v9 = vadd.f32 %v12984_v35, %v15166_v54  ;;  %13202 = vmatprep.mubr.msk.bf16.mxu1 %vm672_vm3, %v3139_v18  ;;  %v3171_v61 = vshll.u32 %v15066_v34, 16  ;;  %v3177_v35 = vshrl.u32 %v15090_v62, 16 }
 0x124   : > { %v15293_v37 = vadd.f32 %v13018_v22, %v1041_v7  ;;  %13307 = vmatpush3.bf16.msra.mxu0 %v15018_v59  ;;  %13236 = vmatprep.mubr.msk.bf16.mxu0 %vm672_vm3, %v3540_v15  ;;  %v3147_v59 = vor.u32 %v3146_v53, %v3143_v1  ;;  %v1048_v0 = vpop.f32.mrf.mxu1  ;;  %v3165_v42 = vor.u32 %v3164_v5, %v3161_v56 }
 0x125   : > { %v1310_v20 = vpop.f32.mrf.mxu0  ;;  %13382 = vmatprep.subr.bf16.mxu0 %v15284_v11  ;;  %v1049_v24 = vadd.f32 %v1048_v0, %v15173_v17  ;;  %v3173_v36 = vrot.slane %v3171_v61, 3 }
 0x126   : > { %v15304_v7 = vadd.f32 %v1310_v20, %v1033_v25  ;;  %v12985_v4 = vpop.f32.mrf.mxu1  ;;  %v3544_v25 = vsel %vm3533_vm7, %v3541_v30, %v3543_v29  ;;  %v3148_v1 = vsel %vm3086_vm8, %v3138_v33, %v3147_v59  ;;  %v3157_v17 = vsel %vm3086_vm8, %v3147_v59, %v3156_v39 }
 0x127   : > { %v13019_v6 = vpop.f32.mrf.mxu0  ;;  %v1060_v28 = vadd.f32 %v12985_v4, %v15179_v58  ;;  %v3545_v58 = vrot.slane %v15028_v45, 3  ;;  %v3186_v45 = vshrl.u32 %v15098_v8, 16  ;;  %v3179_v4 = vrot.slane %v3177_v35, 2 }
 0x128   : > { %v15310_v2 = vadd.f32 %v13019_v6, %v1044_v47  ;;  %v1051_v53 = vpop.f32.mrf.mxu1  ;;  %v3170_v47 = vrot.slane %v3168_v27, 2  ;;  %v3166_v27 = vsel %vm3086_vm8, %v3156_v39, %v3165_v42  ;;  %v3207_v35 = vshll.u32 %v15130_v31, 16 }
 0x129   : > { %v1313_v54 = vpop.f32.mrf.mxu0  ;;  %v1052_v22 = vadd.f32 %v1051_v53, %v15190_v23  ;;  %v3180_v23 = vshll.u32 %v15090_v62, 16  ;;  %v3546_v0 = vsel %vm3533_vm7, %v3543_v29, %v3545_v58 }
 0x12a   : > { %v15315_v15 = vadd.f32 %v1313_v54, %v1036_v21  ;;  %v12988_v13 = vpop.f32.mrf.mxu1  ;;  %13203 = vmatmul.mubr.msk.bf16.gmra.mxu1 %vm672_vm3, %v3148_v1  ;;  %v3547_v21 = vrot.slane %v15034_v51, 3  ;;  %v3174_v48 = vor.u32 %v3173_v36, %v3170_v47  ;;  %v3195_v47 = vshrl.u32 %v15122_v44, 16 }
 0x12b   : > { %v13022_v57 = vpop.f32.mrf.mxu0  ;;  %13237 = vmatmul.mubr.msk.bf16.gmra.mxu0 %vm672_vm3, %v3542_v10  ;;  %13206 = vmatprep.mubr.msk.bf16.mxu1 %vm672_vm3, %v3157_v17  ;;  %v3182_v54 = vrot.slane %v3180_v23, 3  ;;  %v3551_v17 = vrot.slane %v15066_v34, 3  ;;  %v3198_v36 = vshll.u32 %v15122_v44, 16  ;;  %v18427_v23 = vld [vmem:[#allocation2_spill] sm:$0xff] }
 0x12c   : > { %v15321_v18 = vadd.f32 %v13022_v57, %v1057_v9  ;;  %13240 = vmatprep.mubr.msk.bf16.mxu0 %vm672_vm3, %v3544_v25  ;;  %v1064_v20 = vpop.f32.mrf.mxu1  ;;  %v3189_v9 = vshll.u32 %v15098_v8, 16  ;;  %v3548_v61 = vsel %vm3533_vm7, %v3545_v58, %v3547_v21  ;;  %v3175_v5 = vsel %vm3086_vm8, %v3165_v42, %v3174_v48 }
 0x12d   : > { %v1326_v33 = vpop.f32.mrf.mxu0  ;;  %v1065_v1 = vadd.f32 %v1064_v20, %v15052_v16  ;;  %v3183_v16 = vor.u32 %v3182_v54, %v3179_v4  ;;  %v3204_v42 = vshrl.u32 %v15130_v31, 16 }
 0x12e   : > { %v15327_v30 = vadd.f32 %v1326_v33, %v1049_v24  ;;  %v12989_v51 = vpop.f32.mrf.mxu1  ;;  %v1073_v24 = vadd.f32 %v12988_v13, %v15043_v46  ;;  %v3191_v29 = vrot.slane %v3189_v9, 3  ;;  %v3549_v46 = vrot.slane %v15058_v14, 3 }
 0x12f   : > { %v13023_v38 = vpop.f32.mrf.mxu0 }
 0x130   : > { %v15334_v59 = vadd.f32 %v13023_v38, %v1060_v28  ;;  %v1067_v25 = vpop.f32.mrf.mxu1  ;;  %v3188_v28 = vrot.slane %v3186_v45, 2  ;;  %v3550_v38 = vsel %vm3533_vm7, %v3547_v21, %v3549_v46  ;;  %v3552_v9 = vsel %vm3533_vm7, %v3549_v46, %v3551_v17 }
 0x131   : > { %v1329_v6 = vpop.f32.mrf.mxu0  ;;  %v1068_v34 = vadd.f32 %v1067_v25, %v18427_v23  ;;  %v3209_v21 = vrot.slane %v3207_v35, 3  ;;  %v18432_v23 = vld [vmem:[#allocation15_spill] sm:$0xff] }
 0x132   : > { %v15340_v10 = vadd.f32 %v1329_v6, %v1052_v22  ;;  %v12992_v39 = vpop.f32.mrf.mxu1  ;;  %13207 = vmatmul.mubr.msk.bf16.gmra.mxu1 %vm672_vm3, %v3166_v27  ;;  %v1076_v22 = vadd.f32 %v12989_v51, %v15060_v32  ;;  %v3192_v14 = vor.u32 %v3191_v29, %v3188_v28  ;;  %v3200_v51 = vrot.slane %v3198_v36, 3  ;;  %v18428_v6 = vld [vmem:[#allocation3_spill] sm:$0xff] }
 0x133   : > { %v13026_v56 = vpop.f32.mrf.mxu0  ;;  %13241 = vmatmul.mubr.msk.bf16.gmra.mxu0 %vm672_vm3, %v3546_v0  ;;  %13210 = vmatprep.mubr.msk.bf16.mxu1 %vm672_vm3, %v3175_v5  ;;  %v3197_v0 = vrot.slane %v3195_v47, 2  ;;  %v1089_v27 = vadd.f32 %v12992_v39, %v18428_v6  ;;  %v18429_v5 = vld [vmem:[#allocation4_spill] sm:$0xff]  ;;  %v18430_v47 = vld [vmem:[#allocation5_spill] sm:$0xff] }
 0x134   : > { %v15345_v53 = vadd.f32 %v13026_v56, %v1073_v24  ;;  %13244 = vmatprep.mubr.msk.bf16.mxu0 %vm672_vm3, %v3548_v61  ;;  %v1080_v13 = vpop.f32.mrf.mxu1  ;;  %v3184_v24 = vsel %vm3086_vm8, %v3174_v48, %v3183_v16  ;;  %v3193_v25 = vsel %vm3086_vm8, %v3183_v16, %v3192_v14  ;;  %v3206_v56 = vrot.slane %v3204_v42, 2  ;;  %v18431_v16 = vld [vmem:[#allocation13_spill] sm:$0xff] }
 0x135   : > { %v1342_v57 = vpop.f32.mrf.mxu0  ;;  %v1081_v28 = vadd.f32 %v1080_v13, %v18429_v5  ;;  %v3201_v39 = vor.u32 %v3200_v51, %v3197_v0  ;;  %v3213_v13 = vshrl.u32 %v18431_v16, 16 }
 0x136   : > { %v15354_v58 = vadd.f32 %v1342_v57, %v1065_v1  ;;  %v12993_v45 = vpop.f32.mrf.mxu1  ;;  %v3553_v1 = vrot.slane %v15090_v62, 3  ;;  %v3555_v57 = vrot.slane %v15098_v8, 3  ;;  %v3210_v62 = vor.u32 %v3209_v21, %v3206_v56 }
 0x137   : > { %v13027_v33 = vpop.f32.mrf.mxu0  ;;  %v1092_v36 = vadd.f32 %v12993_v45, %v18430_v47  ;;  %v3202_v6 = vsel %vm3086_vm8, %v3192_v14, %v3201_v39  ;;  %v3215_v56 = vrot.slane %v3213_v13, 2  ;;  %v18435_v47 = vld [vmem:[#allocation8_spill] sm:$0xff]  ;;  %v3557_v14 = vrot.slane %v15122_v44, 3 }
 0x138   : > { %v15360_v20 = vadd.f32 %v13027_v33, %v1076_v22  ;;  %v1083_v4 = vpop.f32.mrf.mxu1  ;;  %v3216_v33 = vshll.u32 %v18431_v16, 16  ;;  %v3554_v45 = vsel %vm3533_vm7, %v3551_v17, %v3553_v1  ;;  %v3559_v13 = vrot.slane %v15130_v31, 3  ;;  %v18439_v31 = vld [vmem:[#allocation10_spill] sm:$0xff] }
 0x139   : > { %v1345_v32 = vpop.f32.mrf.mxu0 }
 0x13a   : > { %v15365_v61 = vadd.f32 %v1345_v32, %v1068_v34  ;;  %v12996_v46 = vpop.f32.mrf.mxu1  ;;  %13211 = vmatmul.mubr.msk.bf16.gmra.mxu1 %vm672_vm3, %v3184_v24  ;;  %v3222_v34 = vshrl.u32 %v18432_v23, 16  ;;  %v18433_v32 = vld [vmem:[#allocation6_spill] sm:$0xff]  ;;  %v18434_v24 = vld [vmem:[#allocation7_spill] sm:$0xff]  ;;  %v3218_v21 = vrot.slane %v3216_v33, 3  ;;  %v3231_v33 = vshrl.u32 %v15188_v55, 16 }
 0x13b   : > { %v13030_v54 = vpop.f32.mrf.mxu0  ;;  %13245 = vmatmul.mubr.msk.bf16.gmra.mxu0 %vm672_vm3, %v3550_v38  ;;  %13214 = vmatprep.mubr.msk.bf16.mxu1 %vm672_vm3, %v3193_v25  ;;  %v3225_v38 = vshll.u32 %v18432_v23, 16 }
 0x13c   : > { %v15371_v29 = vadd.f32 %v13030_v54, %v1089_v27  ;;  %13248 = vmatprep.mubr.msk.bf16.mxu0 %vm672_vm3, %v3552_v9  ;;  %v1096_v42 = vpop.f32.mrf.mxu1  ;;  %v1084_v9 = vadd.f32 %v1083_v4, %v18433_v32  ;;  %v3556_v27 = vsel %vm3533_vm7, %v3553_v1, %v3555_v57  ;;  %v1105_v54 = vadd.f32 %v12996_v46, %v18434_v24 }
 0x13d   : > { %v1358_v48 = vpop.f32.mrf.mxu0  ;;  %v3211_v4 = vsel %vm3086_vm8, %v3201_v39, %v3210_v62  ;;  %v3227_v17 = vrot.slane %v3225_v38, 3  ;;  %v3234_v39 = vshll.u32 %v15188_v55, 16 }
 0x13e   : > { %v15378_v22 = vadd.f32 %v1358_v48, %v1081_v28  ;;  %v12997_v0 = vpop.f32.mrf.mxu1  ;;  %v3224_v48 = vrot.slane %v3222_v34, 2  ;;  %v18436_v34 = vld [vmem:[#allocation9_spill] sm:$0xff] }
 0x13f   : > { %v13031_v35 = vpop.f32.mrf.mxu0  ;;  %v1108_v38 = vadd.f32 %v12997_v0, %v18436_v34 }
 0x140   : > { %v15386_v8 = vadd.f32 %v13031_v35, %v1092_v36  ;;  %v1099_v5 = vpop.f32.mrf.mxu1  ;;  %v1097_v36 = vadd.f32 %v1096_v42, %v18435_v47  ;;  %v3219_v42 = vor.u32 %v3218_v21, %v3215_v56  ;;  %v15417_v56 = vld [vmem:[%s14357_s13 + $0xa0] ss:$0 sps:$4 sm:$0x77]   ;;  %v18440_v21 = vld [vmem:[#allocation11_spill] sm:$0xff] }
 0x141   : > { %v1361_v51 = vpop.f32.mrf.mxu0  ;;  %v1100_v24 = vadd.f32 %v1099_v5, %v18439_v31  ;;  %v18442_v31 = vld [vmem:[#allocation12_spill] sm:$0xff] }
 0x142   : > { %v15392_v25 = vadd.f32 %v1361_v51, %v1084_v9  ;;  %v13000_v1 = vpop.f32.mrf.mxu1  ;;  %13215 = vmatmul.mubr.msk.bf16.gmra.mxu1 %vm672_vm3, %v3202_v6  ;;  %v18438_v51 = vld [vmem:[#allocation17_spill] sm:$0xff]  ;;  %v3220_v34 = vsel %vm3086_vm8, %v3210_v62, %v3219_v42 }
 0x143   : > { %v13034_v28 = vpop.f32.mrf.mxu0  ;;  %13249 = vmatmul.mubr.msk.bf16.gmra.mxu0 %vm672_vm3, %v3554_v45  ;;  %13218 = vmatprep.mubr.msk.bf16.mxu1 %vm672_vm3, %v3211_v4  ;;  %v3228_v45 = vor.u32 %v3227_v17, %v3224_v48  ;;  %v3240_v6 = vshrl.u32 %v18438_v51, 16  ;;  %v3236_v4 = vrot.slane %v3234_v39, 3  ;;  %v1121_v48 = vadd.f32 %v13000_v1, %v18440_v21 }
 0x144   : > { %v15397_v35 = vadd.f32 %v13034_v28, %v1105_v54  ;;  %13252 = vmatprep.mubr.msk.bf16.mxu0 %vm672_vm3, %v3556_v27  ;;  %v1112_v9 = vpop.f32.mrf.mxu1  ;;  %v3243_v27 = vshll.u32 %v18438_v51, 16  ;;  %v3558_v28 = vsel %vm3533_vm7, %v3555_v57, %v3557_v14  ;;  %v3561_v1 = vrot.slane %v18431_v16, 3  ;;  %v4239_v16 = vld [vmem:[%s14623_s14] sm:$0xf] }
 0x145   : > { %v1374_v46 = vpop.f32.mrf.mxu0  ;;  %v3229_v57 = vsel %vm3086_vm8, %v3219_v42, %v3228_v45  ;;  %v3249_v42 = vshrl.u32 %v15417_v56, 16 }
 0x146   : > { %v15406_v32 = vadd.f32 %v1374_v46, %v1097_v36  ;;  %v13001_v0 = vpop.f32.mrf.mxu1  ;;  %v3560_v36 = vsel %vm3533_vm7, %v3557_v14, %v3559_v13  ;;  %v3233_v46 = vrot.slane %v3231_v33, 2  ;;  %v1113_v14 = vadd.f32 %v1112_v9, %v18442_v31  ;;  %v18447_v31 = vld [vmem:[#allocation19_spill] sm:$0xff] }
 0x147   : > { %v13035_v44 = vpop.f32.mrf.mxu0 }
 0x148   : > { %18437 = vst [vmem:[#allocation2_spill] sm:$0xff] %v15406_v32  ;;  %v15412_v54 = vadd.f32 %v13035_v44, %v1108_v38  ;;  %v1115_v32 = vpop.f32.mrf.mxu1  ;;  %v3242_v38 = vrot.slane %v3240_v6, 2  ;;  %v3245_v44 = vrot.slane %v3243_v27, 3  ;;  %v18444_v6 = vld [vmem:[#allocation14_spill] sm:$0xff] }
 0x149   : > { %v1377_v47 = vpop.f32.mrf.mxu0  ;;  %v1124_v27 = vadd.f32 %v13001_v0, %v18444_v6  ;;  %v3562_v0 = vsel %vm3533_vm7, %v3559_v13, %v3561_v1 }
 0x14a   : > { %v15420_v17 = vadd.f32 %v1377_v47, %v1100_v24  ;;  %v13044_v39 = vpop.f32.mrf.mxu1  ;;  %13219 = vmatmul.mubr.msk.bf16.gmra.mxu1 %vm672_vm3, %v3220_v34  ;;  %v3237_v24 = vor.u32 %v3236_v4, %v3233_v46  ;;  %v18445_v47 = vld [vmem:[#allocation18_spill] sm:$0xff]  ;;  %v3246_v46 = vor.u32 %v3245_v44, %v3242_v38  ;;  %v18446_v4 = vld [vmem:[#allocation16_spill] sm:$0xff] }
 0x14b   : > { %v13038_v5 = vpop.f32.mrf.mxu0  ;;  %13253 = vmatmul.mubr.msk.bf16.gmra.mxu0 %vm672_vm3, %v3558_v28  ;;  %v3563_v28 = vrot.slane %v18432_v23, 3  ;;  %v1846_v9 = vadd.f32 %v13044_v39, %v18445_v47  ;;  %13222 = vmatprep.mubr.msk.bf16.mxu1 %vm672_vm3, %v3229_v57  ;;  %v1116_v23 = vadd.f32 %v1115_v32, %v18446_v4  ;;  %v3251_v32 = vrot.slane %v3249_v42, 2 }
 0x14c   : > { %18441 = vst [vmem:[#allocation3_spill] sm:$0xff] %v15420_v17  ;;  %v15426_v33 = vadd.f32 %v13038_v5, %v1121_v48  ;;  %13256 = vmatprep.mubr.msk.bf16.mxu0 %vm672_vm3, %v3560_v36  ;;  %v3252_v36 = vshll.u32 %v15417_v56, 16  ;;  %v15441_v48 = vld [vmem:[%s14623_s14 + $0x4] sm:$0xf]  ;;  %v1701_v34 = vpop.f32.mrf.mxu1  ;;  %v3238_v57 = vsel %vm3086_vm8, %v3228_v45, %v3237_v24  ;;  %v3247_v13 = vsel %vm3086_vm8, %v3237_v24, %v3246_v46 }
 0x14d   : > { %v1390_v62 = vpop.f32.mrf.mxu0  ;;  %v11874_v6 = vcombine.low %v4239_v16, %v15441_v48  ;;  %v3567_v42 = vrot.slane %v18438_v51, 3 }
 0x14e   : > { %18443 = vst [vmem:[#allocation4_spill] sm:$0xff] %v15426_v33  ;;  %v15435_v21 = vadd.f32 %v1390_v62, %v1113_v14  ;;  %v1844_v33 = vadd.f32 %v1701_v34, %v18447_v31  ;;  %v13045_v14 = vpop.f32.mrf.mxu1  ;;  %v3564_v62 = vsel %vm3533_vm7, %v3561_v1, %v3563_v28  ;;  %v3254_v44 = vrot.slane %v3252_v36, 3  ;;  %v15464_v36 = vld [vmem:[%s14623_s14 + $0x8] sm:$0xff]  }
 0x14f   : > { %v13039_v5 = vpop.f32.mrf.mxu0  ;;  %v1847_v47 = vadd.f32 %v13045_v14, %v15216_v40  ;;  %v3565_v1 = vrot.slane %v15188_v55, 3  ;;  %v4374_v4 = vshll.u32 %v11874_v6, 16 }
 0x150   : > { %v15445_v17 = vadd.f32 %v13039_v5, %v1124_v27  ;;  %v1704_v34 = vpop.f32.mrf.mxu1 }
 0x151   : > { %v1393_v39 = vpop.f32.mrf.mxu0  ;;  %v1845_v5 = vadd.f32 %v1704_v34, %v15222_v41  ;;  %v3255_v41 = vor.u32 %v3254_v44, %v3251_v32  ;;  %v3566_v51 = vsel %vm3533_vm7, %v3563_v28, %v3565_v1  ;;  %v14063_v44 = vld [vmem:[%s14623_s14] sm:$0xff]   ;;  %v15483_v28 = vld [vmem:[%s14623_s14 + $0x10] sm:$0xff]  }
 0x152   : > { %v15452_v38 = vadd.f32 %v1393_v39, %v1116_v23  ;;  %v13048_v40 = vpop.f32.mrf.mxu1  ;;  %13223 = vmatmul.mubr.msk.bf16.gmra.mxu1 %vm672_vm3, %v3238_v57  ;;  %v3568_v57 = vsel %vm3533_vm7, %v3565_v1, %v3567_v42 }
 0x153   : > { %v13082_v27 = vpop.f32.mrf.mxu0  ;;  %13257 = vmatmul.mubr.msk.bf16.gmra.mxu0 %vm672_vm3, %v3562_v0  ;;  %v1850_v23 = vadd.f32 %v13048_v40, %v15227_v63  ;;  %13226 = vmatprep.mubr.msk.bf16.mxu1 %vm672_vm3, %v3247_v13  ;;  %v4372_v63 = vshrl.u32 %v11874_v6, 16 }
 0x154   : > { %v15457_v45 = vadd.f32 %v13082_v27, %v1846_v9  ;;  %13260 = vmatprep.mubr.msk.bf16.mxu0 %vm672_vm3, %v3564_v62  ;;  %v1717_v9 = vpop.f32.mrf.mxu1  ;;  %v4379_v62 = vshll.u32 %v15464_v36, 16 }
 0x155   : > { %v2148_v16 = vpop.f32.mrf.mxu0  ;;  %v1848_v55 = vadd.f32 %v1717_v9, %v15235_v52  ;;  %v3256_v52 = vsel %vm3086_vm8, %v3246_v46, %v3255_v41 }
 0x156   : > { %v15467_v24 = vadd.f32 %v2148_v16, %v1844_v33  ;;  %v13049_v14 = vpop.f32.mrf.mxu1  ;;  %v4376_v33 = vrot.slane %v4374_v4, 1  ;;  %v4381_v40 = vrot.slane %v4379_v62, 1  ;;  %v15492_v16 = vld [vmem:[%s14623_s14 + $0x18] sm:$0xff]  }
 0x157   : > { %v13083_v31 = vpop.f32.mrf.mxu0  ;;  %v1851_v34 = vadd.f32 %v13049_v14, %v15241_v12  ;;  %v3569_v12 = vrot.slane %v15417_v56, 3  ;;  %v4387_v56 = vshll.u32 %v15483_v28, 16  ;;  %v4383_v14 = vshrl.u32 %v15464_v36, 16 }
 0x158   : > { %v15471_v0 = vadd.f32 %v13083_v31, %v1847_v47  ;;  %v1720_v47 = vpop.f32.mrf.mxu1  ;;  %v4377_v46 = vor.u32 %v4376_v33, %v4372_v63  ;;  %v4391_v33 = vshrl.u32 %v15483_v28, 16 }
 0x159   : > { %v2151_v39 = vpop.f32.mrf.mxu0  ;;  %v1849_v13 = vadd.f32 %v1720_v47, %v15248_v60  ;;  %v4389_v47 = vrot.slane %v4387_v56, 1 }
 0x15a   : > { %v15477_v32 = vadd.f32 %v2151_v39, %v1845_v5  ;;  %v13052_v5 = vpop.f32.mrf.mxu1  ;;  %13227 = vmatmul.mubr.msk.bf16.gmra.mxu1 %vm672_vm3, %v3256_v52  ;;  %v4382_v63 = vsel %vm523_vm2, %v4377_v46, %v4381_v40  ;;  %v4385_v46 = vor.u32 %v4383_v14, %v4381_v40 }
 0x15b   : > { %v13086_v27 = vpop.f32.mrf.mxu0  ;;  %13261 = vmatmul.mubr.msk.bf16.gmra.mxu0 %vm672_vm3, %v3566_v51  ;;  %v1854_v4 = vadd.f32 %v13052_v5, %v15257_v49  ;;  %13270 = vmatprep.mubr.msk.bf16.mxu1 %vm672_vm3, %v14063_v44  ;;  %v3570_v51 = vsel %vm3533_vm7, %v3567_v42, %v3569_v12  ;;  %v11969_v49 = vld [vmem:[%s18357_s3 + $0x1a] sm:$0x3]  ;;  %v14065_v42 = vld [vmem:[%s14623_s14 + $0x10] sm:$0xff]  }
 0x15c   : > { %v15486_v6 = vadd.f32 %v13086_v27, %v1850_v23  ;;  %13264 = vmatprep.mubr.msk.bf16.mxu0 %vm672_vm3, %v3568_v57  ;;  %v1733_v60 = vpop.f32.mrf.mxu1  ;;  %v14064_v57 = vld [vmem:[%s14623_s14 + $0x8] sm:$0xff]   ;;  %v15517_v27 = vld [vmem:[%s14623_s14 + $0x20] sm:$0xff]   ;;  %v15520_v12 = vand.u32 %v11969_v49, %v14330_v3 }
 0x15d   : > { %v2164_v1 = vpop.f32.mrf.mxu0  ;;  %v1852_v9 = vadd.f32 %v1733_v60, %v15264_v43  ;;  %v4395_v43 = vshll.u32 %v15492_v16, 16  ;;  %v4393_v60 = vor.u32 %v4391_v33, %v4389_v47  ;;  %v4403_v14 = vshll.u32 %v15517_v27, 16 }
 0x15e   : > { %v15495_v41 = vadd.f32 %v2164_v1, %v1848_v55  ;;  %v13053_v55 = vpop.f32.mrf.mxu1 }
 0x15f   : > { %v13087_v23 = vpop.f32.mrf.mxu0  ;;  %v1855_v62 = vadd.f32 %v13053_v55, %v15277_v19 }
 0x160   : > { %v15500_v31 = vadd.f32 %v13087_v23, %v1851_v34  ;;  %v1736_v52 = vpop.f32.mrf.mxu1  ;;  %v4397_v23 = vrot.slane %v4395_v43, 1  ;;  %v4407_v43 = vshrl.u32 %v15517_v27, 16 }
 0x161   : > { %v2167_v39 = vpop.f32.mrf.mxu0  ;;  %v1853_v5 = vadd.f32 %v1736_v52, %v15287_v26  ;;  %v11989_v26 = vld [vmem:[%s18357_s3 + $0x1c] sm:$0x3] }
 0x162   : > { %v15512_v34 = vadd.f32 %v2167_v39, %v1849_v13  ;;  %v13056_v19 = vpop.f32.mrf.mxu1  ;;  %13271 = vmatmul.mubr.msk.bf16.vlgmr.msra.gmra.mxu1 %vm672_vm3, %v14064_v57  ;;  %v4398_v33 = vsel %vm523_vm2, %v4393_v60, %v4397_v23  ;;  %v15550_v52 = vand.u32 %v11989_v26, %v14330_v3 }
 0x163   : > { %v13090_v44 = vpop.f32.mrf.mxu0  ;;  %13265 = vmatmul.mubr.msk.bf16.gmra.mxu0 %vm672_vm3, %v3570_v51  ;;  %v15528_v51 = vld [vmem:[%s14623_s14 + $0x28] sm:$0xff]   ;;  %v1858_v56 = vadd.f32 %v13056_v19, %v15293_v37  ;;  %13345 = vmatpush3.bf16.msra.mxu1 %v15254_v50  ;;  %v4399_v50 = vshrl.u32 %v15492_v16, 16  ;;  %v4405_v19 = vrot.slane %v4403_v14, 1 }
 0x164   : > { %v15523_v1 = vadd.f32 %v13090_v44, %v1854_v4  ;;  %13308 = vmatprep.mubr.msk.bf16.mxu0 %vm672_vm3, %v4382_v63  ;;  %13274 = vmatprep.mubr.msk.bf16.mxu1 %vm672_vm3, %v14065_v42  ;;  %v1749_v40 = vpop.f32.mrf.mxu1  ;;  %v14068_v63 = vld [vmem:[%s14623_s14 + $0x18] sm:$0xff]   ;;  %v4411_v42 = vshll.u32 %v15528_v51, 16  ;;  %v14070_v44 = vld [vmem:[%s14623_s14 + $0x20] sm:$0xff]  }
 0x165   : > { %v2180_v13 = vpop.f32.mrf.mxu0  ;;  %13420 = vmatprep.subr.bf16.mxu1 %v15520_v12  ;;  %v1856_v55 = vadd.f32 %v1749_v40, %v15304_v7  ;;  %v4401_v26 = vor.u32 %v4399_v50, %v4397_v23 }
 0x166   : > { %v15531_v49 = vadd.f32 %v2180_v13, %v1852_v9  ;;  %v4390_v9 = vsel %vm523_vm2, %v4385_v46, %v4389_v47  ;;  %v13057_v39 = vpop.f32.mrf.mxu1  ;;  %v15558_v13 = vld [vmem:[%s14623_s14 + $0x30] sm:$0xff]  }
 0x167   : > { %v13091_v4 = vpop.f32.mrf.mxu0  ;;  %v1859_v7 = vadd.f32 %v13057_v39, %v15310_v2  ;;  %18448 = vst [vmem:[#allocation5_spill] sm:$0xff] %v15558_v13  ;;  %v4413_v39 = vrot.slane %v4411_v42, 1  ;;  %v4419_v14 = vshll.u32 %v15558_v13, 16 }
 0x168   : > { %v15541_v37 = vadd.f32 %v13091_v4, %v1855_v62  ;;  %v1752_v47 = vpop.f32.mrf.mxu1  ;;  %v4409_v4 = vor.u32 %v4407_v43, %v4405_v19 }
 0x169   : > { %v2183_v57 = vpop.f32.mrf.mxu0  ;;  %v1857_v60 = vadd.f32 %v1752_v47, %v15315_v15 }
 0x16a   : > { %v15553_v62 = vadd.f32 %v2183_v57, %v1853_v5  ;;  %v13060_v2 = vpop.f32.mrf.mxu1  ;;  %13275 = vmatmul.mubr.msk.bf16.gmra.mxu1 %vm672_vm3, %v14068_v63  ;;  %v4406_v63 = vsel %vm523_vm2, %v4401_v26, %v4405_v19  ;;  %v4414_v42 = vsel %vm523_vm2, %v4409_v4, %v4413_v39  ;;  %v4421_v19 = vrot.slane %v4419_v14, 1  ;;  %v15590_v26 = vld [vmem:[%s14623_s14 + $0x40] sm:$0xff]  }
 0x16b   : > { %v13094_v46 = vpop.f32.mrf.mxu0  ;;  %13309 = vmatmul.mubr.msk.bf16.vlgmr.msra.gmra.mxu0 %vm672_vm3, %v4390_v9  ;;  %v15567_v9 = vld [vmem:[%s14623_s14 + $0x38] sm:$0xff]   ;;  %v1862_v15 = vadd.f32 %v13060_v2, %v15321_v18  ;;  %13278 = vmatprep.mubr.msk.bf16.mxu1 %vm672_vm3, %v14070_v44  ;;  %v4423_v44 = vshrl.u32 %v15558_v13, 16  ;;  %18449 = vst [vmem:[#allocation13_spill] sm:$0xff] %v15590_v26 }
 0x16c   : > { %v15561_v40 = vadd.f32 %v13094_v46, %v1858_v56  ;;  %13383 = vmatpush3.bf16.msra.mxu0 %v15284_v11  ;;  %13312 = vmatprep.mubr.msk.bf16.mxu0 %vm672_vm3, %v4398_v33  ;;  %v1765_v11 = vpop.f32.mrf.mxu1  ;;  %v4415_v33 = vshrl.u32 %v15528_v51, 16  ;;  %v4427_v47 = vshll.u32 %v15567_v9, 16 }
 0x16d   : > { %v2196_v5 = vpop.f32.mrf.mxu0  ;;  %13458 = vmatprep.subr.bf16.mxu0 %v15550_v52  ;;  %v1860_v50 = vadd.f32 %v1765_v11, %v15327_v30  ;;  %v14074_v30 = vld [vmem:[%s14623_s14 + $0x30] sm:$0xff]  }
 0x16e   : > { %v15571_v56 = vadd.f32 %v2196_v5, %v1856_v55  ;;  %v13061_v43 = vpop.f32.mrf.mxu1  ;;  %v14072_v55 = vld [vmem:[%s14623_s14 + $0x28] sm:$0xff]  }
 0x16f   : > { %v13095_v23 = vpop.f32.mrf.mxu0  ;;  %v1863_v46 = vadd.f32 %v13061_v43, %v15334_v59  ;;  %v4429_v43 = vrot.slane %v4427_v47, 1 }
 0x170   : > { %v15576_v57 = vadd.f32 %v13095_v23, %v1859_v7  ;;  %v1768_v7 = vpop.f32.mrf.mxu1  ;;  %v4417_v23 = vor.u32 %v4415_v33, %v4413_v39 }
 0x171   : > { %v2199_v18 = vpop.f32.mrf.mxu0  ;;  %v1861_v11 = vadd.f32 %v1768_v7, %v15340_v10 }
 0x172   : > { %v15585_v2 = vadd.f32 %v2199_v18, %v1857_v60  ;;  %v13064_v13 = vpop.f32.mrf.mxu1  ;;  %13279 = vmatmul.mubr.msk.bf16.gmra.mxu1 %vm672_vm3, %v14072_v55  ;;  %v4425_v60 = vor.u32 %v4423_v44, %v4421_v19  ;;  %v15598_v18 = vld [vmem:[%s14623_s14 + $0x48] sm:$0xff]   ;;  %v4431_v44 = vshrl.u32 %v15567_v9, 16 }
 0x173   : > { %v13098_v5 = vpop.f32.mrf.mxu0  ;;  %13313 = vmatmul.mubr.msk.bf16.gmra.mxu0 %vm672_vm3, %v4406_v63  ;;  %v1866_v14 = vadd.f32 %v13064_v13, %v15345_v53  ;;  %13282 = vmatprep.mubr.msk.bf16.mxu1 %vm672_vm3, %v14074_v30  ;;  %v14076_v13 = vld [vmem:[%s14623_s14 + $0x38] sm:$0xff]   ;;  %v4439_v30 = vshrl.u32 %v15590_v26, 16  ;;  %v4443_v7 = vshll.u32 %v15598_v18, 16 }
 0x174   : > { %v15593_v4 = vadd.f32 %v13098_v5, %v1862_v15  ;;  %13316 = vmatprep.mubr.msk.bf16.mxu0 %vm672_vm3, %v4414_v42  ;;  %v1781_v10 = vpop.f32.mrf.mxu1  ;;  %v4435_v15 = vshll.u32 %v15590_v26, 16  ;;  %v4422_v42 = vsel %vm523_vm2, %v4417_v23, %v4421_v19  ;;  %v15620_v23 = vld [vmem:[%s14623_s14 + $0x50] sm:$0xff]   ;;  %v4433_v26 = vor.u32 %v4431_v44, %v4429_v43 }
 0x175   : > { %v2212_v59 = vpop.f32.mrf.mxu0  ;;  %v1864_v33 = vadd.f32 %v1781_v10, %v15354_v58  ;;  %v14078_v58 = vld [vmem:[%s14623_s14 + $0x40] sm:$0xff]   ;;  %18451 = vst [vmem:[#allocation6_spill] sm:$0xff] %v15620_v23 }
 0x176   : > { %v15601_v63 = vadd.f32 %v2212_v59, %v1860_v50  ;;  %v13065_v47 = vpop.f32.mrf.mxu1  ;;  %v4430_v50 = vsel %vm523_vm2, %v4425_v60, %v4429_v43  ;;  %v4437_v19 = vrot.slane %v4435_v15, 1 }
 0x177   : > { %v13099_v39 = vpop.f32.mrf.mxu0  ;;  %v1867_v5 = vadd.f32 %v13065_v47, %v15360_v20  ;;  %v4445_v47 = vrot.slane %v4443_v7, 1 }
 0x178   : > { %v15606_v55 = vadd.f32 %v13099_v39, %v1863_v46  ;;  %v1784_v46 = vpop.f32.mrf.mxu1 }
 0x179   : > { %v2215_v53 = vpop.f32.mrf.mxu0  ;;  %v1865_v39 = vadd.f32 %v1784_v46, %v15365_v61 }
 0x17a   : > { %18450 = vst [vmem:[#allocation15_spill] sm:$0xff] %v15606_v55  ;;  %v15615_v59 = vadd.f32 %v2215_v53, %v1861_v11  ;;  %v13068_v55 = vpop.f32.mrf.mxu1  ;;  %13283 = vmatmul.mubr.msk.bf16.gmra.mxu1 %vm672_vm3, %v14076_v13  ;;  %v4441_v11 = vor.u32 %v4439_v30, %v4437_v19  ;;  %v15628_v53 = vld [vmem:[%s14623_s14 + $0x58] sm:$0xff]   ;;  %v4447_v30 = vshrl.u32 %v15598_v18, 16 }
 0x17b   : > { %v13102_v10 = vpop.f32.mrf.mxu0  ;;  %13317 = vmatmul.mubr.msk.bf16.gmra.mxu0 %vm672_vm3, %v4422_v42  ;;  %18452 = vst [vmem:[#allocation7_spill] sm:$0xff] %v15628_v53  ;;  %v1870_v15 = vadd.f32 %v13068_v55, %v15371_v29  ;;  %13286 = vmatprep.mubr.msk.bf16.mxu1 %vm672_vm3, %v14078_v58  ;;  %v4455_v58 = vshrl.u32 %v15620_v23, 16  ;;  %v4459_v46 = vshll.u32 %v15628_v53, 16 }
 0x17c   : > { %v15623_v60 = vadd.f32 %v13102_v10, %v1866_v14  ;;  %13320 = vmatprep.mubr.msk.bf16.mxu0 %vm672_vm3, %v4430_v50  ;;  %v1797_v61 = vpop.f32.mrf.mxu1  ;;  %v4451_v14 = vshll.u32 %v15620_v23, 16  ;;  %v4438_v50 = vsel %vm523_vm2, %v4433_v26, %v4437_v19  ;;  %v4446_v55 = vsel %vm523_vm2, %v4441_v11, %v4445_v47  ;;  %v15650_v19 = vld [vmem:[%s14623_s14 + $0x60] sm:$0xff]  }
 0x17d   : > { %v2228_v20 = vpop.f32.mrf.mxu0  ;;  %v1868_v44 = vadd.f32 %v1797_v61, %v15378_v22  ;;  %v14082_v22 = vld [vmem:[%s14623_s14 + $0x50] sm:$0xff]   ;;  %18454 = vst [vmem:[#allocation9_spill] sm:$0xff] %v15650_v19  ;;  %v4449_v23 = vor.u32 %v4447_v30, %v4445_v47  ;;  %v18456_v30 = vld [vmem:[#allocation2_spill] sm:$0xff] }
 0x17e   : > { %v15631_v42 = vadd.f32 %v2228_v20, %v1864_v33  ;;  %v13069_v7 = vpop.f32.mrf.mxu1  ;;  %v14080_v33 = vld [vmem:[%s14623_s14 + $0x48] sm:$0xff]   ;;  %v4453_v26 = vrot.slane %v4451_v14, 1 }
 0x17f   : > { %v13103_v43 = vpop.f32.mrf.mxu0  ;;  %v1871_v10 = vadd.f32 %v13069_v7, %v15386_v8  ;;  %v4461_v7 = vrot.slane %v4459_v46, 1  ;;  %v4463_v46 = vshrl.u32 %v15628_v53, 16 }
 0x180   : > { %v15636_v13 = vadd.f32 %v13103_v43, %v1867_v5  ;;  %v1800_v5 = vpop.f32.mrf.mxu1 }
 0x181   : > { %v2231_v29 = vpop.f32.mrf.mxu0  ;;  %v1869_v43 = vadd.f32 %v1800_v5, %v15392_v25 }
 0x182   : > { %18453 = vst [vmem:[#allocation8_spill] sm:$0xff] %v15636_v13  ;;  %v15645_v20 = vadd.f32 %v2231_v29, %v1865_v39  ;;  %v13072_v13 = vpop.f32.mrf.mxu1  ;;  %13287 = vmatmul.mubr.msk.bf16.gmra.mxu1 %vm672_vm3, %v14080_v33  ;;  %v4457_v39 = vor.u32 %v4455_v58, %v4453_v26  ;;  %v15658_v29 = vld [vmem:[%s14623_s14 + $0x68] sm:$0xff]   ;;  %v4454_v58 = vsel %vm523_vm2, %v4449_v23, %v4453_v26  ;;  %v15680_v26 = vld [vmem:[%s14623_s14 + $0x70] sm:$0xff]  }
 0x183   : > { %v13106_v61 = vpop.f32.mrf.mxu0  ;;  %13321 = vmatmul.mubr.msk.bf16.gmra.mxu0 %vm672_vm3, %v4438_v50  ;;  %v1874_v14 = vadd.f32 %v13072_v13, %v15397_v35  ;;  %13290 = vmatprep.mubr.msk.bf16.mxu1 %vm672_vm3, %v14082_v22  ;;  %v4471_v22 = vshrl.u32 %v15650_v19, 16  ;;  %18459 = vst [vmem:[#allocation12_spill] sm:$0xff] %v15680_v26 }
 0x184   : > { %v15653_v11 = vadd.f32 %v13106_v61, %v1870_v15  ;;  %13324 = vmatprep.mubr.msk.bf16.mxu0 %vm672_vm3, %v4446_v55  ;;  %v1813_v25 = vpop.f32.mrf.mxu1  ;;  %v4467_v15 = vshll.u32 %v15650_v19, 16  ;;  %v4462_v13 = vsel %vm523_vm2, %v4457_v39, %v4461_v7  ;;  %v4475_v61 = vshll.u32 %v15658_v29, 16 }
 0x185   : > { %v2244_v8 = vpop.f32.mrf.mxu0  ;;  %v1872_v55 = vadd.f32 %v1813_v25, %v18456_v30  ;;  %v18460_v30 = vld [vmem:[#allocation3_spill] sm:$0xff]  ;;  %v4465_v19 = vor.u32 %v4463_v46, %v4461_v7  ;;  %v4483_v46 = vshll.u32 %v15680_v26, 16 }
 0x186   : > { %v15661_v50 = vadd.f32 %v2244_v8, %v1868_v44  ;;  %v13073_v5 = vpop.f32.mrf.mxu1  ;;  %v14084_v44 = vld [vmem:[%s14623_s14 + $0x58] sm:$0xff]   ;;  %v4469_v23 = vrot.slane %v4467_v15, 1 }
 0x187   : > { %v13107_v47 = vpop.f32.mrf.mxu0  ;;  %v1875_v8 = vadd.f32 %v13073_v5, %v15412_v54  ;;  %v4477_v5 = vrot.slane %v4475_v61, 1  ;;  %v4479_v61 = vshrl.u32 %v15658_v29, 16 }
 0x188   : > { %18455 = vst [vmem:[#allocation17_spill] sm:$0xff] %v15661_v50  ;;  %v15666_v33 = vadd.f32 %v13107_v47, %v1871_v10  ;;  %v14086_v10 = vld [vmem:[%s14623_s14 + $0x60] sm:$0xff]   ;;  %v1816_v25 = vpop.f32.mrf.mxu1 }
 0x189   : > { %v2247_v35 = vpop.f32.mrf.mxu0 }
 0x18a   : > { %18457 = vst [vmem:[#allocation10_spill] sm:$0xff] %v15666_v33  ;;  %v15675_v50 = vadd.f32 %v2247_v35, %v1869_v43  ;;  %v1873_v33 = vadd.f32 %v1816_v25, %v18460_v30  ;;  %v13076_v53 = vpop.f32.mrf.mxu1  ;;  %13291 = vmatmul.mubr.msk.bf16.gmra.mxu1 %vm672_vm3, %v14084_v44  ;;  %v4473_v43 = vor.u32 %v4471_v22, %v4469_v23  ;;  %v15688_v35 = vld [vmem:[%s14623_s14 + $0x78] sm:$0xff]  }
 0x18b   : > { %v13110_v47 = vpop.f32.mrf.mxu0  ;;  %13325 = vmatmul.mubr.msk.bf16.gmra.mxu0 %vm672_vm3, %v4454_v58  ;;  %v18461_v58 = vld [vmem:[#allocation4_spill] sm:$0xff]  ;;  %13294 = vmatprep.mubr.msk.bf16.mxu1 %vm672_vm3, %v14086_v10  ;;  %v4470_v22 = vsel %vm523_vm2, %v4465_v19, %v4469_v23  ;;  %v4487_v10 = vshrl.u32 %v15680_v26, 16  ;;  %v4491_v30 = vshll.u32 %v15688_v35, 16  ;;  %v4485_v19 = vrot.slane %v4483_v46, 1  ;;  %v15710_v23 = vld [vmem:[%s14623_s14 + $0x80] sm:$0xff]  }
 0x18c   : > { %18458 = vst [vmem:[#allocation11_spill] sm:$0xff] %v15675_v50  ;;  %v15683_v39 = vadd.f32 %v13110_v47, %v1874_v14  ;;  %13328 = vmatprep.mubr.msk.bf16.mxu0 %vm672_vm3, %v4462_v13  ;;  %v1878_v15 = vadd.f32 %v13076_v53, %v18461_v58  ;;  %v1829_v14 = vpop.f32.mrf.mxu1  ;;  %v4478_v47 = vsel %vm523_vm2, %v4473_v43, %v4477_v5  ;;  %18463 = vst [vmem:[#allocation18_spill] sm:$0xff] %v15710_v23 }
 0x18d   : > { %v2260_v54 = vpop.f32.mrf.mxu0  ;;  %v1876_v13 = vadd.f32 %v1829_v14, %v15435_v21  ;;  %v14090_v21 = vld [vmem:[%s14623_s14 + $0x70] sm:$0xff]   ;;  %v4481_v26 = vor.u32 %v4479_v61, %v4477_v5  ;;  %v4499_v61 = vshll.u32 %v15710_v23, 16 }
 0x18e   : > { %v15691_v50 = vadd.f32 %v2260_v54, %v1872_v55  ;;  %v13077_v25 = vpop.f32.mrf.mxu1  ;;  %v14088_v55 = vld [vmem:[%s14623_s14 + $0x68] sm:$0xff]  }
 0x18f   : > { %v13111_v7 = vpop.f32.mrf.mxu0  ;;  %v1879_v54 = vadd.f32 %v13077_v25, %v15445_v17  ;;  %v4493_v25 = vrot.slane %v4491_v30, 1  ;;  %v4789_v30 = vld [vmem:[%s14623_s14] sm:$0xe] }
 0x190   : > { %v15696_v44 = vadd.f32 %v13111_v7, %v1875_v8  ;;  %v1832_v8 = vpop.f32.mrf.mxu1 }
 0x191   : > { %v2263_v53 = vpop.f32.mrf.mxu0  ;;  %v1877_v7 = vadd.f32 %v1832_v8, %v15452_v38 }
 0x192   : > { %18462 = vst [vmem:[#allocation14_spill] sm:$0xff] %v15696_v44  ;;  %v15705_v58 = vadd.f32 %v2263_v53, %v1873_v33  ;;  %v13120_v44 = vpop.f32.mrf.mxu1  ;;  %13295 = vmatmul.mubr.msk.bf16.gmra.mxu1 %vm672_vm3, %v14088_v55  ;;  %v4489_v33 = vor.u32 %v4487_v10, %v4485_v19  ;;  %v15718_v53 = vld [vmem:[%s14623_s14 + $0x88] sm:$0xff]   ;;  %v4486_v10 = vsel %vm523_vm2, %v4481_v26, %v4485_v19  ;;  %v4501_v19 = vrot.slane %v4499_v61, 1 }
 0x193   : > { %v13114_v14 = vpop.f32.mrf.mxu0  ;;  %13329 = vmatmul.mubr.msk.bf16.gmra.mxu0 %vm672_vm3, %v4470_v22  ;;  %v2607_v46 = vadd.f32 %v13120_v44, %v15457_v45  ;;  %13298 = vmatprep.mubr.msk.bf16.mxu1 %vm672_vm3, %v14090_v21  ;;  %v4503_v21 = vshrl.u32 %v15710_v23, 16 }
 0x194   : > { %v15713_v43 = vadd.f32 %v13114_v14, %v1878_v15  ;;  %13332 = vmatprep.mubr.msk.bf16.mxu0 %vm672_vm3, %v4478_v47  ;;  %v2462_v38 = vpop.f32.mrf.mxu1  ;;  %v4495_v15 = vshrl.u32 %v15688_v35, 16  ;;  %v4494_v44 = vsel %vm523_vm2, %v4489_v33, %v4493_v25  ;;  %v4507_v14 = vshll.u32 %v15718_v53, 16 }
 0x195   : > { %v2276_v17 = vpop.f32.mrf.mxu0  ;;  %v2605_v55 = vadd.f32 %v2462_v38, %v15467_v24  ;;  %v14094_v24 = vld [vmem:[%s14623_s14 + $0x80] sm:$0xff]  }
 0x196   : > { %v15721_v22 = vadd.f32 %v2276_v17, %v1876_v13  ;;  %v13121_v8 = vpop.f32.mrf.mxu1  ;;  %v14092_v13 = vld [vmem:[%s14623_s14 + $0x78] sm:$0xff]   ;;  %v4497_v26 = vor.u32 %v4495_v15, %v4493_v25 }
 0x197   : > { %v13115_v5 = vpop.f32.mrf.mxu0  ;;  %v2608_v17 = vadd.f32 %v13121_v8, %v15471_v0  ;;  %v15746_v0 = vld [vmem:[%s14623_s14 + $0x90] ss:$0 sps:$4 sm:$0x11]  }
 0x198   : > { %18464 = vst [vmem:[#allocation16_spill] sm:$0xff] %v15721_v22  ;;  %v15727_v47 = vadd.f32 %v13115_v5, %v1879_v54  ;;  %v2465_v54 = vpop.f32.mrf.mxu1  ;;  %v11912_v5 = vcombine.low %v4789_v30, %v15441_v48  ;;  %v5102_v48 = vld [vmem:[%s14623_s14 + $0x8] sm:$0xe]  ;;  %v4502_v30 = vsel %vm523_vm2, %v4497_v26, %v4501_v19  ;;  %v15770_v26 = vld [vmem:[%s14623_s14 + $0x10] sm:$0xff]  }
 0x199   : > { %v2279_v45 = vpop.f32.mrf.mxu0  ;;  %v2606_v33 = vadd.f32 %v2465_v54, %v15477_v32  ;;  %v15755_v32 = vld [vmem:[%s14623_s14 + $0xc] sm:$0xf] }
 0x19a   : > { %v15736_v22 = vadd.f32 %v2279_v45, %v1877_v7  ;;  %v13124_v7 = vpop.f32.mrf.mxu1  ;;  %13299 = vmatmul.mubr.msk.bf16.gmra.mxu1 %vm672_vm3, %v14092_v13  ;;  %v4505_v45 = vor.u32 %v4503_v21, %v4501_v19  ;;  %18465 = vst [vmem:[#allocation19_spill] sm:$0xff] %v15755_v32  ;;  %v4796_v13 = vrot.slane %v15464_v36, 1 }
 0x19b   : > { %v13158_v38 = vpop.f32.mrf.mxu0  ;;  %13333 = vmatmul.mubr.msk.bf16.gmra.mxu0 %vm672_vm3, %v4486_v10  ;;  %v4509_v10 = vrot.slane %v4507_v14, 1  ;;  %v2611_v25 = vadd.f32 %v13124_v7, %v15486_v6  ;;  %13302 = vmatprep.mubr.msk.bf16.mxu1 %vm672_vm3, %v14094_v24  ;;  %v4511_v6 = vshrl.u32 %v15718_v53, 16 }
 0x19c   : > { %v15742_v23 = vadd.f32 %v13158_v38, %v2607_v46  ;;  %13336 = vmatprep.mubr.msk.bf16.mxu0 %vm672_vm3, %v4494_v44  ;;  %v2478_v46 = vpop.f32.mrf.mxu1  ;;  %v4795_v44 = vrot.slane %v11912_v5, 1  ;;  %v14096_v38 = vld [vmem:[%s14623_s14 + $0x88] sm:$0xff]  }
 0x19d   : > { %v2901_v8 = vpop.f32.mrf.mxu0  ;;  %v2609_v21 = vadd.f32 %v2478_v46, %v15495_v41  ;;  %v4510_v7 = vsel %vm523_vm2, %v4505_v45, %v4509_v10  ;;  %v4513_v45 = vor.u32 %v4511_v6, %v4509_v10  ;;  %v4800_v6 = vrot.slane %v15492_v16, 1 }
 0x19e   : > { %v15750_v15 = vadd.f32 %v2901_v8, %v2605_v55  ;;  %v4515_v55 = vshll.u32 %v15746_v0, 16  ;;  %v13125_v24 = vpop.f32.mrf.mxu1  ;;  %v15767_v8 = vcombine.low %v5102_v48, %v15755_v32  ;;  %v4797_v5 = vsel %vm1133_vm4, %v4795_v44, %v4796_v13 }
 0x19f   : > { %v13159_v61 = vpop.f32.mrf.mxu0  ;;  %v2612_v36 = vadd.f32 %v13125_v24, %v15500_v31  ;;  %v5235_v24 = vrot.slane %v15770_v26, 1 }
 0x1a0   : > { %v15760_v14 = vadd.f32 %v13159_v61, %v2608_v17  ;;  %v2481_v41 = vpop.f32.mrf.mxu1  ;;  %v4517_v48 = vrot.slane %v4515_v55, 1 }
 0x1a1   : > { %v2904_v54 = vpop.f32.mrf.mxu0  ;;  %v2610_v46 = vadd.f32 %v2481_v41, %v15512_v34  ;;  %v4798_v34 = vrot.slane %v15483_v28, 1  ;;  %v15802_v41 = vld [vmem:[%s14623_s14 + $0x20] sm:$0xff]  }
 0x1a2   : > { %v15773_v19 = vadd.f32 %v2904_v54, %v2606_v33  ;;  %v13128_v32 = vpop.f32.mrf.mxu1  ;;  %13303 = vmatmul.mubr.msk.bf16.gmra.mxu1 %vm672_vm3, %v14096_v38  ;;  %v5234_v33 = vrot.slane %v15767_v8, 1  ;;  %v4518_v38 = vsel %vm523_vm2, %v4513_v45, %v4517_v48 }
 0x1a3   : > { %v13162_v17 = vpop.f32.mrf.mxu0  ;;  %13337 = vmatmul.mubr.msk.bf16.gmra.mxu0 %vm672_vm3, %v4502_v30  ;;  %v2615_v30 = vadd.f32 %v13128_v32, %v15523_v1  ;;  %13346 = vmatprep.mubr.msk.bf16.mxu1 %vm672_vm3, %v4797_v5  ;;  %v12009_v1 = vld [vmem:[%s18357_s3 + $0x1e] sm:$0x3]  ;;  %v4801_v45 = vsel %vm1133_vm4, %v4798_v34, %v4800_v6 }
 0x1a4   : > { %v15778_v61 = vadd.f32 %v13162_v17, %v2611_v25  ;;  %13340 = vmatprep.mubr.msk.bf16.mxu0 %vm672_vm3, %v4510_v7  ;;  %v2494_v10 = vpop.f32.mrf.mxu1  ;;  %v15795_v7 = vld [vmem:[%s14623_s14 + $0x18] sm:$0xff]   ;;  %v5236_v28 = vsel %vm1133_vm4, %v5234_v33, %v5235_v24  ;;  %v15811_v48 = vand.u32 %v12009_v1, %v14330_v3 }
 0x1a5   : > { %v2917_v31 = vpop.f32.mrf.mxu0  ;;  %v2613_v55 = vadd.f32 %v2494_v10, %v15531_v49  ;;  %v4799_v49 = vsel %vm1133_vm4, %v4796_v13, %v4798_v34  ;;  %v5239_v10 = vrot.slane %v15802_v41, 1 }
 0x1a6   : > { %v15785_v44 = vadd.f32 %v2917_v31, %v2609_v21  ;;  %v13129_v32 = vpop.f32.mrf.mxu1 }
 0x1a7   : > { %v13163_v25 = vpop.f32.mrf.mxu0  ;;  %v2616_v16 = vadd.f32 %v13129_v32, %v15541_v37  ;;  %v5237_v37 = vrot.slane %v15795_v7, 1  ;;  %v4804_v32 = vrot.slane %v15528_v51, 1 }
 0x1a8   : > { %v15791_v54 = vadd.f32 %v13163_v25, %v2612_v36  ;;  %v2497_v36 = vpop.f32.mrf.mxu1 }
 0x1a9   : > { %v2920_v21 = vpop.f32.mrf.mxu0  ;;  %v2614_v31 = vadd.f32 %v2497_v36, %v15553_v62  ;;  %v4802_v62 = vrot.slane %v15517_v27, 1  ;;  %v15840_v36 = vld [vmem:[%s14623_s14 + $0x30] sm:$0xff]  }
 0x1aa   : > { %v15805_v17 = vadd.f32 %v2920_v21, %v2610_v46  ;;  %v13132_v46 = vpop.f32.mrf.mxu1  ;;  %13347 = vmatmul.mubr.msk.bf16.vlgmr.msra.gmra.mxu1 %vm672_vm3, %v4799_v49  ;;  %v15836_v21 = vld [vmem:[%s14623_s14 + $0x28] sm:$0xff]   ;;  %v5240_v49 = vsel %vm1133_vm4, %v5237_v37, %v5239_v10 }
 0x1ab   : > { %v13166_v5 = vpop.f32.mrf.mxu0  ;;  %13341 = vmatmul.mubr.msk.bf16.gmra.mxu0 %vm672_vm3, %v4518_v38  ;;  %v2619_v34 = vadd.f32 %v13132_v46, %v15561_v40  ;;  %13421 = vmatpush3.bf16.msra.mxu1 %v15520_v12  ;;  %v5238_v12 = vsel %vm1133_vm4, %v5235_v24, %v5237_v37  ;;  %v4805_v24 = vsel %vm1133_vm4, %v4802_v62, %v4804_v32 }
 0x1ac   : > { %v15814_v33 = vadd.f32 %v13166_v5, %v2615_v30  ;;  %13384 = vmatprep.mubr.msk.bf16.mxu0 %vm672_vm3, %v5236_v28  ;;  %13350 = vmatprep.mubr.msk.bf16.mxu1 %vm672_vm3, %v4801_v45  ;;  %v12047_v30 = vld [vmem:[%s18357_s3 + $0x20] sm:$0x3]  ;;  %v2510_v38 = vpop.f32.mrf.mxu1 }
 0x1ad   : > { %v2933_v13 = vpop.f32.mrf.mxu0  ;;  %13496 = vmatprep.subr.bf16.mxu1 %v15811_v48  ;;  %v2617_v40 = vadd.f32 %v2510_v38, %v15571_v56  ;;  %v15843_v5 = vand.u32 %v12047_v30, %v14330_v3  ;;  %v4803_v56 = vsel %vm1133_vm4, %v4800_v6, %v4802_v62  ;;  %v5243_v30 = vrot.slane %v15840_v36, 1 }
 0x1ae   : > { %v15821_v25 = vadd.f32 %v2933_v13, %v2613_v55  ;;  %v13133_v28 = vpop.f32.mrf.mxu1 }
 0x1af   : > { %v13167_v1 = vpop.f32.mrf.mxu0  ;;  %v2620_v51 = vadd.f32 %v13133_v28, %v15576_v57  ;;  %v5241_v57 = vrot.slane %v15836_v21, 1 }
 0x1b0   : > { %v15832_v55 = vadd.f32 %v13167_v1, %v2616_v16  ;;  %v2513_v16 = vpop.f32.mrf.mxu1 }
 0x1b1   : > { %v2936_v27 = vpop.f32.mrf.mxu0  ;;  %v2618_v13 = vadd.f32 %v2513_v16, %v15585_v2 }
 0x1b2   : > { %v15846_v45 = vadd.f32 %v2936_v27, %v2614_v31  ;;  %v13136_v31 = vpop.f32.mrf.mxu1  ;;  %13351 = vmatmul.mubr.msk.bf16.gmra.mxu1 %vm672_vm3, %v4803_v56  ;;  %v15871_v56 = vld [vmem:[%s14623_s14 + $0x38] sm:$0xff]  }
 0x1b3   : > { %v13170_v46 = vpop.f32.mrf.mxu0  ;;  %13385 = vmatmul.mubr.msk.bf16.vlgmr.msra.gmra.mxu0 %vm672_vm3, %v5238_v12  ;;  %v2623_v2 = vadd.f32 %v13136_v31, %v15593_v4  ;;  %13354 = vmatprep.mubr.msk.bf16.mxu1 %vm672_vm3, %v4805_v24  ;;  %v4808_v12 = vrot.slane %v15567_v9, 1  ;;  %v18467_v24 = vld [vmem:[#allocation15_spill] sm:$0xff] }
 0x1b4   : > { %v15852_v37 = vadd.f32 %v13170_v46, %v2619_v34  ;;  %13459 = vmatpush3.bf16.msra.mxu0 %v15550_v52  ;;  %13388 = vmatprep.mubr.msk.bf16.mxu0 %vm672_vm3, %v5240_v49  ;;  %v18466_v52 = vld [vmem:[#allocation5_spill] sm:$0xff]  ;;  %v2526_v38 = vpop.f32.mrf.mxu1  ;;  %v5242_v49 = vsel %vm1133_vm4, %v5239_v10, %v5241_v57  ;;  %v15875_v46 = vld [vmem:[%s14623_s14 + $0x40] sm:$0xff]  }
 0x1b5   : > { %v2949_v6 = vpop.f32.mrf.mxu0  ;;  %13534 = vmatprep.subr.bf16.mxu0 %v15843_v5  ;;  %v4806_v62 = vrot.slane %v18466_v52, 1  ;;  %v2621_v28 = vadd.f32 %v2526_v38, %v15601_v63 }
 0x1b6   : > { %v15861_v34 = vadd.f32 %v2949_v6, %v2617_v40  ;;  %v13137_v16 = vpop.f32.mrf.mxu1  ;;  %v5244_v40 = vsel %vm1133_vm4, %v5241_v57, %v5243_v30  ;;  %v5245_v57 = vrot.slane %v15871_v56, 1 }
 0x1b7   : > { %v13171_v1 = vpop.f32.mrf.mxu0  ;;  %v2624_v31 = vadd.f32 %v13137_v16, %v18467_v24  ;;  %v4807_v9 = vsel %vm1133_vm4, %v4804_v32, %v4806_v62  ;;  %v4809_v10 = vsel %vm1133_vm4, %v4806_v62, %v4808_v12  ;;  %v5247_v32 = vrot.slane %v15875_v46, 1 }
 0x1b8   : > { %v15867_v27 = vadd.f32 %v13171_v1, %v2620_v51  ;;  %v2529_v52 = vpop.f32.mrf.mxu1 }
 0x1b9   : > { %v2952_v4 = vpop.f32.mrf.mxu0  ;;  %v2622_v51 = vadd.f32 %v2529_v52, %v15615_v59  ;;  %v18470_v59 = vld [vmem:[#allocation13_spill] sm:$0xff] }
 0x1ba   : > { %v15878_v6 = vadd.f32 %v2952_v4, %v2618_v13  ;;  %v13140_v1 = vpop.f32.mrf.mxu1  ;;  %13355 = vmatmul.mubr.msk.bf16.gmra.mxu1 %vm672_vm3, %v4807_v9  ;;  %v5246_v9 = vsel %vm1133_vm4, %v5243_v30, %v5245_v57 }
 0x1bb   : > { %v13174_v63 = vpop.f32.mrf.mxu0  ;;  %13389 = vmatmul.mubr.msk.bf16.gmra.mxu0 %vm672_vm3, %v5242_v49  ;;  %v2627_v49 = vadd.f32 %v13140_v1, %v15623_v60  ;;  %13358 = vmatprep.mubr.msk.bf16.mxu1 %vm672_vm3, %v4809_v10  ;;  %v15905_v1 = vld [vmem:[%s14623_s14 + $0x50] sm:$0xff]  }
 0x1bc   : > { %v15884_v38 = vadd.f32 %v13174_v63, %v2623_v2  ;;  %13392 = vmatprep.mubr.msk.bf16.mxu0 %vm672_vm3, %v5244_v40  ;;  %v4810_v2 = vrot.slane %v18470_v59, 1  ;;  %v2542_v62 = vpop.f32.mrf.mxu1  ;;  %v4812_v40 = vrot.slane %v15598_v18, 1  ;;  %v15901_v63 = vld [vmem:[%s14623_s14 + $0x48] sm:$0xff]   ;;  %v18472_v10 = vld [vmem:[#allocation8_spill] sm:$0xff] }
 0x1bd   : > { %v2965_v13 = vpop.f32.mrf.mxu0  ;;  %v2625_v24 = vadd.f32 %v2542_v62, %v15631_v42 }
 0x1be   : > { %18468 = vst [vmem:[#allocation2_spill] sm:$0xff] %v15884_v38  ;;  %v15891_v16 = vadd.f32 %v2965_v13, %v2621_v28  ;;  %v13141_v38 = vpop.f32.mrf.mxu1  ;;  %v5248_v28 = vsel %vm1133_vm4, %v5245_v57, %v5247_v32  ;;  %v4811_v18 = vsel %vm1133_vm4, %v4808_v12, %v4810_v2  ;;  %v4813_v30 = vsel %vm1133_vm4, %v4810_v2, %v4812_v40 }
 0x1bf   : > { %v13175_v4 = vpop.f32.mrf.mxu0  ;;  %v2628_v13 = vadd.f32 %v13141_v38, %v18472_v10  ;;  %v5249_v57 = vrot.slane %v15901_v63, 1  ;;  %v5251_v12 = vrot.slane %v15905_v1, 1  ;;  %v18478_v10 = vld [vmem:[#allocation17_spill] sm:$0xff] }
 0x1c0   : > { %18469 = vst [vmem:[#allocation3_spill] sm:$0xff] %v15891_v16  ;;  %v15897_v52 = vadd.f32 %v13175_v4, %v2624_v31  ;;  %v2545_v16 = vpop.f32.mrf.mxu1 }
 0x1c1   : > { %v2968_v60 = vpop.f32.mrf.mxu0  ;;  %v2626_v31 = vadd.f32 %v2545_v16, %v15645_v20  ;;  %v18476_v20 = vld [vmem:[#allocation6_spill] sm:$0xff] }
 0x1c2   : > { %18471 = vst [vmem:[#allocation4_spill] sm:$0xff] %v15897_v52  ;;  %v15908_v59 = vadd.f32 %v2968_v60, %v2622_v51  ;;  %v13144_v38 = vpop.f32.mrf.mxu1  ;;  %13359 = vmatmul.mubr.msk.bf16.gmra.mxu1 %vm672_vm3, %v4811_v18  ;;  %v18477_v60 = vld [vmem:[#allocation7_spill] sm:$0xff]  ;;  %v5250_v18 = vsel %vm1133_vm4, %v5247_v32, %v5249_v57 }
 0x1c3   : > { %v13178_v42 = vpop.f32.mrf.mxu0  ;;  %13393 = vmatmul.mubr.msk.bf16.gmra.mxu0 %vm672_vm3, %v5246_v9  ;;  %v2631_v4 = vadd.f32 %v13144_v38, %v15653_v11  ;;  %13362 = vmatprep.mubr.msk.bf16.mxu1 %vm672_vm3, %v4813_v30  ;;  %v15935_v38 = vld [vmem:[%s14623_s14 + $0x60] sm:$0xff]  }
 0x1c4   : > { %18473 = vst [vmem:[#allocation5_spill] sm:$0xff] %v15908_v59  ;;  %v15914_v62 = vadd.f32 %v13178_v42, %v2627_v49  ;;  %13396 = vmatprep.mubr.msk.bf16.mxu0 %vm672_vm3, %v5248_v28  ;;  %v4814_v49 = vrot.slane %v18476_v20, 1  ;;  %v2558_v16 = vpop.f32.mrf.mxu1  ;;  %v4816_v28 = vrot.slane %v18477_v60, 1  ;;  %v15931_v59 = vld [vmem:[%s14623_s14 + $0x58] sm:$0xff]   ;;  %v18479_v30 = vld [vmem:[#allocation10_spill] sm:$0xff] }
 0x1c5   : > { %v2981_v51 = vpop.f32.mrf.mxu0  ;;  %v2629_v42 = vadd.f32 %v2558_v16, %v18478_v10 }
 0x1c6   : > { %18474 = vst [vmem:[#allocation15_spill] sm:$0xff] %v15914_v62  ;;  %v15921_v9 = vadd.f32 %v2981_v51, %v2625_v24  ;;  %v13145_v52 = vpop.f32.mrf.mxu1  ;;  %v5252_v24 = vsel %vm1133_vm4, %v5249_v57, %v5251_v12  ;;  %v4815_v60 = vsel %vm1133_vm4, %v4812_v40, %v4814_v49  ;;  %v4817_v32 = vsel %vm1133_vm4, %v4814_v49, %v4816_v28 }
 0x1c7   : > { %v13179_v2 = vpop.f32.mrf.mxu0  ;;  %v2632_v51 = vadd.f32 %v13145_v52, %v18479_v30  ;;  %v5253_v57 = vrot.slane %v15931_v59, 1  ;;  %v5255_v40 = vrot.slane %v15935_v38, 1  ;;  %v4820_v30 = vrot.slane %v15658_v29, 1 }
 0x1c8   : > { %18475 = vst [vmem:[#allocation13_spill] sm:$0xff] %v15921_v9  ;;  %v15927_v62 = vadd.f32 %v13179_v2, %v2628_v13  ;;  %v2561_v9 = vpop.f32.mrf.mxu1  ;;  %v18481_v13 = vld [vmem:[#allocation11_spill] sm:$0xff] }
 0x1c9   : > { %v2984_v11 = vpop.f32.mrf.mxu0  ;;  %v2630_v2 = vadd.f32 %v2561_v9, %v18481_v13 }
 0x1ca   : > { %v15938_v20 = vadd.f32 %v2984_v11, %v2626_v31  ;;  %v13148_v52 = vpop.f32.mrf.mxu1  ;;  %13363 = vmatmul.mubr.msk.bf16.gmra.mxu1 %vm672_vm3, %v4815_v60  ;;  %v5254_v60 = vsel %vm1133_vm4, %v5251_v12, %v5253_v57 }
 0x1cb   : > { %v13182_v16 = vpop.f32.mrf.mxu0  ;;  %13397 = vmatmul.mubr.msk.bf16.gmra.mxu0 %vm672_vm3, %v5250_v18  ;;  %v2635_v18 = vadd.f32 %v13148_v52, %v15683_v39  ;;  %13366 = vmatprep.mubr.msk.bf16.mxu1 %vm672_vm3, %v4817_v32  ;;  %v15965_v52 = vld [vmem:[%s14623_s14 + $0x70] sm:$0xff]   ;;  %v18485_v32 = vld [vmem:[#allocation14_spill] sm:$0xff] }
 0x1cc   : > { %18480 = vst [vmem:[#allocation8_spill] sm:$0xff] %v15938_v20  ;;  %v15944_v10 = vadd.f32 %v13182_v16, %v2631_v4  ;;  %13400 = vmatprep.mubr.msk.bf16.mxu0 %vm672_vm3, %v5252_v24  ;;  %v18484_v4 = vld [vmem:[#allocation9_spill] sm:$0xff]  ;;  %v2574_v49 = vpop.f32.mrf.mxu1 }
 0x1cd   : > { %v2997_v31 = vpop.f32.mrf.mxu0  ;;  %v4818_v9 = vrot.slane %v18484_v4, 1  ;;  %v2633_v16 = vadd.f32 %v2574_v49, %v15691_v50 }
 0x1ce   : > { %18482 = vst [vmem:[#allocation6_spill] sm:$0xff] %v15944_v10  ;;  %v15951_v11 = vadd.f32 %v2997_v31, %v2629_v42  ;;  %v15961_v10 = vld [vmem:[%s14623_s14 + $0x68] sm:$0xff]   ;;  %v13149_v20 = vpop.f32.mrf.mxu1  ;;  %v5256_v42 = vsel %vm1133_vm4, %v5253_v57, %v5255_v40 }
 0x1cf   : > { %v13183_v24 = vpop.f32.mrf.mxu0  ;;  %v2636_v31 = vadd.f32 %v13149_v20, %v18485_v32  ;;  %v4819_v29 = vsel %vm1133_vm4, %v4816_v28, %v4818_v9  ;;  %v4821_v12 = vsel %vm1133_vm4, %v4818_v9, %v4820_v30  ;;  %v5257_v57 = vrot.slane %v15961_v10, 1 }
 0x1d0   : > { %18483 = vst [vmem:[#allocation7_spill] sm:$0xff] %v15951_v11  ;;  %v15957_v13 = vadd.f32 %v13183_v24, %v2632_v51  ;;  %v2577_v11 = vpop.f32.mrf.mxu1  ;;  %v5259_v28 = vrot.slane %v15965_v52, 1 }
 0x1d1   : > { %v3000_v39 = vpop.f32.mrf.mxu0  ;;  %v2634_v51 = vadd.f32 %v2577_v11, %v15705_v58  ;;  %v18489_v58 = vld [vmem:[#allocation12_spill] sm:$0xff] }
 0x1d2   : > { %v15968_v4 = vadd.f32 %v3000_v39, %v2630_v2  ;;  %v13152_v20 = vpop.f32.mrf.mxu1  ;;  %13367 = vmatmul.mubr.msk.bf16.gmra.mxu1 %vm672_vm3, %v4819_v29  ;;  %v4824_v39 = vrot.slane %v15688_v35, 1  ;;  %v5258_v29 = vsel %vm1133_vm4, %v5255_v40, %v5257_v57 }
 0x1d3   : > { %v13186_v50 = vpop.f32.mrf.mxu0  ;;  %13401 = vmatmul.mubr.msk.bf16.gmra.mxu0 %vm672_vm3, %v5254_v60  ;;  %v2639_v24 = vadd.f32 %v13152_v20, %v15713_v43  ;;  %13370 = vmatprep.mubr.msk.bf16.mxu1 %vm672_vm3, %v4821_v12  ;;  %v15995_v20 = vld [vmem:[%s14623_s14 + $0x80] sm:$0xff]  }
 0x1d4   : > { %18486 = vst [vmem:[#allocation17_spill] sm:$0xff] %v15968_v4  ;;  %v15974_v49 = vadd.f32 %v13186_v50, %v2635_v18  ;;  %13404 = vmatprep.mubr.msk.bf16.mxu0 %vm672_vm3, %v5256_v42  ;;  %v4822_v18 = vrot.slane %v18489_v58, 1  ;;  %v2590_v11 = vpop.f32.mrf.mxu1  ;;  %v18490_v42 = vld [vmem:[#allocation16_spill] sm:$0xff] }
 0x1d5   : > { %v3013_v2 = vpop.f32.mrf.mxu0  ;;  %v2637_v32 = vadd.f32 %v2590_v11, %v18490_v42 }
 0x1d6   : > { %18487 = vst [vmem:[#allocation10_spill] sm:$0xff] %v15974_v49  ;;  %v15981_v60 = vadd.f32 %v3013_v2, %v2633_v16  ;;  %v15991_v49 = vld [vmem:[%s14623_s14 + $0x78] sm:$0xff]   ;;  %v13153_v4 = vpop.f32.mrf.mxu1  ;;  %v5260_v16 = vsel %vm1133_vm4, %v5257_v57, %v5259_v28  ;;  %v4823_v35 = vsel %vm1133_vm4, %v4820_v30, %v4822_v18  ;;  %v4825_v40 = vsel %vm1133_vm4, %v4822_v18, %v4824_v39 }
 0x1d7   : > { %v13187_v9 = vpop.f32.mrf.mxu0  ;;  %v2640_v12 = vadd.f32 %v13153_v4, %v15727_v47  ;;  %v5261_v57 = vrot.slane %v15991_v49, 1  ;;  %v5263_v30 = vrot.slane %v15995_v20, 1  ;;  %v4828_v18 = vrot.slane %v15718_v53, 1 }
 0x1d8   : > { %18488 = vst [vmem:[#allocation11_spill] sm:$0xff] %v15981_v60  ;;  %v15987_v50 = vadd.f32 %v13187_v9, %v2636_v31  ;;  %v2593_v58 = vpop.f32.mrf.mxu1 }
 0x1d9   : > { %v3016_v43 = vpop.f32.mrf.mxu0  ;;  %v2638_v31 = vadd.f32 %v2593_v58, %v15736_v22  ;;  %v18495_v22 = vld [vmem:[#allocation18_spill] sm:$0xff]  ;;  %v5556_v58 = vshrl.u32 %v15770_v26, 16 }
 0x1da   : > { %18491 = vst [vmem:[#allocation9_spill] sm:$0xff] %v15987_v50  ;;  %v15998_v2 = vadd.f32 %v3016_v43, %v2634_v51  ;;  %v13196_v42 = vpop.f32.mrf.mxu1  ;;  %13371 = vmatmul.mubr.msk.bf16.gmra.mxu1 %vm672_vm3, %v4823_v35  ;;  %v5551_v35 = vshll.u32 %v15767_v8, 16 }
 0x1db   : > { %v13190_v11 = vpop.f32.mrf.mxu0  ;;  %13405 = vmatmul.mubr.msk.bf16.gmra.mxu0 %vm672_vm3, %v5258_v29  ;;  %v3493_v4 = vadd.f32 %v13196_v42, %v15742_v23  ;;  %13374 = vmatprep.mubr.msk.bf16.mxu1 %vm672_vm3, %v4825_v40  ;;  %v5262_v40 = vsel %vm1133_vm4, %v5259_v28, %v5261_v57  ;;  %v16025_v42 = vld [vmem:[%s14623_s14 + $0x88] sm:$0xff]  }
 0x1dc   : > { %18492 = vst [vmem:[#allocation14_spill] sm:$0xff] %v15998_v2  ;;  %v16004_v9 = vadd.f32 %v13190_v11, %v2639_v24  ;;  %13408 = vmatprep.mubr.msk.bf16.mxu0 %vm672_vm3, %v5260_v16  ;;  %v4826_v24 = vrot.slane %v18495_v22, 1  ;;  %v3348_v29 = vpop.f32.mrf.mxu1  ;;  %v5548_v16 = vshrl.u32 %v15767_v8, 16  ;;  %v5559_v11 = vshll.u32 %v15770_v26, 16 }
 0x1dd   : > { %v3029_v47 = vpop.f32.mrf.mxu0  ;;  %v3491_v23 = vadd.f32 %v3348_v29, %v15750_v15  ;;  %v5264_v22 = vsel %vm1133_vm4, %v5261_v57, %v5263_v30 }
 0x1de   : > { %18493 = vst [vmem:[#allocation12_spill] sm:$0xff] %v16004_v9  ;;  %v16011_v51 = vadd.f32 %v3029_v47, %v2637_v32  ;;  %v13197_v47 = vpop.f32.mrf.mxu1  ;;  %v4827_v2 = vsel %vm1133_vm4, %v4824_v39, %v4826_v24  ;;  %v4829_v15 = vsel %vm1133_vm4, %v4826_v24, %v4828_v18  ;;  %v5550_v28 = vrot.slane %v5548_v16, 1 }
 0x1df   : > { %v13191_v43 = vpop.f32.mrf.mxu0  ;;  %v3494_v8 = vadd.f32 %v13197_v47, %v15760_v14  ;;  %v5561_v50 = vrot.slane %v5559_v11, 2  ;;  %v5265_v14 = vrot.slane %v16025_v42, 1  ;;  %v4830_v24 = vrot.slane %v15746_v0, 1  ;;  %v5987_v11 = vld [vmem:[%s14623_s14 + $0x8] sm:$0xc] }
 0x1e0   : > { %18494 = vst [vmem:[#allocation16_spill] sm:$0xff] %v16011_v51  ;;  %v16021_v32 = vadd.f32 %v13191_v43, %v2640_v12  ;;  %v16029_v51 = vld [vmem:[%s14623_s14 + $0x90] sm:$0xff]   ;;  %v3351_v12 = vpop.f32.mrf.mxu1  ;;  %v5553_v43 = vrot.slane %v5551_v35, 2  ;;  %v5574_v0 = vshrl.u32 %v15802_v41, 16 }
 0x1e1   : > { %v3032_v53 = vpop.f32.mrf.mxu0  ;;  %v3492_v57 = vadd.f32 %v3351_v12, %v15773_v19  ;;  %v5267_v16 = vrot.slane %v16029_v51, 1  ;;  %v5565_v19 = vshrl.u32 %v15795_v7, 16 }
 0x1e2   : > { %18496 = vst [vmem:[#allocation18_spill] sm:$0xff] %v16021_v32  ;;  %v16032_v9 = vadd.f32 %v3032_v53, %v2638_v31  ;;  %v5558_v32 = vrot.slane %v5556_v58, 1  ;;  %v13200_v39 = vpop.f32.mrf.mxu1  ;;  %13375 = vmatmul.mubr.msk.bf16.gmra.mxu1 %vm672_vm3, %v4827_v2  ;;  %v5554_v2 = vor.u32 %v5553_v43, %v5550_v28 }
 0x1e3   : > { %v13234_v29 = vpop.f32.mrf.mxu0  ;;  %13409 = vmatmul.mubr.msk.bf16.gmra.mxu0 %vm672_vm3, %v5262_v40  ;;  %v3497_v35 = vadd.f32 %v13200_v39, %v15778_v61  ;;  %13378 = vmatprep.mubr.msk.bf16.mxu1 %vm672_vm3, %v4829_v15  ;;  %v14119_v15 = vld [vmem:[%s14623_s14 + $0x98] ss:$0 sps:$4 sm:$0x11]   ;;  %v5567_v43 = vrot.slane %v5565_v19, 1  ;;  %v5994_v19 = vrot.slane %v15770_v26, 2 }
 0x1e4   : > { %18497 = vst [vmem:[#allocation20_spill] sm:$0xff] %v16032_v9  ;;  %v16038_v60 = vadd.f32 %v13234_v29, %v3493_v4  ;;  %13412 = vmatprep.mubr.msk.bf16.mxu0 %vm672_vm3, %v5264_v22  ;;  %v5568_v4 = vshll.u32 %v15795_v7, 16  ;;  %v3364_v40 = vpop.f32.mrf.mxu1  ;;  %v5562_v53 = vor.u32 %v5561_v50, %v5558_v32  ;;  %v5577_v22 = vshll.u32 %v15802_v41, 16 }
 0x1e5   : > { %v3662_v31 = vpop.f32.mrf.mxu0  ;;  %v3495_v12 = vadd.f32 %v3364_v40, %v15785_v44  ;;  %v5576_v40 = vrot.slane %v5574_v0, 1 }
 0x1e6   : > { %18498 = vst [vmem:[#allocation21_spill] sm:$0xff] %v16038_v60  ;;  %v16046_v58 = vadd.f32 %v3662_v31, %v3491_v23  ;;  %v5266_v23 = vsel %vm1133_vm4, %v5263_v30, %v5265_v14  ;;  %v13201_v29 = vpop.f32.mrf.mxu1  ;;  %v4831_v31 = vsel %vm1133_vm4, %v4828_v18, %v4830_v24  ;;  %v18500_v60 = vld [vmem:[#allocation19_spill] sm:$0xff]  ;;  %v5570_v9 = vrot.slane %v5568_v4, 2 }
 0x1e7   : > { %v13235_v47 = vpop.f32.mrf.mxu0  ;;  %v11990_v28 = vcombine.low %v5987_v11, %v18500_v60  ;;  %v3498_v50 = vadd.f32 %v13201_v29, %v15791_v54  ;;  %v5563_v30 = vsel %vm1886_vm6, %v5554_v2, %v5562_v53  ;;  %v5269_v60 = vrot.slane %v14119_v15, 1 }
 0x1e8   : > { %18499 = vst [vmem:[#allocation22_spill] sm:$0xff] %v16046_v58  ;;  %v16055_v61 = vadd.f32 %v13235_v47, %v3494_v8  ;;  %v5268_v58 = vsel %vm1133_vm4, %v5265_v14, %v5267_v16  ;;  %v3367_v44 = vpop.f32.mrf.mxu1  ;;  %v5579_v47 = vrot.slane %v5577_v22, 2  ;;  %v5583_v4 = vshrl.u32 %v15836_v21, 16 }
 0x1e9   : > { %v3665_v39 = vpop.f32.mrf.mxu0  ;;  %v3496_v18 = vadd.f32 %v3367_v44, %v15805_v17  ;;  %v5993_v14 = vrot.slane %v11990_v28, 2  ;;  %v5586_v11 = vshll.u32 %v15836_v21, 16  ;;  %v5571_v17 = vor.u32 %v5570_v9, %v5567_v43 }
 0x1ea   : > { %v16063_v32 = vadd.f32 %v3665_v39, %v3492_v57  ;;  %v13204_v54 = vpop.f32.mrf.mxu1  ;;  %13379 = vmatmul.mubr.msk.bf16.gmra.mxu1 %vm672_vm3, %v4831_v31  ;;  %v5580_v22 = vor.u32 %v5579_v47, %v5576_v40  ;;  %v5595_v15 = vshll.u32 %v15840_v36, 16  ;;  %v5270_v39 = vsel %vm1133_vm4, %v5267_v16, %v5269_v60 }
 0x1eb   : > { %v13238_v8 = vpop.f32.mrf.mxu0  ;;  %13413 = vmatmul.mubr.msk.bf16.gmra.mxu0 %vm672_vm3, %v5266_v23  ;;  %v3501_v2 = vadd.f32 %v13204_v54, %v15814_v33  ;;  %13422 = vmatprep.mubr.msk.bf16.mxu1 %vm672_vm3, %v5563_v30  ;;  %v5592_v23 = vshrl.u32 %v15840_v36, 16  ;;  %v12067_v33 = vld [vmem:[%s18357_s3 + $0x22] sm:$0x3]  ;;  %v5995_v9 = vsel %vm2333_vm5, %v5993_v14, %v5994_v19  ;;  %v5585_v28 = vrot.slane %v5583_v4, 1 }
 0x1ec   : > { %v16068_v24 = vadd.f32 %v13238_v8, %v3497_v35  ;;  %13416 = vmatprep.mubr.msk.bf16.mxu0 %vm672_vm3, %v5268_v58  ;;  %v3380_v35 = vpop.f32.mrf.mxu1  ;;  %v5588_v43 = vrot.slane %v5586_v11, 2  ;;  %v5581_v16 = vsel %vm1886_vm6, %v5571_v17, %v5580_v22  ;;  %v5597_v47 = vrot.slane %v5595_v15, 2 }
 0x1ed   : > { %v3678_v57 = vpop.f32.mrf.mxu0  ;;  %v3499_v26 = vadd.f32 %v3380_v35, %v15821_v25  ;;  %v5572_v25 = vsel %vm1886_vm6, %v5562_v53, %v5571_v17  ;;  %v5594_v40 = vrot.slane %v5592_v23, 1  ;;  %v16096_v60 = vand.u32 %v12067_v33, %v14330_v3 }
 0x1ee   : > { %v16076_v0 = vadd.f32 %v3678_v57, %v3495_v12  ;;  %v13205_v12 = vpop.f32.mrf.mxu1  ;;  %v5589_v14 = vor.u32 %v5588_v43, %v5585_v28  ;;  %v5998_v4 = vrot.slane %v15802_v41, 2  ;;  %v5610_v41 = vshrl.u32 %v15875_v46, 16 }
 0x1ef   : > { %v13239_v58 = vpop.f32.mrf.mxu0  ;;  %v3502_v44 = vadd.f32 %v13205_v12, %v15832_v55  ;;  %v5996_v55 = vrot.slane %v15795_v7, 2  ;;  %v12087_v7 = vld [vmem:[%s18357_s3 + $0x24] sm:$0x3]  ;;  %v5598_v23 = vor.u32 %v5597_v47, %v5594_v40 }
 0x1f0   : > { %v16082_v29 = vadd.f32 %v13239_v58, %v3498_v50  ;;  %v3383_v50 = vpop.f32.mrf.mxu1  ;;  %v5590_v12 = vsel %vm1886_vm6, %v5580_v22, %v5589_v14 }
 0x1f1   : > { %v3681_v31 = vpop.f32.mrf.mxu0  ;;  %v3500_v54 = vadd.f32 %v3383_v50, %v15846_v45  ;;  %v5601_v45 = vshrl.u32 %v15871_v56, 16 }
 0x1f2   : > { %v16090_v8 = vadd.f32 %v3681_v31, %v3496_v18  ;;  %v13208_v53 = vpop.f32.mrf.mxu1  ;;  %13423 = vmatmul.mubr.msk.bf16.vlgmr.msra.gmra.mxu1 %vm672_vm3, %v5572_v25  ;;  %v5999_v31 = vsel %vm2333_vm5, %v5996_v55, %v5998_v4 }
 0x1f3   : > { %v13242_v30 = vpop.f32.mrf.mxu0  ;;  %13417 = vmatmul.mubr.msk.bf16.gmra.mxu0 %vm672_vm3, %v5270_v39  ;;  %v3505_v11 = vadd.f32 %v13208_v53, %v15852_v37  ;;  %13497 = vmatpush3.bf16.msra.mxu1 %v15811_v48  ;;  %v5613_v37 = vshll.u32 %v15875_v46, 16  ;;  %v5603_v25 = vrot.slane %v5601_v45, 1  ;;  %v5619_v53 = vshrl.u32 %v15901_v63, 16 }
 0x1f4   : > { %v16099_v57 = vadd.f32 %v13242_v30, %v3501_v2  ;;  %13460 = vmatprep.mubr.msk.bf16.mxu0 %vm672_vm3, %v5995_v9  ;;  %13426 = vmatprep.mubr.msk.bf16.mxu1 %vm672_vm3, %v5581_v16  ;;  %v5604_v2 = vshll.u32 %v15871_v56, 16  ;;  %v3396_v35 = vpop.f32.mrf.mxu1  ;;  %v16125_v9 = vand.u32 %v12087_v7, %v14330_v3  ;;  %v5612_v30 = vrot.slane %v5610_v41, 1 }
 0x1f5   : > { %v3694_v18 = vpop.f32.mrf.mxu0  ;;  %13572 = vmatprep.subr.bf16.mxu1 %v16096_v60  ;;  %v3503_v48 = vadd.f32 %v3396_v35, %v15861_v34  ;;  %v5615_v16 = vrot.slane %v5613_v37, 2  ;;  %v5628_v7 = vshrl.u32 %v15905_v1, 16  ;;  %v18502_v35 = vld [vmem:[#allocation3_spill] sm:$0xff] }
 0x1f6   : > { %v16106_v17 = vadd.f32 %v3694_v18, %v3499_v26  ;;  %v5997_v26 = vsel %vm2333_vm5, %v5994_v19, %v5996_v55  ;;  %v13209_v39 = vpop.f32.mrf.mxu1  ;;  %v5606_v50 = vrot.slane %v5604_v2, 2  ;;  %v5599_v19 = vsel %vm1886_vm6, %v5589_v14, %v5598_v23 }
 0x1f7   : > { %v13243_v58 = vpop.f32.mrf.mxu0  ;;  %v3506_v28 = vadd.f32 %v13209_v39, %v15867_v27  ;;  %v6000_v27 = vrot.slane %v15836_v21, 2  ;;  %v6002_v55 = vrot.slane %v15840_v36, 2  ;;  %v5622_v18 = vshll.u32 %v15901_v63, 16 }
 0x1f8   : > { %v16119_v15 = vadd.f32 %v13243_v58, %v3502_v44  ;;  %v3399_v34 = vpop.f32.mrf.mxu1  ;;  %v5616_v2 = vor.u32 %v5615_v16, %v5612_v30  ;;  %v5631_v36 = vshll.u32 %v15905_v1, 16  ;;  %v5630_v30 = vrot.slane %v5628_v7, 1  ;;  %v18504_v16 = vld [vmem:[#allocation5_spill] sm:$0xff] }
 0x1f9   : > { %v3697_v33 = vpop.f32.mrf.mxu0  ;;  %v3504_v22 = vadd.f32 %v3399_v34, %v15878_v6  ;;  %v18501_v6 = vld [vmem:[#allocation2_spill] sm:$0xff]  ;;  %v6001_v37 = vsel %vm2333_vm5, %v5998_v4, %v6000_v27 }
 0x1fa   : > { %v16128_v43 = vadd.f32 %v3697_v33, %v3500_v54  ;;  %v13212_v47 = vpop.f32.mrf.mxu1  ;;  %13427 = vmatmul.mubr.msk.bf16.gmra.mxu1 %vm672_vm3, %v5590_v12  ;;  %v5621_v33 = vrot.slane %v5619_v53, 1  ;;  %v5624_v12 = vrot.slane %v5622_v18, 2  ;;  %v5633_v4 = vrot.slane %v5631_v36, 2 }
 0x1fb   : > { %v13246_v44 = vpop.f32.mrf.mxu0  ;;  %13461 = vmatmul.mubr.msk.bf16.vlgmr.msra.gmra.mxu0 %vm672_vm3, %v5997_v26  ;;  %v3509_v14 = vadd.f32 %v13212_v47, %v18501_v6  ;;  %13430 = vmatprep.mubr.msk.bf16.mxu1 %vm672_vm3, %v5599_v19  ;;  %v6006_v18 = vrot.slane %v15875_v46, 2  ;;  %v18505_v6 = vld [vmem:[#allocation15_spill] sm:$0xff] }
 0x1fc   : > { %v16133_v40 = vadd.f32 %v13246_v44, %v3505_v11  ;;  %13535 = vmatpush3.bf16.msra.mxu0 %v15843_v5  ;;  %13464 = vmatprep.mubr.msk.bf16.mxu0 %vm672_vm3, %v5999_v31  ;;  %v5607_v5 = vor.u32 %v5606_v50, %v5603_v25  ;;  %v3412_v21 = vpop.f32.mrf.mxu1  ;;  %v18503_v31 = vld [vmem:[#allocation4_spill] sm:$0xff]  ;;  %v5625_v53 = vor.u32 %v5624_v12, %v5621_v33 }
 0x1fd   : > { %v3710_v54 = vpop.f32.mrf.mxu0  ;;  %13610 = vmatprep.subr.bf16.mxu0 %v16125_v9  ;;  %v3507_v58 = vadd.f32 %v3412_v21, %v18502_v35  ;;  %v5646_v35 = vshrl.u32 %v15935_v38, 16 }
 0x1fe   : > { %v16144_v11 = vadd.f32 %v3710_v54, %v3503_v48  ;;  %v13213_v26 = vpop.f32.mrf.mxu1  ;;  %v6003_v48 = vsel %vm2333_vm5, %v6000_v27, %v6002_v55  ;;  %v5608_v34 = vsel %vm1886_vm6, %v5598_v23, %v5607_v5  ;;  %v6004_v27 = vrot.slane %v15871_v56, 2 }
 0x1ff   : > { %v13247_v45 = vpop.f32.mrf.mxu0  ;;  %v3510_v25 = vadd.f32 %v13213_v26, %v18503_v31  ;;  %v5634_v56 = vor.u32 %v5633_v4, %v5630_v30  ;;  %v18506_v26 = vld [vmem:[#allocation13_spill] sm:$0xff]  ;;  %v5626_v12 = vsel %vm1886_vm6, %v5616_v2, %v5625_v53 }
 0x200   : > { %v16150_v41 = vadd.f32 %v13247_v45, %v3506_v28  ;;  %v3415_v44 = vpop.f32.mrf.mxu1  ;;  %v5617_v28 = vsel %vm1886_vm6, %v5607_v5, %v5616_v2  ;;  %v5640_v45 = vshll.u32 %v15931_v59, 16  ;;  %v6007_v31 = vsel %vm2333_vm5, %v6004_v27, %v6006_v18 }
 0x201   : > { %v3713_v39 = vpop.f32.mrf.mxu0  ;;  %v3508_v47 = vadd.f32 %v3415_v44, %v18504_v16  ;;  %v5648_v16 = vrot.slane %v5646_v35, 1 }
 0x202   : > { %v16155_v50 = vadd.f32 %v3713_v39, %v3504_v22  ;;  %v13216_v22 = vpop.f32.mrf.mxu1  ;;  %13431 = vmatmul.mubr.msk.bf16.gmra.mxu1 %vm672_vm3, %v5608_v34 }
 0x203   : > { %v13250_v19 = vpop.f32.mrf.mxu0  ;;  %13465 = vmatmul.mubr.msk.bf16.gmra.mxu0 %vm672_vm3, %v6001_v37  ;;  %v3513_v21 = vadd.f32 %v13216_v22, %v18505_v6  ;;  %13434 = vmatprep.mubr.msk.bf16.mxu1 %vm672_vm3, %v5617_v28  ;;  %v5649_v37 = vshll.u32 %v15935_v38, 16  ;;  %v5642_v28 = vrot.slane %v5640_v45, 2  ;;  %v18507_v22 = vld [vmem:[#allocation8_spill] sm:$0xff]  ;;  %v18508_v45 = vld [vmem:[#allocation6_spill] sm:$0xff] }
 0x204   : > { %v16161_v54 = vadd.f32 %v13250_v19, %v3509_v14  ;;  %13468 = vmatprep.mubr.msk.bf16.mxu0 %vm672_vm3, %v6003_v48  ;;  %v5637_v14 = vshrl.u32 %v15931_v59, 16  ;;  %v3428_v7 = vpop.f32.mrf.mxu1 }
 0x205   : > { %v3726_v23 = vpop.f32.mrf.mxu0  ;;  %v3511_v39 = vadd.f32 %v3428_v7, %v18506_v26  ;;  %v5664_v26 = vshrl.u32 %v15965_v52, 16 }
 0x206   : > { %v16168_v5 = vadd.f32 %v3726_v23, %v3507_v58  ;;  %v6005_v58 = vsel %vm2333_vm5, %v6002_v55, %v6004_v27  ;;  %v13217_v48 = vpop.f32.mrf.mxu1  ;;  %v5639_v19 = vrot.slane %v5637_v14, 1  ;;  %v5651_v55 = vrot.slane %v5649_v37, 2 }
 0x207   : > { %v13251_v36 = vpop.f32.mrf.mxu0  ;;  %v3514_v34 = vadd.f32 %v13217_v48, %v15927_v62  ;;  %v6008_v62 = vrot.slane %v15901_v63, 2  ;;  %v6010_v27 = vrot.slane %v15905_v1, 2  ;;  %v5655_v14 = vshrl.u32 %v15961_v10, 16  ;;  %v18509_v48 = vld [vmem:[#allocation7_spill] sm:$0xff] }
 0x208   : > { %v16176_v46 = vadd.f32 %v13251_v36, %v3510_v25  ;;  %v3431_v30 = vpop.f32.mrf.mxu1  ;;  %v5635_v25 = vsel %vm1886_vm6, %v5625_v53, %v5634_v56  ;;  %v5658_v53 = vshll.u32 %v15961_v10, 16  ;;  %v5652_v63 = vor.u32 %v5651_v55, %v5648_v16 }
 0x209   : > { %v3729_v33 = vpop.f32.mrf.mxu0  ;;  %v3512_v23 = vadd.f32 %v3431_v30, %v18507_v22 }
 0x20a   : > { %v16182_v44 = vadd.f32 %v3729_v33, %v3508_v47  ;;  %v13220_v2 = vpop.f32.mrf.mxu1  ;;  %13435 = vmatmul.mubr.msk.bf16.gmra.mxu1 %vm672_vm3, %v5626_v12  ;;  %v6009_v12 = vsel %vm2333_vm5, %v6006_v18, %v6008_v62 }
 0x20b   : > { %v13254_v4 = vpop.f32.mrf.mxu0  ;;  %13469 = vmatmul.mubr.msk.bf16.gmra.mxu0 %vm672_vm3, %v6005_v58  ;;  %v3517_v7 = vadd.f32 %v13220_v2, %v18508_v45  ;;  %13438 = vmatprep.mubr.msk.bf16.mxu1 %vm672_vm3, %v5635_v25  ;;  %v5667_v58 = vshll.u32 %v15965_v52, 16  ;;  %v5660_v25 = vrot.slane %v5658_v53, 2  ;;  %v5666_v2 = vrot.slane %v5664_v26, 1  ;;  %v18511_v53 = vld [vmem:[#allocation10_spill] sm:$0xff] }
 0x20c   : > { %v16187_v6 = vadd.f32 %v13254_v4, %v3513_v21  ;;  %13472 = vmatprep.mubr.msk.bf16.mxu0 %vm672_vm3, %v6007_v31  ;;  %v5643_v21 = vor.u32 %v5642_v28, %v5639_v19  ;;  %v3444_v35 = vpop.f32.mrf.mxu1  ;;  %v5657_v4 = vrot.slane %v5655_v14, 1  ;;  %v6014_v14 = vrot.slane %v15935_v38, 2 }
 0x20d   : > { %v3742_v47 = vpop.f32.mrf.mxu0  ;;  %v3515_v1 = vadd.f32 %v3444_v35, %v18509_v48  ;;  %v5669_v18 = vrot.slane %v5667_v58, 2  ;;  %v5676_v26 = vshll.u32 %v15991_v49, 16 }
 0x20e   : > { %v16196_v36 = vadd.f32 %v3742_v47, %v3511_v39  ;;  %v13221_v31 = vpop.f32.mrf.mxu1  ;;  %v6011_v39 = vsel %vm2333_vm5, %v6008_v62, %v6010_v27  ;;  %v5644_v16 = vsel %vm1886_vm6, %v5634_v56, %v5643_v21  ;;  %v18510_v47 = vld [vmem:[#allocation17_spill] sm:$0xff]  ;;  %v5661_v62 = vor.u32 %v5660_v25, %v5657_v4 }
 0x20f   : > { %v13255_v37 = vpop.f32.mrf.mxu0  ;;  %v3518_v19 = vadd.f32 %v13221_v31, %v15957_v13  ;;  %v6012_v13 = vrot.slane %v15931_v59, 2  ;;  %v5670_v59 = vor.u32 %v5669_v18, %v5666_v2  ;;  %v5685_v31 = vshll.u32 %v15995_v20, 16 }
 0x210   : > { %v16202_v33 = vadd.f32 %v13255_v37, %v3514_v34  ;;  %v3447_v55 = vpop.f32.mrf.mxu1  ;;  %v5653_v34 = vsel %vm1886_vm6, %v5643_v21, %v5652_v63  ;;  %v5678_v18 = vrot.slane %v5676_v26, 2  ;;  %v5691_v26 = vshrl.u32 %v16025_v42, 16 }
 0x211   : > { %v3745_v30 = vpop.f32.mrf.mxu0  ;;  %v3516_v45 = vadd.f32 %v3447_v55, %v18510_v47  ;;  %v6015_v55 = vsel %vm2333_vm5, %v6012_v13, %v6014_v14 }
 0x212   : > { %v16207_v28 = vadd.f32 %v3745_v30, %v3512_v23  ;;  %v13224_v23 = vpop.f32.mrf.mxu1  ;;  %13439 = vmatmul.mubr.msk.bf16.gmra.mxu1 %vm672_vm3, %v5644_v16  ;;  %v18512_v30 = vld [vmem:[#allocation11_spill] sm:$0xff]  ;;  %v5662_v16 = vsel %vm1886_vm6, %v5652_v63, %v5661_v62  ;;  %v6016_v63 = vrot.slane %v15961_v10, 2 }
 0x213   : > { %v13258_v22 = vpop.f32.mrf.mxu0  ;;  %13473 = vmatmul.mubr.msk.bf16.gmra.mxu0 %vm672_vm3, %v6009_v12  ;;  %v3521_v37 = vadd.f32 %v13224_v23, %v18511_v53  ;;  %13442 = vmatprep.mubr.msk.bf16.mxu1 %vm672_vm3, %v5653_v34  ;;  %v5682_v12 = vshrl.u32 %v15995_v20, 16 }
 0x214   : > { %v16213_v35 = vadd.f32 %v13258_v22, %v3517_v7  ;;  %13476 = vmatprep.mubr.msk.bf16.mxu0 %vm672_vm3, %v6011_v39  ;;  %v5673_v7 = vshrl.u32 %v15991_v49, 16  ;;  %v3460_v58 = vpop.f32.mrf.mxu1  ;;  %v18513_v22 = vld [vmem:[#allocation9_spill] sm:$0xff] }
 0x215   : > { %v3758_v56 = vpop.f32.mrf.mxu0  ;;  %v3519_v39 = vadd.f32 %v3460_v58, %v18512_v30  ;;  %v5684_v53 = vrot.slane %v5682_v12, 1  ;;  %v18514_v58 = vld [vmem:[#allocation14_spill] sm:$0xff]  ;;  %v18515_v12 = vld [vmem:[#allocation12_spill] sm:$0xff] }
 0x216   : > { %v16220_v21 = vadd.f32 %v3758_v56, %v3515_v1  ;;  %v6013_v1 = vsel %vm2333_vm5, %v6010_v27, %v6012_v13  ;;  %v13225_v4 = vpop.f32.mrf.mxu1  ;;  %v5675_v2 = vrot.slane %v5673_v7, 1  ;;  %v5687_v27 = vrot.slane %v5685_v31, 2 }
 0x217   : > { %v13259_v48 = vpop.f32.mrf.mxu0  ;;  %v3522_v34 = vadd.f32 %v13225_v4, %v18513_v22  ;;  %v6018_v7 = vrot.slane %v15965_v52, 2  ;;  %v18517_v52 = vld [vmem:[#allocation16_spill] sm:$0xff] }
 0x218   : > { %v16228_v38 = vadd.f32 %v13259_v48, %v3518_v19  ;;  %v3463_v23 = vpop.f32.mrf.mxu1  ;;  %v5671_v19 = vsel %vm1886_vm6, %v5661_v62, %v5670_v59  ;;  %v5694_v62 = vshll.u32 %v16025_v42, 16 }
 0x219   : > { %v3761_v25 = vpop.f32.mrf.mxu0  ;;  %v3520_v48 = vadd.f32 %v3463_v23, %v18514_v58 }
 0x21a   : > { %v16234_v47 = vadd.f32 %v3761_v25, %v3516_v45  ;;  %v13228_v45 = vpop.f32.mrf.mxu1  ;;  %13443 = vmatmul.mubr.msk.bf16.gmra.mxu1 %vm672_vm3, %v5662_v16  ;;  %v5688_v25 = vor.u32 %v5687_v27, %v5684_v53  ;;  %v5700_v16 = vshrl.u32 %v16029_v51, 16  ;;  %v16263_v27 = vld [vmem:[%s14623_s14 + $0x98] ss:$0 sps:$4 sm:$0x33]  }
 0x21b   : > { %v13262_v56 = vpop.f32.mrf.mxu0  ;;  %13477 = vmatmul.mubr.msk.bf16.gmra.mxu0 %vm672_vm3, %v6013_v1  ;;  %v3525_v31 = vadd.f32 %v13228_v45, %v18515_v12  ;;  %13446 = vmatprep.mubr.msk.bf16.mxu1 %vm672_vm3, %v5671_v19  ;;  %v6019_v45 = vsel %vm2333_vm5, %v6016_v63, %v6018_v7  ;;  %v5693_v19 = vrot.slane %v5691_v26, 1 }
 0x21c   : > { %v16239_v30 = vadd.f32 %v13262_v56, %v3521_v37  ;;  %13480 = vmatprep.mubr.msk.bf16.mxu0 %vm672_vm3, %v6015_v55  ;;  %v5679_v37 = vor.u32 %v5678_v18, %v5675_v2  ;;  %v3476_v4 = vpop.f32.mrf.mxu1  ;;  %v5703_v55 = vshll.u32 %v16029_v51, 16  ;;  %v6017_v56 = vsel %vm2333_vm5, %v6014_v14, %v6016_v63  ;;  %v18518_v18 = vld [vmem:[#allocation18_spill] sm:$0xff] }
 0x21d   : > { %v3774_v13 = vpop.f32.mrf.mxu0  ;;  %v3523_v22 = vadd.f32 %v3476_v4, %v18517_v52  ;;  %v5696_v2 = vrot.slane %v5694_v62, 2  ;;  %v18519_v52 = vld [vmem:[#allocation20_spill] sm:$0xff] }
 0x21e   : > { %v16248_v1 = vadd.f32 %v3774_v13, %v3519_v39  ;;  %v13229_v58 = vpop.f32.mrf.mxu1  ;;  %v5680_v53 = vsel %vm1886_vm6, %v5670_v59, %v5679_v37  ;;  %v5689_v14 = vsel %vm1886_vm6, %v5679_v37, %v5688_v25  ;;  %v18520_v37 = vld [vmem:[#allocation21_spill] sm:$0xff] }
 0x21f   : > { %v13263_v10 = vpop.f32.mrf.mxu0  ;;  %v3526_v13 = vadd.f32 %v13229_v58, %v18518_v18  ;;  %v5697_v58 = vor.u32 %v5696_v2, %v5693_v19  ;;  %v18521_v18 = vld [vmem:[#allocation22_spill] sm:$0xff]  ;;  %v16286_v2 = vld [vmem:[%s14623_s14 + $0x14] sm:$0xf] }
 0x220   : > { %18516 = vst [vmem:[#allocation19_spill] sm:$0xff] %v16248_v1  ;;  %v16254_v23 = vadd.f32 %v13263_v10, %v3522_v34  ;;  %v3479_v1 = vpop.f32.mrf.mxu1  ;;  %v5702_v34 = vrot.slane %v5700_v16, 1  ;;  %v5705_v10 = vrot.slane %v5703_v55, 2  ;;  %18523 = vst [vmem:[#allocation3_spill] sm:$0xff] %v16286_v2 }
 0x221   : > { %v3777_v39 = vpop.f32.mrf.mxu0  ;;  %v3524_v63 = vadd.f32 %v3479_v1, %v18519_v52  ;;  %v5712_v1 = vshll.u32 %v16263_v27, 16 }
 0x222   : > { %v16259_v12 = vadd.f32 %v3777_v39, %v3520_v48  ;;  %v6020_v48 = vrot.slane %v15991_v49, 2  ;;  %v13272_v62 = vpop.f32.mrf.mxu1  ;;  %13447 = vmatmul.mubr.msk.bf16.gmra.mxu1 %vm672_vm3, %v5680_v53 }
 0x223   : > { %v13266_v4 = vpop.f32.mrf.mxu0  ;;  %13481 = vmatmul.mubr.msk.bf16.gmra.mxu0 %vm672_vm3, %v6017_v56  ;;  %v6022_v56 = vrot.slane %v15995_v20, 2  ;;  %v4205_v16 = vadd.f32 %v13272_v62, %v18520_v37  ;;  %13450 = vmatprep.mubr.msk.bf16.mxu1 %vm672_vm3, %v5689_v14  ;;  %v6300_v20 = vld [vmem:[%s14623_s14 + $0x10] sm:$0xc]  ;;  %v5698_v14 = vsel %vm1886_vm6, %v5688_v25, %v5697_v58 }
 0x224   : > { %v16268_v26 = vadd.f32 %v13266_v4, %v3525_v31  ;;  %13484 = vmatprep.mubr.msk.bf16.mxu0 %vm672_vm3, %v6019_v45  ;;  %v5709_v31 = vshrl.u32 %v16263_v27, 16  ;;  %v4060_v49 = vpop.f32.mrf.mxu1  ;;  %v5706_v45 = vor.u32 %v5705_v10, %v5702_v34  ;;  %v6021_v19 = vsel %vm2333_vm5, %v6018_v7, %v6020_v48 }
 0x225   : > { %v3790_v59 = vpop.f32.mrf.mxu0  ;;  %v4203_v53 = vadd.f32 %v4060_v49, %v18521_v18  ;;  %v6023_v62 = vsel %vm2333_vm5, %v6020_v48, %v6022_v56  ;;  %v5714_v10 = vrot.slane %v5712_v1, 2  ;;  %v16297_v18 = vld [vmem:[%s14623_s14 + $0x18] sm:$0xff]  }
 0x226   : > { %v16275_v55 = vadd.f32 %v3790_v59, %v3523_v22  ;;  %v13273_v22 = vpop.f32.mrf.mxu1  ;;  %v5711_v34 = vrot.slane %v5709_v31, 1  ;;  %v5707_v7 = vsel %vm1886_vm6, %v5697_v58, %v5706_v45  ;;  %18524 = vst [vmem:[#allocation4_spill] sm:$0xff] %v16297_v18 }
 0x227   : > { %v13267_v39 = vpop.f32.mrf.mxu0  ;;  %v4206_v59 = vadd.f32 %v13273_v22, %v16055_v61  ;;  %v6024_v61 = vrot.slane %v16025_v42, 2 }
 0x228   : > { %v16281_v4 = vadd.f32 %v13267_v39, %v3526_v13  ;;  %v4063_v13 = vpop.f32.mrf.mxu1  ;;  %v12010_v39 = vcombine.low %v6300_v20, %v16286_v2  ;;  %v6757_v20 = vshll.u32 %v16297_v18, 16  ;;  %v5715_v22 = vor.u32 %v5714_v10, %v5711_v34 }
 0x229   : > { %v3793_v52 = vpop.f32.mrf.mxu0  ;;  %v4204_v25 = vadd.f32 %v4063_v13, %v16063_v32 }
 0x22a   : > { %18522 = vst [vmem:[#allocation2_spill] sm:$0xff] %v16281_v4  ;;  %v16291_v37 = vadd.f32 %v3793_v52, %v3524_v63  ;;  %v6026_v63 = vrot.slane %v16029_v51, 2  ;;  %v13276_v48 = vpop.f32.mrf.mxu1  ;;  %13451 = vmatmul.mubr.msk.bf16.gmra.mxu1 %vm672_vm3, %v5698_v14  ;;  %v6746_v1 = vshrl.u32 %v12010_v39, 16  ;;  %v6749_v58 = vshll.u32 %v12010_v39, 16 }
 0x22b   : > { %v13310_v49 = vpop.f32.mrf.mxu0  ;;  %13485 = vmatmul.mubr.msk.bf16.gmra.mxu0 %vm672_vm3, %v6021_v19  ;;  %v6754_v19 = vshrl.u32 %v16297_v18, 16  ;;  %v4209_v32 = vadd.f32 %v13276_v48, %v16068_v24  ;;  %13454 = vmatprep.mubr.msk.bf16.mxu1 %vm672_vm3, %v5707_v7  ;;  %v6432_v51 = vrot.slane %v12010_v39, 2  ;;  %v6433_v14 = vrot.slane %v16297_v18, 2 }
 0x22c   : > { %v16300_v4 = vadd.f32 %v13310_v49, %v4205_v16  ;;  %13488 = vmatprep.mubr.msk.bf16.mxu0 %vm672_vm3, %v6023_v62  ;;  %v4076_v42 = vpop.f32.mrf.mxu1  ;;  %v6025_v49 = vsel %vm2333_vm5, %v6022_v56, %v6024_v61  ;;  %v6027_v2 = vsel %vm2333_vm5, %v6024_v61, %v6026_v63  ;;  %v6748_v48 = vrot.slane %v6746_v1, 2  ;;  %v16329_v1 = vld [vmem:[%s14623_s14 + $0x28] sm:$0xff]  }
 0x22d   : > { %v4610_v31 = vpop.f32.mrf.mxu0  ;;  %v4207_v62 = vadd.f32 %v4076_v42, %v16076_v0  ;;  %v6751_v7 = vrot.slane %v6749_v58, 3  ;;  %v6756_v34 = vrot.slane %v6754_v19, 2  ;;  %v6759_v10 = vrot.slane %v6757_v20, 3  ;;  %v16323_v0 = vld [vmem:[%s14623_s14 + $0x20] sm:$0xff]   ;;  %18525 = vst [vmem:[#allocation5_spill] sm:$0xff] %v16329_v1 }
 0x22e   : > { %v16309_v16 = vadd.f32 %v4610_v31, %v4203_v53  ;;  %v13277_v24 = vpop.f32.mrf.mxu1  ;;  %v5716_v18 = vsel %vm1886_vm6, %v5706_v45, %v5715_v22  ;;  %v6434_v56 = vsel %vm2333_vm5, %v6432_v51, %v6433_v14  ;;  %v6028_v61 = vrot.slane %v16263_v27, 2 }
 0x22f   : > { %v13311_v52 = vpop.f32.mrf.mxu0  ;;  %v4210_v31 = vadd.f32 %v13277_v24, %v16082_v29  ;;  %v6763_v29 = vshrl.u32 %v16323_v0, 16  ;;  %v6766_v45 = vshll.u32 %v16323_v0, 16  ;;  %v6752_v22 = vor.u32 %v6751_v7, %v6748_v48 }
 0x230   : > { %v16314_v13 = vadd.f32 %v13311_v52, %v4206_v59  ;;  %v4079_v59 = vpop.f32.mrf.mxu1  ;;  %v6760_v52 = vor.u32 %v6759_v10, %v6756_v34  ;;  %v6772_v27 = vshrl.u32 %v16329_v1, 16  ;;  %v6775_v51 = vshll.u32 %v16329_v1, 16 }
 0x231   : > { %v4613_v53 = vpop.f32.mrf.mxu0  ;;  %v4208_v58 = vadd.f32 %v4079_v59, %v16090_v8  ;;  %v6765_v34 = vrot.slane %v6763_v29, 2 }
 0x232   : > { %v16319_v39 = vadd.f32 %v4613_v53, %v4204_v25  ;;  %v13280_v25 = vpop.f32.mrf.mxu1  ;;  %13455 = vmatmul.mubr.msk.bf16.gmra.mxu1 %vm672_vm3, %v5716_v18  ;;  %v6029_v18 = vsel %vm2333_vm5, %v6026_v63, %v6028_v61  ;;  %v6437_v53 = vrot.slane %v16329_v1, 2  ;;  %v6774_v63 = vrot.slane %v6772_v27, 2 }
 0x233   : > { %v13314_v42 = vpop.f32.mrf.mxu0  ;;  %13489 = vmatmul.mubr.msk.bf16.gmra.mxu0 %vm672_vm3, %v6025_v49  ;;  %v4213_v8 = vadd.f32 %v13280_v25, %v16099_v57  ;;  %13498 = vmatprep.mubr.msk.bf16.mxu1 %vm672_vm3, %v6434_v56  ;;  %v6768_v57 = vrot.slane %v6766_v45, 3  ;;  %v16355_v56 = vld [vmem:[%s14623_s14 + $0x30] sm:$0xff]   ;;  %v6777_v61 = vrot.slane %v6775_v51, 3 }
 0x234   : > { %v16332_v19 = vadd.f32 %v13314_v42, %v4209_v32  ;;  %13492 = vmatprep.mubr.msk.bf16.mxu0 %vm672_vm3, %v6027_v2  ;;  %v6435_v2 = vrot.slane %v16323_v0, 2  ;;  %v4092_v49 = vpop.f32.mrf.mxu1  ;;  %v6761_v42 = vsel %vm3086_vm8, %v6752_v22, %v6760_v52  ;;  %v6781_v22 = vshrl.u32 %v16355_v56, 16 }
 0x235   : > { %v4626_v20 = vpop.f32.mrf.mxu0  ;;  %v4211_v48 = vadd.f32 %v4092_v49, %v16106_v17  ;;  %v16364_v49 = vld [vmem:[%s14623_s14 + $0x38] sm:$0xff]  }
 0x236   : > { %v16341_v32 = vadd.f32 %v4626_v20, %v4207_v62  ;;  %v12124_v62 = vld [vmem:[%s18357_s3 + $0x26] sm:$0x3]  ;;  %v13281_v10 = vpop.f32.mrf.mxu1  ;;  %v6438_v20 = vsel %vm2333_vm5, %v6435_v2, %v6437_v53 }
 0x237   : > { %v13315_v24 = vpop.f32.mrf.mxu0  ;;  %v4214_v25 = vadd.f32 %v13281_v10, %v16119_v15  ;;  %v16369_v27 = vand.u32 %v12124_v62, %v14330_v3  ;;  %v6790_v10 = vshrl.u32 %v16364_v49, 16 }
 0x238   : > { %v16348_v7 = vadd.f32 %v13315_v24, %v4210_v31  ;;  %v6436_v31 = vsel %vm2333_vm5, %v6433_v14, %v6435_v2  ;;  %v4095_v29 = vpop.f32.mrf.mxu1  ;;  %v6784_v24 = vshll.u32 %v16355_v56, 16  ;;  %v6769_v14 = vor.u32 %v6768_v57, %v6765_v34 }
 0x239   : > { %v4629_v59 = vpop.f32.mrf.mxu0  ;;  %v4212_v15 = vadd.f32 %v4095_v29, %v16128_v43  ;;  %v6439_v43 = vrot.slane %v16355_v56, 2 }
 0x23a   : > { %v16358_v17 = vadd.f32 %v4629_v59, %v4208_v58  ;;  %v13284_v51 = vpop.f32.mrf.mxu1  ;;  %13499 = vmatmul.mubr.msk.bf16.vlgmr.msra.gmra.mxu1 %vm672_vm3, %v6436_v31  ;;  %v6793_v59 = vshll.u32 %v16364_v49, 16 }
 0x23b   : > { %v13318_v45 = vpop.f32.mrf.mxu0  ;;  %13493 = vmatmul.mubr.msk.bf16.gmra.mxu0 %vm672_vm3, %v6029_v18  ;;  %v6778_v18 = vor.u32 %v6777_v61, %v6774_v63  ;;  %v4217_v1 = vadd.f32 %v13284_v51, %v16133_v40  ;;  %13573 = vmatpush3.bf16.msra.mxu1 %v16096_v60  ;;  %v6783_v63 = vrot.slane %v6781_v22, 2  ;;  %v6786_v61 = vrot.slane %v6784_v24, 3 }
 0x23c   : > { %v16372_v58 = vadd.f32 %v13318_v45, %v4213_v8  ;;  %13536 = vmatprep.mubr.msk.bf16.mxu0 %vm672_vm3, %v6761_v42  ;;  %13502 = vmatprep.mubr.msk.bf16.mxu1 %vm672_vm3, %v6438_v20  ;;  %v12162_v8 = vld [vmem:[%s18357_s3 + $0x28] sm:$0x3]  ;;  %v4108_v34 = vpop.f32.mrf.mxu1  ;;  %v6441_v42 = vrot.slane %v16364_v49, 2  ;;  %v6792_v20 = vrot.slane %v6790_v10, 2  ;;  %v6795_v51 = vrot.slane %v6793_v59, 3 }
 0x23d   : > { %v4642_v2 = vpop.f32.mrf.mxu0  ;;  %13648 = vmatprep.subr.bf16.mxu1 %v16369_v27  ;;  %v4215_v40 = vadd.f32 %v4108_v34, %v16144_v11  ;;  %v6779_v45 = vsel %vm3086_vm8, %v6769_v14, %v6778_v18  ;;  %v6440_v11 = vsel %vm2333_vm5, %v6437_v53, %v6439_v43  ;;  %v16407_v10 = vld [vmem:[%s14623_s14 + $0x48] sm:$0xff]  }
 0x23e   : > { %v16379_v62 = vadd.f32 %v4642_v2, %v4211_v48  ;;  %v6770_v48 = vsel %vm3086_vm8, %v6760_v52, %v6769_v14  ;;  %v13285_v31 = vpop.f32.mrf.mxu1  ;;  %v16395_v2 = vand.u32 %v12162_v8, %v14330_v3  ;;  %v6787_v14 = vor.u32 %v6786_v61, %v6783_v63  ;;  %18528 = vst [vmem:[#allocation8_spill] sm:$0xff] %v16407_v10 }
 0x23f   : > { %v13319_v57 = vpop.f32.mrf.mxu0  ;;  %v4218_v22 = vadd.f32 %v13285_v31, %v16150_v41  ;;  %v6808_v63 = vshrl.u32 %v16407_v10, 16  ;;  %v6811_v61 = vshll.u32 %v16407_v10, 16 }
 0x240   : > { %v16390_v60 = vadd.f32 %v13319_v57, %v4214_v25  ;;  %18526 = vst [vmem:[#allocation15_spill] sm:$0xff] %v16395_v2  ;;  %v16402_v25 = vld [vmem:[%s14623_s14 + $0x40] sm:$0xff]   ;;  %v4111_v34 = vpop.f32.mrf.mxu1  ;;  %v6442_v57 = vsel %vm2333_vm5, %v6439_v43, %v6441_v42  ;;  %v6796_v43 = vor.u32 %v6795_v51, %v6792_v20  ;;  %v6445_v20 = vrot.slane %v16407_v10, 2 }
 0x241   : > { %v4645_v29 = vpop.f32.mrf.mxu0  ;;  %18527 = vst [vmem:[#allocation13_spill] sm:$0xff] %v16402_v25  ;;  %v4216_v59 = vadd.f32 %v4111_v34, %v16155_v50  ;;  %v6799_v41 = vshrl.u32 %v16402_v25, 16  ;;  %v6802_v53 = vshll.u32 %v16402_v25, 16 }
 0x242   : > { %v16398_v24 = vadd.f32 %v4645_v29, %v4212_v15  ;;  %v13288_v15 = vpop.f32.mrf.mxu1  ;;  %13503 = vmatmul.mubr.msk.bf16.gmra.mxu1 %vm672_vm3, %v6440_v11 }
 0x243   : > { %v13322_v52 = vpop.f32.mrf.mxu0  ;;  %13537 = vmatmul.mubr.msk.bf16.vlgmr.msra.gmra.mxu0 %vm672_vm3, %v6770_v48  ;;  %13506 = vmatprep.mubr.msk.bf16.mxu1 %vm672_vm3, %v6442_v57  ;;  %v6801_v34 = vrot.slane %v6799_v41, 2  ;;  %v16432_v57 = vld [vmem:[%s14623_s14 + $0x50] sm:$0xff]  }
 0x244   : > { %v16410_v8 = vadd.f32 %v13322_v52, %v4217_v1  ;;  %13611 = vmatpush3.bf16.msra.mxu0 %v16125_v9  ;;  %13540 = vmatprep.mubr.msk.bf16.mxu0 %vm672_vm3, %v6779_v45  ;;  %v4221_v9 = vadd.f32 %v13288_v15, %v16161_v54  ;;  %v6443_v1 = vrot.slane %v16402_v25, 2  ;;  %v4124_v31 = vpop.f32.mrf.mxu1  ;;  %v6788_v45 = vsel %vm3086_vm8, %v6778_v18, %v6787_v14 }
 0x245   : > { %v4658_v48 = vpop.f32.mrf.mxu0  ;;  %13686 = vmatprep.subr.bf16.mxu0 %v16395_v2  ;;  %v4219_v51 = vadd.f32 %v4124_v31, %v16168_v5  ;;  %v6804_v52 = vrot.slane %v6802_v53, 3  ;;  %v6797_v15 = vsel %vm3086_vm8, %v6787_v14, %v6796_v43  ;;  %18529 = vst [vmem:[#allocation6_spill] sm:$0xff] %v16432_v57  ;;  %v6813_v25 = vrot.slane %v6811_v61, 3  ;;  %v16441_v53 = vld [vmem:[%s14623_s14 + $0x58] sm:$0xff]  }
 0x246   : > { %v16421_v50 = vadd.f32 %v4658_v48, %v4215_v40  ;;  %v13289_v54 = vpop.f32.mrf.mxu1  ;;  %v6810_v48 = vrot.slane %v6808_v63, 2  ;;  %v6444_v10 = vsel %vm2333_vm5, %v6441_v42, %v6443_v1  ;;  %v6446_v41 = vsel %vm2333_vm5, %v6443_v1, %v6445_v20 }
 0x247   : > { %v13323_v29 = vpop.f32.mrf.mxu0  ;;  %v4222_v2 = vadd.f32 %v13289_v54, %v16176_v46  ;;  %v6817_v14 = vshrl.u32 %v16432_v57, 16  ;;  %v6820_v31 = vshll.u32 %v16432_v57, 16  ;;  %v6805_v46 = vor.u32 %v6804_v52, %v6801_v34 }
 0x248   : > { %v16428_v11 = vadd.f32 %v13323_v29, %v4218_v22  ;;  %v4127_v5 = vpop.f32.mrf.mxu1  ;;  %v6814_v29 = vor.u32 %v6813_v25, %v6810_v48  ;;  %v6826_v1 = vshrl.u32 %v16441_v53, 16  ;;  %v6449_v52 = vrot.slane %v16441_v53, 2 }
 0x249   : > { %v4661_v40 = vpop.f32.mrf.mxu0  ;;  %v4220_v63 = vadd.f32 %v4127_v5, %v16182_v44  ;;  %v6447_v44 = vrot.slane %v16432_v57, 2 }
 0x24a   : > { %v16435_v18 = vadd.f32 %v4661_v40, %v4216_v59  ;;  %v13292_v42 = vpop.f32.mrf.mxu1  ;;  %13507 = vmatmul.mubr.msk.bf16.gmra.mxu1 %vm672_vm3, %v6444_v10  ;;  %v6819_v10 = vrot.slane %v6817_v14, 2 }
 0x24b   : > { %v13326_v22 = vpop.f32.mrf.mxu0  ;;  %13541 = vmatmul.mubr.msk.bf16.gmra.mxu0 %vm672_vm3, %v6788_v45  ;;  %v6829_v45 = vshll.u32 %v16441_v53, 16  ;;  %v4225_v54 = vadd.f32 %v13292_v42, %v16187_v6  ;;  %13510 = vmatprep.mubr.msk.bf16.mxu1 %vm672_vm3, %v6446_v41  ;;  %v6806_v6 = vsel %vm3086_vm8, %v6796_v43, %v6805_v46  ;;  %v6828_v41 = vrot.slane %v6826_v1, 2 }
 0x24c   : > { %v16446_v61 = vadd.f32 %v13326_v22, %v4221_v9  ;;  %13544 = vmatprep.mubr.msk.bf16.mxu0 %vm672_vm3, %v6797_v15  ;;  %v4140_v9 = vpop.f32.mrf.mxu1  ;;  %v6822_v15 = vrot.slane %v6820_v31, 3  ;;  %v6815_v22 = vsel %vm3086_vm8, %v6805_v46, %v6814_v29  ;;  %v6448_v14 = vsel %vm2333_vm5, %v6445_v20, %v6447_v44  ;;  %v16468_v31 = vld [vmem:[%s14623_s14 + $0x60] sm:$0xff]  }
 0x24d   : > { %v4674_v59 = vpop.f32.mrf.mxu0  ;;  %v4223_v25 = vadd.f32 %v4140_v9, %v16196_v36  ;;  %v6831_v42 = vrot.slane %v6829_v45, 3  ;;  %18530 = vst [vmem:[#allocation7_spill] sm:$0xff] %v16468_v31  ;;  %v6450_v43 = vsel %vm2333_vm5, %v6447_v44, %v6449_v52  ;;  %v6838_v20 = vshll.u32 %v16468_v31, 16 }
 0x24e   : > { %v16453_v40 = vadd.f32 %v4674_v59, %v4219_v51  ;;  %v13293_v51 = vpop.f32.mrf.mxu1  ;;  %v6823_v9 = vor.u32 %v6822_v15, %v6819_v10  ;;  %v6451_v15 = vrot.slane %v16468_v31, 2 }
 0x24f   : > { %v13327_v34 = vpop.f32.mrf.mxu0  ;;  %v4226_v59 = vadd.f32 %v13293_v51, %v16202_v33  ;;  %v6835_v33 = vshrl.u32 %v16468_v31, 16 }
 0x250   : > { %v16459_v48 = vadd.f32 %v13327_v34, %v4222_v2  ;;  %v4143_v36 = vpop.f32.mrf.mxu1  ;;  %v16473_v34 = vld [vmem:[%s14623_s14 + $0x68] sm:$0xff]  }
 0x251   : > { %v4677_v5 = vpop.f32.mrf.mxu0  ;;  %18531 = vst [vmem:[#allocation17_spill] sm:$0xff] %v16473_v34  ;;  %v4224_v46 = vadd.f32 %v4143_v36, %v16207_v28  ;;  %v6844_v44 = vshrl.u32 %v16473_v34, 16  ;;  %v6847_v10 = vshll.u32 %v16473_v34, 16  ;;  %v6837_v36 = vrot.slane %v6835_v33, 2 }
 0x252   : > { %v16464_v57 = vadd.f32 %v4677_v5, %v4220_v63  ;;  %v13296_v63 = vpop.f32.mrf.mxu1  ;;  %13511 = vmatmul.mubr.msk.bf16.gmra.mxu1 %vm672_vm3, %v6448_v14  ;;  %v6453_v14 = vrot.slane %v16473_v34, 2  ;;  %v6452_v34 = vsel %vm2333_vm5, %v6449_v52, %v6451_v15 }
 0x253   : > { %v13330_v2 = vpop.f32.mrf.mxu0  ;;  %13545 = vmatmul.mubr.msk.bf16.gmra.mxu0 %vm672_vm3, %v6806_v6  ;;  %v6832_v6 = vor.u32 %v6831_v42, %v6828_v41  ;;  %v4229_v28 = vadd.f32 %v13296_v63, %v16213_v35  ;;  %13514 = vmatprep.mubr.msk.bf16.mxu1 %vm672_vm3, %v6450_v43  ;;  %v16496_v43 = vld [vmem:[%s14623_s14 + $0x70] sm:$0xff]   ;;  %v6849_v31 = vrot.slane %v6847_v10, 3 }
 0x254   : > { %v16476_v1 = vadd.f32 %v13330_v2, %v4225_v54  ;;  %13548 = vmatprep.mubr.msk.bf16.mxu0 %vm672_vm3, %v6815_v22  ;;  %v4156_v51 = vpop.f32.mrf.mxu1  ;;  %v6824_v22 = vsel %vm3086_vm8, %v6814_v29, %v6823_v9  ;;  %v6840_v2 = vrot.slane %v6838_v20, 3  ;;  %18533 = vst [vmem:[#allocation11_spill] sm:$0xff] %v16496_v43  ;;  %v6454_v33 = vsel %vm2333_vm5, %v6451_v15, %v6453_v14  ;;  %v16505_v20 = vld [vmem:[%s14623_s14 + $0x78] sm:$0xff]  }
 0x255   : > { %v4690_v45 = vpop.f32.mrf.mxu0  ;;  %v4227_v41 = vadd.f32 %v4156_v51, %v16220_v21  ;;  %v6833_v63 = vsel %vm3086_vm8, %v6823_v9, %v6832_v6  ;;  %18534 = vst [vmem:[#allocation9_spill] sm:$0xff] %v16505_v20  ;;  %v6853_v9 = vshrl.u32 %v16496_v43, 16  ;;  %v6856_v51 = vshll.u32 %v16496_v43, 16 }
 0x256   : > { %v16485_v54 = vadd.f32 %v4690_v45, %v4223_v25  ;;  %v13297_v35 = vpop.f32.mrf.mxu1  ;;  %v6846_v45 = vrot.slane %v6844_v44, 2  ;;  %v6862_v15 = vshrl.u32 %v16505_v20, 16 }
 0x257   : > { %v13331_v5 = vpop.f32.mrf.mxu0 }
 0x258   : > { %18532 = vst [vmem:[#allocation10_spill] sm:$0xff] %v16485_v54  ;;  %v16492_v42 = vadd.f32 %v13331_v5, %v4226_v59  ;;  %v4230_v54 = vadd.f32 %v13297_v35, %v16228_v38  ;;  %v4159_v21 = vpop.f32.mrf.mxu1  ;;  %v6841_v38 = vor.u32 %v6840_v2, %v6837_v36  ;;  %v6850_v5 = vor.u32 %v6849_v31, %v6846_v45  ;;  %v18536_v31 = vld [vmem:[#allocation19_spill] sm:$0xff] }
 0x259   : > { %v4693_v25 = vpop.f32.mrf.mxu0  ;;  %v4228_v44 = vadd.f32 %v4159_v21, %v16234_v47  ;;  %v6455_v47 = vrot.slane %v16496_v43, 2  ;;  %v6457_v2 = vrot.slane %v16505_v20, 2 }
 0x25a   : > { %v16499_v29 = vadd.f32 %v4693_v25, %v4224_v46  ;;  %v13300_v52 = vpop.f32.mrf.mxu1  ;;  %13515 = vmatmul.mubr.msk.bf16.gmra.mxu1 %vm672_vm3, %v6452_v34  ;;  %v6855_v34 = vrot.slane %v6853_v9, 2 }
 0x25b   : > { %v13334_v59 = vpop.f32.mrf.mxu0  ;;  %13549 = vmatmul.mubr.msk.bf16.gmra.mxu0 %vm672_vm3, %v6824_v22  ;;  %v6865_v22 = vshll.u32 %v16505_v20, 16  ;;  %v4233_v35 = vadd.f32 %v13300_v52, %v16239_v30  ;;  %13518 = vmatprep.mubr.msk.bf16.mxu1 %vm672_vm3, %v6454_v33  ;;  %v6842_v30 = vsel %vm3086_vm8, %v6832_v6, %v6841_v38  ;;  %v6851_v33 = vsel %vm3086_vm8, %v6841_v38, %v6850_v5 }
 0x25c   : > { %v16510_v10 = vadd.f32 %v13334_v59, %v4229_v28  ;;  %13552 = vmatprep.mubr.msk.bf16.mxu0 %vm672_vm3, %v6833_v63  ;;  %v4172_v28 = vpop.f32.mrf.mxu1  ;;  %v6858_v63 = vrot.slane %v6856_v51, 3  ;;  %v6864_v52 = vrot.slane %v6862_v15, 2  ;;  %v6456_v9 = vsel %vm2333_vm5, %v6453_v14, %v6455_v47  ;;  %v16532_v51 = vld [vmem:[%s14623_s14 + $0x80] sm:$0xff]  }
 0x25d   : > { %v4706_v46 = vpop.f32.mrf.mxu0  ;;  %v4231_v45 = vadd.f32 %v4172_v28, %v18536_v31  ;;  %18537 = vst [vmem:[#allocation12_spill] sm:$0xff] %v16532_v51  ;;  %v6458_v6 = vsel %vm2333_vm5, %v6455_v47, %v6457_v2  ;;  %v16537_v31 = vld [vmem:[%s14623_s14 + $0x88] sm:$0xff]   ;;  %v6874_v14 = vshll.u32 %v16532_v51, 16 }
 0x25e   : > { %v16517_v25 = vadd.f32 %v4706_v46, %v4227_v41  ;;  %v13301_v41 = vpop.f32.mrf.mxu1  ;;  %v6867_v46 = vrot.slane %v6865_v22, 3  ;;  %18538 = vst [vmem:[#allocation16_spill] sm:$0xff] %v16537_v31  ;;  %v6880_v47 = vshrl.u32 %v16537_v31, 16 }
 0x25f   : > { %v13335_v36 = vpop.f32.mrf.mxu0  ;;  %v4234_v43 = vadd.f32 %v13301_v41, %v16254_v23  ;;  %v6871_v23 = vshrl.u32 %v16532_v51, 16 }
 0x260   : > { %18535 = vst [vmem:[#allocation14_spill] sm:$0xff] %v16517_v25  ;;  %v16523_v21 = vadd.f32 %v13335_v36, %v4230_v54  ;;  %v4175_v28 = vpop.f32.mrf.mxu1  ;;  %v6859_v36 = vor.u32 %v6858_v63, %v6855_v34  ;;  %v6883_v34 = vshll.u32 %v16537_v31, 16  ;;  %v6459_v63 = vrot.slane %v16532_v51, 2 }
 0x261   : > { %v4709_v59 = vpop.f32.mrf.mxu0  ;;  %v4232_v38 = vadd.f32 %v4175_v28, %v16259_v12  ;;  %v6873_v28 = vrot.slane %v6871_v23, 2 }
 0x262   : > { %v16528_v25 = vadd.f32 %v4709_v59, %v4228_v44  ;;  %v13304_v44 = vpop.f32.mrf.mxu1  ;;  %13519 = vmatmul.mubr.msk.bf16.gmra.mxu1 %vm672_vm3, %v6456_v9  ;;  %v6461_v9 = vrot.slane %v16537_v31, 2  ;;  %v6885_v51 = vrot.slane %v6883_v34, 3  ;;  %v6460_v31 = vsel %vm2333_vm5, %v6457_v2, %v6459_v63 }
 0x263   : > { %v13338_v54 = vpop.f32.mrf.mxu0  ;;  %13553 = vmatmul.mubr.msk.bf16.gmra.mxu0 %vm672_vm3, %v6842_v30  ;;  %v6868_v30 = vor.u32 %v6867_v46, %v6864_v52  ;;  %v4237_v12 = vadd.f32 %v13304_v44, %v16268_v26  ;;  %13522 = vmatprep.mubr.msk.bf16.mxu1 %vm672_vm3, %v6458_v6  ;;  %v16560_v6 = vld [vmem:[%s14623_s14 + $0x90] sm:$0xff]  }
 0x264   : > { %v16540_v15 = vadd.f32 %v13338_v54, %v4233_v35  ;;  %13556 = vmatprep.mubr.msk.bf16.mxu0 %vm672_vm3, %v6851_v33  ;;  %v4188_v41 = vpop.f32.mrf.mxu1  ;;  %v6860_v33 = vsel %vm3086_vm8, %v6850_v5, %v6859_v36  ;;  %v6876_v54 = vrot.slane %v6874_v14, 3  ;;  %18540 = vst [vmem:[#allocation20_spill] sm:$0xff] %v16560_v6  ;;  %v6462_v23 = vsel %vm2333_vm5, %v6459_v63, %v6461_v9  ;;  %v16569_v14 = vld [vmem:[%s14623_s14 + $0x98] sm:$0xff]  }
 0x265   : > { %v4722_v22 = vpop.f32.mrf.mxu0  ;;  %v4235_v52 = vadd.f32 %v4188_v41, %v16275_v55  ;;  %v6869_v44 = vsel %vm3086_vm8, %v6859_v36, %v6868_v30  ;;  %18542 = vst [vmem:[#allocation21_spill] sm:$0xff] %v16569_v14  ;;  %v6889_v36 = vshrl.u32 %v16560_v6, 16  ;;  %v6892_v41 = vshll.u32 %v16560_v6, 16 }
 0x266   : > { %v16549_v35 = vadd.f32 %v4722_v22, %v4231_v45  ;;  %v13305_v26 = vpop.f32.mrf.mxu1  ;;  %v6882_v22 = vrot.slane %v6880_v47, 2  ;;  %v6898_v63 = vshrl.u32 %v16569_v14, 16 }
 0x267   : > { %v13339_v59 = vpop.f32.mrf.mxu0 }
 0x268   : > { %18539 = vst [vmem:[#allocation18_spill] sm:$0xff] %v16549_v35  ;;  %v16556_v46 = vadd.f32 %v13339_v59, %v4234_v43  ;;  %v18541_v35 = vld [vmem:[#allocation2_spill] sm:$0xff]  ;;  %v4191_v55 = vpop.f32.mrf.mxu1  ;;  %v6886_v59 = vor.u32 %v6885_v51, %v6882_v22  ;;  %v6894_v51 = vrot.slane %v6892_v41, 3 }
 0x269   : > { %v4725_v45 = vpop.f32.mrf.mxu0  ;;  %v4238_v20 = vadd.f32 %v13305_v26, %v18541_v35  ;;  %v4236_v47 = vadd.f32 %v4191_v55, %v16291_v37  ;;  %v6463_v37 = vrot.slane %v16560_v6, 2 }
 0x26a   : > { %v16563_v5 = vadd.f32 %v4725_v45, %v4232_v38  ;;  %v6877_v38 = vor.u32 %v6876_v54, %v6873_v28  ;;  %v13348_v2 = vpop.f32.mrf.mxu1  ;;  %13523 = vmatmul.mubr.msk.bf16.gmra.mxu1 %vm672_vm3, %v6460_v31  ;;  %v6465_v31 = vrot.slane %v16569_v14, 2  ;;  %v6891_v54 = vrot.slane %v6889_v36, 2 }
 0x26b   : > { %v13342_v43 = vpop.f32.mrf.mxu0  ;;  %13557 = vmatmul.mubr.msk.bf16.gmra.mxu0 %vm672_vm3, %v6860_v33  ;;  %v6901_v33 = vshll.u32 %v16569_v14, 16  ;;  %v5068_v26 = vadd.f32 %v13348_v2, %v16300_v4  ;;  %13526 = vmatprep.mubr.msk.bf16.mxu1 %vm672_vm3, %v6462_v23  ;;  %v7185_v4 = vld [vmem:[%s14623_s14 + $0x10] sm:$0x8]  ;;  %v6464_v36 = vsel %vm2333_vm5, %v6461_v9, %v6463_v37 }
 0x26c   : > { %v16574_v34 = vadd.f32 %v13342_v43, %v4237_v12  ;;  %13560 = vmatprep.mubr.msk.bf16.mxu0 %vm672_vm3, %v6869_v44  ;;  %v4923_v12 = vpop.f32.mrf.mxu1  ;;  %v6878_v55 = vsel %vm3086_vm8, %v6868_v30, %v6877_v38  ;;  %v6887_v2 = vsel %vm3086_vm8, %v6877_v38, %v6886_v59  ;;  %v6466_v30 = vsel %vm2333_vm5, %v6463_v37, %v6465_v31 }
 0x26d   : > { %v4738_v35 = vpop.f32.mrf.mxu0  ;;  %v5066_v44 = vadd.f32 %v4923_v12, %v16309_v16  ;;  %v6903_v6 = vrot.slane %v6901_v33, 3  ;;  %v14140_v16 = vld [vmem:[%s14623_s14 + $0xa0] ss:$0 sps:$4 sm:$0x33]   ;;  %v6895_v12 = vor.u32 %v6894_v51, %v6891_v54 }
 0x26e   : > { %v16581_v45 = vadd.f32 %v4738_v35, %v4235_v52  ;;  %v16592_v52 = vld [vmem:[%s14623_s14 + $0xa0] ss:$0 sps:$4 sm:$0x77]   ;;  %v13349_v43 = vpop.f32.mrf.mxu1  ;;  %v6900_v35 = vrot.slane %v6898_v63, 2 }
 0x26f   : > { %v13343_v28 = vpop.f32.mrf.mxu0  ;;  %v5069_v14 = vadd.f32 %v13349_v43, %v16314_v13  ;;  %v6907_v13 = vshrl.u32 %v16592_v52, 16  ;;  %v6910_v9 = vshll.u32 %v16592_v52, 16 }
 0x270   : > { %18543 = vst [vmem:[#allocation22_spill] sm:$0xff] %v16581_v45  ;;  %v16587_v22 = vadd.f32 %v13343_v28, %v4238_v20  ;;  %v4926_v20 = vpop.f32.mrf.mxu1  ;;  %v18545_v28 = vld [vmem:[#allocation3_spill] sm:$0xff] }
 0x271   : > { %v4741_v23 = vpop.f32.mrf.mxu0  ;;  %v5067_v38 = vadd.f32 %v4926_v20, %v16319_v39  ;;  %v6467_v39 = vrot.slane %v14140_v16, 2 }
 0x272   : > { %18544 = vst [vmem:[#allocation19_spill] sm:$0xff] %v16587_v22  ;;  %v16596_v45 = vadd.f32 %v4741_v23, %v4236_v47  ;;  %v12068_v22 = vcombine.low %v7185_v4, %v18545_v28  ;;  %v13352_v47 = vpop.f32.mrf.mxu1  ;;  %13527 = vmatmul.mubr.msk.bf16.gmra.mxu1 %vm672_vm3, %v6464_v36  ;;  %v6896_v4 = vsel %vm3086_vm8, %v6886_v59, %v6895_v12  ;;  %v18546_v23 = vld [vmem:[#allocation4_spill] sm:$0xff]  ;;  %v6909_v36 = vrot.slane %v6907_v13, 2 }
 0x273   : > { %v13386_v41 = vpop.f32.mrf.mxu0  ;;  %13561 = vmatmul.mubr.msk.bf16.gmra.mxu0 %vm672_vm3, %v6878_v55  ;;  %v6904_v55 = vor.u32 %v6903_v6, %v6900_v35  ;;  %v5072_v37 = vadd.f32 %v13352_v47, %v16332_v19  ;;  %13530 = vmatprep.mubr.msk.bf16.mxu1 %vm672_vm3, %v6466_v30  ;;  %v6912_v6 = vrot.slane %v6910_v9, 3  ;;  %v6468_v28 = vsel %vm2333_vm5, %v6465_v31, %v6467_v39 }
 0x274   : > { %v16604_v63 = vadd.f32 %v13386_v41, %v5068_v26  ;;  %13564 = vmatprep.mubr.msk.bf16.mxu0 %vm672_vm3, %v6887_v2  ;;  %v4939_v26 = vpop.f32.mrf.mxu1  ;;  %v7191_v43 = vrot.slane %v12068_v22, 3  ;;  %v7192_v2 = vrot.slane %v18546_v23, 3  ;;  %v7194_v47 = vrot.slane %v16323_v0, 3 }
 0x275   : > { %v5362_v33 = vpop.f32.mrf.mxu0  ;;  %v5070_v20 = vadd.f32 %v4939_v26, %v16341_v32 }
 0x276   : > { %v16611_v54 = vadd.f32 %v5362_v33, %v5066_v44  ;;  %v13353_v35 = vpop.f32.mrf.mxu1  ;;  %v6905_v44 = vsel %vm3086_vm8, %v6895_v12, %v6904_v55  ;;  %v7193_v32 = vsel %vm3533_vm7, %v7191_v43, %v7192_v2  ;;  %v6913_v12 = vor.u32 %v6912_v6, %v6909_v36  ;;  %v14143_v43 = vld [vmem:[%s14907_s29] sm:$0xff]  }
 0x277   : > { %v13387_v51 = vpop.f32.mrf.mxu0  ;;  %v5073_v30 = vadd.f32 %v13353_v35, %v16348_v7  ;;  %v7195_v6 = vsel %vm3533_vm7, %v7192_v2, %v7194_v47 }
 0x278   : > { %v16617_v41 = vadd.f32 %v13387_v51, %v5069_v14  ;;  %v4942_v59 = vpop.f32.mrf.mxu1 }
 0x279   : > { %v5365_v19 = vpop.f32.mrf.mxu0  ;;  %v5071_v14 = vadd.f32 %v4942_v59, %v16358_v17 }
 0x27a   : > { %v16621_v16 = vadd.f32 %v5365_v19, %v5067_v38  ;;  %v13356_v9 = vpop.f32.mrf.mxu1  ;;  %13531 = vmatmul.mubr.msk.bf16.gmra.mxu1 %vm672_vm3, %v6468_v28 }
 0x27b   : > { %v13390_v22 = vpop.f32.mrf.mxu0  ;;  %13565 = vmatmul.mubr.msk.bf16.gmra.mxu0 %vm672_vm3, %v6896_v4  ;;  %v5076_v31 = vadd.f32 %v13356_v9, %v16372_v58  ;;  %13574 = vmatprep.mubr.msk.bf16.mxu1 %vm672_vm3, %v7193_v32  ;;  %v6914_v4 = vsel %vm3086_vm8, %v6904_v55, %v6913_v12  ;;  %v12182_v58 = vld [vmem:[%s18357_s3 + $0x2a] sm:$0x3]  ;;  %v7200_v9 = vrot.slane %v16364_v49, 3 }
 0x27c   : > { %v16627_v13 = vadd.f32 %v13390_v22, %v5072_v37  ;;  %13568 = vmatprep.mubr.msk.bf16.mxu0 %vm672_vm3, %v6905_v44  ;;  %v4955_v33 = vpop.f32.mrf.mxu1  ;;  %v18547_v37 = vld [vmem:[#allocation5_spill] sm:$0xff]  ;;  %v16652_v55 = vand.u32 %v12182_v58, %v14330_v3  ;;  %v7198_v22 = vrot.slane %v16355_v56, 3  ;;  %v14144_v12 = vld [vmem:[%s14907_s29 + $0x8] sm:$0xff]  }
 0x27d   : > { %v5378_v7 = vpop.f32.mrf.mxu0  ;;  %v7196_v39 = vrot.slane %v18547_v37, 3  ;;  %v5074_v26 = vadd.f32 %v4955_v33, %v16379_v62  ;;  %v18548_v58 = vld [vmem:[#allocation15_spill] sm:$0xff] }
 0x27e   : > { %v16632_v38 = vadd.f32 %v5378_v7, %v5070_v20  ;;  %v13357_v23 = vpop.f32.mrf.mxu1 }
 0x27f   : > { %v13391_v17 = vpop.f32.mrf.mxu0  ;;  %v5077_v36 = vadd.f32 %v13357_v23, %v16390_v60  ;;  %v7197_v62 = vsel %vm3533_vm7, %v7194_v47, %v7196_v39  ;;  %v7199_v37 = vsel %vm3533_vm7, %v7196_v39, %v7198_v22 }
 0x280   : > { %v16638_v51 = vadd.f32 %v13391_v17, %v5073_v30  ;;  %v4958_v35 = vpop.f32.mrf.mxu1 }
 0x281   : > { %v5381_v20 = vpop.f32.mrf.mxu0  ;;  %v5075_v44 = vadd.f32 %v4958_v35, %v16398_v24  ;;  %v12220_v24 = vld [vmem:[%s18357_s3 + $0x2c] sm:$0x3] }
 0x282   : > { %v16646_v0 = vadd.f32 %v5381_v20, %v5071_v14  ;;  %v13360_v60 = vpop.f32.mrf.mxu1  ;;  %13575 = vmatmul.mubr.msk.bf16.vlgmr.msra.gmra.mxu1 %vm672_vm3, %v7195_v6  ;;  %v16676_v56 = vand.u32 %v12220_v24, %v14330_v3 }
 0x283   : > { %v13394_v19 = vpop.f32.mrf.mxu0  ;;  %13569 = vmatmul.mubr.msk.bf16.gmra.mxu0 %vm672_vm3, %v6914_v4  ;;  %v5080_v28 = vadd.f32 %v13360_v60, %v16410_v8  ;;  %13649 = vmatpush3.bf16.msra.mxu1 %v16369_v27  ;;  %v14145_v27 = vld [vmem:[%s14907_s29 + $0x10] sm:$0xff]  }
 0x284   : > { %v16655_v30 = vadd.f32 %v13394_v19, %v5076_v31  ;;  %13612 = vmatprep.mubr.msk.bf16.mxu0 %vm672_vm3, %v14143_v43  ;;  %13578 = vmatprep.mubr.msk.bf16.mxu1 %vm672_vm3, %v7197_v62  ;;  %v4971_v32 = vpop.f32.mrf.mxu1  ;;  %v14146_v19 = vld [vmem:[%s14907_s29 + $0x18] sm:$0xff]   ;;  %v18550_v62 = vld [vmem:[#allocation8_spill] sm:$0xff] }
 0x285   : > { %v5394_v2 = vpop.f32.mrf.mxu0  ;;  %13724 = vmatprep.subr.bf16.mxu1 %v16652_v55  ;;  %v5078_v8 = vadd.f32 %v4971_v32, %v16421_v50  ;;  %v7201_v50 = vsel %vm3533_vm7, %v7198_v22, %v7200_v9 }
 0x286   : > { %v16660_v59 = vadd.f32 %v5394_v2, %v5074_v26  ;;  %v13361_v31 = vpop.f32.mrf.mxu1 }
 0x287   : > { %v13395_v14 = vpop.f32.mrf.mxu0  ;;  %v5081_v33 = vadd.f32 %v13361_v31, %v16428_v11 }
 0x288   : > { %v16672_v7 = vadd.f32 %v13395_v14, %v5077_v36  ;;  %v4974_v26 = vpop.f32.mrf.mxu1 }
 0x289   : > { %v5397_v47 = vpop.f32.mrf.mxu0  ;;  %v5079_v4 = vadd.f32 %v4974_v26, %v16435_v18  ;;  %v18549_v18 = vld [vmem:[#allocation13_spill] sm:$0xff] }
 0x28a   : > { %v16679_v17 = vadd.f32 %v5397_v47, %v5075_v44  ;;  %v13364_v11 = vpop.f32.mrf.mxu1  ;;  %13579 = vmatmul.mubr.msk.bf16.gmra.mxu1 %vm672_vm3, %v7199_v37  ;;  %v7202_v36 = vrot.slane %v18549_v18, 3  ;;  %v7204_v44 = vrot.slane %v18550_v62, 3  ;;  %v18551_v37 = vld [vmem:[#allocation6_spill] sm:$0xff] }
 0x28b   : > { %v13398_v49 = vpop.f32.mrf.mxu0  ;;  %13613 = vmatmul.mubr.msk.bf16.vlgmr.msra.gmra.mxu0 %vm672_vm3, %v14144_v12  ;;  %v5084_v23 = vadd.f32 %v13364_v11, %v16446_v61  ;;  %13582 = vmatprep.mubr.msk.bf16.mxu1 %vm672_vm3, %v7201_v50  ;;  %v7206_v26 = vrot.slane %v18551_v37, 3  ;;  %v14151_v37 = vld [vmem:[%s14907_s29 + $0x40] sm:$0xff]  }
 0x28c   : > { %v16685_v43 = vadd.f32 %v13398_v49, %v5080_v28  ;;  %13687 = vmatpush3.bf16.msra.mxu0 %v18548_v58  ;;  %13616 = vmatprep.mubr.msk.bf16.mxu0 %vm672_vm3, %v14145_v27  ;;  %v4987_v6 = vpop.f32.mrf.mxu1  ;;  %v14147_v28 = vld [vmem:[%s14907_s29 + $0x20] sm:$0xff]   ;;  %v7203_v14 = vsel %vm3533_vm7, %v7200_v9, %v7202_v36  ;;  %v7205_v27 = vsel %vm3533_vm7, %v7202_v36, %v7204_v44 }
 0x28d   : > { %v5410_v39 = vpop.f32.mrf.mxu0  ;;  %13762 = vmatprep.subr.bf16.mxu0 %v16676_v56  ;;  %v5082_v60 = vadd.f32 %v4987_v6, %v16453_v40  ;;  %v18552_v58 = vld [vmem:[#allocation10_spill] sm:$0xff] }
 0x28e   : > { %v16692_v20 = vadd.f32 %v5410_v39, %v5078_v8  ;;  %v13365_v22 = vpop.f32.mrf.mxu1 }
 0x28f   : > { %v13399_v35 = vpop.f32.mrf.mxu0  ;;  %v5085_v61 = vadd.f32 %v13365_v22, %v16459_v48 }
 0x290   : > { %v16699_v2 = vadd.f32 %v13399_v35, %v5081_v33  ;;  %v4990_v12 = vpop.f32.mrf.mxu1  ;;  %v7207_v35 = vsel %vm3533_vm7, %v7204_v44, %v7206_v26 }
 0x291   : > { %v5413_v24 = vpop.f32.mrf.mxu0  ;;  %v5083_v40 = vadd.f32 %v4990_v12, %v16464_v57  ;;  %v14148_v57 = vld [vmem:[%s14907_s29 + $0x28] sm:$0xff]  }
 0x292   : > { %v16703_v32 = vadd.f32 %v5413_v24, %v5079_v4  ;;  %v13368_v47 = vpop.f32.mrf.mxu1  ;;  %13583 = vmatmul.mubr.msk.bf16.gmra.mxu1 %vm672_vm3, %v7203_v14  ;;  %v7208_v4 = vrot.slane %v16441_v53, 3 }
 0x293   : > { %v13402_v8 = vpop.f32.mrf.mxu0  ;;  %13617 = vmatmul.mubr.msk.bf16.gmra.mxu0 %vm672_vm3, %v14146_v19  ;;  %v5088_v9 = vadd.f32 %v13368_v47, %v16476_v1  ;;  %13586 = vmatprep.mubr.msk.bf16.mxu1 %vm672_vm3, %v7205_v27  ;;  %v18554_v27 = vld [vmem:[#allocation17_spill] sm:$0xff]  ;;  %v18555_v47 = vld [vmem:[#allocation14_spill] sm:$0xff] }
 0x294   : > { %v16709_v31 = vadd.f32 %v13402_v8, %v5084_v23  ;;  %13620 = vmatprep.mubr.msk.bf16.mxu0 %vm672_vm3, %v14147_v28  ;;  %v5003_v49 = vpop.f32.mrf.mxu1  ;;  %v14149_v23 = vld [vmem:[%s14907_s29 + $0x30] sm:$0xff]   ;;  %v7209_v53 = vsel %vm3533_vm7, %v7206_v26, %v7208_v4 }
 0x295   : > { %v5426_v48 = vpop.f32.mrf.mxu0  ;;  %v5086_v11 = vadd.f32 %v5003_v49, %v18552_v58 }
 0x296   : > { %v16714_v33 = vadd.f32 %v5426_v48, %v5082_v60  ;;  %v13369_v18 = vpop.f32.mrf.mxu1 }
 0x297   : > { %v13403_v50 = vpop.f32.mrf.mxu0  ;;  %v5089_v1 = vadd.f32 %v13369_v18, %v16492_v42 }
 0x298   : > { %v16721_v39 = vadd.f32 %v13403_v50, %v5085_v61  ;;  %v5006_v19 = vpop.f32.mrf.mxu1  ;;  %v18553_v61 = vld [vmem:[#allocation7_spill] sm:$0xff] }
 0x299   : > { %v5429_v36 = vpop.f32.mrf.mxu0  ;;  %v5087_v60 = vadd.f32 %v5006_v19, %v16499_v29  ;;  %v7210_v14 = vrot.slane %v18553_v61, 3  ;;  %v14150_v29 = vld [vmem:[%s14907_s29 + $0x38] sm:$0xff]   ;;  %v18556_v19 = vld [vmem:[#allocation11_spill] sm:$0xff] }
 0x29a   : > { %v16725_v6 = vadd.f32 %v5429_v36, %v5083_v40  ;;  %v13372_v22 = vpop.f32.mrf.mxu1  ;;  %13587 = vmatmul.mubr.msk.bf16.gmra.mxu1 %vm672_vm3, %v7207_v35  ;;  %v7212_v40 = vrot.slane %v18554_v27, 3 }
 0x29b   : > { %v13406_v62 = vpop.f32.mrf.mxu0  ;;  %13621 = vmatmul.mubr.msk.bf16.gmra.mxu0 %vm672_vm3, %v14148_v57  ;;  %v5092_v44 = vadd.f32 %v13372_v22, %v16510_v10  ;;  %13590 = vmatprep.mubr.msk.bf16.mxu1 %vm672_vm3, %v7209_v53  ;;  %v7211_v57 = vsel %vm3533_vm7, %v7208_v4, %v7210_v14  ;;  %v18557_v22 = vld [vmem:[#allocation9_spill] sm:$0xff] }
 0x29c   : > { %v16731_v28 = vadd.f32 %v13406_v62, %v5088_v9  ;;  %13624 = vmatprep.mubr.msk.bf16.mxu0 %vm672_vm3, %v14149_v23  ;;  %v5019_v12 = vpop.f32.mrf.mxu1  ;;  %v7213_v23 = vsel %vm3533_vm7, %v7210_v14, %v7212_v40  ;;  %v7214_v62 = vrot.slane %v18556_v19, 3  ;;  %v18561_v19 = vld [vmem:[#allocation22_spill] sm:$0xff] }
 0x29d   : > { %v5442_v42 = vpop.f32.mrf.mxu0  ;;  %v5090_v48 = vadd.f32 %v5019_v12, %v18555_v47  ;;  %v14153_v12 = vld [vmem:[%s14907_s29 + $0x50] sm:$0xff]  }
 0x29e   : > { %v16736_v24 = vadd.f32 %v5442_v42, %v5086_v11  ;;  %v13373_v26 = vpop.f32.mrf.mxu1  ;;  %v7216_v42 = vrot.slane %v18557_v22, 3  ;;  %v7215_v47 = vsel %vm3533_vm7, %v7212_v40, %v7214_v62  ;;  %v16792_v22 = vld [vmem:[%s14907_s29 + $0x4] sm:$0xf] }
 0x29f   : > { %v13407_v8 = vpop.f32.mrf.mxu0  ;;  %v5093_v10 = vadd.f32 %v13373_v26, %v16523_v21 }
 0x2a0   : > { %v16743_v9 = vadd.f32 %v13407_v8, %v5089_v1  ;;  %v5022_v58 = vpop.f32.mrf.mxu1  ;;  %v7217_v26 = vsel %vm3533_vm7, %v7214_v62, %v7216_v42 }
 0x2a1   : > { %v5445_v49 = vpop.f32.mrf.mxu0  ;;  %v5091_v18 = vadd.f32 %v5022_v58, %v16528_v25  ;;  %v14152_v25 = vld [vmem:[%s14907_s29 + $0x48] sm:$0xff]  }
 0x2a2   : > { %v16747_v50 = vadd.f32 %v5445_v49, %v5087_v60  ;;  %v13376_v1 = vpop.f32.mrf.mxu1  ;;  %13591 = vmatmul.mubr.msk.bf16.gmra.mxu1 %vm672_vm3, %v7211_v57 }
 0x2a3   : > { %v13410_v11 = vpop.f32.mrf.mxu0  ;;  %13625 = vmatmul.mubr.msk.bf16.gmra.mxu0 %vm672_vm3, %v14150_v29  ;;  %v5096_v4 = vadd.f32 %v13376_v1, %v16540_v15  ;;  %13594 = vmatprep.mubr.msk.bf16.mxu1 %vm672_vm3, %v7213_v23  ;;  %v14154_v1 = vld [vmem:[%s14907_s29 + $0x58] sm:$0xff]  }
 0x2a4   : > { %v16753_v36 = vadd.f32 %v13410_v11, %v5092_v44  ;;  %13628 = vmatprep.mubr.msk.bf16.mxu0 %vm672_vm3, %v14151_v37  ;;  %v5035_v53 = vpop.f32.mrf.mxu1  ;;  %v18558_v44 = vld [vmem:[#allocation18_spill] sm:$0xff]  ;;  %v18559_v11 = vld [vmem:[#allocation12_spill] sm:$0xff] }
 0x2a5   : > { %v5458_v21 = vpop.f32.mrf.mxu0  ;;  %v5094_v61 = vadd.f32 %v5035_v53, %v18558_v44  ;;  %v7218_v23 = vrot.slane %v18559_v11, 3 }
 0x2a6   : > { %v16758_v35 = vadd.f32 %v5458_v21, %v5090_v48  ;;  %v13377_v8 = vpop.f32.mrf.mxu1  ;;  %v18560_v21 = vld [vmem:[#allocation16_spill] sm:$0xff] }
 0x2a7   : > { %v13411_v60 = vpop.f32.mrf.mxu0  ;;  %v5097_v15 = vadd.f32 %v13377_v8, %v16556_v46 }
 0x2a8   : > { %v16765_v14 = vadd.f32 %v13411_v60, %v5093_v10  ;;  %v5038_v48 = vpop.f32.mrf.mxu1  ;;  %v14155_v60 = vld [vmem:[%s14907_s29 + $0x60] sm:$0xff]  }
 0x2a9   : > { %v5461_v29 = vpop.f32.mrf.mxu0  ;;  %v5095_v49 = vadd.f32 %v5038_v48, %v16563_v5 }
 0x2aa   : > { %v16769_v27 = vadd.f32 %v5461_v29, %v5091_v18  ;;  %v13380_v46 = vpop.f32.mrf.mxu1  ;;  %13595 = vmatmul.mubr.msk.bf16.gmra.mxu1 %vm672_vm3, %v7215_v47  ;;  %v7219_v29 = vsel %vm3533_vm7, %v7216_v42, %v7218_v23 }
 0x2ab   : > { %v13414_v37 = vpop.f32.mrf.mxu0  ;;  %13629 = vmatmul.mubr.msk.bf16.gmra.mxu0 %vm672_vm3, %v14152_v25  ;;  %v5100_v57 = vadd.f32 %v13380_v46, %v16574_v34  ;;  %13598 = vmatprep.mubr.msk.bf16.mxu1 %vm672_vm3, %v7217_v26  ;;  %v7896_v25 = vld [vmem:[%s14907_s29] sm:$0xf] }
 0x2ac   : > { %v16775_v10 = vadd.f32 %v13414_v37, %v5096_v4  ;;  %13632 = vmatprep.mubr.msk.bf16.mxu0 %vm672_vm3, %v14153_v12  ;;  %v5051_v5 = vpop.f32.mrf.mxu1  ;;  %v7220_v4 = vrot.slane %v18560_v21, 3  ;;  %v12125_v37 = vcombine.low %v7896_v25, %v16792_v22 }
 0x2ad   : > { %v5474_v40 = vpop.f32.mrf.mxu0  ;;  %v5098_v62 = vadd.f32 %v5051_v5, %v18561_v19  ;;  %v16814_v19 = vld [vmem:[%s14907_s29 + $0x8] sm:$0xff]  }
 0x2ae   : > { %v16780_v58 = vadd.f32 %v5474_v40, %v5094_v61  ;;  %v13381_v34 = vpop.f32.mrf.mxu1  ;;  %v18562_v61 = vld [vmem:[#allocation19_spill] sm:$0xff] }
 0x2af   : > { %v13415_v18 = vpop.f32.mrf.mxu0  ;;  %v5101_v12 = vadd.f32 %v13381_v34, %v18562_v61 }
 0x2b0   : > { %v16787_v53 = vadd.f32 %v13415_v18, %v5097_v15  ;;  %v5054_v47 = vpop.f32.mrf.mxu1  ;;  %v7221_v15 = vsel %vm3533_vm7, %v7218_v23, %v7220_v4  ;;  %v18563_v23 = vld [vmem:[#allocation20_spill] sm:$0xff] }
 0x2b1   : > { %v5477_v44 = vpop.f32.mrf.mxu0  ;;  %v5099_v26 = vadd.f32 %v5054_v47, %v16596_v45  ;;  %v7222_v5 = vrot.slane %v18563_v23, 3  ;;  %v14156_v45 = vld [vmem:[%s14907_s29 + $0x68] sm:$0xff]  }
 0x2b2   : > { %v16795_v8 = vadd.f32 %v5477_v44, %v5095_v49  ;;  %v13424_v49 = vpop.f32.mrf.mxu1  ;;  %13599 = vmatmul.mubr.msk.bf16.gmra.mxu1 %vm672_vm3, %v7219_v29  ;;  %v14157_v44 = vld [vmem:[%s14907_s29 + $0x70] sm:$0xff]  }
 0x2b3   : > { %v13418_v48 = vpop.f32.mrf.mxu0  ;;  %13633 = vmatmul.mubr.msk.bf16.gmra.mxu0 %vm672_vm3, %v14154_v1  ;;  %v5953_v40 = vadd.f32 %v13424_v49, %v16604_v63  ;;  %13602 = vmatprep.mubr.msk.bf16.mxu1 %vm672_vm3, %v7221_v15  ;;  %v7223_v47 = vsel %vm3533_vm7, %v7220_v4, %v7222_v5 }
 0x2b4   : > { %v16802_v46 = vadd.f32 %v13418_v48, %v5100_v57  ;;  %13636 = vmatprep.mubr.msk.bf16.mxu0 %vm672_vm3, %v14155_v60  ;;  %v5808_v18 = vpop.f32.mrf.mxu1  ;;  %v18564_v57 = vld [vmem:[#allocation21_spill] sm:$0xff]  ;;  %v8031_v60 = vshll.u32 %v12125_v37, 16 }
 0x2b5   : > { %v5490_v42 = vpop.f32.mrf.mxu0  ;;  %v7224_v21 = vrot.slane %v18564_v57, 3  ;;  %v5951_v25 = vadd.f32 %v5808_v18, %v16611_v54  ;;  %v8029_v54 = vshrl.u32 %v12125_v37, 16  ;;  %v16833_v18 = vld [vmem:[%s14907_s29 + $0x10] sm:$0xff]   ;;  %v14158_v57 = vld [vmem:[%s14907_s29 + $0x78] sm:$0xff]  }
 0x2b6   : > { %v16807_v11 = vadd.f32 %v5490_v42, %v5098_v62  ;;  %v13425_v63 = vpop.f32.mrf.mxu1  ;;  %v8036_v42 = vshll.u32 %v16814_v19, 16 }
 0x2b7   : > { %v13419_v1 = vpop.f32.mrf.mxu0  ;;  %v5954_v61 = vadd.f32 %v13425_v63, %v16617_v41  ;;  %v7225_v49 = vsel %vm3533_vm7, %v7222_v5, %v7224_v21  ;;  %v16843_v63 = vld [vmem:[%s14907_s29 + $0x18] sm:$0xff]  }
 0x2b8   : > { %v16817_v34 = vadd.f32 %v13419_v1, %v5101_v12  ;;  %v5811_v48 = vpop.f32.mrf.mxu1  ;;  %v8033_v12 = vrot.slane %v8031_v60, 1 }
 0x2b9   : > { %v5493_v62 = vpop.f32.mrf.mxu0  ;;  %v5952_v23 = vadd.f32 %v5811_v48, %v16621_v16  ;;  %v7226_v16 = vrot.slane %v16592_v52, 3  ;;  %v14159_v48 = vld [vmem:[%s14907_s29 + $0x80] sm:$0xff]  }
 0x2ba   : > { %v16821_v29 = vadd.f32 %v5493_v62, %v5099_v26  ;;  %v13428_v4 = vpop.f32.mrf.mxu1  ;;  %13603 = vmatmul.mubr.msk.bf16.gmra.mxu1 %vm672_vm3, %v7223_v47  ;;  %v8034_v60 = vor.u32 %v8033_v12, %v8029_v54  ;;  %v8040_v12 = vshrl.u32 %v16814_v19, 16 }
 0x2bb   : > { %v13462_v15 = vpop.f32.mrf.mxu0  ;;  %13637 = vmatmul.mubr.msk.bf16.gmra.mxu0 %vm672_vm3, %v14156_v45  ;;  %v5957_v37 = vadd.f32 %v13428_v4, %v16627_v13  ;;  %13606 = vmatprep.mubr.msk.bf16.mxu1 %vm672_vm3, %v7225_v49  ;;  %v7227_v54 = vsel %vm3533_vm7, %v7224_v21, %v7226_v16 }
 0x2bc   : > { %v16828_v41 = vadd.f32 %v13462_v15, %v5953_v40  ;;  %13640 = vmatprep.mubr.msk.bf16.mxu0 %vm672_vm3, %v14157_v44  ;;  %v8446_v40 = vld [vmem:[%s14907_s29] sm:$0xe]  ;;  %v5824_v1 = vpop.f32.mrf.mxu1  ;;  %v8038_v44 = vrot.slane %v8036_v42, 1  ;;  %v8044_v15 = vshll.u32 %v16833_v18, 16 }
 0x2bd   : > { %v6121_v26 = vpop.f32.mrf.mxu0  ;;  %v5955_v62 = vadd.f32 %v5824_v1, %v16632_v38  ;;  %v12163_v49 = vcombine.low %v8446_v40, %v16792_v22  ;;  %v8052_v1 = vshll.u32 %v16843_v63, 16 }
 0x2be   : > { %v16836_v5 = vadd.f32 %v6121_v26, %v5951_v25  ;;  %v13429_v13 = vpop.f32.mrf.mxu1  ;;  %v8048_v26 = vshrl.u32 %v16833_v18, 16  ;;  %v8046_v16 = vrot.slane %v8044_v15, 1 }
 0x2bf   : > { %v13463_v45 = vpop.f32.mrf.mxu0  ;;  %v5958_v52 = vadd.f32 %v13429_v13, %v16638_v51  ;;  %v8452_v40 = vrot.slane %v12163_v49, 1 }
 0x2c0   : > { %v16846_v47 = vadd.f32 %v13463_v45, %v5954_v61  ;;  %v5827_v42 = vpop.f32.mrf.mxu1  ;;  %v8039_v61 = vsel %vm523_vm2, %v8034_v60, %v8038_v44  ;;  %v8453_v45 = vrot.slane %v16814_v19, 1 }
 0x2c1   : > { %v6124_v25 = vpop.f32.mrf.mxu0  ;;  %v5956_v22 = vadd.f32 %v5827_v42, %v16646_v0  ;;  %v8042_v0 = vor.u32 %v8040_v12, %v8038_v44  ;;  %v8050_v42 = vor.u32 %v8048_v26, %v8046_v16 }
 0x2c2   : > { %v16852_v4 = vadd.f32 %v6124_v25, %v5952_v23  ;;  %v13432_v21 = vpop.f32.mrf.mxu1  ;;  %13607 = vmatmul.mubr.msk.bf16.gmra.mxu1 %vm672_vm3, %v7227_v54  ;;  %v14162_v25 = vld [vmem:[%s14907_s29 + $0x88] sm:$0xff]   ;;  %v8454_v44 = vsel %vm1133_vm4, %v8452_v40, %v8453_v45 }
 0x2c3   : > { %v13466_v38 = vpop.f32.mrf.mxu0  ;;  %13641 = vmatmul.mubr.msk.bf16.gmra.mxu0 %vm672_vm3, %v14158_v57  ;;  %v16867_v57 = vld [vmem:[%s14907_s29 + $0x20] sm:$0xff]   ;;  %v5961_v60 = vadd.f32 %v13432_v21, %v16655_v30  ;;  %13650 = vmatprep.mubr.msk.bf16.mxu1 %vm672_vm3, %v8039_v61  ;;  %v16875_v54 = vld [vmem:[%s14907_s29 + $0x28] sm:$0xff]  }
 0x2c4   : > { %v16861_v51 = vadd.f32 %v13466_v38, %v5957_v37  ;;  %13644 = vmatprep.mubr.msk.bf16.mxu0 %vm672_vm3, %v14159_v48  ;;  %v5840_v37 = vpop.f32.mrf.mxu1  ;;  %v8054_v38 = vrot.slane %v8052_v1, 1  ;;  %v12240_v30 = vld [vmem:[%s18357_s3 + $0x2e] sm:$0x3]  ;;  %v8060_v12 = vshll.u32 %v16867_v57, 16  ;;  %v8047_v1 = vsel %vm523_vm2, %v8042_v0, %v8046_v16 }
 0x2c5   : > { %v6137_v23 = vpop.f32.mrf.mxu0  ;;  %v5959_v15 = vadd.f32 %v5840_v37, %v16660_v59  ;;  %v8056_v59 = vshrl.u32 %v16843_v63, 16  ;;  %v8064_v37 = vshrl.u32 %v16867_v57, 16  ;;  %v8068_v40 = vshll.u32 %v16875_v54, 16 }
 0x2c6   : > { %v16870_v13 = vadd.f32 %v6137_v23, %v5955_v62  ;;  %v13433_v19 = vpop.f32.mrf.mxu1  ;;  %v8055_v23 = vsel %vm523_vm2, %v8050_v42, %v8054_v38  ;;  %v8455_v16 = vrot.slane %v16833_v18, 1  ;;  %v8062_v42 = vrot.slane %v8060_v12, 1  ;;  %v12260_v18 = vld [vmem:[%s18357_s3 + $0x30] sm:$0x3] }
 0x2c7   : > { %v13467_v48 = vpop.f32.mrf.mxu0  ;;  %v5962_v61 = vadd.f32 %v13433_v19, %v16672_v7  ;;  %v8457_v19 = vrot.slane %v16843_v63, 1  ;;  %v16916_v63 = vld [vmem:[%s14907_s29 + $0x38] sm:$0xff]  }
 0x2c8   : > { %v16878_v49 = vadd.f32 %v13467_v48, %v5958_v52  ;;  %v5843_v52 = vpop.f32.mrf.mxu1  ;;  %v16895_v48 = vand.u32 %v12240_v30, %v14330_v3  ;;  %v8066_v12 = vor.u32 %v8064_v37, %v8062_v42 }
 0x2c9   : > { %v6140_v62 = vpop.f32.mrf.mxu0  ;;  %v5960_v7 = vadd.f32 %v5843_v52, %v16679_v17  ;;  %v8058_v17 = vor.u32 %v8056_v59, %v8054_v38  ;;  %v8458_v52 = vsel %vm1133_vm4, %v8455_v16, %v8457_v19 }
 0x2ca   : > { %v16886_v26 = vadd.f32 %v6140_v62, %v5956_v22  ;;  %v13436_v0 = vpop.f32.mrf.mxu1  ;;  %13651 = vmatmul.mubr.msk.bf16.vlgmr.msra.gmra.mxu1 %vm672_vm3, %v8047_v1  ;;  %v16905_v62 = vld [vmem:[%s14907_s29 + $0x30] sm:$0xff]   ;;  %v8070_v1 = vrot.slane %v8068_v40, 1 }
 0x2cb   : > { %v13470_v21 = vpop.f32.mrf.mxu0  ;;  %13645 = vmatmul.mubr.msk.bf16.gmra.mxu0 %vm672_vm3, %v14162_v25  ;;  %v5965_v30 = vadd.f32 %v13436_v0, %v16685_v43  ;;  %13725 = vmatpush3.bf16.msra.mxu1 %v16652_v55  ;;  %v8456_v55 = vsel %vm1133_vm4, %v8453_v45, %v8455_v16  ;;  %v8063_v0 = vsel %vm523_vm2, %v8058_v17, %v8062_v42 }
 0x2cc   : > { %18565 = vst [vmem:[#allocation2_spill] sm:$0xff] %v16886_v26  ;;  %v16898_v22 = vadd.f32 %v13470_v21, %v5961_v60  ;;  %13688 = vmatprep.mubr.msk.bf16.mxu0 %vm672_vm3, %v8454_v44  ;;  %13654 = vmatprep.mubr.msk.bf16.mxu1 %vm672_vm3, %v8055_v23  ;;  %v5856_v60 = vpop.f32.mrf.mxu1  ;;  %v8076_v21 = vshll.u32 %v16905_v62, 16  ;;  %v16926_v23 = vand.u32 %v12260_v18, %v14330_v3  ;;  %v8084_v18 = vshll.u32 %v16916_v63, 16 }
 0x2cd   : > { %v6153_v25 = vpop.f32.mrf.mxu0  ;;  %13800 = vmatprep.subr.bf16.mxu1 %v16895_v48  ;;  %v5963_v43 = vadd.f32 %v5856_v60, %v16692_v20  ;;  %v8072_v20 = vshrl.u32 %v16875_v54, 16  ;;  %v8071_v16 = vsel %vm523_vm2, %v8066_v12, %v8070_v1  ;;  %v8461_v12 = vrot.slane %v16875_v54, 1 }
 0x2ce   : > { %v16908_v26 = vadd.f32 %v6153_v25, %v5959_v15  ;;  %v13437_v38 = vpop.f32.mrf.mxu1  ;;  %18566 = vst [vmem:[#allocation3_spill] sm:$0xff] %v16926_v23  ;;  %v8080_v25 = vshrl.u32 %v16905_v62, 16 }
 0x2cf   : > { %v13471_v44 = vpop.f32.mrf.mxu0  ;;  %v5966_v37 = vadd.f32 %v13437_v38, %v16699_v2 }
 0x2d0   : > { %v16920_v15 = vadd.f32 %v13471_v44, %v5962_v61  ;;  %v5859_v61 = vpop.f32.mrf.mxu1  ;;  %v8078_v44 = vrot.slane %v8076_v21, 1 }
 0x2d1   : > { %v6156_v59 = vpop.f32.mrf.mxu0  ;;  %v5964_v60 = vadd.f32 %v5859_v61, %v16703_v32 }
 0x2d2   : > { %v16929_v40 = vadd.f32 %v6156_v59, %v5960_v7  ;;  %v8459_v7 = vrot.slane %v16867_v57, 1  ;;  %v13440_v42 = vpop.f32.mrf.mxu1  ;;  %13655 = vmatmul.mubr.msk.bf16.gmra.mxu1 %vm672_vm3, %v8063_v0  ;;  %v8082_v59 = vor.u32 %v8080_v25, %v8078_v44  ;;  %v16954_v0 = vld [vmem:[%s14907_s29 + $0x48] sm:$0xff]   ;;  %v8088_v25 = vshrl.u32 %v16916_v63, 16 }
 0x2d3   : > { %v13474_v45 = vpop.f32.mrf.mxu0  ;;  %13689 = vmatmul.mubr.msk.bf16.vlgmr.msra.gmra.mxu0 %vm672_vm3, %v8456_v55  ;;  %v16946_v55 = vld [vmem:[%s14907_s29 + $0x40] sm:$0xff]   ;;  %v5969_v32 = vadd.f32 %v13440_v42, %v16709_v31  ;;  %13658 = vmatprep.mubr.msk.bf16.mxu1 %vm672_vm3, %v8071_v16 }
 0x2d4   : > { %v16938_v2 = vadd.f32 %v13474_v45, %v5965_v30  ;;  %13763 = vmatpush3.bf16.msra.mxu0 %v16676_v56  ;;  %13692 = vmatprep.mubr.msk.bf16.mxu0 %vm672_vm3, %v8458_v52  ;;  %v8074_v56 = vor.u32 %v8072_v20, %v8070_v1  ;;  %v5872_v57 = vpop.f32.mrf.mxu1  ;;  %v8086_v52 = vrot.slane %v8084_v18, 1  ;;  %v8460_v61 = vsel %vm1133_vm4, %v8457_v19, %v8459_v7 }
 0x2d5   : > { %v6169_v17 = vpop.f32.mrf.mxu0  ;;  %13838 = vmatprep.subr.bf16.mxu0 %v16926_v23  ;;  %v5967_v21 = vadd.f32 %v5872_v57, %v16714_v33  ;;  %v8462_v31 = vsel %vm1133_vm4, %v8459_v7, %v8461_v12  ;;  %v8092_v1 = vshll.u32 %v16946_v55, 16  ;;  %v8096_v18 = vshrl.u32 %v16946_v55, 16  ;;  %v16979_v57 = vld [vmem:[%s14907_s29 + $0x50] sm:$0xff]  }
 0x2d6   : > { %v16950_v30 = vadd.f32 %v6169_v17, %v5963_v43  ;;  %v13441_v45 = vpop.f32.mrf.mxu1  ;;  %v8079_v16 = vsel %vm523_vm2, %v8074_v56, %v8078_v44  ;;  %v8087_v19 = vsel %vm523_vm2, %v8082_v59, %v8086_v52  ;;  %v8100_v7 = vshll.u32 %v16954_v0, 16 }
 0x2d7   : > { %v13475_v38 = vpop.f32.mrf.mxu0  ;;  %v5970_v43 = vadd.f32 %v13441_v45, %v16721_v39  ;;  %v8094_v44 = vrot.slane %v8092_v1, 1  ;;  %v8465_v56 = vrot.slane %v16916_v63, 1 }
 0x2d8   : > { %v16957_v54 = vadd.f32 %v13475_v38, %v5966_v37  ;;  %v5875_v33 = vpop.f32.mrf.mxu1 }
 0x2d9   : > { %v6172_v23 = vpop.f32.mrf.mxu0  ;;  %v5968_v42 = vadd.f32 %v5875_v33, %v16725_v6  ;;  %v8090_v6 = vor.u32 %v8088_v25, %v8086_v52  ;;  %v8098_v45 = vor.u32 %v8096_v18, %v8094_v44  ;;  %v8108_v52 = vshll.u32 %v16979_v57, 16 }
 0x2da   : > { %v16963_v20 = vadd.f32 %v6172_v23, %v5964_v60  ;;  %v8463_v23 = vrot.slane %v16905_v62, 1  ;;  %v13444_v60 = vpop.f32.mrf.mxu1  ;;  %13659 = vmatmul.mubr.msk.bf16.gmra.mxu1 %vm672_vm3, %v8079_v16  ;;  %v8102_v62 = vrot.slane %v8100_v7, 1  ;;  %v8104_v18 = vshrl.u32 %v16954_v0, 16 }
 0x2db   : > { %v13478_v37 = vpop.f32.mrf.mxu0  ;;  %13693 = vmatmul.mubr.msk.bf16.gmra.mxu0 %vm672_vm3, %v8460_v61  ;;  %v5973_v38 = vadd.f32 %v13444_v60, %v16731_v28  ;;  %13662 = vmatprep.mubr.msk.bf16.mxu1 %vm672_vm3, %v8087_v19  ;;  %v8095_v19 = vsel %vm523_vm2, %v8090_v6, %v8094_v44  ;;  %v8112_v7 = vshrl.u32 %v16979_v57, 16  ;;  %v8110_v6 = vrot.slane %v8108_v52, 1 }
 0x2dc   : > { %v16972_v39 = vadd.f32 %v13478_v37, %v5969_v32  ;;  %13696 = vmatprep.mubr.msk.bf16.mxu0 %vm672_vm3, %v8462_v31  ;;  %v5888_v32 = vpop.f32.mrf.mxu1  ;;  %v16986_v31 = vld [vmem:[%s14907_s29 + $0x58] sm:$0xff]   ;;  %v8464_v63 = vsel %vm1133_vm4, %v8461_v12, %v8463_v23  ;;  %v8466_v28 = vsel %vm1133_vm4, %v8463_v23, %v8465_v56  ;;  %v8103_v12 = vsel %vm523_vm2, %v8098_v45, %v8102_v62 }
 0x2dd   : > { %v6185_v17 = vpop.f32.mrf.mxu0  ;;  %v5971_v16 = vadd.f32 %v5888_v32, %v16736_v24  ;;  %v8116_v23 = vshll.u32 %v16986_v31, 16  ;;  %v8469_v32 = vrot.slane %v16954_v0, 1 }
 0x2de   : > { %v16982_v59 = vadd.f32 %v6185_v17, %v5967_v21  ;;  %v13445_v33 = vpop.f32.mrf.mxu1 }
 0x2df   : > { %v13479_v61 = vpop.f32.mrf.mxu0  ;;  %v5974_v21 = vadd.f32 %v13445_v33, %v16743_v9 }
 0x2e0   : > { %v16989_v1 = vadd.f32 %v13479_v61, %v5970_v43  ;;  %v5891_v24 = vpop.f32.mrf.mxu1  ;;  %v17011_v61 = vld [vmem:[%s14907_s29 + $0x60] sm:$0xff]  }
 0x2e1   : > { %v6188_v37 = vpop.f32.mrf.mxu0  ;;  %v5972_v60 = vadd.f32 %v5891_v24, %v16747_v50  ;;  %v8106_v50 = vor.u32 %v8104_v18, %v8102_v62  ;;  %v8124_v62 = vshll.u32 %v17011_v61, 16 }
 0x2e2   : > { %v16995_v25 = vadd.f32 %v6188_v37, %v5968_v42  ;;  %v8467_v42 = vrot.slane %v16946_v55, 1  ;;  %v13448_v17 = vpop.f32.mrf.mxu1  ;;  %13663 = vmatmul.mubr.msk.bf16.gmra.mxu1 %vm672_vm3, %v8095_v19  ;;  %v8114_v37 = vor.u32 %v8112_v7, %v8110_v6  ;;  %v8118_v55 = vrot.slane %v8116_v23, 1 }
 0x2e3   : > { %v13482_v43 = vpop.f32.mrf.mxu0  ;;  %13697 = vmatmul.mubr.msk.bf16.gmra.mxu0 %vm672_vm3, %v8464_v63  ;;  %v5977_v45 = vadd.f32 %v13448_v17, %v16753_v36  ;;  %13666 = vmatprep.mubr.msk.bf16.mxu1 %vm672_vm3, %v8103_v12  ;;  %v8111_v12 = vsel %vm523_vm2, %v8106_v50, %v8110_v6  ;;  %v8120_v7 = vshrl.u32 %v16986_v31, 16  ;;  %v8128_v23 = vshrl.u32 %v17011_v61, 16 }
 0x2e4   : > { %v17004_v9 = vadd.f32 %v13482_v43, %v5973_v38  ;;  %13700 = vmatprep.mubr.msk.bf16.mxu0 %vm672_vm3, %v8466_v28  ;;  %v5904_v38 = vpop.f32.mrf.mxu1  ;;  %v17018_v28 = vld [vmem:[%s14907_s29 + $0x68] sm:$0xff]   ;;  %v8468_v0 = vsel %vm1133_vm4, %v8465_v56, %v8467_v42  ;;  %v8470_v36 = vsel %vm1133_vm4, %v8467_v42, %v8469_v32  ;;  %v8119_v56 = vsel %vm523_vm2, %v8114_v37, %v8118_v55 }
 0x2e5   : > { %v6201_v44 = vpop.f32.mrf.mxu0  ;;  %v5975_v19 = vadd.f32 %v5904_v38, %v16758_v35  ;;  %v8132_v42 = vshll.u32 %v17018_v28, 16  ;;  %v8126_v50 = vrot.slane %v8124_v62, 1  ;;  %v8473_v38 = vrot.slane %v16986_v31, 1 }
 0x2e6   : > { %v17014_v63 = vadd.f32 %v6201_v44, %v5971_v16  ;;  %v13449_v24 = vpop.f32.mrf.mxu1 }
 0x2e7   : > { %v13483_v33 = vpop.f32.mrf.mxu0  ;;  %v5978_v16 = vadd.f32 %v13449_v24, %v16765_v14 }
 0x2e8   : > { %v17021_v52 = vadd.f32 %v13483_v33, %v5974_v21  ;;  %v5907_v35 = vpop.f32.mrf.mxu1  ;;  %v17043_v33 = vld [vmem:[%s14907_s29 + $0x70] sm:$0xff]  }
 0x2e9   : > { %v6204_v43 = vpop.f32.mrf.mxu0  ;;  %v5976_v17 = vadd.f32 %v5907_v35, %v16769_v27  ;;  %v8122_v27 = vor.u32 %v8120_v7, %v8118_v55  ;;  %v8140_v55 = vshll.u32 %v17043_v33, 16 }
 0x2ea   : > { %v17027_v18 = vadd.f32 %v6204_v43, %v5972_v60  ;;  %v8471_v60 = vrot.slane %v16979_v57, 1  ;;  %v13452_v44 = vpop.f32.mrf.mxu1  ;;  %13667 = vmatmul.mubr.msk.bf16.gmra.mxu1 %vm672_vm3, %v8111_v12  ;;  %v8130_v43 = vor.u32 %v8128_v23, %v8126_v50  ;;  %v8134_v57 = vrot.slane %v8132_v42, 1 }
 0x2eb   : > { %v13486_v21 = vpop.f32.mrf.mxu0  ;;  %13701 = vmatmul.mubr.msk.bf16.gmra.mxu0 %vm672_vm3, %v8468_v0  ;;  %v5981_v37 = vadd.f32 %v13452_v44, %v16775_v10  ;;  %13670 = vmatprep.mubr.msk.bf16.mxu1 %vm672_vm3, %v8119_v56  ;;  %v8127_v56 = vsel %vm523_vm2, %v8122_v27, %v8126_v50  ;;  %v8136_v23 = vshrl.u32 %v17018_v28, 16  ;;  %v8144_v42 = vshrl.u32 %v17043_v33, 16 }
 0x2ec   : > { %v17036_v14 = vadd.f32 %v13486_v21, %v5977_v45  ;;  %13704 = vmatprep.mubr.msk.bf16.mxu0 %vm672_vm3, %v8470_v36  ;;  %v5920_v45 = vpop.f32.mrf.mxu1  ;;  %v17050_v36 = vld [vmem:[%s14907_s29 + $0x78] sm:$0xff]   ;;  %v8472_v31 = vsel %vm1133_vm4, %v8469_v32, %v8471_v60  ;;  %v8474_v10 = vsel %vm1133_vm4, %v8471_v60, %v8473_v38  ;;  %v8135_v32 = vsel %vm523_vm2, %v8130_v43, %v8134_v57 }
 0x2ed   : > { %v6217_v6 = vpop.f32.mrf.mxu0  ;;  %v5979_v12 = vadd.f32 %v5920_v45, %v16780_v58  ;;  %v8148_v60 = vshll.u32 %v17050_v36, 16  ;;  %v8142_v27 = vrot.slane %v8140_v55, 1  ;;  %v8477_v45 = vrot.slane %v17018_v28, 1 }
 0x2ee   : > { %v17046_v0 = vadd.f32 %v6217_v6, %v5975_v19  ;;  %v13453_v35 = vpop.f32.mrf.mxu1 }
 0x2ef   : > { %v13487_v24 = vpop.f32.mrf.mxu0  ;;  %v5982_v19 = vadd.f32 %v13453_v35, %v16787_v53 }
 0x2f0   : > { %v17053_v62 = vadd.f32 %v13487_v24, %v5978_v16  ;;  %v5923_v58 = vpop.f32.mrf.mxu1  ;;  %v17075_v24 = vld [vmem:[%s14907_s29 + $0x80] sm:$0xff]  }
 0x2f1   : > { %v6220_v21 = vpop.f32.mrf.mxu0  ;;  %v5980_v44 = vadd.f32 %v5923_v58, %v16795_v8  ;;  %v8138_v8 = vor.u32 %v8136_v23, %v8134_v57 }
 0x2f2   : > { %v17059_v7 = vadd.f32 %v6220_v21, %v5976_v17  ;;  %v8475_v17 = vrot.slane %v17011_v61, 1  ;;  %v13456_v6 = vpop.f32.mrf.mxu1  ;;  %13671 = vmatmul.mubr.msk.bf16.gmra.mxu1 %vm672_vm3, %v8127_v56  ;;  %v8146_v21 = vor.u32 %v8144_v42, %v8142_v27  ;;  %v8150_v61 = vrot.slane %v8148_v60, 1 }
 0x2f3   : > { %v13490_v16 = vpop.f32.mrf.mxu0  ;;  %13705 = vmatmul.mubr.msk.bf16.gmra.mxu0 %vm672_vm3, %v8472_v31  ;;  %v5985_v43 = vadd.f32 %v13456_v6, %v16802_v46  ;;  %13674 = vmatprep.mubr.msk.bf16.mxu1 %vm672_vm3, %v8135_v32  ;;  %v8152_v46 = vshrl.u32 %v17050_v36, 16  ;;  %v8143_v42 = vsel %vm523_vm2, %v8138_v8, %v8142_v27 }
 0x2f4   : > { %v17068_v53 = vadd.f32 %v13490_v16, %v5981_v37  ;;  %13708 = vmatprep.mubr.msk.bf16.mxu0 %vm672_vm3, %v8474_v10  ;;  %v5936_v37 = vpop.f32.mrf.mxu1  ;;  %v17082_v10 = vld [vmem:[%s14907_s29 + $0x88] sm:$0xff]   ;;  %v8476_v28 = vsel %vm1133_vm4, %v8473_v38, %v8475_v17  ;;  %v8478_v57 = vsel %vm1133_vm4, %v8475_v17, %v8477_v45  ;;  %v8151_v38 = vsel %vm523_vm2, %v8146_v21, %v8150_v61 }
 0x2f5   : > { %v6233_v50 = vpop.f32.mrf.mxu0  ;;  %v5983_v56 = vadd.f32 %v5936_v37, %v16807_v11  ;;  %v8164_v6 = vshll.u32 %v17082_v10, 16  ;;  %v8154_v8 = vor.u32 %v8152_v46, %v8150_v61  ;;  %v17119_v46 = vld [vmem:[%s14907_s29 + $0xc] sm:$0xf] }
 0x2f6   : > { %v17078_v31 = vadd.f32 %v6233_v50, %v5979_v12  ;;  %v13457_v58 = vpop.f32.mrf.mxu1  ;;  %v8156_v12 = vshll.u32 %v17075_v24, 16  ;;  %18567 = vst [vmem:[#allocation4_spill] sm:$0xff] %v17119_v46 }
 0x2f7   : > { %v13491_v35 = vpop.f32.mrf.mxu0  ;;  %v5986_v23 = vadd.f32 %v13457_v58, %v16817_v34  ;;  %v8479_v34 = vrot.slane %v17043_v33, 1 }
 0x2f8   : > { %v17085_v55 = vadd.f32 %v13491_v35, %v5982_v19  ;;  %v5939_v60 = vpop.f32.mrf.mxu1  ;;  %v8160_v19 = vshrl.u32 %v17075_v24, 16  ;;  %v8158_v37 = vrot.slane %v8156_v12, 1  ;;  %v8481_v35 = vrot.slane %v17050_v36, 1  ;;  %v8759_v36 = vld [vmem:[%s14907_s29 + $0x8] sm:$0xe] }
 0x2f9   : > { %v6236_v16 = vpop.f32.mrf.mxu0  ;;  %v5984_v17 = vadd.f32 %v5939_v60, %v16821_v29  ;;  %v17111_v29 = vld [vmem:[%s14907_s29 + $0x90] ss:$0 sps:$4 sm:$0x11]   ;;  %v8480_v61 = vsel %vm1133_vm4, %v8477_v45, %v8479_v34 }
 0x2fa   : > { %v17092_v32 = vadd.f32 %v6236_v16, %v5980_v44  ;;  %v13500_v44 = vpop.f32.mrf.mxu1  ;;  %13675 = vmatmul.mubr.msk.bf16.gmra.mxu1 %vm672_vm3, %v8143_v42  ;;  %v8162_v58 = vor.u32 %v8160_v19, %v8158_v37  ;;  %v8166_v16 = vrot.slane %v8164_v6, 1  ;;  %v8159_v12 = vsel %vm523_vm2, %v8154_v8, %v8158_v37 }
 0x2fb   : > { %v13494_v11 = vpop.f32.mrf.mxu0  ;;  %13709 = vmatmul.mubr.msk.bf16.gmra.mxu0 %vm672_vm3, %v8476_v28  ;;  %v6705_v21 = vadd.f32 %v13500_v44, %v16828_v41  ;;  %13678 = vmatprep.mubr.msk.bf16.mxu1 %vm672_vm3, %v8151_v38  ;;  %v8482_v60 = vsel %vm1133_vm4, %v8479_v34, %v8481_v35  ;;  %v12183_v44 = vcombine.low %v8759_v36, %v17119_v46 }
 0x2fc   : > { %v17100_v50 = vadd.f32 %v13494_v11, %v5985_v43  ;;  %13712 = vmatprep.mubr.msk.bf16.mxu0 %vm672_vm3, %v8478_v57  ;;  %v6560_v43 = vpop.f32.mrf.mxu1  ;;  %v8167_v6 = vsel %vm523_vm2, %v8162_v58, %v8166_v16 }
 0x2fd   : > { %v6249_v27 = vpop.f32.mrf.mxu0  ;;  %v6703_v57 = vadd.f32 %v6560_v43, %v16836_v5  ;;  %v8168_v5 = vshrl.u32 %v17082_v10, 16  ;;  %v9208_v58 = vshll.u32 %v12183_v44, 16 }
 0x2fe   : > { %v17107_v28 = vadd.f32 %v6249_v27, %v5983_v56  ;;  %v13501_v41 = vpop.f32.mrf.mxu1  ;;  %v17132_v27 = vld [vmem:[%s14907_s29 + $0x10] sm:$0xff]  }
 0x2ff   : > { %v13495_v33 = vpop.f32.mrf.mxu0  ;;  %v6706_v11 = vadd.f32 %v13501_v41, %v16846_v47  ;;  %18568 = vst [vmem:[#allocation5_spill] sm:$0xff] %v17132_v27  ;;  %v8483_v47 = vrot.slane %v17075_v24, 1  ;;  %v9216_v36 = vshll.u32 %v17132_v27, 16  ;;  %v8170_v41 = vor.u32 %v8168_v5, %v8166_v16 }
 0x300   : > { %v17114_v42 = vadd.f32 %v13495_v33, %v5986_v23  ;;  %v8172_v23 = vshll.u32 %v17111_v29, 16  ;;  %v6563_v19 = vpop.f32.mrf.mxu1  ;;  %v9205_v33 = vshrl.u32 %v12183_v44, 16 }
 0x301   : > { %v6252_v56 = vpop.f32.mrf.mxu0  ;;  %v6704_v34 = vadd.f32 %v6563_v19, %v16852_v4  ;;  %v8484_v46 = vsel %vm1133_vm4, %v8481_v35, %v8483_v47 }
 0x302   : > { %v17124_v38 = vadd.f32 %v6252_v56, %v5984_v17  ;;  %v8485_v17 = vrot.slane %v17082_v10, 1  ;;  %v13504_v37 = vpop.f32.mrf.mxu1  ;;  %13679 = vmatmul.mubr.msk.bf16.gmra.mxu1 %vm672_vm3, %v8159_v12  ;;  %v8174_v24 = vrot.slane %v8172_v23, 1  ;;  %v8892_v12 = vrot.slane %v17132_v27, 1 }
 0x303   : > { %v13538_v45 = vpop.f32.mrf.mxu0  ;;  %13713 = vmatmul.mubr.msk.bf16.gmra.mxu0 %vm672_vm3, %v8480_v61  ;;  %v9213_v61 = vshrl.u32 %v17132_v27, 16  ;;  %v6709_v4 = vadd.f32 %v13504_v37, %v16861_v51  ;;  %13682 = vmatprep.mubr.msk.bf16.mxu1 %vm672_vm3, %v8167_v6  ;;  %v9207_v5 = vrot.slane %v9205_v33, 1  ;;  %v9210_v6 = vrot.slane %v9208_v58, 2  ;;  %v17164_v33 = vld [vmem:[%s14907_s29 + $0x20] sm:$0xff]  }
 0x304   : > { %v17135_v8 = vadd.f32 %v13538_v45, %v6705_v21  ;;  %13716 = vmatprep.mubr.msk.bf16.mxu0 %vm672_vm3, %v8482_v60  ;;  %v6576_v56 = vpop.f32.mrf.mxu1  ;;  %v8891_v60 = vrot.slane %v12183_v44, 1  ;;  %v8486_v51 = vsel %vm1133_vm4, %v8483_v47, %v8485_v17  ;;  %v9218_v37 = vrot.slane %v9216_v36, 2  ;;  %18570 = vst [vmem:[#allocation13_spill] sm:$0xff] %v17164_v33  ;;  %v18571_v58 = vld [vmem:[#allocation2_spill] sm:$0xff] }
 0x305   : > { %v7006_v43 = vpop.f32.mrf.mxu0  ;;  %v6707_v19 = vadd.f32 %v6576_v56, %v16870_v13  ;;  %v9215_v23 = vrot.slane %v9213_v61, 1  ;;  %v8175_v27 = vsel %vm523_vm2, %v8170_v41, %v8174_v24  ;;  %v17158_v13 = vld [vmem:[%s14907_s29 + $0x18] sm:$0xff]   ;;  %v8487_v47 = vrot.slane %v17111_v29, 1 }
 0x306   : > { %v17144_v21 = vadd.f32 %v7006_v43, %v6703_v57  ;;  %v13505_v57 = vpop.f32.mrf.mxu1  ;;  %18569 = vst [vmem:[#allocation15_spill] sm:$0xff] %v17158_v13  ;;  %v8893_v35 = vsel %vm1133_vm4, %v8891_v60, %v8892_v12  ;;  %v9211_v24 = vor.u32 %v9210_v6, %v9207_v5  ;;  %v9231_v29 = vshrl.u32 %v17164_v33, 16 }
 0x307   : > { %v13539_v10 = vpop.f32.mrf.mxu0  ;;  %v6710_v43 = vadd.f32 %v13505_v57, %v16878_v49  ;;  %v9222_v49 = vshrl.u32 %v17158_v13, 16  ;;  %v9234_v60 = vshll.u32 %v17164_v33, 16  ;;  %v8896_v5 = vrot.slane %v17164_v33, 1 }
 0x308   : > { %v17149_v45 = vadd.f32 %v13539_v10, %v6706_v11  ;;  %v6579_v11 = vpop.f32.mrf.mxu1  ;;  %v9219_v10 = vor.u32 %v9218_v37, %v9215_v23 }
 0x309   : > { %v7009_v16 = vpop.f32.mrf.mxu0  ;;  %v6708_v61 = vadd.f32 %v6579_v11, %v18571_v58  ;;  %v9224_v37 = vrot.slane %v9222_v49, 1 }
 0x30a   : > { %v17154_v44 = vadd.f32 %v7009_v16, %v6704_v34  ;;  %v9225_v34 = vshll.u32 %v17158_v13, 16  ;;  %v13508_v41 = vpop.f32.mrf.mxu1  ;;  %13683 = vmatmul.mubr.msk.bf16.gmra.mxu1 %vm672_vm3, %v8175_v27  ;;  %v8488_v27 = vsel %vm1133_vm4, %v8485_v17, %v8487_v47  ;;  %v9220_v58 = vsel %vm1886_vm6, %v9211_v24, %v9219_v10 }
 0x30b   : > { %v13542_v56 = vpop.f32.mrf.mxu0  ;;  %13717 = vmatmul.mubr.msk.bf16.gmra.mxu0 %vm672_vm3, %v8484_v46  ;;  %v6713_v57 = vadd.f32 %v13508_v41, %v16898_v22  ;;  %13726 = vmatprep.mubr.msk.bf16.mxu1 %vm672_vm3, %v8893_v35  ;;  %v17190_v41 = vld [vmem:[%s14907_s29 + $0x28] sm:$0xff]   ;;  %v9233_v17 = vrot.slane %v9231_v29, 1  ;;  %v9236_v47 = vrot.slane %v9234_v60, 2 }
 0x30c   : > { %v17167_v36 = vadd.f32 %v13542_v56, %v6709_v4  ;;  %13720 = vmatprep.mubr.msk.bf16.mxu0 %vm672_vm3, %v8486_v51  ;;  %v8894_v51 = vrot.slane %v17158_v13, 1  ;;  %v6592_v16 = vpop.f32.mrf.mxu1  ;;  %v9227_v22 = vrot.slane %v9225_v34, 2  ;;  %v9240_v24 = vshrl.u32 %v17190_v41, 16 }
 0x30d   : > { %v7022_v46 = vpop.f32.mrf.mxu0  ;;  %v6711_v6 = vadd.f32 %v6592_v16, %v16908_v26  ;;  %v9243_v33 = vshll.u32 %v17190_v41, 16 }
 0x30e   : > { %v17176_v4 = vadd.f32 %v7022_v46, %v6707_v19  ;;  %v12298_v19 = vld [vmem:[%s18357_s3 + $0x32] sm:$0x3]  ;;  %v13509_v56 = vpop.f32.mrf.mxu1  ;;  %v8897_v16 = vsel %vm1133_vm4, %v8894_v51, %v8896_v5 }
 0x30f   : > { %v13543_v11 = vpop.f32.mrf.mxu0  ;;  %v6714_v46 = vadd.f32 %v13509_v56, %v16920_v15  ;;  %v17204_v29 = vand.u32 %v12298_v19, %v14330_v3 }
 0x310   : > { %v17183_v23 = vadd.f32 %v13543_v11, %v6710_v43  ;;  %v8895_v43 = vsel %vm1133_vm4, %v8892_v12, %v8894_v51  ;;  %v6595_v49 = vpop.f32.mrf.mxu1  ;;  %v17199_v11 = vld [vmem:[%s14907_s29 + $0x30] sm:$0xff]   ;;  %v9228_v12 = vor.u32 %v9227_v22, %v9224_v37 }
 0x311   : > { %v7025_v35 = vpop.f32.mrf.mxu0  ;;  %v6712_v15 = vadd.f32 %v6595_v49, %v16929_v40  ;;  %v9249_v56 = vshrl.u32 %v17199_v11, 16  ;;  %v8898_v40 = vrot.slane %v17190_v41, 1 }
 0x312   : > { %v17193_v26 = vadd.f32 %v7025_v35, %v6708_v61  ;;  %v13512_v60 = vpop.f32.mrf.mxu1  ;;  %13727 = vmatmul.mubr.msk.bf16.vlgmr.msra.gmra.mxu1 %vm672_vm3, %v8895_v43  ;;  %v9252_v35 = vshll.u32 %v17199_v11, 16 }
 0x313   : > { %v13546_v34 = vpop.f32.mrf.mxu0  ;;  %13721 = vmatmul.mubr.msk.bf16.gmra.mxu0 %vm672_vm3, %v8488_v27  ;;  %v9237_v27 = vor.u32 %v9236_v47, %v9233_v17  ;;  %v6717_v13 = vadd.f32 %v13512_v60, %v16938_v2  ;;  %13801 = vmatpush3.bf16.msra.mxu1 %v16895_v48  ;;  %v9242_v17 = vrot.slane %v9240_v24, 1  ;;  %v9245_v47 = vrot.slane %v9243_v33, 2 }
 0x314   : > { %v17207_v61 = vadd.f32 %v13546_v34, %v6713_v57  ;;  %13764 = vmatprep.mubr.msk.bf16.mxu0 %vm672_vm3, %v9220_v58  ;;  %13730 = vmatprep.mubr.msk.bf16.mxu1 %vm672_vm3, %v8897_v16  ;;  %v12318_v57 = vld [vmem:[%s18357_s3 + $0x34] sm:$0x3]  ;;  %v6608_v37 = vpop.f32.mrf.mxu1  ;;  %v8900_v58 = vrot.slane %v17199_v11, 1  ;;  %v9251_v16 = vrot.slane %v9249_v56, 1  ;;  %v9254_v60 = vrot.slane %v9252_v35, 2  ;;  %v17242_v56 = vld [vmem:[%s14907_s29 + $0x40] sm:$0xff]  }
 0x315   : > { %v7038_v51 = vpop.f32.mrf.mxu0  ;;  %13876 = vmatprep.subr.bf16.mxu1 %v17204_v29  ;;  %v6715_v2 = vadd.f32 %v6608_v37, %v16950_v30  ;;  %v9238_v34 = vsel %vm1886_vm6, %v9228_v12, %v9237_v27  ;;  %v8899_v30 = vsel %vm1133_vm4, %v8896_v5, %v8898_v40  ;;  %18574 = vst [vmem:[#allocation10_spill] sm:$0xff] %v17242_v56 }
 0x316   : > { %v17214_v19 = vadd.f32 %v7038_v51, %v6711_v6  ;;  %v9229_v6 = vsel %vm1886_vm6, %v9219_v10, %v9228_v12  ;;  %v13513_v43 = vpop.f32.mrf.mxu1  ;;  %v17230_v51 = vand.u32 %v12318_v57, %v14330_v3  ;;  %v9246_v12 = vor.u32 %v9245_v47, %v9242_v17 }
 0x317   : > { %v13547_v22 = vpop.f32.mrf.mxu0  ;;  %v6718_v33 = vadd.f32 %v13513_v43, %v16957_v54  ;;  %v18575_v54 = vld [vmem:[#allocation3_spill] sm:$0xff]  ;;  %v9267_v17 = vshrl.u32 %v17242_v56, 16  ;;  %v9270_v47 = vshll.u32 %v17242_v56, 16 }
 0x318   : > { %v17225_v48 = vadd.f32 %v13547_v22, %v6714_v46  ;;  %18572 = vst [vmem:[#allocation8_spill] sm:$0xff] %v17230_v51  ;;  %v17237_v46 = vld [vmem:[%s14907_s29 + $0x38] sm:$0xff]   ;;  %v6611_v37 = vpop.f32.mrf.mxu1  ;;  %v8901_v22 = vsel %vm1133_vm4, %v8898_v40, %v8900_v58  ;;  %v9255_v40 = vor.u32 %v9254_v60, %v9251_v16  ;;  %v8904_v16 = vrot.slane %v17242_v56, 1 }
 0x319   : > { %v7041_v49 = vpop.f32.mrf.mxu0  ;;  %18573 = vst [vmem:[#allocation6_spill] sm:$0xff] %v17237_v46  ;;  %v6716_v3 = vadd.f32 %v6611_v37, %v16963_v20  ;;  %v9258_v5 = vshrl.u32 %v17237_v46, 16  ;;  %v8902_v43 = vrot.slane %v17237_v46, 1 }
 0x31a   : > { %v17233_v24 = vadd.f32 %v7041_v49, %v6712_v15  ;;  %v9261_v15 = vshll.u32 %v17237_v46, 16  ;;  %v13516_v57 = vpop.f32.mrf.mxu1  ;;  %13731 = vmatmul.mubr.msk.bf16.gmra.mxu1 %vm672_vm3, %v8899_v30  ;;  %v9247_v30 = vsel %vm1886_vm6, %v9237_v27, %v9246_v12  ;;  %v9272_v46 = vrot.slane %v9270_v47, 2 }
 0x31b   : > { %v13550_v10 = vpop.f32.mrf.mxu0  ;;  %13765 = vmatmul.mubr.msk.bf16.vlgmr.msra.gmra.mxu0 %vm672_vm3, %v9229_v6  ;;  %v6721_v20 = vadd.f32 %v13516_v57, %v16972_v39  ;;  %13734 = vmatprep.mubr.msk.bf16.mxu1 %vm672_vm3, %v8901_v22  ;;  %v9256_v57 = vsel %vm1886_vm6, %v9246_v12, %v9255_v40  ;;  %v17267_v22 = vld [vmem:[%s14907_s29 + $0x48] sm:$0xff]   ;;  %v8903_v56 = vsel %vm1133_vm4, %v8900_v58, %v8902_v43 }
 0x31c   : > { %v17245_v35 = vadd.f32 %v13550_v10, %v6717_v13  ;;  %13839 = vmatpush3.bf16.msra.mxu0 %v18575_v54  ;;  %13768 = vmatprep.mubr.msk.bf16.mxu0 %vm672_vm3, %v9238_v34  ;;  %v6624_v49 = vpop.f32.mrf.mxu1  ;;  %v9260_v10 = vrot.slane %v9258_v5, 1  ;;  %v9263_v54 = vrot.slane %v9261_v15, 2  ;;  %18576 = vst [vmem:[#allocation7_spill] sm:$0xff] %v17267_v22  ;;  %v8905_v5 = vsel %vm1133_vm4, %v8902_v43, %v8904_v16  ;;  %v17276_v15 = vld [vmem:[%s14907_s29 + $0x50] sm:$0xff]  }
 0x31d   : > { %v7054_v6 = vpop.f32.mrf.mxu0  ;;  %13914 = vmatprep.subr.bf16.mxu0 %v17230_v51  ;;  %v6719_v60 = vadd.f32 %v6624_v49, %v16982_v59  ;;  %v9276_v12 = vshrl.u32 %v17267_v22, 16  ;;  %v9279_v49 = vshll.u32 %v17267_v22, 16  ;;  %v9285_v43 = vshrl.u32 %v17276_v15, 16 }
 0x31e   : > { %v17256_v13 = vadd.f32 %v7054_v6, %v6715_v2  ;;  %v13517_v39 = vpop.f32.mrf.mxu1  ;;  %v9269_v6 = vrot.slane %v9267_v17, 1 }
 0x31f   : > { %v13551_v34 = vpop.f32.mrf.mxu0  ;;  %v6722_v51 = vadd.f32 %v13517_v39, %v16989_v1  ;;  %v9264_v1 = vor.u32 %v9263_v54, %v9260_v10  ;;  %v8908_v54 = vrot.slane %v17276_v15, 1 }
 0x320   : > { %v17263_v37 = vadd.f32 %v13551_v34, %v6718_v33  ;;  %v6627_v59 = vpop.f32.mrf.mxu1  ;;  %v9273_v34 = vor.u32 %v9272_v46, %v9269_v6 }
 0x321   : > { %v7057_v2 = vpop.f32.mrf.mxu0  ;;  %v6720_v17 = vadd.f32 %v6627_v59, %v16995_v25  ;;  %v8906_v25 = vrot.slane %v17267_v22, 1 }
 0x322   : > { %v17270_v27 = vadd.f32 %v7057_v2, %v6716_v3  ;;  %v13520_v58 = vpop.f32.mrf.mxu1  ;;  %13735 = vmatmul.mubr.msk.bf16.gmra.mxu1 %vm672_vm3, %v8903_v56  ;;  %v9278_v56 = vrot.slane %v9276_v12, 1 }
 0x323   : > { %v13554_v33 = vpop.f32.mrf.mxu0  ;;  %13769 = vmatmul.mubr.msk.bf16.gmra.mxu0 %vm672_vm3, %v9247_v30  ;;  %v9288_v30 = vshll.u32 %v17276_v15, 16  ;;  %v6725_v39 = vadd.f32 %v13520_v58, %v17004_v9  ;;  %13738 = vmatprep.mubr.msk.bf16.mxu1 %vm672_vm3, %v8905_v5  ;;  %v9265_v9 = vsel %vm1886_vm6, %v9255_v40, %v9264_v1  ;;  %v9287_v5 = vrot.slane %v9285_v43, 1 }
 0x324   : > { %v17281_v47 = vadd.f32 %v13554_v33, %v6721_v20  ;;  %13772 = vmatprep.mubr.msk.bf16.mxu0 %vm672_vm3, %v9256_v57  ;;  %v6640_v20 = vpop.f32.mrf.mxu1  ;;  %v9281_v57 = vrot.slane %v9279_v49, 2  ;;  %v9274_v33 = vsel %vm1886_vm6, %v9264_v1, %v9273_v34  ;;  %v8907_v12 = vsel %vm1133_vm4, %v8904_v16, %v8906_v25  ;;  %v17303_v49 = vld [vmem:[%s14907_s29 + $0x58] sm:$0xff]  }
 0x325   : > { %v7070_v3 = vpop.f32.mrf.mxu0  ;;  %v6723_v46 = vadd.f32 %v6640_v20, %v17014_v63  ;;  %v9290_v58 = vrot.slane %v9288_v30, 2  ;;  %18577 = vst [vmem:[#allocation17_spill] sm:$0xff] %v17303_v49  ;;  %v8909_v40 = vsel %vm1133_vm4, %v8906_v25, %v8908_v54  ;;  %v9297_v16 = vshll.u32 %v17303_v49, 16 }
 0x326   : > { %v17288_v2 = vadd.f32 %v7070_v3, %v6719_v60  ;;  %v13521_v60 = vpop.f32.mrf.mxu1  ;;  %v9282_v20 = vor.u32 %v9281_v57, %v9278_v56  ;;  %v8910_v57 = vrot.slane %v17303_v49, 1 }
 0x327   : > { %v13555_v10 = vpop.f32.mrf.mxu0  ;;  %v6726_v3 = vadd.f32 %v13521_v60, %v17021_v52  ;;  %v9294_v52 = vshrl.u32 %v17303_v49, 16 }
 0x328   : > { %v17294_v6 = vadd.f32 %v13555_v10, %v6722_v51  ;;  %v6643_v63 = vpop.f32.mrf.mxu1  ;;  %v17308_v10 = vld [vmem:[%s14907_s29 + $0x60] sm:$0xff]  }
 0x329   : > { %v7073_v59 = vpop.f32.mrf.mxu0  ;;  %18578 = vst [vmem:[#allocation14_spill] sm:$0xff] %v17308_v10  ;;  %v6724_v1 = vadd.f32 %v6643_v63, %v17027_v18  ;;  %v9303_v25 = vshrl.u32 %v17308_v10, 16  ;;  %v9306_v56 = vshll.u32 %v17308_v10, 16  ;;  %v9296_v63 = vrot.slane %v9294_v52, 1 }
 0x32a   : > { %v17299_v22 = vadd.f32 %v7073_v59, %v6720_v17  ;;  %v13524_v17 = vpop.f32.mrf.mxu1  ;;  %13739 = vmatmul.mubr.msk.bf16.gmra.mxu1 %vm672_vm3, %v8907_v12  ;;  %v8912_v12 = vrot.slane %v17308_v10, 1  ;;  %v8911_v10 = vsel %vm1133_vm4, %v8908_v54, %v8910_v57 }
 0x32b   : > { %v13558_v51 = vpop.f32.mrf.mxu0  ;;  %13773 = vmatmul.mubr.msk.bf16.gmra.mxu0 %vm672_vm3, %v9265_v9  ;;  %v9291_v9 = vor.u32 %v9290_v58, %v9287_v5  ;;  %v6729_v18 = vadd.f32 %v13524_v17, %v17036_v14  ;;  %13742 = vmatprep.mubr.msk.bf16.mxu1 %vm672_vm3, %v8909_v40  ;;  %v17331_v40 = vld [vmem:[%s14907_s29 + $0x68] sm:$0xff]   ;;  %v9308_v49 = vrot.slane %v9306_v56, 2 }
 0x32c   : > { %v17311_v43 = vadd.f32 %v13558_v51, %v6725_v39  ;;  %13776 = vmatprep.mubr.msk.bf16.mxu0 %vm672_vm3, %v9274_v33  ;;  %v6656_v60 = vpop.f32.mrf.mxu1  ;;  %v9283_v33 = vsel %vm1886_vm6, %v9273_v34, %v9282_v20  ;;  %v9299_v51 = vrot.slane %v9297_v16, 2  ;;  %18580 = vst [vmem:[#allocation9_spill] sm:$0xff] %v17331_v40  ;;  %v8913_v52 = vsel %vm1133_vm4, %v8910_v57, %v8912_v12  ;;  %v17340_v16 = vld [vmem:[%s14907_s29 + $0x70] sm:$0xff]  }
 0x32d   : > { %v7086_v30 = vpop.f32.mrf.mxu0  ;;  %v6727_v5 = vadd.f32 %v6656_v60, %v17046_v0  ;;  %v9292_v17 = vsel %vm1886_vm6, %v9282_v20, %v9291_v9  ;;  %v9312_v20 = vshrl.u32 %v17331_v40, 16  ;;  %v9315_v60 = vshll.u32 %v17331_v40, 16 }
 0x32e   : > { %v17320_v39 = vadd.f32 %v7086_v30, %v6723_v46  ;;  %v13525_v14 = vpop.f32.mrf.mxu1  ;;  %v9305_v30 = vrot.slane %v9303_v25, 1  ;;  %v9321_v57 = vshrl.u32 %v17340_v16, 16 }
 0x32f   : > { %v13559_v59 = vpop.f32.mrf.mxu0 }
 0x330   : > { %18579 = vst [vmem:[#allocation11_spill] sm:$0xff] %v17320_v39  ;;  %v17327_v58 = vadd.f32 %v13559_v59, %v6726_v3  ;;  %v6730_v39 = vadd.f32 %v13525_v14, %v17053_v62  ;;  %v6659_v0 = vpop.f32.mrf.mxu1  ;;  %v9300_v62 = vor.u32 %v9299_v51, %v9296_v63  ;;  %v9309_v59 = vor.u32 %v9308_v49, %v9305_v30 }
 0x331   : > { %v7089_v46 = vpop.f32.mrf.mxu0  ;;  %v6728_v25 = vadd.f32 %v6659_v0, %v17059_v7  ;;  %v8914_v7 = vrot.slane %v17331_v40, 1  ;;  %v8916_v51 = vrot.slane %v17340_v16, 1 }
 0x332   : > { %v17334_v34 = vadd.f32 %v7089_v46, %v6724_v1  ;;  %v13528_v54 = vpop.f32.mrf.mxu1  ;;  %13743 = vmatmul.mubr.msk.bf16.gmra.mxu1 %vm672_vm3, %v8911_v10  ;;  %v9314_v10 = vrot.slane %v9312_v20, 1 }
 0x333   : > { %v13562_v3 = vpop.f32.mrf.mxu0  ;;  %13777 = vmatmul.mubr.msk.bf16.gmra.mxu0 %vm672_vm3, %v9283_v33  ;;  %v9324_v33 = vshll.u32 %v17340_v16, 16  ;;  %v6733_v14 = vadd.f32 %v13528_v54, %v17068_v53  ;;  %13746 = vmatprep.mubr.msk.bf16.mxu1 %vm672_vm3, %v8913_v52  ;;  %v9301_v53 = vsel %vm1886_vm6, %v9291_v9, %v9300_v62  ;;  %v9323_v52 = vrot.slane %v9321_v57, 1 }
 0x334   : > { %v17345_v56 = vadd.f32 %v13562_v3, %v6729_v18  ;;  %13780 = vmatprep.mubr.msk.bf16.mxu0 %vm672_vm3, %v9292_v17  ;;  %v6672_v18 = vpop.f32.mrf.mxu1  ;;  %v9317_v17 = vrot.slane %v9315_v60, 2  ;;  %v9310_v3 = vsel %vm1886_vm6, %v9300_v62, %v9309_v59  ;;  %v8915_v20 = vsel %vm1133_vm4, %v8912_v12, %v8914_v7  ;;  %v17367_v60 = vld [vmem:[%s14907_s29 + $0x78] sm:$0xff]  }
 0x335   : > { %v7102_v1 = vpop.f32.mrf.mxu0  ;;  %v6731_v49 = vadd.f32 %v6672_v18, %v17078_v31  ;;  %v9326_v54 = vrot.slane %v9324_v33, 2  ;;  %18581 = vst [vmem:[#allocation18_spill] sm:$0xff] %v17367_v60  ;;  %v8917_v9 = vsel %vm1133_vm4, %v8914_v7, %v8916_v51  ;;  %v9333_v12 = vshll.u32 %v17367_v60, 16 }
 0x336   : > { %v17352_v46 = vadd.f32 %v7102_v1, %v6727_v5  ;;  %v13529_v5 = vpop.f32.mrf.mxu1  ;;  %v9318_v18 = vor.u32 %v9317_v17, %v9314_v10  ;;  %v8918_v17 = vrot.slane %v17367_v60, 1 }
 0x337   : > { %v13563_v63 = vpop.f32.mrf.mxu0  ;;  %v6734_v1 = vadd.f32 %v13529_v5, %v17085_v55  ;;  %v9330_v55 = vshrl.u32 %v17367_v60, 16 }
 0x338   : > { %v17358_v30 = vadd.f32 %v13563_v63, %v6730_v39  ;;  %v6675_v31 = vpop.f32.mrf.mxu1  ;;  %v17372_v63 = vld [vmem:[%s14907_s29 + $0x80] sm:$0xff]  }
 0x339   : > { %v7105_v0 = vpop.f32.mrf.mxu0  ;;  %18582 = vst [vmem:[#allocation12_spill] sm:$0xff] %v17372_v63  ;;  %v6732_v62 = vadd.f32 %v6675_v31, %v17092_v32  ;;  %v9339_v7 = vshrl.u32 %v17372_v63, 16  ;;  %v9342_v10 = vshll.u32 %v17372_v63, 16  ;;  %v9332_v31 = vrot.slane %v9330_v55, 1 }
 0x33a   : > { %v17363_v40 = vadd.f32 %v7105_v0, %v6728_v25  ;;  %v13532_v25 = vpop.f32.mrf.mxu1  ;;  %13747 = vmatmul.mubr.msk.bf16.gmra.mxu1 %vm672_vm3, %v8915_v20  ;;  %v8920_v20 = vrot.slane %v17372_v63, 1  ;;  %v8919_v63 = vsel %vm1133_vm4, %v8916_v51, %v8918_v17 }
 0x33b   : > { %v13566_v39 = vpop.f32.mrf.mxu0  ;;  %13781 = vmatmul.mubr.msk.bf16.gmra.mxu0 %vm672_vm3, %v9301_v53  ;;  %v9327_v53 = vor.u32 %v9326_v54, %v9323_v52  ;;  %v6737_v32 = vadd.f32 %v13532_v25, %v17100_v50  ;;  %13750 = vmatprep.mubr.msk.bf16.mxu1 %vm672_vm3, %v8917_v9  ;;  %v17395_v9 = vld [vmem:[%s14907_s29 + $0x88] sm:$0xff]   ;;  %v9344_v60 = vrot.slane %v9342_v10, 2 }
 0x33c   : > { %v17375_v57 = vadd.f32 %v13566_v39, %v6733_v14  ;;  %13784 = vmatprep.mubr.msk.bf16.mxu0 %vm672_vm3, %v9310_v3  ;;  %v6688_v5 = vpop.f32.mrf.mxu1  ;;  %v9319_v3 = vsel %vm1886_vm6, %v9309_v59, %v9318_v18  ;;  %v9335_v39 = vrot.slane %v9333_v12, 2  ;;  %18584 = vst [vmem:[#allocation22_spill] sm:$0xff] %v17395_v9  ;;  %v8921_v55 = vsel %vm1133_vm4, %v8918_v17, %v8920_v20  ;;  %v17404_v12 = vld [vmem:[%s14907_s29 + $0x90] sm:$0xff]  }
 0x33d   : > { %v7118_v33 = vpop.f32.mrf.mxu0  ;;  %v6735_v52 = vadd.f32 %v6688_v5, %v17107_v28  ;;  %v9328_v25 = vsel %vm1886_vm6, %v9318_v18, %v9327_v53  ;;  %18585 = vst [vmem:[#allocation19_spill] sm:$0xff] %v17404_v12  ;;  %v9348_v18 = vshrl.u32 %v17395_v9, 16  ;;  %v9351_v5 = vshll.u32 %v17395_v9, 16 }
 0x33e   : > { %v17384_v14 = vadd.f32 %v7118_v33, %v6731_v49  ;;  %v13533_v50 = vpop.f32.mrf.mxu1  ;;  %v9341_v33 = vrot.slane %v9339_v7, 1  ;;  %v9357_v17 = vshrl.u32 %v17404_v12, 16 }
 0x33f   : > { %v13567_v0 = vpop.f32.mrf.mxu0 }
 0x340   : > { %18583 = vst [vmem:[#allocation16_spill] sm:$0xff] %v17384_v14  ;;  %v17391_v54 = vadd.f32 %v13567_v0, %v6734_v1  ;;  %v6738_v14 = vadd.f32 %v13533_v50, %v17114_v42  ;;  %v6691_v28 = vpop.f32.mrf.mxu1  ;;  %v9336_v42 = vor.u32 %v9335_v39, %v9332_v31  ;;  %v9345_v0 = vor.u32 %v9344_v60, %v9341_v33 }
 0x341   : > { %v7121_v49 = vpop.f32.mrf.mxu0  ;;  %v6736_v7 = vadd.f32 %v6691_v28, %v17124_v38  ;;  %v8922_v38 = vrot.slane %v17395_v9, 1  ;;  %v9350_v39 = vrot.slane %v9348_v18, 1  ;;  %v9353_v60 = vrot.slane %v9351_v5, 2 }
 0x342   : > { %v17398_v59 = vadd.f32 %v7121_v49, %v6732_v62  ;;  %v13576_v51 = vpop.f32.mrf.mxu1  ;;  %13751 = vmatmul.mubr.msk.bf16.gmra.mxu1 %vm672_vm3, %v8919_v63  ;;  %v8924_v63 = vrot.slane %v17404_v12, 1  ;;  %v9337_v28 = vsel %vm1886_vm6, %v9327_v53, %v9336_v42 }
 0x343   : > { %v13570_v1 = vpop.f32.mrf.mxu0  ;;  %13785 = vmatmul.mubr.msk.bf16.gmra.mxu0 %vm672_vm3, %v9319_v3  ;;  %v9360_v3 = vshll.u32 %v17404_v12, 16  ;;  %v7464_v50 = vadd.f32 %v13576_v51, %v17135_v8  ;;  %13754 = vmatprep.mubr.msk.bf16.mxu1 %vm672_vm3, %v8921_v55  ;;  %v9644_v8 = vld [vmem:[%s14907_s29 + $0x8] sm:$0xc]  ;;  %v9346_v51 = vsel %vm1886_vm6, %v9336_v42, %v9345_v0  ;;  %v8923_v18 = vsel %vm1133_vm4, %v8920_v20, %v8922_v38 }
 0x344   : > { %v17409_v10 = vadd.f32 %v13570_v1, %v6737_v32  ;;  %13788 = vmatprep.mubr.msk.bf16.mxu0 %vm672_vm3, %v9328_v25  ;;  %v7319_v32 = vpop.f32.mrf.mxu1  ;;  %v8925_v53 = vsel %vm1133_vm4, %v8922_v38, %v8924_v63 }
 0x345   : > { %v7134_v62 = vpop.f32.mrf.mxu0  ;;  %v7462_v25 = vadd.f32 %v7319_v32, %v17144_v21  ;;  %v9362_v9 = vrot.slane %v9360_v3, 2  ;;  %v14199_v21 = vld [vmem:[%s14907_s29 + $0x98] ss:$0 sps:$4 sm:$0x11]   ;;  %v9354_v32 = vor.u32 %v9353_v60, %v9350_v39 }
 0x346   : > { %v17416_v49 = vadd.f32 %v7134_v62, %v6735_v52  ;;  %v17427_v52 = vld [vmem:[%s14907_s29 + $0x98] ss:$0 sps:$4 sm:$0x33]   ;;  %v13577_v1 = vpop.f32.mrf.mxu1  ;;  %v9359_v62 = vrot.slane %v9357_v17, 1 }
 0x347   : > { %v13571_v31 = vpop.f32.mrf.mxu0  ;;  %v7465_v12 = vadd.f32 %v13577_v1, %v17149_v45  ;;  %v9366_v45 = vshrl.u32 %v17427_v52, 16  ;;  %v9369_v20 = vshll.u32 %v17427_v52, 16 }
 0x348   : > { %18586 = vst [vmem:[#allocation20_spill] sm:$0xff] %v17416_v49  ;;  %v17422_v33 = vadd.f32 %v13571_v31, %v6738_v14  ;;  %v7322_v14 = vpop.f32.mrf.mxu1  ;;  %v18587_v31 = vld [vmem:[#allocation4_spill] sm:$0xff]  ;;  %v9363_v38 = vor.u32 %v9362_v9, %v9359_v62 }
 0x349   : > { %v7137_v55 = vpop.f32.mrf.mxu0  ;;  %v12241_v42 = vcombine.low %v9644_v8, %v18587_v31  ;;  %v7463_v17 = vadd.f32 %v7322_v14, %v17154_v44  ;;  %v8926_v44 = vrot.slane %v14199_v21, 1  ;;  %v17451_v8 = vld [vmem:[%s14907_s29 + $0x14] sm:$0xf] }
 0x34a   : > { %v17431_v49 = vadd.f32 %v7137_v55, %v6736_v7  ;;  %v13580_v7 = vpop.f32.mrf.mxu1  ;;  %13755 = vmatmul.mubr.msk.bf16.gmra.mxu1 %vm672_vm3, %v8923_v18  ;;  %v9364_v21 = vsel %vm1886_vm6, %v9354_v32, %v9363_v38 }
 0x34b   : > { %v13614_v5 = vpop.f32.mrf.mxu0  ;;  %13789 = vmatmul.mubr.msk.bf16.gmra.mxu0 %vm672_vm3, %v9337_v28  ;;  %v7468_v39 = vadd.f32 %v13580_v7, %v17167_v36  ;;  %13758 = vmatprep.mubr.msk.bf16.mxu1 %vm672_vm3, %v8925_v53  ;;  %v9650_v14 = vrot.slane %v12241_v42, 2  ;;  %v9368_v36 = vrot.slane %v9366_v45, 1 }
 0x34c   : > { %v17439_v3 = vadd.f32 %v13614_v5, %v7464_v50  ;;  %13792 = vmatprep.mubr.msk.bf16.mxu0 %vm672_vm3, %v9346_v51  ;;  %v9957_v50 = vld [vmem:[%s14907_s29 + $0x10] sm:$0xc]  ;;  %v7335_v1 = vpop.f32.mrf.mxu1  ;;  %v9355_v51 = vsel %vm1886_vm6, %v9345_v0, %v9354_v32  ;;  %v18588_v5 = vld [vmem:[#allocation5_spill] sm:$0xff] }
 0x34d   : > { %v7717_v28 = vpop.f32.mrf.mxu0  ;;  %v9651_v18 = vrot.slane %v18588_v5, 2  ;;  %v7466_v9 = vadd.f32 %v7335_v1, %v17176_v4  ;;  %v17460_v7 = vcombine.low %v9957_v50, %v17451_v8  ;;  %v8927_v5 = vsel %vm1133_vm4, %v8924_v63, %v8926_v44 }
 0x34e   : > { %v17446_v60 = vadd.f32 %v7717_v28, %v7462_v25  ;;  %v9371_v25 = vrot.slane %v9369_v20, 2  ;;  %v13581_v31 = vpop.f32.mrf.mxu1  ;;  %v17463_v28 = vld [vmem:[%s14907_s29 + $0x18] sm:$0xff]  }
 0x34f   : > { %v13615_v55 = vpop.f32.mrf.mxu0  ;;  %v7469_v0 = vadd.f32 %v13581_v31, %v17183_v23  ;;  %v9652_v45 = vsel %vm2333_vm5, %v9650_v14, %v9651_v18  ;;  %v10089_v63 = vrot.slane %v17460_v7, 2 }
 0x350   : > { %v17456_v62 = vadd.f32 %v13615_v55, %v7465_v12  ;;  %v7338_v4 = vpop.f32.mrf.mxu1  ;;  %v9372_v50 = vor.u32 %v9371_v25, %v9368_v36  ;;  %v18590_v36 = vld [vmem:[#allocation13_spill] sm:$0xff] }
 0x351   : > { %v7720_v53 = vpop.f32.mrf.mxu0  ;;  %v7467_v20 = vadd.f32 %v7338_v4, %v17193_v26  ;;  %v18589_v26 = vld [vmem:[#allocation15_spill] sm:$0xff]  ;;  %v9655_v25 = vrot.slane %v18590_v36, 2  ;;  %v9659_v36 = vrot.slane %v17199_v11, 2 }
 0x352   : > { %v17466_v42 = vadd.f32 %v7720_v53, %v7463_v17  ;;  %v13584_v1 = vpop.f32.mrf.mxu1  ;;  %13759 = vmatmul.mubr.msk.bf16.gmra.mxu1 %vm672_vm3, %v8927_v5  ;;  %v10090_v17 = vrot.slane %v17463_v28, 2  ;;  %v17489_v5 = vld [vmem:[%s14907_s29 + $0x20] sm:$0xff]  }
 0x353   : > { %v13618_v12 = vpop.f32.mrf.mxu0  ;;  %13793 = vmatmul.mubr.msk.bf16.gmra.mxu0 %vm672_vm3, %v9355_v51  ;;  %v7472_v44 = vadd.f32 %v13584_v1, %v17207_v61  ;;  %13802 = vmatprep.mubr.msk.bf16.mxu1 %vm672_vm3, %v9652_v45 }
 0x354   : > { %v17472_v32 = vadd.f32 %v13618_v12, %v7468_v39  ;;  %13796 = vmatprep.mubr.msk.bf16.mxu0 %vm672_vm3, %v9364_v21  ;;  %v9653_v39 = vrot.slane %v18589_v26, 2  ;;  %v7351_v51 = vpop.f32.mrf.mxu1  ;;  %v9373_v21 = vsel %vm1886_vm6, %v9363_v38, %v9372_v50  ;;  %v17493_v12 = vld [vmem:[%s14907_s29 + $0x28] sm:$0xff]  }
 0x355   : > { %v7733_v23 = vpop.f32.mrf.mxu0  ;;  %v7470_v31 = vadd.f32 %v7351_v51, %v17214_v19 }
 0x356   : > { %v17479_v55 = vadd.f32 %v7733_v23, %v7466_v9  ;;  %v13585_v4 = vpop.f32.mrf.mxu1  ;;  %v10091_v9 = vsel %vm2333_vm5, %v10089_v63, %v10090_v17  ;;  %v9654_v23 = vsel %vm2333_vm5, %v9651_v18, %v9653_v39  ;;  %v9656_v38 = vsel %vm2333_vm5, %v9653_v39, %v9655_v25 }
 0x357   : > { %v13619_v14 = vpop.f32.mrf.mxu0  ;;  %v7473_v45 = vadd.f32 %v13585_v4, %v17225_v48  ;;  %v10092_v63 = vrot.slane %v17489_v5, 2  ;;  %v10094_v18 = vrot.slane %v17493_v12, 2 }
 0x358   : > { %v17485_v53 = vadd.f32 %v13619_v14, %v7469_v0  ;;  %v7354_v26 = vpop.f32.mrf.mxu1 }
 0x359   : > { %v7736_v61 = vpop.f32.mrf.mxu0  ;;  %v7471_v0 = vadd.f32 %v7354_v26, %v17233_v24  ;;  %v9657_v24 = vrot.slane %v17190_v41, 2 }
 0x35a   : > { %v17496_v1 = vadd.f32 %v7736_v61, %v7467_v20  ;;  %v13588_v48 = vpop.f32.mrf.mxu1  ;;  %13803 = vmatmul.mubr.msk.bf16.vlgmr.msra.gmra.mxu1 %vm672_vm3, %v9654_v23  ;;  %v10093_v61 = vsel %vm2333_vm5, %v10090_v17, %v10092_v63  ;;  %v17524_v23 = vld [vmem:[%s14907_s29 + $0x38] sm:$0xff]  }
 0x35b   : > { %v13622_v19 = vpop.f32.mrf.mxu0  ;;  %13797 = vmatmul.mubr.msk.bf16.gmra.mxu0 %vm672_vm3, %v9373_v21  ;;  %v7476_v51 = vadd.f32 %v13588_v48, %v17245_v35  ;;  %13877 = vmatpush3.bf16.msra.mxu1 %v17204_v29  ;;  %v10095_v29 = vsel %vm2333_vm5, %v10092_v63, %v10094_v18  ;;  %v9658_v11 = vsel %vm2333_vm5, %v9655_v25, %v9657_v24  ;;  %v18591_v48 = vld [vmem:[#allocation8_spill] sm:$0xff]  ;;  %v10098_v63 = vrot.slane %v17524_v23, 2 }
 0x35c   : > { %v17502_v50 = vadd.f32 %v13622_v19, %v7472_v44  ;;  %13840 = vmatprep.mubr.msk.bf16.mxu0 %vm672_vm3, %v10091_v9  ;;  %13806 = vmatprep.mubr.msk.bf16.mxu1 %vm672_vm3, %v9656_v38  ;;  %v7367_v44 = vpop.f32.mrf.mxu1  ;;  %v17520_v9 = vld [vmem:[%s14907_s29 + $0x30] sm:$0xff]   ;;  %v9660_v17 = vsel %vm2333_vm5, %v9657_v24, %v9659_v36 }
 0x35d   : > { %v7749_v20 = vpop.f32.mrf.mxu0  ;;  %v7474_v21 = vadd.f32 %v7367_v44, %v17256_v13 }
 0x35e   : > { %v17509_v14 = vadd.f32 %v7749_v20, %v7470_v31  ;;  %v13589_v35 = vpop.f32.mrf.mxu1 }
 0x35f   : > { %v13623_v39 = vpop.f32.mrf.mxu0  ;;  %v7477_v41 = vadd.f32 %v13589_v35, %v17263_v37  ;;  %v10096_v37 = vrot.slane %v17520_v9, 2 }
 0x360   : > { %v17516_v4 = vadd.f32 %v13623_v39, %v7473_v45  ;;  %v7370_v19 = vpop.f32.mrf.mxu1 }
 0x361   : > { %v7752_v31 = vpop.f32.mrf.mxu0  ;;  %v7475_v45 = vadd.f32 %v7370_v19, %v17270_v27  ;;  %v18592_v27 = vld [vmem:[#allocation6_spill] sm:$0xff] }
 0x362   : > { %v17527_v26 = vadd.f32 %v7752_v31, %v7471_v0  ;;  %v13592_v0 = vpop.f32.mrf.mxu1  ;;  %13807 = vmatmul.mubr.msk.bf16.gmra.mxu1 %vm672_vm3, %v9658_v11  ;;  %v10097_v11 = vsel %vm2333_vm5, %v10094_v18, %v10096_v37  ;;  %v17551_v19 = vld [vmem:[%s14907_s29 + $0x40] sm:$0xff]  }
 0x363   : > { %v13626_v13 = vpop.f32.mrf.mxu0  ;;  %13841 = vmatmul.mubr.msk.bf16.vlgmr.msra.gmra.mxu0 %vm672_vm3, %v10093_v61  ;;  %v7480_v20 = vadd.f32 %v13592_v0, %v17281_v47  ;;  %13810 = vmatprep.mubr.msk.bf16.mxu1 %vm672_vm3, %v9660_v17  ;;  %v18593_v61 = vld [vmem:[#allocation10_spill] sm:$0xff] }
 0x364   : > { %v17533_v38 = vadd.f32 %v13626_v13, %v7476_v51  ;;  %13915 = vmatpush3.bf16.msra.mxu0 %v18591_v48  ;;  %13844 = vmatprep.mubr.msk.bf16.mxu0 %vm672_vm3, %v10095_v29  ;;  %v9661_v51 = vrot.slane %v18592_v27, 2  ;;  %v7383_v44 = vpop.f32.mrf.mxu1  ;;  %v9663_v35 = vrot.slane %v18593_v61, 2  ;;  %v17555_v48 = vld [vmem:[%s14907_s29 + $0x48] sm:$0xff]  }
 0x365   : > { %v7765_v25 = vpop.f32.mrf.mxu0  ;;  %v7478_v31 = vadd.f32 %v7383_v44, %v17288_v2 }
 0x366   : > { %v17541_v24 = vadd.f32 %v7765_v25, %v7474_v21  ;;  %v13593_v13 = vpop.f32.mrf.mxu1  ;;  %v10099_v21 = vsel %vm2333_vm5, %v10096_v37, %v10098_v63  ;;  %v9662_v25 = vsel %vm2333_vm5, %v9659_v36, %v9661_v51  ;;  %v9664_v18 = vsel %vm2333_vm5, %v9661_v51, %v9663_v35 }
 0x367   : > { %v13627_v39 = vpop.f32.mrf.mxu0  ;;  %v7481_v17 = vadd.f32 %v13593_v13, %v17294_v6  ;;  %v10100_v37 = vrot.slane %v17551_v19, 2  ;;  %v10102_v36 = vrot.slane %v17555_v48, 2  ;;  %v9667_v13 = vrot.slane %v17276_v15, 2 }
 0x368   : > { %v17547_v29 = vadd.f32 %v13627_v39, %v7477_v41  ;;  %v7386_v27 = vpop.f32.mrf.mxu1 }
 0x369   : > { %v7768_v47 = vpop.f32.mrf.mxu0  ;;  %v7479_v41 = vadd.f32 %v7386_v27, %v17299_v22  ;;  %v18595_v22 = vld [vmem:[#allocation7_spill] sm:$0xff] }
 0x36a   : > { %v17558_v0 = vadd.f32 %v7768_v47, %v7475_v45  ;;  %v13596_v6 = vpop.f32.mrf.mxu1  ;;  %13811 = vmatmul.mubr.msk.bf16.gmra.mxu1 %vm672_vm3, %v9662_v25  ;;  %v18596_v47 = vld [vmem:[#allocation11_spill] sm:$0xff]  ;;  %v10101_v25 = vsel %vm2333_vm5, %v10098_v63, %v10100_v37 }
 0x36b   : > { %v13630_v2 = vpop.f32.mrf.mxu0  ;;  %13845 = vmatmul.mubr.msk.bf16.gmra.mxu0 %vm672_vm3, %v10097_v11  ;;  %v7484_v39 = vadd.f32 %v13596_v6, %v17311_v43  ;;  %13814 = vmatprep.mubr.msk.bf16.mxu1 %vm672_vm3, %v9664_v18  ;;  %v17585_v6 = vld [vmem:[%s14907_s29 + $0x58] sm:$0xff]  }
 0x36c   : > { %v17564_v44 = vadd.f32 %v13630_v2, %v7480_v20  ;;  %13848 = vmatprep.mubr.msk.bf16.mxu0 %vm672_vm3, %v10099_v21  ;;  %v9665_v20 = vrot.slane %v18595_v22, 2  ;;  %v7399_v51 = vpop.f32.mrf.mxu1  ;;  %v17581_v2 = vld [vmem:[%s14907_s29 + $0x50] sm:$0xff]  }
 0x36d   : > { %v7781_v45 = vpop.f32.mrf.mxu0  ;;  %v7482_v21 = vadd.f32 %v7399_v51, %v18596_v47 }
 0x36e   : > { %18594 = vst [vmem:[#allocation21_spill] sm:$0xff] %v17564_v44  ;;  %v17571_v61 = vadd.f32 %v7781_v45, %v7478_v31  ;;  %v13597_v44 = vpop.f32.mrf.mxu1  ;;  %v10103_v31 = vsel %vm2333_vm5, %v10100_v37, %v10102_v36  ;;  %v9666_v15 = vsel %vm2333_vm5, %v9663_v35, %v9665_v20  ;;  %v9668_v63 = vsel %vm2333_vm5, %v9665_v20, %v9667_v13 }
 0x36f   : > { %v13631_v11 = vpop.f32.mrf.mxu0  ;;  %v7485_v18 = vadd.f32 %v13597_v44, %v17327_v58  ;;  %v10104_v37 = vrot.slane %v17581_v2, 2  ;;  %v10106_v35 = vrot.slane %v17585_v6, 2 }
 0x370   : > { %v17577_v27 = vadd.f32 %v13631_v11, %v7481_v17  ;;  %v7402_v22 = vpop.f32.mrf.mxu1 }
 0x371   : > { %v7784_v43 = vpop.f32.mrf.mxu0  ;;  %v7483_v17 = vadd.f32 %v7402_v22, %v17334_v34  ;;  %v18599_v34 = vld [vmem:[#allocation17_spill] sm:$0xff] }
 0x372   : > { %v17588_v45 = vadd.f32 %v7784_v43, %v7479_v41  ;;  %v13600_v58 = vpop.f32.mrf.mxu1  ;;  %13815 = vmatmul.mubr.msk.bf16.gmra.mxu1 %vm672_vm3, %v9666_v15  ;;  %v18600_v43 = vld [vmem:[#allocation14_spill] sm:$0xff]  ;;  %v10105_v15 = vsel %vm2333_vm5, %v10102_v36, %v10104_v37 }
 0x373   : > { %v13634_v51 = vpop.f32.mrf.mxu0  ;;  %13849 = vmatmul.mubr.msk.bf16.gmra.mxu0 %vm672_vm3, %v10101_v25  ;;  %v7488_v44 = vadd.f32 %v13600_v58, %v17345_v56  ;;  %13818 = vmatprep.mubr.msk.bf16.mxu1 %vm672_vm3, %v9668_v63  ;;  %v17615_v58 = vld [vmem:[%s14907_s29 + $0x68] sm:$0xff]  }
 0x374   : > { %18597 = vst [vmem:[#allocation2_spill] sm:$0xff] %v17588_v45  ;;  %v17594_v11 = vadd.f32 %v13634_v51, %v7484_v39  ;;  %13852 = vmatprep.mubr.msk.bf16.mxu0 %vm672_vm3, %v10103_v31  ;;  %v9669_v39 = vrot.slane %v18599_v34, 2  ;;  %v7415_v20 = vpop.f32.mrf.mxu1  ;;  %v9671_v31 = vrot.slane %v18600_v43, 2 }
 0x375   : > { %v7797_v41 = vpop.f32.mrf.mxu0  ;;  %v7486_v22 = vadd.f32 %v7415_v20, %v17352_v46 }
 0x376   : > { %18598 = vst [vmem:[#allocation3_spill] sm:$0xff] %v17594_v11  ;;  %v17601_v47 = vadd.f32 %v7797_v41, %v7482_v21  ;;  %v17611_v11 = vld [vmem:[%s14907_s29 + $0x60] sm:$0xff]   ;;  %v13601_v45 = vpop.f32.mrf.mxu1  ;;  %v10107_v21 = vsel %vm2333_vm5, %v10104_v37, %v10106_v35  ;;  %v9670_v34 = vsel %vm2333_vm5, %v9667_v13, %v9669_v39  ;;  %v9672_v36 = vsel %vm2333_vm5, %v9669_v39, %v9671_v31 }
 0x377   : > { %v13635_v25 = vpop.f32.mrf.mxu0  ;;  %v7489_v63 = vadd.f32 %v13601_v45, %v17358_v30  ;;  %v10108_v37 = vrot.slane %v17611_v11, 2  ;;  %v10110_v13 = vrot.slane %v17615_v58, 2 }
 0x378   : > { %v17607_v51 = vadd.f32 %v13635_v25, %v7485_v18  ;;  %v7418_v43 = vpop.f32.mrf.mxu1 }
 0x379   : > { %v7800_v56 = vpop.f32.mrf.mxu0  ;;  %v7487_v18 = vadd.f32 %v7418_v43, %v17363_v40  ;;  %v18603_v40 = vld [vmem:[#allocation9_spill] sm:$0xff] }
 0x37a   : > { %v17618_v41 = vadd.f32 %v7800_v56, %v7483_v17  ;;  %v13604_v30 = vpop.f32.mrf.mxu1  ;;  %13819 = vmatmul.mubr.msk.bf16.gmra.mxu1 %vm672_vm3, %v9670_v34  ;;  %v9675_v56 = vrot.slane %v17340_v16, 2  ;;  %v10109_v34 = vsel %vm2333_vm5, %v10106_v35, %v10108_v37 }
 0x37b   : > { %v13638_v46 = vpop.f32.mrf.mxu0  ;;  %13853 = vmatmul.mubr.msk.bf16.gmra.mxu0 %vm672_vm3, %v10105_v15  ;;  %v7492_v17 = vadd.f32 %v13604_v30, %v17375_v57  ;;  %13822 = vmatprep.mubr.msk.bf16.mxu1 %vm672_vm3, %v9672_v36  ;;  %v17645_v30 = vld [vmem:[%s14907_s29 + $0x78] sm:$0xff]  }
 0x37c   : > { %18601 = vst [vmem:[#allocation4_spill] sm:$0xff] %v17618_v41  ;;  %v17624_v20 = vadd.f32 %v13638_v46, %v7488_v44  ;;  %13856 = vmatprep.mubr.msk.bf16.mxu0 %vm672_vm3, %v10107_v21  ;;  %v9673_v44 = vrot.slane %v18603_v40, 2  ;;  %v7431_v39 = vpop.f32.mrf.mxu1  ;;  %v18604_v21 = vld [vmem:[#allocation16_spill] sm:$0xff] }
 0x37d   : > { %v7813_v45 = vpop.f32.mrf.mxu0  ;;  %v7490_v43 = vadd.f32 %v7431_v39, %v18604_v21 }
 0x37e   : > { %18602 = vst [vmem:[#allocation5_spill] sm:$0xff] %v17624_v20  ;;  %v17631_v25 = vadd.f32 %v7813_v45, %v7486_v22  ;;  %v17641_v20 = vld [vmem:[%s14907_s29 + $0x70] sm:$0xff]   ;;  %v13605_v41 = vpop.f32.mrf.mxu1  ;;  %v10111_v22 = vsel %vm2333_vm5, %v10108_v37, %v10110_v13  ;;  %v9674_v16 = vsel %vm2333_vm5, %v9671_v31, %v9673_v44  ;;  %v9676_v35 = vsel %vm2333_vm5, %v9673_v44, %v9675_v56 }
 0x37f   : > { %v13639_v15 = vpop.f32.mrf.mxu0  ;;  %v7493_v36 = vadd.f32 %v13605_v41, %v17391_v54  ;;  %v10112_v37 = vrot.slane %v17641_v20, 2  ;;  %v10114_v31 = vrot.slane %v17645_v30, 2 }
 0x380   : > { %v17637_v46 = vadd.f32 %v13639_v15, %v7489_v63  ;;  %v7434_v40 = vpop.f32.mrf.mxu1 }
 0x381   : > { %v7816_v57 = vpop.f32.mrf.mxu0  ;;  %v7491_v63 = vadd.f32 %v7434_v40, %v17398_v59  ;;  %v18609_v59 = vld [vmem:[#allocation18_spill] sm:$0xff]  ;;  %v18611_v40 = vld [vmem:[#allocation20_spill] sm:$0xff] }
 0x382   : > { %18605 = vst [vmem:[#allocation15_spill] sm:$0xff] %v17637_v46  ;;  %v17648_v45 = vadd.f32 %v7816_v57, %v7487_v18  ;;  %v13608_v54 = vpop.f32.mrf.mxu1  ;;  %13823 = vmatmul.mubr.msk.bf16.gmra.mxu1 %vm672_vm3, %v9674_v16  ;;  %v18610_v57 = vld [vmem:[#allocation12_spill] sm:$0xff]  ;;  %v10113_v16 = vsel %vm2333_vm5, %v10110_v13, %v10112_v37 }
 0x383   : > { %v13642_v39 = vpop.f32.mrf.mxu0  ;;  %13857 = vmatmul.mubr.msk.bf16.gmra.mxu0 %vm672_vm3, %v10109_v34  ;;  %v7496_v18 = vadd.f32 %v13608_v54, %v17409_v10  ;;  %13826 = vmatprep.mubr.msk.bf16.mxu1 %vm672_vm3, %v9676_v35  ;;  %v17675_v54 = vld [vmem:[%s14907_s29 + $0x88] sm:$0xff]  }
 0x384   : > { %18606 = vst [vmem:[#allocation13_spill] sm:$0xff] %v17648_v45  ;;  %v17654_v15 = vadd.f32 %v13642_v39, %v7492_v17  ;;  %13860 = vmatprep.mubr.msk.bf16.mxu0 %vm672_vm3, %v10111_v22  ;;  %v9677_v17 = vrot.slane %v18609_v59, 2  ;;  %v7447_v44 = vpop.f32.mrf.mxu1  ;;  %v9679_v22 = vrot.slane %v18610_v57, 2  ;;  %v17671_v45 = vld [vmem:[%s14907_s29 + $0x80] sm:$0xff]   ;;  %18613 = vst [vmem:[#allocation7_spill] sm:$0xff] %v17675_v54 }
 0x385   : > { %v7829_v41 = vpop.f32.mrf.mxu0  ;;  %v7494_v39 = vadd.f32 %v7447_v44, %v18611_v40 }
 0x386   : > { %18607 = vst [vmem:[#allocation8_spill] sm:$0xff] %v17654_v15  ;;  %v17661_v21 = vadd.f32 %v7829_v41, %v7490_v43  ;;  %v13609_v46 = vpop.f32.mrf.mxu1  ;;  %v10115_v43 = vsel %vm2333_vm5, %v10112_v37, %v10114_v31  ;;  %v9678_v59 = vsel %vm2333_vm5, %v9675_v56, %v9677_v17  ;;  %v9680_v13 = vsel %vm2333_vm5, %v9677_v17, %v9679_v22  ;;  %v18618_v17 = vld [vmem:[#allocation19_spill] sm:$0xff] }
 0x387   : > { %v13643_v34 = vpop.f32.mrf.mxu0  ;;  %v7497_v35 = vadd.f32 %v13609_v46, %v17422_v33  ;;  %v10116_v37 = vrot.slane %v17671_v45, 2  ;;  %v10118_v56 = vrot.slane %v17675_v54, 2 }
 0x388   : > { %18608 = vst [vmem:[#allocation6_spill] sm:$0xff] %v17661_v21  ;;  %v17667_v15 = vadd.f32 %v13643_v34, %v7493_v36  ;;  %v7450_v57 = vpop.f32.mrf.mxu1 }
 0x389   : > { %v7832_v10 = vpop.f32.mrf.mxu0  ;;  %v7495_v36 = vadd.f32 %v7450_v57, %v17431_v49  ;;  %v18617_v49 = vld [vmem:[#allocation22_spill] sm:$0xff]  ;;  %v10403_v57 = vshrl.u32 %v17460_v7, 16 }
 0x38a   : > { %18612 = vst [vmem:[#allocation10_spill] sm:$0xff] %v17667_v15  ;;  %v17678_v41 = vadd.f32 %v7832_v10, %v7491_v63  ;;  %v13652_v40 = vpop.f32.mrf.mxu1  ;;  %13827 = vmatmul.mubr.msk.bf16.gmra.mxu1 %vm672_vm3, %v9678_v59  ;;  %v10406_v59 = vshll.u32 %v17460_v7, 16 }
 0x38b   : > { %v13646_v44 = vpop.f32.mrf.mxu0  ;;  %13861 = vmatmul.mubr.msk.bf16.gmra.mxu0 %vm672_vm3, %v10113_v16  ;;  %v8412_v46 = vadd.f32 %v13652_v40, %v17439_v3  ;;  %13830 = vmatprep.mubr.msk.bf16.mxu1 %vm672_vm3, %v9680_v13  ;;  %v9683_v16 = vrot.slane %v18618_v17, 2  ;;  %v10117_v13 = vsel %vm2333_vm5, %v10114_v31, %v10116_v37  ;;  %v17705_v40 = vld [vmem:[%s14907_s29 + $0x90] sm:$0xff]   ;;  %v10119_v17 = vsel %vm2333_vm5, %v10116_v37, %v10118_v56 }
 0x38c   : > { %18614 = vst [vmem:[#allocation11_spill] sm:$0xff] %v17678_v41  ;;  %v17684_v34 = vadd.f32 %v13646_v44, %v7496_v18  ;;  %13864 = vmatprep.mubr.msk.bf16.mxu0 %vm672_vm3, %v10115_v43  ;;  %v9681_v18 = vrot.slane %v18617_v49, 2  ;;  %v8267_v10 = vpop.f32.mrf.mxu1  ;;  %v10411_v44 = vshrl.u32 %v17463_v28, 16  ;;  %v10405_v31 = vrot.slane %v10403_v57, 2 }
 0x38d   : > { %v7845_v33 = vpop.f32.mrf.mxu0  ;;  %v8410_v3 = vadd.f32 %v8267_v10, %v17446_v60 }
 0x38e   : > { %18615 = vst [vmem:[#allocation17_spill] sm:$0xff] %v17684_v34  ;;  %v17691_v63 = vadd.f32 %v7845_v33, %v7494_v39  ;;  %v10414_v34 = vshll.u32 %v17463_v28, 16  ;;  %v13653_v33 = vpop.f32.mrf.mxu1  ;;  %v9682_v15 = vsel %vm2333_vm5, %v9679_v22, %v9681_v18  ;;  %v9684_v60 = vsel %vm2333_vm5, %v9681_v18, %v9683_v16 }
 0x38f   : > { %v13647_v43 = vpop.f32.mrf.mxu0  ;;  %v8413_v7 = vadd.f32 %v13653_v33, %v17456_v62  ;;  %v10120_v62 = vrot.slane %v17705_v40, 2  ;;  %v9685_v18 = vrot.slane %v17427_v52, 2  ;;  %v10429_v52 = vshrl.u32 %v17493_v12, 16 }
 0x390   : > { %18616 = vst [vmem:[#allocation14_spill] sm:$0xff] %v17691_v63  ;;  %v17701_v39 = vadd.f32 %v13647_v43, %v7497_v35  ;;  %v17709_v63 = vld [vmem:[%s14907_s29 + $0x98] sm:$0xff]   ;;  %v8270_v35 = vpop.f32.mrf.mxu1  ;;  %v10408_v43 = vrot.slane %v10406_v59, 3  ;;  %v10416_v21 = vrot.slane %v10414_v34, 3 }
 0x391   : > { %v7848_v49 = vpop.f32.mrf.mxu0  ;;  %v8411_v37 = vadd.f32 %v8270_v35, %v17466_v42  ;;  %v10122_v57 = vrot.slane %v17709_v63, 2  ;;  %v10420_v42 = vshrl.u32 %v17489_v5, 16 }
 0x392   : > { %18619 = vst [vmem:[#allocation9_spill] sm:$0xff] %v17701_v39  ;;  %v17712_v41 = vadd.f32 %v7848_v49, %v7495_v36  ;;  %v10413_v39 = vrot.slane %v10411_v44, 2  ;;  %v13656_v22 = vpop.f32.mrf.mxu1  ;;  %13831 = vmatmul.mubr.msk.bf16.gmra.mxu1 %vm672_vm3, %v9682_v15  ;;  %v10842_v44 = vld [vmem:[%s14907_s29 + $0x10] sm:$0x8]  ;;  %v10409_v15 = vor.u32 %v10408_v43, %v10405_v31 }
 0x393   : > { %v13690_v10 = vpop.f32.mrf.mxu0  ;;  %13865 = vmatmul.mubr.msk.bf16.gmra.mxu0 %vm672_vm3, %v10117_v13  ;;  %v8416_v59 = vadd.f32 %v13656_v22, %v17472_v32  ;;  %13834 = vmatprep.mubr.msk.bf16.mxu1 %vm672_vm3, %v9684_v60  ;;  %v14220_v60 = vld [vmem:[%s14907_s29 + $0xa0] ss:$0 sps:$4 sm:$0x33]   ;;  %v12319_v31 = vcombine.low %v10842_v44, %v17451_v8  ;;  %v10422_v43 = vrot.slane %v10420_v42, 2  ;;  %v10849_v42 = vrot.slane %v17463_v28, 3 }
 0x394   : > { %v17718_v54 = vadd.f32 %v13690_v10, %v8412_v46  ;;  %13868 = vmatprep.mubr.msk.bf16.mxu0 %vm672_vm3, %v10119_v17  ;;  %v10423_v46 = vshll.u32 %v17489_v5, 16  ;;  %v8283_v13 = vpop.f32.mrf.mxu1  ;;  %v10417_v49 = vor.u32 %v10416_v21, %v10413_v39  ;;  %v10432_v17 = vshll.u32 %v17493_v12, 16 }
 0x395   : > { %v8580_v36 = vpop.f32.mrf.mxu0  ;;  %v8414_v35 = vadd.f32 %v8283_v13, %v17479_v55  ;;  %v10431_v13 = vrot.slane %v10429_v52, 2  ;;  %v10124_v8 = vrot.slane %v14220_v60, 2  ;;  %v10441_v44 = vshll.u32 %v17520_v9, 16 }
 0x396   : > { %18620 = vst [vmem:[#allocation16_spill] sm:$0xff] %v17718_v54  ;;  %v17726_v34 = vadd.f32 %v8580_v36, %v8410_v3  ;;  %v10121_v3 = vsel %vm2333_vm5, %v10118_v56, %v10120_v62  ;;  %v13657_v10 = vpop.f32.mrf.mxu1  ;;  %v9686_v36 = vsel %vm2333_vm5, %v9683_v16, %v9685_v18  ;;  %v10425_v54 = vrot.slane %v10423_v46, 3 }
 0x397   : > { %v13691_v33 = vpop.f32.mrf.mxu0  ;;  %v8417_v21 = vadd.f32 %v13657_v10, %v17485_v53  ;;  %v10418_v56 = vsel %vm3086_vm8, %v10409_v15, %v10417_v49  ;;  %v10438_v46 = vshrl.u32 %v17520_v9, 16  ;;  %v10450_v60 = vshll.u32 %v17524_v23, 16 }
 0x398   : > { %18621 = vst [vmem:[#allocation18_spill] sm:$0xff] %v17726_v34  ;;  %v17735_v32 = vadd.f32 %v13691_v33, %v8413_v7  ;;  %v10123_v34 = vsel %vm2333_vm5, %v10120_v62, %v10122_v57  ;;  %v8286_v55 = vpop.f32.mrf.mxu1  ;;  %v10434_v33 = vrot.slane %v10432_v17, 3  ;;  %v10848_v62 = vrot.slane %v12319_v31, 3 }
 0x399   : > { %v8583_v22 = vpop.f32.mrf.mxu0  ;;  %v8415_v16 = vadd.f32 %v8286_v55, %v17496_v1  ;;  %v10426_v1 = vor.u32 %v10425_v54, %v10422_v43  ;;  %v10440_v31 = vrot.slane %v10438_v46, 2  ;;  %v10443_v55 = vrot.slane %v10441_v44, 3 }
 0x39a   : > { %v17743_v39 = vadd.f32 %v8583_v22, %v8411_v37  ;;  %v13660_v53 = vpop.f32.mrf.mxu1  ;;  %13835 = vmatmul.mubr.msk.bf16.gmra.mxu1 %vm672_vm3, %v9686_v36  ;;  %v10435_v17 = vor.u32 %v10434_v33, %v10431_v13  ;;  %v10125_v22 = vsel %vm2333_vm5, %v10122_v57, %v10124_v8  ;;  %v10452_v57 = vrot.slane %v10450_v60, 3 }
 0x39b   : > { %v13694_v7 = vpop.f32.mrf.mxu0  ;;  %13869 = vmatmul.mubr.msk.bf16.gmra.mxu0 %vm672_vm3, %v10121_v3  ;;  %v8420_v15 = vadd.f32 %v13660_v53, %v17502_v50  ;;  %13878 = vmatprep.mubr.msk.bf16.mxu1 %vm672_vm3, %v10418_v56  ;;  %v10447_v3 = vshrl.u32 %v17524_v23, 16  ;;  %v10444_v53 = vor.u32 %v10443_v55, %v10440_v31  ;;  %v10459_v44 = vshll.u32 %v17551_v19, 16 }
 0x39c   : > { %v17748_v18 = vadd.f32 %v13694_v7, %v8416_v59  ;;  %13872 = vmatprep.mubr.msk.bf16.mxu0 %vm672_vm3, %v10123_v34  ;;  %v8299_v59 = vpop.f32.mrf.mxu1  ;;  %v10427_v7 = vsel %vm3086_vm8, %v10417_v49, %v10426_v1 }
 0x39d   : > { %v8596_v37 = vpop.f32.mrf.mxu0  ;;  %v8418_v28 = vadd.f32 %v8299_v59, %v17509_v14  ;;  %v10436_v14 = vsel %vm3086_vm8, %v10426_v1, %v10435_v17  ;;  %v10465_v59 = vshrl.u32 %v17555_v48, 16  ;;  %v10461_v55 = vrot.slane %v10459_v44, 3 }
 0x39e   : > { %v17756_v52 = vadd.f32 %v8596_v37, %v8414_v35  ;;  %v13661_v36 = vpop.f32.mrf.mxu1  ;;  %v10850_v35 = vsel %vm3533_vm7, %v10848_v62, %v10849_v42  ;;  %v10853_v37 = vrot.slane %v17493_v12, 3  ;;  %v10483_v44 = vshrl.u32 %v17585_v6, 16 }
 0x39f   : > { %v13695_v34 = vpop.f32.mrf.mxu0  ;;  %v8421_v54 = vadd.f32 %v13661_v36, %v17516_v4  ;;  %v10851_v4 = vrot.slane %v17489_v5, 3 }
 0x3a0   : > { %v17762_v10 = vadd.f32 %v13695_v34, %v8417_v21  ;;  %v8302_v56 = vpop.f32.mrf.mxu1  ;;  %v10449_v21 = vrot.slane %v10447_v3, 2  ;;  %v10468_v34 = vshll.u32 %v17555_v48, 16 }
 0x3a1   : > { %v8599_v50 = vpop.f32.mrf.mxu0  ;;  %v8419_v33 = vadd.f32 %v8302_v56, %v17527_v26  ;;  %v10456_v26 = vshrl.u32 %v17551_v19, 16  ;;  %v10854_v36 = vsel %vm3533_vm7, %v10851_v4, %v10853_v37 }
 0x3a2   : > { %v17767_v43 = vadd.f32 %v8599_v50, %v8415_v16  ;;  %v13664_v16 = vpop.f32.mrf.mxu1  ;;  %13879 = vmatmul.mubr.msk.bf16.vlgmr.msra.gmra.mxu1 %vm672_vm3, %v10427_v7  ;;  %v10453_v5 = vor.u32 %v10452_v57, %v10449_v21  ;;  %v10857_v57 = vrot.slane %v17524_v23, 3 }
 0x3a3   : > { %v13698_v13 = vpop.f32.mrf.mxu0  ;;  %13873 = vmatmul.mubr.msk.bf16.gmra.mxu0 %vm672_vm3, %v10125_v22  ;;  %v8424_v62 = vadd.f32 %v13664_v16, %v17533_v38  ;;  %13882 = vmatprep.mubr.msk.bf16.mxu1 %vm672_vm3, %v10436_v14  ;;  %v10852_v38 = vsel %vm3533_vm7, %v10849_v42, %v10851_v4  ;;  %v10445_v22 = vsel %vm3086_vm8, %v10435_v17, %v10444_v53  ;;  %v10458_v31 = vrot.slane %v10456_v26, 2  ;;  %v18622_v16 = vld [vmem:[#allocation21_spill] sm:$0xff] }
 0x3a4   : > { %v17773_v8 = vadd.f32 %v13698_v13, %v8420_v15  ;;  %13916 = vmatprep.mubr.msk.bf16.mxu0 %vm672_vm3, %v10850_v35  ;;  %v8315_v15 = vpop.f32.mrf.mxu1  ;;  %v10470_v42 = vrot.slane %v10468_v34, 3  ;;  %v10477_v4 = vshll.u32 %v17581_v2, 16 }
 0x3a5   : > { %v8612_v49 = vpop.f32.mrf.mxu0  ;;  %v8422_v3 = vadd.f32 %v8315_v15, %v17541_v24  ;;  %v10454_v24 = vsel %vm3086_vm8, %v10444_v53, %v10453_v5  ;;  %v10486_v15 = vshll.u32 %v17585_v6, 16 }
 0x3a6   : > { %v17780_v46 = vadd.f32 %v8612_v49, %v8418_v28  ;;  %v13665_v60 = vpop.f32.mrf.mxu1 }
 0x3a7   : > { %v13699_v1 = vpop.f32.mrf.mxu0  ;;  %v8425_v50 = vadd.f32 %v13665_v60, %v17547_v29  ;;  %v10855_v29 = vrot.slane %v17520_v9, 3 }
 0x3a8   : > { %v17788_v12 = vadd.f32 %v13699_v1, %v8421_v54  ;;  %v8318_v7 = vpop.f32.mrf.mxu1  ;;  %v10467_v54 = vrot.slane %v10465_v59, 2 }
 0x3a9   : > { %v8615_v28 = vpop.f32.mrf.mxu0  ;;  %v8423_v13 = vadd.f32 %v8318_v7, %v17558_v0  ;;  %v10462_v0 = vor.u32 %v10461_v55, %v10458_v31  ;;  %v10856_v59 = vsel %vm3533_vm7, %v10853_v37, %v10855_v29  ;;  %v10488_v37 = vrot.slane %v10486_v15, 3 }
 0x3aa   : > { %v17794_v35 = vadd.f32 %v8615_v28, %v8419_v33  ;;  %v13668_v17 = vpop.f32.mrf.mxu1  ;;  %13883 = vmatmul.mubr.msk.bf16.gmra.mxu1 %vm672_vm3, %v10445_v22  ;;  %v10474_v33 = vshrl.u32 %v17581_v2, 16  ;;  %v10471_v9 = vor.u32 %v10470_v42, %v10467_v54  ;;  %v10479_v28 = vrot.slane %v10477_v4, 3 }
 0x3ab   : > { %v13702_v56 = vpop.f32.mrf.mxu0  ;;  %13917 = vmatmul.mubr.msk.bf16.vlgmr.msra.gmra.mxu0 %vm672_vm3, %v10852_v38  ;;  %v8428_v49 = vadd.f32 %v13668_v17, %v18622_v16  ;;  %13886 = vmatprep.mubr.msk.bf16.mxu1 %vm672_vm3, %v10454_v24  ;;  %v10463_v31 = vsel %vm3086_vm8, %v10453_v5, %v10462_v0  ;;  %v18624_v17 = vld [vmem:[#allocation3_spill] sm:$0xff]  ;;  %v10492_v4 = vshrl.u32 %v17611_v11, 16  ;;  %v10495_v16 = vshll.u32 %v17611_v11, 16 }
 0x3ac   : > { %v17799_v14 = vadd.f32 %v13702_v56, %v8424_v62  ;;  %13920 = vmatprep.mubr.msk.bf16.mxu0 %vm672_vm3, %v10854_v36  ;;  %v8331_v62 = vpop.f32.mrf.mxu1  ;;  %v10476_v60 = vrot.slane %v10474_v33, 2  ;;  %v18623_v56 = vld [vmem:[#allocation2_spill] sm:$0xff] }
 0x3ad   : > { %v8628_v21 = vpop.f32.mrf.mxu0  ;;  %v8426_v23 = vadd.f32 %v8331_v62, %v17571_v61  ;;  %v10472_v61 = vsel %vm3086_vm8, %v10462_v0, %v10471_v9  ;;  %v10501_v62 = vshrl.u32 %v17615_v58, 16 }
 0x3ae   : > { %v17808_v53 = vadd.f32 %v8628_v21, %v8422_v3  ;;  %v13669_v34 = vpop.f32.mrf.mxu1  ;;  %v10858_v3 = vsel %vm3533_vm7, %v10855_v29, %v10857_v57  ;;  %v10861_v29 = vrot.slane %v17555_v48, 3 }
 0x3af   : > { %v13703_v26 = vpop.f32.mrf.mxu0  ;;  %v8429_v22 = vadd.f32 %v13669_v34, %v17577_v27  ;;  %v10859_v27 = vrot.slane %v17551_v19, 3 }
 0x3b0   : > { %v17814_v1 = vadd.f32 %v13703_v26, %v8425_v50  ;;  %v8334_v55 = vpop.f32.mrf.mxu1  ;;  %v10485_v50 = vrot.slane %v10483_v44, 2  ;;  %v10504_v26 = vshll.u32 %v17615_v58, 16 }
 0x3b1   : > { %v8631_v38 = vpop.f32.mrf.mxu0  ;;  %v8427_v24 = vadd.f32 %v8334_v55, %v18623_v56  ;;  %v10860_v15 = vsel %vm3533_vm7, %v10857_v57, %v10859_v27 }
 0x3b2   : > { %v17819_v36 = vadd.f32 %v8631_v38, %v8423_v13  ;;  %v13672_v42 = vpop.f32.mrf.mxu1  ;;  %13887 = vmatmul.mubr.msk.bf16.gmra.mxu1 %vm672_vm3, %v10463_v31  ;;  %v10480_v13 = vor.u32 %v10479_v28, %v10476_v60  ;;  %v10489_v19 = vor.u32 %v10488_v37, %v10485_v50  ;;  %v10862_v38 = vsel %vm3533_vm7, %v10859_v27, %v10861_v29 }
 0x3b3   : > { %v13706_v7 = vpop.f32.mrf.mxu0  ;;  %13921 = vmatmul.mubr.msk.bf16.gmra.mxu0 %vm672_vm3, %v10856_v59  ;;  %v8432_v21 = vadd.f32 %v13672_v42, %v18624_v17  ;;  %13890 = vmatprep.mubr.msk.bf16.mxu1 %vm672_vm3, %v10472_v61  ;;  %v10494_v28 = vrot.slane %v10492_v4, 2  ;;  %v10497_v31 = vrot.slane %v10495_v16, 3  ;;  %v10506_v57 = vrot.slane %v10504_v26, 3  ;;  %v18625_v61 = vld [vmem:[#allocation4_spill] sm:$0xff] }
 0x3b4   : > { %v17825_v54 = vadd.f32 %v13706_v7, %v8428_v49  ;;  %13924 = vmatprep.mubr.msk.bf16.mxu0 %vm672_vm3, %v10858_v3  ;;  %v8347_v49 = vpop.f32.mrf.mxu1  ;;  %v10481_v34 = vsel %vm3086_vm8, %v10471_v9, %v10480_v13  ;;  %v10510_v27 = vshrl.u32 %v17641_v20, 16  ;;  %v10513_v42 = vshll.u32 %v17641_v20, 16 }
 0x3b5   : > { %v8644_v5 = vpop.f32.mrf.mxu0  ;;  %v8430_v44 = vadd.f32 %v8347_v49, %v17601_v47  ;;  %v10490_v47 = vsel %vm3086_vm8, %v10480_v13, %v10489_v19  ;;  %v10519_v49 = vshrl.u32 %v17645_v30, 16 }
 0x3b6   : > { %v17832_v33 = vadd.f32 %v8644_v5, %v8426_v23  ;;  %v13673_v23 = vpop.f32.mrf.mxu1  ;;  %v18626_v5 = vld [vmem:[#allocation5_spill] sm:$0xff] }
 0x3b7   : > { %v13707_v0 = vpop.f32.mrf.mxu0  ;;  %v8433_v3 = vadd.f32 %v13673_v23, %v17607_v51  ;;  %v10863_v51 = vrot.slane %v17581_v2, 3 }
 0x3b8   : > { %v17840_v48 = vadd.f32 %v13707_v0, %v8429_v22  ;;  %v8350_v55 = vpop.f32.mrf.mxu1  ;;  %v10503_v22 = vrot.slane %v10501_v62, 2  ;;  %v10522_v0 = vshll.u32 %v17645_v30, 16 }
 0x3b9   : > { %v8647_v59 = vpop.f32.mrf.mxu0  ;;  %v8431_v50 = vadd.f32 %v8350_v55, %v18625_v61  ;;  %v10864_v26 = vsel %vm3533_vm7, %v10861_v29, %v10863_v51 }
 0x3ba   : > { %v17846_v60 = vadd.f32 %v8647_v59, %v8427_v24  ;;  %v13676_v9 = vpop.f32.mrf.mxu1  ;;  %13891 = vmatmul.mubr.msk.bf16.gmra.mxu1 %vm672_vm3, %v10481_v34  ;;  %v10865_v24 = vrot.slane %v17585_v6, 3  ;;  %v10507_v2 = vor.u32 %v10506_v57, %v10503_v22  ;;  %v10512_v59 = vrot.slane %v10510_v27, 2  ;;  %v18628_v22 = vld [vmem:[#allocation13_spill] sm:$0xff]  ;;  %v18629_v27 = vld [vmem:[#allocation8_spill] sm:$0xff] }
 0x3bb   : > { %v13710_v7 = vpop.f32.mrf.mxu0  ;;  %13925 = vmatmul.mubr.msk.bf16.gmra.mxu0 %vm672_vm3, %v10860_v15  ;;  %v8436_v13 = vadd.f32 %v13676_v9, %v18626_v5  ;;  %13894 = vmatprep.mubr.msk.bf16.mxu1 %vm672_vm3, %v10490_v47  ;;  %v10515_v34 = vrot.slane %v10513_v42, 3  ;;  %v10524_v29 = vrot.slane %v10522_v0, 3 }
 0x3bc   : > { %v17851_v37 = vadd.f32 %v13710_v7, %v8432_v21  ;;  %13928 = vmatprep.mubr.msk.bf16.mxu0 %vm672_vm3, %v10862_v38  ;;  %v10498_v21 = vor.u32 %v10497_v31, %v10494_v28  ;;  %v8363_v4 = vpop.f32.mrf.mxu1  ;;  %v18627_v38 = vld [vmem:[#allocation15_spill] sm:$0xff] }
 0x3bd   : > { %v8660_v56 = vpop.f32.mrf.mxu0  ;;  %v8434_v6 = vadd.f32 %v8363_v4, %v17631_v25  ;;  %v10516_v9 = vor.u32 %v10515_v34, %v10512_v59 }
 0x3be   : > { %v17860_v17 = vadd.f32 %v8660_v56, %v8430_v44  ;;  %v13677_v15 = vpop.f32.mrf.mxu1  ;;  %v10866_v44 = vsel %vm3533_vm7, %v10863_v51, %v10865_v24  ;;  %v10499_v55 = vsel %vm3086_vm8, %v10489_v19, %v10498_v21  ;;  %v10508_v25 = vsel %vm3086_vm8, %v10498_v21, %v10507_v2 }
 0x3bf   : > { %v13711_v16 = vpop.f32.mrf.mxu0  ;;  %v8437_v28 = vadd.f32 %v13677_v15, %v18627_v38  ;;  %v10867_v51 = vrot.slane %v17611_v11, 3  ;;  %v10869_v56 = vrot.slane %v17615_v58, 3  ;;  %v10531_v21 = vshll.u32 %v17671_v45, 16  ;;  %v18631_v15 = vld [vmem:[#allocation6_spill] sm:$0xff] }
 0x3c0   : > { %v17866_v62 = vadd.f32 %v13711_v16, %v8433_v3  ;;  %v8366_v7 = vpop.f32.mrf.mxu1  ;;  %v10521_v3 = vrot.slane %v10519_v49, 2  ;;  %v18630_v49 = vld [vmem:[#allocation7_spill] sm:$0xff]  ;;  %v10517_v34 = vsel %vm3086_vm8, %v10507_v2, %v10516_v9  ;;  %v10871_v2 = vrot.slane %v17641_v20, 3 }
 0x3c1   : > { %v8663_v23 = vpop.f32.mrf.mxu0  ;;  %v8435_v57 = vadd.f32 %v8366_v7, %v18628_v22  ;;  %v10537_v0 = vshrl.u32 %v18630_v49, 16  ;;  %v10870_v38 = vsel %vm3533_vm7, %v10867_v51, %v10869_v56 }
 0x3c2   : > { %v17871_v31 = vadd.f32 %v8663_v23, %v8431_v50  ;;  %v13680_v50 = vpop.f32.mrf.mxu1  ;;  %13895 = vmatmul.mubr.msk.bf16.gmra.mxu1 %vm672_vm3, %v10499_v55  ;;  %v10525_v11 = vor.u32 %v10524_v29, %v10521_v3  ;;  %v18632_v55 = vld [vmem:[#allocation10_spill] sm:$0xff]  ;;  %v10533_v3 = vrot.slane %v10531_v21, 3  ;;  %v10546_v21 = vshrl.u32 %v17705_v40, 16 }
 0x3c3   : > { %v13714_v47 = vpop.f32.mrf.mxu0  ;;  %13929 = vmatmul.mubr.msk.bf16.gmra.mxu0 %vm672_vm3, %v10864_v26  ;;  %v8440_v42 = vadd.f32 %v13680_v50, %v18629_v27  ;;  %13898 = vmatprep.mubr.msk.bf16.mxu1 %vm672_vm3, %v10508_v25  ;;  %v10540_v26 = vshll.u32 %v18630_v49, 16  ;;  %v10539_v50 = vrot.slane %v10537_v0, 2 }
 0x3c4   : > { %v17877_v61 = vadd.f32 %v13714_v47, %v8436_v13  ;;  %13932 = vmatprep.mubr.msk.bf16.mxu0 %vm672_vm3, %v10866_v44  ;;  %v10528_v13 = vshrl.u32 %v17671_v45, 16  ;;  %v8379_v4 = vpop.f32.mrf.mxu1 }
 0x3c5   : > { %v8676_v19 = vpop.f32.mrf.mxu0  ;;  %v8438_v23 = vadd.f32 %v8379_v4, %v18631_v15 }
 0x3c6   : > { %v17884_v5 = vadd.f32 %v8676_v19, %v8434_v6  ;;  %v10868_v6 = vsel %vm3533_vm7, %v10865_v24, %v10867_v51  ;;  %v13681_v44 = vpop.f32.mrf.mxu1  ;;  %v10530_v25 = vrot.slane %v10528_v13, 2  ;;  %v10542_v24 = vrot.slane %v10540_v26, 3  ;;  %v18633_v19 = vld [vmem:[#allocation11_spill] sm:$0xff] }
 0x3c7   : > { %v13715_v16 = vpop.f32.mrf.mxu0  ;;  %v8441_v7 = vadd.f32 %v13681_v44, %v18632_v55  ;;  %v10873_v13 = vrot.slane %v17645_v30, 3  ;;  %v10555_v44 = vshrl.u32 %v17709_v63, 16  ;;  %v18635_v30 = vld [vmem:[#allocation14_spill] sm:$0xff]  ;;  %v10872_v55 = vsel %vm3533_vm7, %v10869_v56, %v10871_v2 }
 0x3c8   : > { %v17892_v58 = vadd.f32 %v13715_v16, %v8437_v28  ;;  %v8382_v29 = vpop.f32.mrf.mxu1  ;;  %v10526_v28 = vsel %vm3086_vm8, %v10516_v9, %v10525_v11  ;;  %v10549_v9 = vshll.u32 %v17705_v40, 16  ;;  %v18634_v16 = vld [vmem:[#allocation17_spill] sm:$0xff] }
 0x3c9   : > { %v8679_v59 = vpop.f32.mrf.mxu0  ;;  %v8439_v27 = vadd.f32 %v8382_v29, %v18633_v19 }
 0x3ca   : > { %v17898_v47 = vadd.f32 %v8679_v59, %v8435_v57  ;;  %v13684_v57 = vpop.f32.mrf.mxu1  ;;  %13899 = vmatmul.mubr.msk.bf16.gmra.mxu1 %vm672_vm3, %v10517_v34  ;;  %v10558_v59 = vshll.u32 %v17709_v63, 16 }
 0x3cb   : > { %v13718_v22 = vpop.f32.mrf.mxu0  ;;  %13933 = vmatmul.mubr.msk.bf16.gmra.mxu0 %vm672_vm3, %v10868_v6  ;;  %v8444_v0 = vadd.f32 %v13684_v57, %v18634_v16  ;;  %13902 = vmatprep.mubr.msk.bf16.mxu1 %vm672_vm3, %v10526_v28  ;;  %v10543_v6 = vor.u32 %v10542_v24, %v10539_v50  ;;  %v10548_v28 = vrot.slane %v10546_v21, 2  ;;  %v17927_v24 = vld [vmem:[%s14907_s29 + $0xa0] ss:$0 sps:$4 sm:$0x77]   ;;  %s13959_s29 = smul.u32 288, %s18650_s19 }
 0x3cc   : > { %v17903_v4 = vadd.f32 %v13718_v22, %v8440_v42  ;;  %13936 = vmatprep.mubr.msk.bf16.mxu0 %vm672_vm3, %v10870_v38  ;;  %v10534_v42 = vor.u32 %v10533_v3, %v10530_v25  ;;  %v8395_v15 = vpop.f32.mrf.mxu1  ;;  %v10874_v22 = vsel %vm3533_vm7, %v10871_v2, %v10873_v13  ;;  %v10551_v25 = vrot.slane %v10549_v9, 3  ;;  %v18636_v3 = vld [vmem:[#allocation9_spill] sm:$0xff] }
 0x3cd   : > { %v8692_v51 = vpop.f32.mrf.mxu0  ;;  %v8442_v34 = vadd.f32 %v8395_v15, %v18635_v30  ;;  %v10560_v15 = vrot.slane %v10558_v59, 3  ;;  %v10877_v30 = vrot.slane %v18630_v49, 3  ;;  %s386_s10 = sadd.s32 %s13959_s29, %s13958_s9 }
 0x3ce   : > { %v17912_v26 = vadd.f32 %v8692_v51, %v8438_v23  ;;  %v13685_v29 = vpop.f32.mrf.mxu1  ;;  %v10535_v50 = vsel %vm3086_vm8, %v10525_v11, %v10534_v42  ;;  %v10544_v56 = vsel %vm3086_vm8, %v10534_v42, %v10543_v6  ;;  %s11603_s18 = sshll.u32 %s386_s10, 2 }
 0x3cf   : > { %v13719_v20 = vpop.f32.mrf.mxu0  ;;  %v8445_v19 = vadd.f32 %v13685_v29, %v18636_v3  ;;  %s18199_s14 = scalar_lea.vmem %s18359_s5, %s11603_s18 }
 0x3d0   : > { %v17918_v38 = vadd.f32 %v13719_v20, %v8441_v7  ;;  %v8398_v51 = vpop.f32.mrf.mxu1  ;;  %v10557_v7 = vrot.slane %v10555_v44, 2  ;;  %v10552_v20 = vor.u32 %v10551_v25, %v10548_v28 }
 0x3d1   : > { %v8695_v23 = vpop.f32.mrf.mxu0  ;;  %v8443_v2 = vadd.f32 %v8398_v51, %v17712_v41  ;;  %v10564_v41 = vshrl.u32 %v17927_v24, 16 }
 0x3d2   : > { %v17923_v57 = vadd.f32 %v8695_v23, %v8439_v27  ;;  %v10875_v27 = vrot.slane %v17671_v45, 3  ;;  %v13728_v9 = vpop.f32.mrf.mxu1  ;;  %13903 = vmatmul.mubr.msk.bf16.gmra.mxu1 %vm672_vm3, %v10535_v50  ;;  %v10561_v45 = vor.u32 %v10560_v15, %v10557_v7  ;;  %v18638_v23 = vld [vmem:[#allocation18_spill] sm:$0xff] }
 0x3d3   : > { %v13722_v16 = vpop.f32.mrf.mxu0  ;;  %13937 = vmatmul.mubr.msk.bf16.gmra.mxu0 %vm672_vm3, %v10872_v55  ;;  %v18637_v55 = vld [vmem:[#allocation16_spill] sm:$0xff]  ;;  %13906 = vmatprep.mubr.msk.bf16.mxu1 %vm672_vm3, %v10544_v56  ;;  %v10566_v56 = vrot.slane %v10564_v41, 2 }
 0x3d4   : > { %v17932_v21 = vadd.f32 %v13722_v16, %v8444_v0  ;;  %13940 = vmatprep.mubr.msk.bf16.mxu0 %vm672_vm3, %v10874_v22  ;;  %v9164_v29 = vadd.f32 %v13728_v9, %v18637_v55  ;;  %v10567_v0 = vshll.u32 %v17927_v24, 16  ;;  %v9019_v44 = vpop.f32.mrf.mxu1  ;;  %v10876_v28 = vsel %vm3533_vm7, %v10873_v13, %v10875_v27 }
 0x3d5   : > { %v8708_v11 = vpop.f32.mrf.mxu0  ;;  %v9162_v22 = vadd.f32 %v9019_v44, %v18638_v23  ;;  %v10878_v50 = vsel %vm3533_vm7, %v10875_v27, %v10877_v30 }
 0x3d6   : > { %v17939_v42 = vadd.f32 %v8708_v11, %v8442_v34  ;;  %v13729_v49 = vpop.f32.mrf.mxu1  ;;  %v10553_v34 = vsel %vm3086_vm8, %v10543_v6, %v10552_v20  ;;  %v10569_v9 = vrot.slane %v10567_v0, 3  ;;  %v10879_v6 = vrot.slane %v17705_v40, 3 }
 0x3d7   : > { %v13723_v59 = vpop.f32.mrf.mxu0  ;;  %v9165_v51 = vadd.f32 %v13729_v49, %v17735_v32 }
 0x3d8   : > { %v17945_v3 = vadd.f32 %v13723_v59, %v8445_v19  ;;  %v9022_v11 = vpop.f32.mrf.mxu1  ;;  %v10562_v19 = vsel %vm3086_vm8, %v10552_v20, %v10561_v45  ;;  %v10570_v20 = vor.u32 %v10569_v9, %v10566_v56  ;;  %v10880_v40 = vsel %vm3533_vm7, %v10877_v30, %v10879_v6 }
 0x3d9   : > { %v8711_v25 = vpop.f32.mrf.mxu0  ;;  %v9163_v13 = vadd.f32 %v9022_v11, %v17743_v39  ;;  %v10883_v30 = vrot.slane %v17927_v24, 3 }
 0x3da   : > { %v17951_v16 = vadd.f32 %v8711_v25, %v8443_v2  ;;  %v13732_v27 = vpop.f32.mrf.mxu1  ;;  %13907 = vmatmul.mubr.msk.bf16.gmra.mxu1 %vm672_vm3, %v10553_v34  ;;  %v10881_v2 = vrot.slane %v17709_v63, 3 }
 0x3db   : > { %v13766_v7 = vpop.f32.mrf.mxu0  ;;  %13941 = vmatmul.mubr.msk.bf16.gmra.mxu0 %vm672_vm3, %v10876_v28  ;;  %v9168_v55 = vadd.f32 %v13732_v27, %v17748_v18  ;;  %13910 = vmatprep.mubr.msk.bf16.mxu1 %vm672_vm3, %v10562_v19 }
 0x3dc   : > { %v17956_v15 = vadd.f32 %v13766_v7, %v9164_v29  ;;  %13944 = vmatprep.mubr.msk.bf16.mxu0 %vm672_vm3, %v10878_v50  ;;  %v9035_v39 = vpop.f32.mrf.mxu1  ;;  %v10882_v28 = vsel %vm3533_vm7, %v10879_v6, %v10881_v2 }
 0x3dd   : > { %v9465_v32 = vpop.f32.mrf.mxu0  ;;  %v9166_v0 = vadd.f32 %v9035_v39, %v17756_v52 }
 0x3de   : > { %v17963_v41 = vadd.f32 %v9465_v32, %v9162_v22  ;;  %v13733_v59 = vpop.f32.mrf.mxu1  ;;  %v10571_v22 = vsel %vm3086_vm8, %v10561_v45, %v10570_v20 }
 0x3df   : > { %v13767_v29 = vpop.f32.mrf.mxu0  ;;  %v9169_v63 = vadd.f32 %v13733_v59, %v17762_v10 }
 0x3e0   : > { %v17967_v44 = vadd.f32 %v13767_v29, %v9165_v51  ;;  %v9038_v49 = vpop.f32.mrf.mxu1 }
 0x3e1   : > { %v9468_v23 = vpop.f32.mrf.mxu0  ;;  %v9167_v52 = vadd.f32 %v9038_v49, %v17767_v43  ;;  %v10884_v43 = vsel %vm3533_vm7, %v10881_v2, %v10883_v30 }
 0x3e2   : > { %v17972_v18 = vadd.f32 %v9468_v23, %v9163_v13  ;;  %v13736_v50 = vpop.f32.mrf.mxu1  ;;  %13911 = vmatmul.mubr.msk.bf16.gmra.mxu1 %vm672_vm3, %v10571_v22 }
 0x3e3   : > { %v13770_v25 = vpop.f32.mrf.mxu0  ;;  %13945 = vmatmul.mubr.msk.bf16.gmra.mxu0 %vm672_vm3, %v10880_v40  ;;  %v9172_v51 = vadd.f32 %v13736_v50, %v17773_v8 }
 0x3e4   : > { %v17977_v34 = vadd.f32 %v13770_v25, %v9168_v55  ;;  %13948 = vmatprep.mubr.msk.bf16.mxu0 %vm672_vm3, %v10882_v28  ;;  %v9051_v45 = vpop.f32.mrf.mxu1 }
 0x3e5   : > { %v9481_v10 = vpop.f32.mrf.mxu0  ;;  %v9170_v11 = vadd.f32 %v9051_v45, %v17780_v46 }
 0x3e6   : > { %v17983_v56 = vadd.f32 %v9481_v10, %v9166_v0  ;;  %v13737_v19 = vpop.f32.mrf.mxu1 }
 0x3e7   : > { %v13771_v9 = vpop.f32.mrf.mxu0  ;;  %v9173_v24 = vadd.f32 %v13737_v19, %v17788_v12 }
 0x3e8   : > { %v17986_v7 = vadd.f32 %v13771_v9, %v9169_v63  ;;  %v9054_v27 = vpop.f32.mrf.mxu1 }
 0x3e9   : > { %v9484_v13 = vpop.f32.mrf.mxu0  ;;  %v9171_v8 = vadd.f32 %v9054_v27, %v17794_v35 }
 0x3ea   : > { %v17990_v6 = vadd.f32 %v9484_v13, %v9167_v52  ;;  %v13740_v20 = vpop.f32.mrf.mxu1 }
 0x3eb   : > { %v13774_v32 = vpop.f32.mrf.mxu0  ;;  %13949 = vmatmul.mubr.msk.bf16.gmra.mxu0 %vm672_vm3, %v10884_v43  ;;  %v9176_v39 = vadd.f32 %v13740_v20, %v17799_v14 }
 0x3ec   : > { %v17994_v55 = vadd.f32 %v13774_v32, %v9172_v51  ;;  %v9067_v2 = vpop.f32.mrf.mxu1 }
 0x3ed   : > { %v9497_v46 = vpop.f32.mrf.mxu0  ;;  %v9174_v12 = vadd.f32 %v9067_v2, %v17808_v53 }
 0x3ee   : > { %v17997_v29 = vadd.f32 %v9497_v46, %v9170_v11  ;;  %v13741_v59 = vpop.f32.mrf.mxu1 }
 0x3ef   : > { %v13775_v0 = vpop.f32.mrf.mxu0  ;;  %v9177_v28 = vadd.f32 %v13741_v59, %v17814_v1 }
 0x3f0   : > { %v18000_v40 = vadd.f32 %v13775_v0, %v9173_v24  ;;  %v9070_v35 = vpop.f32.mrf.mxu1 }
 0x3f1   : > { %v9500_v23 = vpop.f32.mrf.mxu0  ;;  %v9175_v49 = vadd.f32 %v9070_v35, %v17819_v36 }
 0x3f2   : > { %v18003_v63 = vadd.f32 %v9500_v23, %v9171_v8  ;;  %v13744_v14 = vpop.f32.mrf.mxu1 }
 0x3f3   : > { %v13778_v22 = vpop.f32.mrf.mxu0  ;;  %v9180_v30 = vadd.f32 %v13744_v14, %v17825_v54 }
 0x3f4   : > { %v18006_v25 = vadd.f32 %v13778_v22, %v9176_v39  ;;  %v9083_v53 = vpop.f32.mrf.mxu1 }
 0x3f5   : > { %v9513_v52 = vpop.f32.mrf.mxu0  ;;  %v9178_v51 = vadd.f32 %v9083_v53, %v17832_v33 }
 0x3f6   : > { %v18009_v50 = vadd.f32 %v9513_v52, %v9174_v12  ;;  %v13745_v1 = vpop.f32.mrf.mxu1 }
 0x3f7   : > { %v13779_v10 = vpop.f32.mrf.mxu0  ;;  %v9181_v11 = vadd.f32 %v13745_v1, %v17840_v48 }
 0x3f8   : > { %v18012_v45 = vadd.f32 %v13779_v10, %v9177_v28  ;;  %v9086_v36 = vpop.f32.mrf.mxu1 }
 0x3f9   : > { %v9516_v9 = vpop.f32.mrf.mxu0  ;;  %v9179_v13 = vadd.f32 %v9086_v36, %v17846_v60 }
 0x3fa   : > { %v18015_v43 = vadd.f32 %v9516_v9, %v9175_v49  ;;  %v13748_v54 = vpop.f32.mrf.mxu1 }
 0x3fb   : > { %v13782_v19 = vpop.f32.mrf.mxu0  ;;  %v9184_v32 = vadd.f32 %v13748_v54, %v17851_v37 }
 0x3fc   : > { %v18018_v24 = vadd.f32 %v13782_v19, %v9180_v30  ;;  %v9099_v33 = vpop.f32.mrf.mxu1 }
 0x3fd   : > { %v9529_v27 = vpop.f32.mrf.mxu0  ;;  %v9182_v46 = vadd.f32 %v9099_v33, %v17860_v17 }
 0x3fe   : > { %v18021_v8 = vadd.f32 %v9529_v27, %v9178_v51  ;;  %v13749_v48 = vpop.f32.mrf.mxu1 }
 0x3ff   : > { %v13783_v20 = vpop.f32.mrf.mxu0  ;;  %v9185_v0 = vadd.f32 %v13749_v48, %v17866_v62 }
 0x400   : > { %v18024_v39 = vadd.f32 %v13783_v20, %v9181_v11  ;;  %v9102_v60 = vpop.f32.mrf.mxu1 }
 0x401   : > { %v9532_v2 = vpop.f32.mrf.mxu0  ;;  %v9183_v23 = vadd.f32 %v9102_v60, %v17871_v31 }
 0x402   : > { %v18027_v12 = vadd.f32 %v9532_v2, %v9179_v13  ;;  %v13752_v37 = vpop.f32.mrf.mxu1 }
 0x403   : > { %v13786_v59 = vpop.f32.mrf.mxu0  ;;  %v9188_v22 = vadd.f32 %v13752_v37, %v17877_v61 }
 0x404   : > { %v18030_v28 = vadd.f32 %v13786_v59, %v9184_v32  ;;  %v9115_v17 = vpop.f32.mrf.mxu1 }
 0x405   : > { %v9545_v35 = vpop.f32.mrf.mxu0  ;;  %v9186_v52 = vadd.f32 %v9115_v17, %v17884_v5 }
 0x406   : > { %v18033_v49 = vadd.f32 %v9545_v35, %v9182_v46  ;;  %v13753_v62 = vpop.f32.mrf.mxu1 }
 0x407   : > { %v13787_v14 = vpop.f32.mrf.mxu0  ;;  %v9189_v10 = vadd.f32 %v13753_v62, %v17892_v58 }
 0x408   : > { %v18036_v30 = vadd.f32 %v13787_v14, %v9185_v0  ;;  %v9118_v31 = vpop.f32.mrf.mxu1 }
 0x409   : > { %v9548_v53 = vpop.f32.mrf.mxu0  ;;  %v9187_v9 = vadd.f32 %v9118_v31, %v17898_v47 }
 0x40a   : > { %v18039_v51 = vadd.f32 %v9548_v53, %v9183_v23  ;;  %v13756_v61 = vpop.f32.mrf.mxu1 }
 0x40b   : > { %v13790_v1 = vpop.f32.mrf.mxu0  ;;  %v9192_v19 = vadd.f32 %v13756_v61, %v17903_v4 }
 0x40c   : > { %v18042_v11 = vadd.f32 %v13790_v1, %v9188_v22  ;;  %v9131_v5 = vpop.f32.mrf.mxu1 }
 0x40d   : > { %v9561_v36 = vpop.f32.mrf.mxu0  ;;  %v9190_v27 = vadd.f32 %v9131_v5, %v17912_v26 }
 0x40e   : > { %v18045_v13 = vadd.f32 %v9561_v36, %v9186_v52  ;;  %v13757_v58 = vpop.f32.mrf.mxu1 }
 0x40f   : > { %v13791_v54 = vpop.f32.mrf.mxu0  ;;  %v9193_v20 = vadd.f32 %v13757_v58, %v17918_v38 }
 0x410   : > { %v18048_v32 = vadd.f32 %v13791_v54, %v9189_v10  ;;  %v9134_v47 = vpop.f32.mrf.mxu1 }
 0x411   : > { %v9564_v33 = vpop.f32.mrf.mxu0  ;;  %v9191_v2 = vadd.f32 %v9134_v47, %v17923_v57 }
 0x412   : > { %v18051_v46 = vadd.f32 %v9564_v33, %v9187_v9  ;;  %v13760_v4 = vpop.f32.mrf.mxu1 }
 0x413   : > { %v13794_v48 = vpop.f32.mrf.mxu0  ;;  %v9196_v59 = vadd.f32 %v13760_v4, %v17932_v21 }
 0x414   : > { %v18054_v0 = vadd.f32 %v13794_v48, %v9192_v19  ;;  %v9147_v26 = vpop.f32.mrf.mxu1 }
 0x415   : > { %v9577_v60 = vpop.f32.mrf.mxu0  ;;  %v9194_v35 = vadd.f32 %v9147_v26, %v17939_v42 }
 0x416   : > { %v18057_v23 = vadd.f32 %v9577_v60, %v9190_v27  ;;  %v13761_v38 = vpop.f32.mrf.mxu1 }
 0x417   : > { %v13795_v37 = vpop.f32.mrf.mxu0  ;;  %v9197_v14 = vadd.f32 %v13761_v38, %v17945_v3 }
 0x418   : > { %v18060_v22 = vadd.f32 %v13795_v37, %v9193_v20  ;;  %v9150_v57 = vpop.f32.mrf.mxu1 }
 0x419   : > { %v9580_v17 = vpop.f32.mrf.mxu0  ;;  %v9195_v53 = vadd.f32 %v9150_v57, %v17951_v16 }
 0x41a   : > { %v18063_v52 = vadd.f32 %v9580_v17, %v9191_v2  ;;  %v13804_v21 = vpop.f32.mrf.mxu1 }
 0x41b   : > { %v13798_v62 = vpop.f32.mrf.mxu0  ;;  %v9923_v1 = vadd.f32 %v13804_v21, %v17956_v15 }
 0x41c   : > { %v18066_v10 = vadd.f32 %v13798_v62, %v9196_v59  ;;  %v9778_v42 = vpop.f32.mrf.mxu1 }
 0x41d   : > { %v9593_v31 = vpop.f32.mrf.mxu0  ;;  %v9921_v36 = vadd.f32 %v9778_v42, %v17963_v41 }
 0x41e   : > { %v18069_v9 = vadd.f32 %v9593_v31, %v9194_v35  ;;  %v13805_v3 = vpop.f32.mrf.mxu1 }
 0x41f   : > { %v13799_v61 = vpop.f32.mrf.mxu0  ;;  %v9924_v54 = vadd.f32 %v13805_v3, %v17967_v44 }
 0x420   : > { %v18072_v19 = vadd.f32 %v13799_v61, %v9197_v14  ;;  %v9781_v16 = vpop.f32.mrf.mxu1 }
 0x421   : > { %v9596_v5 = vpop.f32.mrf.mxu0  ;;  %v9922_v33 = vadd.f32 %v9781_v16, %v17972_v18 }
 0x422   : > { %v18075_v27 = vadd.f32 %v9596_v5, %v9195_v53  ;;  %v13808_v15 = vpop.f32.mrf.mxu1 }
 0x423   : > { %v13842_v58 = vpop.f32.mrf.mxu0  ;;  %v9927_v48 = vadd.f32 %v13808_v15, %v17977_v34 }
 0x424   : > { %v18078_v20 = vadd.f32 %v13842_v58, %v9923_v1  ;;  %v9794_v41 = vpop.f32.mrf.mxu1 }
 0x425   : > { %v10217_v47 = vpop.f32.mrf.mxu0  ;;  %v9925_v60 = vadd.f32 %v9794_v41, %v17983_v56 }
 0x426   : > { %v18081_v2 = vadd.f32 %v10217_v47, %v9921_v36  ;;  %v13809_v44 = vpop.f32.mrf.mxu1 }
 0x427   : > { %v13843_v4 = vpop.f32.mrf.mxu0  ;;  %v9928_v37 = vadd.f32 %v13809_v44, %v17986_v7 }
 0x428   : > { %v18084_v59 = vadd.f32 %v13843_v4, %v9924_v54  ;;  %v9797_v18 = vpop.f32.mrf.mxu1 }
 0x429   : > { %v10220_v26 = vpop.f32.mrf.mxu0  ;;  %v9926_v17 = vadd.f32 %v9797_v18, %v17990_v6 }
 0x42a   : > { %v18087_v35 = vadd.f32 %v10220_v26, %v9922_v33  ;;  %v13812_v34 = vpop.f32.mrf.mxu1 }
 0x42b   : > { %v13846_v38 = vpop.f32.mrf.mxu0  ;;  %v9931_v62 = vadd.f32 %v13812_v34, %v17994_v55 }
 0x42c   : > { %v18090_v14 = vadd.f32 %v13846_v38, %v9927_v48  ;;  %v9810_v56 = vpop.f32.mrf.mxu1 }
 0x42d   : > { %v10233_v57 = vpop.f32.mrf.mxu0  ;;  %v9929_v31 = vadd.f32 %v9810_v56, %v17997_v29 }
 0x42e   : > { %v18093_v53 = vadd.f32 %v10233_v57, %v9925_v60  ;;  %v13813_v7 = vpop.f32.mrf.mxu1 }
 0x42f   : > { %v13847_v21 = vpop.f32.mrf.mxu0  ;;  %v9932_v61 = vadd.f32 %v13813_v7, %v18000_v40 }
 0x430   : > { %v18096_v1 = vadd.f32 %v13847_v21, %v9928_v37  ;;  %v9813_v6 = vpop.f32.mrf.mxu1 }
 0x431   : > { %v10236_v42 = vpop.f32.mrf.mxu0  ;;  %v9930_v5 = vadd.f32 %v9813_v6, %v18003_v63 }
 0x432   : > { %v18099_v36 = vadd.f32 %v10236_v42, %v9926_v17  ;;  %v13816_v55 = vpop.f32.mrf.mxu1 }
 0x433   : > { %v13850_v3 = vpop.f32.mrf.mxu0  ;;  %v9935_v58 = vadd.f32 %v13816_v55, %v18006_v25 }
 0x434   : > { %v18102_v54 = vadd.f32 %v13850_v3, %v9931_v62  ;;  %v9826_v29 = vpop.f32.mrf.mxu1 }
 0x435   : > { %v10249_v16 = vpop.f32.mrf.mxu0  ;;  %v9933_v47 = vadd.f32 %v9826_v29, %v18009_v50 }
 0x436   : > { %v18105_v33 = vadd.f32 %v10249_v16, %v9929_v31  ;;  %v13817_v40 = vpop.f32.mrf.mxu1 }
 0x437   : > { %v13851_v15 = vpop.f32.mrf.mxu0  ;;  %v9936_v4 = vadd.f32 %v13817_v40, %v18012_v45 }
 0x438   : > { %v18108_v48 = vadd.f32 %v13851_v15, %v9932_v61  ;;  %v9829_v63 = vpop.f32.mrf.mxu1 }
 0x439   : > { %v10252_v41 = vpop.f32.mrf.mxu0  ;;  %v9934_v26 = vadd.f32 %v9829_v63, %v18015_v43 }
 0x43a   : > { %v18111_v60 = vadd.f32 %v10252_v41, %v9930_v5  ;;  %v13820_v25 = vpop.f32.mrf.mxu1 }
 0x43b   : > { %v13854_v44 = vpop.f32.mrf.mxu0  ;;  %v9939_v38 = vadd.f32 %v13820_v25, %v18018_v24 }
 0x43c   : > { %v18114_v37 = vadd.f32 %v13854_v44, %v9935_v58  ;;  %v9842_v50 = vpop.f32.mrf.mxu1 }
 0x43d   : > { %v10265_v18 = vpop.f32.mrf.mxu0  ;;  %v9937_v57 = vadd.f32 %v9842_v50, %v18021_v8 }
 0x43e   : > { %v18117_v17 = vadd.f32 %v10265_v18, %v9933_v47  ;;  %v13821_v45 = vpop.f32.mrf.mxu1 }
 0x43f   : > { %v13855_v34 = vpop.f32.mrf.mxu0  ;;  %v9940_v21 = vadd.f32 %v13821_v45, %v18024_v39 }
 0x440   : > { %v18120_v62 = vadd.f32 %v13855_v34, %v9936_v4  ;;  %v9845_v43 = vpop.f32.mrf.mxu1 }
 0x441   : > { %v10268_v56 = vpop.f32.mrf.mxu0  ;;  %v9938_v42 = vadd.f32 %v9845_v43, %v18027_v12 }
 0x442   : > { %v18123_v31 = vadd.f32 %v10268_v56, %v9934_v26  ;;  %v13824_v24 = vpop.f32.mrf.mxu1 }
 0x443   : > { %v13858_v7 = vpop.f32.mrf.mxu0  ;;  %v9943_v3 = vadd.f32 %v13824_v24, %v18030_v28 }
 0x444   : > { %v18126_v61 = vadd.f32 %v13858_v7, %v9939_v38  ;;  %v9858_v8 = vpop.f32.mrf.mxu1 }
 0x445   : > { %v10281_v6 = vpop.f32.mrf.mxu0  ;;  %v9941_v16 = vadd.f32 %v9858_v8, %v18033_v49 }
 0x446   : > { %v18129_v5 = vadd.f32 %v10281_v6, %v9937_v57  ;;  %v13825_v39 = vpop.f32.mrf.mxu1 }
 0x447   : > { %v13859_v55 = vpop.f32.mrf.mxu0  ;;  %v9944_v15 = vadd.f32 %v13825_v39, %v18036_v30 }
 0x448   : > { %v18132_v58 = vadd.f32 %v13859_v55, %v9940_v21  ;;  %v9861_v12 = vpop.f32.mrf.mxu1 }
 0x449   : > { %v10284_v29 = vpop.f32.mrf.mxu0  ;;  %v9942_v41 = vadd.f32 %v9861_v12, %v18039_v51 }
 0x44a   : > { %v18135_v47 = vadd.f32 %v10284_v29, %v9938_v42  ;;  %v13828_v28 = vpop.f32.mrf.mxu1 }
 0x44b   : > { %v13862_v40 = vpop.f32.mrf.mxu0  ;;  %v9947_v44 = vadd.f32 %v13828_v28, %v18042_v11 }
 0x44c   : > { %v18138_v4 = vadd.f32 %v13862_v40, %v9943_v3  ;;  %v9874_v49 = vpop.f32.mrf.mxu1 }
 0x44d   : > { %v10297_v63 = vpop.f32.mrf.mxu0  ;;  %v9945_v18 = vadd.f32 %v9874_v49, %v18045_v13 }
 0x44e   : > { %v18141_v26 = vadd.f32 %v10297_v63, %v9941_v16  ;;  %v13829_v30 = vpop.f32.mrf.mxu1 }
 0x44f   : > { %v13863_v25 = vpop.f32.mrf.mxu0  ;;  %v9948_v34 = vadd.f32 %v13829_v30, %v18048_v32 }
 0x450   : > { %v18144_v38 = vadd.f32 %v13863_v25, %v9944_v15  ;;  %v9877_v51 = vpop.f32.mrf.mxu1 }
 0x451   : > { %v10300_v50 = vpop.f32.mrf.mxu0  ;;  %v9946_v56 = vadd.f32 %v9877_v51, %v18051_v46 }
 0x452   : > { %v18147_v57 = vadd.f32 %v10300_v50, %v9942_v41  ;;  %v13832_v11 = vpop.f32.mrf.mxu1 }
 0x453   : > { %v13866_v45 = vpop.f32.mrf.mxu0  ;;  %v9951_v7 = vadd.f32 %v13832_v11, %v18054_v0 }
 0x454   : > { %v18150_v21 = vadd.f32 %v13866_v45, %v9947_v44  ;;  %v9890_v13 = vpop.f32.mrf.mxu1 }
 0x455   : > { %v10313_v43 = vpop.f32.mrf.mxu0  ;;  %v9949_v6 = vadd.f32 %v9890_v13, %v18057_v23 }
 0x456   : > { %v18153_v42 = vadd.f32 %v10313_v43, %v9945_v18  ;;  %v13833_v3 = vpop.f32.mrf.mxu1 }
 0x457   : > { %v13867_v24 = vpop.f32.mrf.mxu0  ;;  %v9952_v55 = vadd.f32 %v13833_v3, %v18060_v22 }
 0x458   : > { %v18156_v32 = vadd.f32 %v13867_v24, %v9948_v34  ;;  %v9893_v16 = vpop.f32.mrf.mxu1 }
 0x459   : > { %v10316_v8 = vpop.f32.mrf.mxu0  ;;  %v9950_v29 = vadd.f32 %v9893_v16, %v18063_v52 }
 0x45a   : > { %v18159_v46 = vadd.f32 %v10316_v8, %v9946_v56  ;;  %v13836_v15 = vpop.f32.mrf.mxu1 }
 0x45b   : > { %v13870_v39 = vpop.f32.mrf.mxu0  ;;  %v9955_v23 = vadd.f32 %v13836_v15, %v18066_v10 }
 0x45c   : > { %v18162_v0 = vadd.f32 %v13870_v39, %v9951_v7  ;;  %v9906_v41 = vpop.f32.mrf.mxu1 }
 0x45d   : > { %v10329_v12 = vpop.f32.mrf.mxu0  ;;  %v9953_v22 = vadd.f32 %v9906_v41, %v18069_v9 }
 0x45e   : > { %v18165_v40 = vadd.f32 %v10329_v12, %v9949_v6  ;;  %v13837_v44 = vpop.f32.mrf.mxu1  ;;  %v18189_v6 = vld [vmem:[%s18358_s4] ss:$0 sm:$0xff] }
 0x45f   : > { %v13871_v28 = vpop.f32.mrf.mxu0  ;;  %v9956_v52 = vadd.f32 %v13837_v44, %v18072_v19 }
 0x460   : > { %v18169_v63 = vadd.f32 %v13871_v28, %v9952_v55  ;;  %v9909_v18 = vpop.f32.mrf.mxu1 }
 0x461   : > { %v10332_v49 = vpop.f32.mrf.mxu0  ;;  %v9954_v10 = vadd.f32 %v9909_v18, %v18075_v27 }
 0x462   : > { %v18172_v25 = vadd.f32 %v10332_v49, %v9950_v29  ;;  %v13880_v34 = vpop.f32.mrf.mxu1 }
 0x463   : > { %v13874_v30 = vpop.f32.mrf.mxu0  ;;  %v10808_v7 = vadd.f32 %v13880_v34, %v18078_v20 }
 0x464   : > { %v18176_v50 = vadd.f32 %v13874_v30, %v9955_v23  ;;  %v10663_v9 = vpop.f32.mrf.mxu1 }
 0x465   : > { %v10345_v51 = vpop.f32.mrf.mxu0  ;;  %v10806_v3 = vadd.f32 %v10663_v9, %v18081_v2 }
 0x466   : > { %v18178_v45 = vadd.f32 %v10345_v51, %v9953_v22  ;;  %v13881_v19 = vpop.f32.mrf.mxu1 }
 0x467   : > { %v13875_v56 = vpop.f32.mrf.mxu0  ;;  %v10809_v39 = vadd.f32 %v13881_v19, %v18084_v59 }
 0x468   : > { %v18181_v11 = vadd.f32 %v13875_v56, %v9956_v52  ;;  %v10666_v24 = vpop.f32.mrf.mxu1 }
 0x469   : > { %v10348_v43 = vpop.f32.mrf.mxu0  ;;  %v10807_v22 = vadd.f32 %v10666_v24, %v18087_v35 }
 0x46a   : > { %v18184_v13 = vadd.f32 %v10348_v43, %v9954_v10  ;;  %v13884_v55 = vpop.f32.mrf.mxu1 }
 0x46b   : > { %v13918_v27 = vpop.f32.mrf.mxu0  ;;  %v10812_v44 = vadd.f32 %v13884_v55, %v18090_v14 }
 0x46c   : > { %v11121_v8 = vadd.f32 %v13918_v27, %v10808_v7  ;;  %v10679_v15 = vpop.f32.mrf.mxu1 }
 0x46d   : > { %v10976_v16 = vpop.f32.mrf.mxu0  ;;  %v10810_v35 = vadd.f32 %v10679_v15, %v18093_v53 }
 0x46e   : > { %v11164_v20 = vadd.f32 %v18189_v6, %v11121_v8  ;;  %v11119_v29 = vadd.f32 %v10976_v16, %v10806_v3  ;;  %v13885_v2 = vpop.f32.mrf.mxu1 }
 0x46f   : > { %v13919_v12 = vpop.f32.mrf.mxu0  ;;  %v10813_v14 = vadd.f32 %v13885_v2, %v18096_v1 }
 0x470   : > { %v11200_v23 = vmax.f32 %v11164_v20, 0.0  ;;  %v11162_v41 = vadd.f32 %v18189_v6, %v11119_v29  ;;  %v11122_v28 = vadd.f32 %v13919_v12, %v10809_v39  ;;  %v10682_v30 = vpop.f32.mrf.mxu1 }
 0x471   : > { %v10979_v59 = vpop.f32.mrf.mxu0  ;;  %v10811_v29 = vadd.f32 %v10682_v30, %v18099_v36 }
 0x472   : > { %v12379_v49 = vpack.c.bf16 %v11200_v23, %v11200_v23  ;;  %v11198_v52 = vmax.f32 %v11162_v41, 0.0  ;;  %v11165_v18 = vadd.f32 %v18189_v6, %v11122_v28  ;;  %v11120_v10 = vadd.f32 %v10979_v59, %v10807_v22  ;;  %v13888_v43 = vpop.f32.mrf.mxu1 }
 0x473   : > { %v13922_v34 = vpop.f32.mrf.mxu0  ;;  %v10816_v23 = vadd.f32 %v13888_v43, %v18102_v54 }
 0x474   : > { %11381 = vst.msk [vmem:[%s18199_s14 + $0x8] sm:$0xf] %vm11378_vm9, %v12379_v49  ;;  %v12377_v51 = vpack.c.bf16 %v11198_v52, %v11198_v52  ;;  %v11201_v9 = vmax.f32 %v11165_v18, 0.0  ;;  %v11125_v56 = vadd.f32 %v13922_v34, %v10812_v44  ;;  %v11163_v19 = vadd.f32 %v18189_v6, %v11120_v10  ;;  %v10695_v55 = vpop.f32.mrf.mxu1 }
 0x475   : > { %v10992_v7 = vpop.f32.mrf.mxu0  ;;  %v10814_v36 = vadd.f32 %v10695_v55, %v18105_v33 }
 0x476   : > { %11379 = vst.msk [vmem:[%s18199_s14] sm:$0xf] %vm11378_vm9, %v12377_v51  ;;  %v12380_v24 = vpack.c.bf16 %v11201_v9, %v11201_v9  ;;  %v11168_v27 = vadd.f32 %v18189_v6, %v11125_v56  ;;  %v11123_v3 = vadd.f32 %v10992_v7, %v10810_v35  ;;  %v11199_v8 = vmax.f32 %v11163_v19, 0.0  ;;  %v13889_v12 = vpop.f32.mrf.mxu1 }
 0x477   : > { %v13923_v16 = vpop.f32.mrf.mxu0  ;;  %v10817_v34 = vadd.f32 %v13889_v12, %v18108_v48 }
 0x478   : > { %11382 = vst.msk [vmem:[%s18199_s14 + $0xc] sm:$0xf] %vm11378_vm9, %v12380_v24  ;;  %v11204_v53 = vmax.f32 %v11168_v27, 0.0  ;;  %v11166_v39 = vadd.f32 %v18189_v6, %v11123_v3  ;;  %v11126_v20 = vadd.f32 %v13923_v16, %v10813_v14  ;;  %v12378_v15 = vpack.c.bf16 %v11199_v8, %v11199_v8  ;;  %v10698_v2 = vpop.f32.mrf.mxu1 }
 0x479   : > { %v10995_v1 = vpop.f32.mrf.mxu0  ;;  %v10815_v24 = vadd.f32 %v10698_v2, %v18111_v60 }
 0x47a   : > { %v12383_v41 = vpack.c.bf16 %v11204_v53, %v11204_v53  ;;  %v11202_v28 = vmax.f32 %v11166_v39, 0.0  ;;  %v11169_v22 = vadd.f32 %v18189_v6, %v11126_v20  ;;  %11380 = vst.msk [vmem:[%s18199_s14 + $0x4] sm:$0xf] %vm11378_vm9, %v12378_v15  ;;  %v11124_v59 = vadd.f32 %v10995_v1, %v10811_v29  ;;  %v13892_v30 = vpop.f32.mrf.mxu1 }
 0x47b   : > { %v13926_v44 = vpop.f32.mrf.mxu0  ;;  %v10820_v8 = vadd.f32 %v13892_v30, %v18114_v37 }
 0x47c   : > { %11385 = vst.msk [vmem:[%s18199_s14 + $0x18] sm:$0xf] %vm11378_vm9, %v12383_v41  ;;  %v12381_v49 = vpack.c.bf16 %v11202_v28, %v11202_v28  ;;  %v11205_v52 = vmax.f32 %v11169_v22, 0.0  ;;  %v11129_v18 = vadd.f32 %v13926_v44, %v10816_v23  ;;  %v11167_v54 = vadd.f32 %v18189_v6, %v11124_v59  ;;  %v10711_v19 = vpop.f32.mrf.mxu1 }
 0x47d   : > { %v11008_v10 = vpop.f32.mrf.mxu0  ;;  %v10818_v60 = vadd.f32 %v10711_v19, %v18117_v17 }
 0x47e   : > { %11383 = vst.msk [vmem:[%s18199_s14 + $0x10] sm:$0xf] %vm11378_vm9, %v12381_v49  ;;  %v12384_v35 = vpack.c.bf16 %v11205_v52, %v11205_v52  ;;  %v11172_v51 = vadd.f32 %v18189_v6, %v11129_v18  ;;  %v11127_v9 = vadd.f32 %v11008_v10, %v10814_v36  ;;  %v11203_v56 = vmax.f32 %v11167_v54, 0.0  ;;  %v13893_v3 = vpop.f32.mrf.mxu1 }
 0x47f   : > { %v13927_v43 = vpop.f32.mrf.mxu0  ;;  %v10821_v28 = vadd.f32 %v13893_v3, %v18120_v62 }
 0x480   : > { %11386 = vst.msk [vmem:[%s18199_s14 + $0x1c] sm:$0xf] %vm11378_vm9, %v12384_v35  ;;  %v11208_v33 = vmax.f32 %v11172_v51, 0.0  ;;  %v11170_v7 = vadd.f32 %v18189_v6, %v11127_v9  ;;  %v11130_v14 = vadd.f32 %v13927_v43, %v10817_v34  ;;  %v12382_v27 = vpack.c.bf16 %v11203_v56, %v11203_v56  ;;  %v10714_v39 = vpop.f32.mrf.mxu1 }
 0x481   : > { %v11011_v48 = vpop.f32.mrf.mxu0  ;;  %v10819_v54 = vadd.f32 %v10714_v39, %v18123_v31 }
 0x482   : > { %v12387_v55 = vpack.c.bf16 %v11208_v33, %v11208_v33  ;;  %v11206_v16 = vmax.f32 %v11170_v7, 0.0  ;;  %v11173_v53 = vadd.f32 %v18189_v6, %v11130_v14  ;;  %11384 = vst.msk [vmem:[%s18199_s14 + $0x14] sm:$0xf] %vm11378_vm9, %v12382_v27  ;;  %v11128_v20 = vadd.f32 %v11011_v48, %v10815_v24  ;;  %v13896_v23 = vpop.f32.mrf.mxu1 }
 0x483   : > { %v13930_v29 = vpop.f32.mrf.mxu0  ;;  %v10824_v34 = vadd.f32 %v13896_v23, %v18126_v61 }
 0x484   : > { %11389 = vst.msk [vmem:[%s18199_s14 + $0x28] sm:$0xf] %vm11378_vm9, %v12387_v55  ;;  %v12385_v15 = vpack.c.bf16 %v11206_v16, %v11206_v16  ;;  %v11209_v12 = vmax.f32 %v11173_v53, 0.0  ;;  %v11133_v1 = vadd.f32 %v13930_v29, %v10820_v8  ;;  %v11171_v37 = vadd.f32 %v18189_v6, %v11128_v20  ;;  %v10727_v36 = vpop.f32.mrf.mxu1 }
 0x485   : > { %v11024_v41 = vpop.f32.mrf.mxu0  ;;  %v10822_v31 = vadd.f32 %v10727_v36, %v18129_v5 }
 0x486   : > { %11387 = vst.msk [vmem:[%s18199_s14 + $0x20] sm:$0xf] %vm11378_vm9, %v12385_v15  ;;  %v12388_v22 = vpack.c.bf16 %v11209_v12, %v11209_v12  ;;  %v11176_v2 = vadd.f32 %v18189_v6, %v11133_v1  ;;  %v11131_v59 = vadd.f32 %v11024_v41, %v10818_v60  ;;  %v11207_v44 = vmax.f32 %v11171_v37, 0.0  ;;  %v13897_v10 = vpop.f32.mrf.mxu1 }
 0x487   : > { %v13931_v49 = vpop.f32.mrf.mxu0  ;;  %v10825_v3 = vadd.f32 %v13897_v10, %v18132_v58 }
 0x488   : > { %11390 = vst.msk [vmem:[%s18199_s14 + $0x2c] sm:$0xf] %vm11378_vm9, %v12388_v22  ;;  %v11212_v17 = vmax.f32 %v11176_v2, 0.0  ;;  %v11174_v52 = vadd.f32 %v18189_v6, %v11131_v59  ;;  %v11134_v18 = vadd.f32 %v13931_v49, %v10821_v28  ;;  %v12386_v30 = vpack.c.bf16 %v11207_v44, %v11207_v44  ;;  %v10730_v56 = vpop.f32.mrf.mxu1 }
 0x489   : > { %v11027_v62 = vpop.f32.mrf.mxu0  ;;  %v10823_v60 = vadd.f32 %v10730_v56, %v18135_v47 }
 0x48a   : > { %v12391_v35 = vpack.c.bf16 %v11212_v17, %v11212_v17  ;;  %v11210_v51 = vmax.f32 %v11174_v52, 0.0  ;;  %v11177_v9 = vadd.f32 %v18189_v6, %v11134_v18  ;;  %11388 = vst.msk [vmem:[%s18199_s14 + $0x24] sm:$0xf] %vm11378_vm9, %v12386_v30  ;;  %v11132_v19 = vadd.f32 %v11027_v62, %v10819_v54  ;;  %v13900_v24 = vpop.f32.mrf.mxu1 }
 0x48b   : > { %v13934_v43 = vpop.f32.mrf.mxu0  ;;  %v10828_v1 = vadd.f32 %v13900_v24, %v18138_v4 }
 0x48c   : > { %11393 = vst.msk [vmem:[%s18199_s14 + $0x38] sm:$0xf] %vm11378_vm9, %v12391_v35  ;;  %v12389_v33 = vpack.c.bf16 %v11210_v51, %v11210_v51  ;;  %v11213_v7 = vmax.f32 %v11177_v9, 0.0  ;;  %v11137_v14 = vadd.f32 %v13934_v43, %v10824_v34  ;;  %v11175_v61 = vadd.f32 %v18189_v6, %v11132_v19  ;;  %v10743_v53 = vpop.f32.mrf.mxu1 }
 0x48d   : > { %v11040_v27 = vpop.f32.mrf.mxu0  ;;  %v10826_v47 = vadd.f32 %v10743_v53, %v18141_v26 }
 0x48e   : > { %11391 = vst.msk [vmem:[%s18199_s14 + $0x30] sm:$0xf] %vm11378_vm9, %v12389_v33  ;;  %v12392_v48 = vpack.c.bf16 %v11213_v7, %v11213_v7  ;;  %v11180_v8 = vadd.f32 %v18189_v6, %v11137_v14  ;;  %v11135_v55 = vadd.f32 %v11040_v27, %v10822_v31  ;;  %v11211_v16 = vmax.f32 %v11175_v61, 0.0  ;;  %v13901_v12 = vpop.f32.mrf.mxu1 }
 0x48f   : > { %v13935_v39 = vpop.f32.mrf.mxu0  ;;  %v10829_v52 = vadd.f32 %v13901_v12, %v18144_v38 }
 0x490   : > { %11394 = vst.msk [vmem:[%s18199_s14 + $0x3c] sm:$0xf] %vm11378_vm9, %v12392_v48  ;;  %v11216_v5 = vmax.f32 %v11180_v8, 0.0  ;;  %v11178_v20 = vadd.f32 %v18189_v6, %v11135_v55  ;;  %v11138_v29 = vadd.f32 %v13935_v39, %v10825_v3  ;;  %v12390_v15 = vpack.c.bf16 %v11211_v16, %v11211_v16  ;;  %v10746_v28 = vpop.f32.mrf.mxu1 }
 0x491   : > { %v11043_v58 = vpop.f32.mrf.mxu0  ;;  %v10827_v9 = vadd.f32 %v10746_v28, %v18147_v57 }
 0x492   : > { %v12395_v37 = vpack.c.bf16 %v11216_v5, %v11216_v5  ;;  %v11214_v23 = vmax.f32 %v11178_v20, 0.0  ;;  %v11181_v41 = vadd.f32 %v18189_v6, %v11138_v29  ;;  %11392 = vst.msk [vmem:[%s18199_s14 + $0x34] sm:$0xf] %vm11378_vm9, %v12390_v15  ;;  %v11136_v22 = vadd.f32 %v11043_v58, %v10823_v60  ;;  %v13904_v49 = vpop.f32.mrf.mxu1 }
 0x493   : > { %v13938_v2 = vpop.f32.mrf.mxu0  ;;  %v10832_v43 = vadd.f32 %v13904_v49, %v18150_v21 }
 0x494   : > { %11397 = vst.msk [vmem:[%s18199_s14 + $0x48] sm:$0xf] %vm11378_vm9, %v12395_v37  ;;  %v12393_v59 = vpack.c.bf16 %v11214_v23, %v11214_v23  ;;  %v11217_v44 = vmax.f32 %v11181_v41, 0.0  ;;  %v11141_v36 = vadd.f32 %v13938_v2, %v10828_v1  ;;  %v11179_v4 = vadd.f32 %v18189_v6, %v11136_v22  ;;  %v10759_v62 = vpop.f32.mrf.mxu1 }
 0x495   : > { %v11056_v17 = vpop.f32.mrf.mxu0  ;;  %v10830_v57 = vadd.f32 %v10759_v62, %v18153_v42 }
 0x496   : > { %11395 = vst.msk [vmem:[%s18199_s14 + $0x40] sm:$0xf] %vm11378_vm9, %v12393_v59  ;;  %v12396_v18 = vpack.c.bf16 %v11217_v44, %v11217_v44  ;;  %v11184_v54 = vadd.f32 %v18189_v6, %v11141_v36  ;;  %v11139_v30 = vadd.f32 %v11056_v17, %v10826_v47  ;;  %v11215_v10 = vmax.f32 %v11179_v4, 0.0  ;;  %v13905_v19 = vpop.f32.mrf.mxu1 }
 0x497   : > { %v13939_v34 = vpop.f32.mrf.mxu0  ;;  %v10833_v16 = vadd.f32 %v13905_v19, %v18156_v32 }
 0x498   : > { %11398 = vst.msk [vmem:[%s18199_s14 + $0x4c] sm:$0xf] %vm11378_vm9, %v12396_v18  ;;  %v11220_v26 = vmax.f32 %v11184_v54, 0.0  ;;  %v11182_v35 = vadd.f32 %v18189_v6, %v11139_v30  ;;  %v11142_v51 = vadd.f32 %v13939_v34, %v10829_v52  ;;  %v12394_v56 = vpack.c.bf16 %v11215_v10, %v11215_v10  ;;  %v10762_v14 = vpop.f32.mrf.mxu1 }
 0x499   : > { %v11059_v38 = vpop.f32.mrf.mxu0  ;;  %v10831_v58 = vadd.f32 %v10762_v14, %v18159_v46 }
 0x49a   : > { %v12399_v31 = vpack.c.bf16 %v11220_v26, %v11220_v26  ;;  %v11218_v33 = vmax.f32 %v11182_v35, 0.0  ;;  %v11185_v7 = vadd.f32 %v18189_v6, %v11142_v51  ;;  %11396 = vst.msk [vmem:[%s18199_s14 + $0x44] sm:$0xf] %vm11378_vm9, %v12394_v56  ;;  %v11140_v61 = vadd.f32 %v11059_v38, %v10827_v9  ;;  %v13908_v8 = vpop.f32.mrf.mxu1 }
 0x49b   : > { %v13942_v24 = vpop.f32.mrf.mxu0  ;;  %v10836_v23 = vadd.f32 %v13908_v8, %v18162_v0 }
 0x49c   : > { %11401 = vst.msk [vmem:[%s18199_s14 + $0x58] sm:$0xf] %vm11378_vm9, %v12399_v31  ;;  %v12397_v27 = vpack.c.bf16 %v11218_v33, %v11218_v33  ;;  %v11221_v3 = vmax.f32 %v11185_v7, 0.0  ;;  %v11145_v48 = vadd.f32 %v13942_v24, %v10832_v43  ;;  %v11183_v21 = vadd.f32 %v18189_v6, %v11140_v61  ;;  %v10775_v29 = vpop.f32.mrf.mxu1 }
 0x49d   : > { %v11072_v55 = vpop.f32.mrf.mxu0  ;;  %v10834_v46 = vadd.f32 %v10775_v29, %v18165_v40 }
 0x49e   : > { %11399 = vst.msk [vmem:[%s18199_s14 + $0x50] sm:$0xf] %vm11378_vm9, %v12397_v27  ;;  %v12400_v53 = vpack.c.bf16 %v11221_v3, %v11221_v3  ;;  %v11188_v39 = vadd.f32 %v18189_v6, %v11145_v48  ;;  %v11143_v5 = vadd.f32 %v11072_v55, %v10830_v57  ;;  %v11219_v20 = vmax.f32 %v11183_v21, 0.0  ;;  %v13909_v37 = vpop.f32.mrf.mxu1 }
 0x49f   : > { %v13943_v60 = vpop.f32.mrf.mxu0  ;;  %v10837_v52 = vadd.f32 %v13909_v37, %v18169_v63 }
 0x4a0   : > { %11402 = vst.msk [vmem:[%s18199_s14 + $0x5c] sm:$0xf] %vm11378_vm9, %v12400_v53  ;;  %v11224_v42 = vmax.f32 %v11188_v39, 0.0  ;;  %v11186_v15 = vadd.f32 %v18189_v6, %v11143_v5  ;;  %v11146_v12 = vadd.f32 %v13943_v60, %v10833_v16  ;;  %v12398_v1 = vpack.c.bf16 %v11219_v20, %v11219_v20  ;;  %v10778_v2 = vpop.f32.mrf.mxu1 }
 0x4a1   : > { %v11075_v32 = vpop.f32.mrf.mxu0  ;;  %v10835_v51 = vadd.f32 %v10778_v2, %v18172_v25 }
 0x4a2   : > { %v12403_v41 = vpack.c.bf16 %v11224_v42, %v11224_v42  ;;  %v11222_v28 = vmax.f32 %v11186_v15, 0.0  ;;  %v11189_v22 = vadd.f32 %v18189_v6, %v11146_v12  ;;  %11400 = vst.msk [vmem:[%s18199_s14 + $0x54] sm:$0xf] %vm11378_vm9, %v12398_v1  ;;  %v11144_v47 = vadd.f32 %v11075_v32, %v10831_v58  ;;  %v13912_v49 = vpop.f32.mrf.mxu1 }
 0x4a3   : > { %v13946_v59 = vpop.f32.mrf.mxu0  ;;  %v10840_v19 = vadd.f32 %v13912_v49, %v18176_v50 }
 0x4a4   : > { %11405 = vst.msk [vmem:[%s18199_s14 + $0x68] sm:$0xf] %vm11378_vm9, %v12403_v41  ;;  %v12401_v44 = vpack.c.bf16 %v11222_v28, %v11222_v28  ;;  %v11225_v36 = vmax.f32 %v11189_v22, 0.0  ;;  %v11149_v4 = vadd.f32 %v13946_v59, %v10836_v23  ;;  %v11187_v0 = vadd.f32 %v18189_v6, %v11144_v47  ;;  %v10791_v62 = vpop.f32.mrf.mxu1 }
 0x4a5   : > { %v11088_v17 = vpop.f32.mrf.mxu0  ;;  %v10838_v14 = vadd.f32 %v10791_v62, %v18178_v45 }
 0x4a6   : > { %11403 = vst.msk [vmem:[%s18199_s14 + $0x60] sm:$0xf] %vm11378_vm9, %v12401_v44  ;;  %v12404_v18 = vpack.c.bf16 %v11225_v36, %v11225_v36  ;;  %v11192_v54 = vadd.f32 %v18189_v6, %v11149_v4  ;;  %v11147_v30 = vadd.f32 %v11088_v17, %v10834_v46  ;;  %v11223_v10 = vmax.f32 %v11187_v0, 0.0  ;;  %v13913_v56 = vpop.f32.mrf.mxu1 }
 0x4a7   : > { %v13947_v34 = vpop.f32.mrf.mxu0  ;;  %v10841_v3 = vadd.f32 %v13913_v56, %v18181_v11 }
 0x4a8   : > { %11406 = vst.msk [vmem:[%s18199_s14 + $0x6c] sm:$0xf] %vm11378_vm9, %v12404_v18  ;;  %v11228_v40 = vmax.f32 %v11192_v54, 0.0  ;;  %v11190_v26 = vadd.f32 %v18189_v6, %v11147_v30  ;;  %v11150_v35 = vadd.f32 %v13947_v34, %v10837_v52  ;;  %v12402_v9 = vpack.c.bf16 %v11223_v10, %v11223_v10  ;;  %v10794_v57 = vpop.f32.mrf.mxu1 }
 0x4a9   : > { %v11091_v63 = vpop.f32.mrf.mxu0  ;;  %v10839_v45 = vadd.f32 %v10794_v57, %v18184_v13 }
 0x4aa   : > { %v12407_v38 = vpack.c.bf16 %v11228_v40, %v11228_v40  ;;  %v11226_v43 = vmax.f32 %v11190_v26, 0.0  ;;  %v11193_v31 = vadd.f32 %v18189_v6, %v11150_v35  ;;  %11404 = vst.msk [vmem:[%s18199_s14 + $0x64] sm:$0xf] %vm11378_vm9, %v12402_v9  ;;  %v11148_v33 = vadd.f32 %v11091_v63, %v10835_v51 }
 0x4ab   : > { %v13950_v7 = vpop.f32.mrf.mxu0 }
 0x4ac   : > { %11409 = vst.msk [vmem:[%s18199_s14 + $0x78] sm:$0xf] %vm11378_vm9, %v12407_v38  ;;  %v12405_v25 = vpack.c.bf16 %v11226_v43, %v11226_v43  ;;  %v11229_v61 = vmax.f32 %v11193_v31, 0.0  ;;  %v11153_v24 = vadd.f32 %v13950_v7, %v10840_v19  ;;  %v11191_v27 = vadd.f32 %v18189_v6, %v11148_v33 }
 0x4ad   : > { %v11104_v50 = vpop.f32.mrf.mxu0 }
 0x4ae   : > { %11407 = vst.msk [vmem:[%s18199_s14 + $0x70] sm:$0xf] %vm11378_vm9, %v12405_v25  ;;  %v12408_v48 = vpack.c.bf16 %v11229_v61, %v11229_v61  ;;  %v11196_v21 = vadd.f32 %v18189_v6, %v11153_v24  ;;  %v11151_v8 = vadd.f32 %v11104_v50, %v10838_v14  ;;  %v11227_v55 = vmax.f32 %v11191_v27, 0.0 }
 0x4af   : > { %v13951_v16 = vpop.f32.mrf.mxu0 }
 0x4b0   : > { %11410 = vst.msk [vmem:[%s18199_s14 + $0x7c] sm:$0xf] %vm11378_vm9, %v12408_v48  ;;  %v11232_v53 = vmax.f32 %v11196_v21, 0.0  ;;  %v11194_v39 = vadd.f32 %v18189_v6, %v11151_v8  ;;  %v11154_v5 = vadd.f32 %v13951_v16, %v10841_v3  ;;  %v12406_v20 = vpack.c.bf16 %v11227_v55, %v11227_v55 }
 0x4b1   : > { %v11107_v11 = vpop.f32.mrf.mxu0 }
 0x4b2   : > { %v12411_v29 = vpack.c.bf16 %v11232_v53, %v11232_v53  ;;  %v11230_v60 = vmax.f32 %v11194_v39, 0.0  ;;  %v11197_v42 = vadd.f32 %v18189_v6, %v11154_v5  ;;  %v11152_v15 = vadd.f32 %v11107_v11, %v10839_v45  ;;  %11408 = vst.msk [vmem:[%s18199_s14 + $0x74] sm:$0xf] %vm11378_vm9, %v12406_v20 }
 0x4b4   : > { %11413 = vst.msk [vmem:[%s18199_s14 + $0x88] sm:$0xf] %vm11378_vm9, %v12411_v29  ;;  %v12409_v12 = vpack.c.bf16 %v11230_v60, %v11230_v60  ;;  %v11233_v58 = vmax.f32 %v11197_v42, 0.0  ;;  %v11195_v13 = vadd.f32 %v18189_v6, %v11152_v15 }
 0x4b6   : > { %11411 = vst.msk [vmem:[%s18199_s14 + $0x80] sm:$0xf] %vm11378_vm9, %v12409_v12  ;;  %v12412_v1 = vpack.c.bf16 %v11233_v58, %v11233_v58  ;;  %v11231_v37 = vmax.f32 %v11195_v13, 0.0 }
 0x4b8   : > { %11414 = vst.msk [vmem:[%s18199_s14 + $0x8c] sm:$0xf] %vm11378_vm9, %v12412_v1  ;;  %v12410_v32 = vpack.c.bf16 %v11231_v37, %v11231_v37 }
 0x4ba   : > { %11412 = vst.msk [vmem:[%s18199_s14 + $0x84] sm:$0xf] %vm11378_vm9, %v12410_v32 }
 0x4bb PF: > { %s15_s22 = sadd.s32 1, %s14261_s22   ;;  %s18639_s18 = smov %s14253_s20 }
 0x4bc   : > { %p12_p10 = scmp.ge.s32.totalorder %s15_s22, 18   ;;  %s18640_s19 = smov %s14257_s21 }
 0x4bd   : > { %s18641_s20 = smov %s18644_s23  ;;  %s18642_s21 = smov %s18648_s24 }
 0x4be   :  { %14 = sbr.rel (!%p12_p10) target bundleno = 3 (0x3), region = 108 }

</bundles_post_ra>
